<compile_context>
chip_gen: v7x
topology: tpu7x:2x2x1
jax: 0.10.0
libtpu: 0.0.40
codegen_flags: <defaults>
</compile_context>

<pallas_src>
import functools

import jax
import jax.numpy as jnp
import numpy as np
from jax.experimental import pallas as pl
from jax.experimental.pallas import tpu as pltpu


def _round_up(x, m):
    return ((x + m - 1) // m) * m


# ----------------------------------------------------------------------------
# Pallas kernel: fused (patches @ folded-weights) + bias, ReLU
# ----------------------------------------------------------------------------
def _matmul_bias_relu_kernel(p_ref, w_ref, b_ref, o_ref):
    acc = jnp.dot(p_ref[...], w_ref[...], preferred_element_type=jnp.float32)
    o_ref[...] = jnp.maximum(acc + b_ref[...], 0.0)


def _matmul_bias_relu(lhs, wm, bias):
    """lhs: (M, K) f32, wm: (K, Cout) f32 (BN scale already folded), bias: (Cout,).

    Casts operands to bf16 (MXU-native), accumulates in f32, returns (M, Cout) f32.
    """
    m, kdim = lhs.shape
    cout = wm.shape[1]

    # Lane-dense output: pad Cout to a multiple of 128 with zero weight/bias
    # columns (sliced off afterwards) so stores are unmasked.
    cout_pad = _round_up(cout, 128)

    # Pad M only to the bf16 sublane granularity (16).  Give the grid >= 2
    # "parallel" steps over M when M allows so both v7x TensorCores are used.
    sub = 16
    grid_m = 2 if m >= 2 * sub else 1
    m_pad = _round_up(m, sub * grid_m)
    tm = m_pad // grid_m

    lhs_p = jnp.pad(lhs, ((0, m_pad - m), (0, 0))).astype(jnp.bfloat16)
    wm_p = jnp.pad(wm, ((0, 0), (0, cout_pad - cout))).astype(jnp.bfloat16)
    bias_p = jnp.pad(bias, (0, cout_pad - cout)).reshape(1, cout_pad)
    bias_p = bias_p.astype(jnp.float32)

    out = pl.pallas_call(
        _matmul_bias_relu_kernel,
        out_shape=jax.ShapeDtypeStruct((m_pad, cout_pad), jnp.float32),
        grid=(grid_m,),
        in_specs=[
            pl.BlockSpec((tm, kdim), lambda i: (i, 0)),
            pl.BlockSpec((kdim, cout_pad), lambda i: (0, 0)),  # resident weights
            pl.BlockSpec((1, cout_pad), lambda i: (0, 0)),
        ],
        out_specs=pl.BlockSpec((tm, cout_pad), lambda i: (i, 0)),
        compiler_params=pltpu.CompilerParams(
            dimension_semantics=("parallel",)),
    )(lhs_p, wm_p, bias_p)
    return out[:m, :cout]


# ----------------------------------------------------------------------------
# Glue: im2col patch extraction (plain JAX slices; tiny at these shapes)
# ----------------------------------------------------------------------------
def _extract_patches(x_nhwc, ksize, stride):
    """x: (N,H,W,C) -> patches (N*Ho*Wo, ksize*ksize*C), ordered (kh, kw, C)."""
    n, h, w, c = x_nhwc.shape
    ho = (h - ksize) // stride + 1
    wo = (w - ksize) // stride + 1
    cols = []
    for kh in range(ksize):
        for kw in range(ksize):
            cols.append(
                x_nhwc[:,
                       kh:kh + stride * (ho - 1) + 1:stride,
                       kw:kw + stride * (wo - 1) + 1:stride, :])
    p = jnp.stack(cols, axis=3)                       # (N, Ho, Wo, k*k, C)
    return p.reshape(n * ho * wo, ksize * ksize * c), (n, ho, wo)


# ----------------------------------------------------------------------------
# Conv + BN + ReLU wrappers (matmul hot path in Pallas)
# ----------------------------------------------------------------------------
def conv_bn_relu(x_nhwc, w, scale, bias, *, stride, padding):
    """w: (kh, kw, Cin, Cout); scale/bias: (Cout,). Returns NHWC float32."""
    k = w.shape[0]
    cout = w.shape[-1]
    if padding > 0:
        x_nhwc = jnp.pad(
            x_nhwc, ((0, 0), (padding, padding), (padding, padding), (0, 0)))
    patches, (n, ho, wo) = _extract_patches(x_nhwc, k, stride)
    kdim = patches.shape[1]
    wm = w.reshape(kdim, cout) * scale[None, :]   # fold BN scale into weights
    out = _matmul_bias_relu(patches, wm, bias)
    return out.reshape(n, ho, wo, cout)


def conv1x1_bn_relu_fused(x_nhwc, branch_params):
    """Several 1x1 conv+BN+ReLU sharing the same input, fused into ONE matmul."""
    n, h, w, c = x_nhwc.shape
    wms, biases, couts = [], [], []
    for p in branch_params:
        cout = p["w"].shape[-1]
        wms.append(p["w"].reshape(c, cout) * p["scale"][None, :])
        biases.append(p["bias"])
        couts.append(cout)
    wm = jnp.concatenate(wms, axis=1)      # (1088, 768) -> lane-dense Cout
    bias = jnp.concatenate(biases)
    y = _matmul_bias_relu(x_nhwc.reshape(n * h * w, c), wm, bias)
    outs, off = [], 0
    for cout in couts:
        outs.append(y[:, off:off + cout].reshape(n, h, w, cout))
        off += cout
    return outs


# ----------------------------------------------------------------------------
# MaxPool2d(3, stride=2), VALID — plain-JAX pairwise max tree (memory-bound;
# a Pallas kernel here only adds HBM round trips and a launch).
# ----------------------------------------------------------------------------
def maxpool3x3_s2(x_nhwc):
    n, h, w, c = x_nhwc.shape
    ho = (h - 3) // 2 + 1
    wo = (w - 3) // 2 + 1
    out = None
    for kh in range(3):
        for kw in range(3):
            sl = x_nhwc[:, kh:kh + 2 * (ho - 1) + 1:2,
                        kw:kw + 2 * (wo - 1) + 1:2, :]
            out = sl if out is None else jnp.maximum(out, sl)
    return out


# ----------------------------------------------------------------------------
# Parameter construction (deterministic, synthetic)
# ----------------------------------------------------------------------------
def make_basic_conv_params(key, cin, cout, ksize):
    ks = jax.random.split(key, 5)
    fan_in = ksize * ksize * cin
    w = jax.random.normal(ks[0], (ksize, ksize, cin, cout),
                          jnp.float32) / np.sqrt(fan_in)
    gamma = jax.random.uniform(ks[1], (cout,), jnp.float32, 0.5, 1.5)
    beta = jax.random.normal(ks[2], (cout,), jnp.float32) * 0.1
    run_mean = jax.random.normal(ks[3], (cout,), jnp.float32) * 0.1
    run_var = jax.random.uniform(ks[4], (cout,), jnp.float32, 0.5, 1.5)
    scale = gamma / jnp.sqrt(run_var + 1e-3)     # BN eps = 0.001
    bias = beta - run_mean * scale
    return {"w": w, "scale": scale, "bias": bias}


def make_mixed_c_params(key):
    ks = jax.random.split(key, 7)
    return {
        # branch0: 1088->256 (1x1, s1), 256->384 (3x3, s2)
        "b0_0": make_basic_conv_params(ks[0], 1088, 256, 1),
        "b0_1": make_basic_conv_params(ks[1], 256, 384, 3),
        # branch1: 1088->256 (1x1, s1), 256->288 (3x3, s2)
        "b1_0": make_basic_conv_params(ks[2], 1088, 256, 1),
        "b1_1": make_basic_conv_params(ks[3], 256, 288, 3),
        # branch2: 1088->256 (1x1, s1), 256->288 (3x3, s1, p1), 288->320 (3x3, s2)
        "b2_0": make_basic_conv_params(ks[4], 1088, 256, 1),
        "b2_1": make_basic_conv_params(ks[5], 256, 288, 3),
        "b2_2": make_basic_conv_params(ks[6], 288, 320, 3),
    }


# ----------------------------------------------------------------------------
# Mixed_C forward
# ----------------------------------------------------------------------------
def mixed_c_forward(params, x_nchw):
    x = jnp.transpose(x_nchw, (0, 2, 3, 1))  # NCHW -> NHWC
    p = params

    # Three 1x1 stems share the same input: one fused (M,1088)x(1088,768) matmul.
    s0, s1, s2 = conv1x1_bn_relu_fused(x, [p["b0_0"], p["b1_0"], p["b2_0"]])

    y0 = conv_bn_relu(s0, p["b0_1"]["w"], p["b0_1"]["scale"], p["b0_1"]["bias"],
                      stride=2, padding=0)
    y1 = conv_bn_relu(s1, p["b1_1"]["w"], p["b1_1"]["scale"], p["b1_1"]["bias"],
                      stride=2, padding=0)
    y2 = conv_bn_relu(s2, p["b2_1"]["w"], p["b2_1"]["scale"], p["b2_1"]["bias"],
                      stride=1, padding=1)
    y2 = conv_bn_relu(y2, p["b2_2"]["w"], p["b2_2"]["scale"], p["b2_2"]["bias"],
                      stride=2, padding=0)
    y3 = maxpool3x3_s2(x)

    out = jnp.concatenate([y0, y1, y2, y3], axis=-1)  # channel concat
    return jnp.transpose(out, (0, 3, 1, 2))           # NHWC -> NCHW


# ----------------------------------------------------------------------------
# Pure-JAX references
# ----------------------------------------------------------------------------
def _ref_conv_f32(x, w, scale, bias, stride, padding):
    y = jax.lax.conv_general_dilated(
        x, w, window_strides=(stride, stride),
        padding=[(padding, padding), (padding, padding)],
        dimension_numbers=("NHWC", "HWIO", "NHWC"))
    return jnp.maximum(y * scale + bias, 0.0)


def _ref_conv_bf16(x, w, scale, bias, stride, padding):
    # Mirrors the Pallas operand rounding: fold scale in f32, cast to bf16,
    # accumulate in f32, add bias in f32.
    wf = (w * scale).astype(jnp.bfloat16)
    y = jax.lax.conv_general_dilated(
        x.astype(jnp.bfloat16), wf, window_strides=(stride, stride),
        padding=[(padding, padding), (padding, padding)],
        dimension_numbers=("NHWC", "HWIO", "NHWC"),
        preferred_element_type=jnp.float32)
    return jnp.maximum(y + bias, 0.0)


def _ref_forward(params, x_nchw, conv):
    x = jnp.transpose(x_nchw, (0, 2, 3, 1))
    p = params
    y0 = conv(x, p["b0_0"]["w"], p["b0_0"]["scale"], p["b0_0"]["bias"], 1, 0)
    y0 = conv(y0, p["b0_1"]["w"], p["b0_1"]["scale"], p["b0_1"]["bias"], 2, 0)
    y1 = conv(x, p["b1_0"]["w"], p["b1_0"]["scale"], p["b1_0"]["bias"], 1, 0)
    y1 = conv(y1, p["b1_1"]["w"], p["b1_1"]["scale"], p["b1_1"]["bias"], 2, 0)
    y2 = conv(x, p["b2_0"]["w"], p["b2_0"]["scale"], p["b2_0"]["bias"], 1, 0)
    y2 = conv(y2, p["b2_1"]["w"], p["b2_1"]["scale"], p["b2_1"]["bias"], 1, 1)
    y2 = conv(y2, p["b2_2"]["w"], p["b2_2"]["scale"], p["b2_2"]["bias"], 2, 0)
    y3 = jax.lax.reduce_window(x, -jnp.inf, jax.lax.max,
                               (1, 3, 3, 1), (1, 2, 2, 1), "VALID")
    out = jnp.concatenate([y0, y1, y2, y3], axis=-1)
    return jnp.transpose(out, (0, 3, 1, 2))


# ----------------------------------------------------------------------------
if __name__ == "__main__":
    key = jax.random.PRNGKey(0)
    k_param, k_x = jax.random.split(key)

    params = make_mixed_c_params(k_param)

    # Small spatial size; channel count (1088) is fixed by the module.
    N, C, H, W = 2, 1088, 9, 9
    x = jax.random.normal(k_x, (N, C, H, W), jnp.float32)

    fwd = jax.jit(functools.partial(mixed_c_forward, params))
    out = jax.block_until_ready(fwd(x))

    # Expected output: channels 384 + 288 + 320 + 1088 = 2080, spatial 4x4.
    assert out.shape == (N, 2080, 4, 4), out.shape

    # Tight check vs. a reference using the same bf16 operand rounding.
    ref_bf16 = jax.block_until_ready(_ref_forward(params, x, _ref_conv_bf16))
    np.testing.assert_allclose(np.asarray(out), np.asarray(ref_bf16),
                               rtol=2e-2, atol=2e-2)

    # Loose sanity check vs. the pure-f32 module semantics (bf16 operand
    # rounding is the only deviation; accumulation is f32).
    ref_f32 = jax.block_until_ready(_ref_forward(params, x, _ref_conv_f32))
    np.testing.assert_allclose(np.asarray(out), np.asarray(ref_f32),
                               rtol=1e-1, atol=1e-1)

    print("KERNEL_OK")
</pallas_src>

<mosaic_0001>
module attributes {stable_mosaic.version = 11 : i64} {
  func.func @_matmul_bias_relu_kernel(%arg0: i32, %arg1: memref<96x1088xbf16, #tpu.memory_space<vmem>>, %arg2: memref<1088x768xbf16, #tpu.memory_space<vmem>>, %arg3: memref<1x768xf32, #tpu.memory_space<vmem>>, %arg4: memref<96x768xf32, #tpu.memory_space<vmem>>) attributes {dimension_semantics = [#tpu.dimension_semantics<parallel>], iteration_bounds = array<i64: 2>, scalar_prefetch = 0 : i64, scratch_operands = 0 : i64, tpu.core_type = #tpu.core_type<tc>, window_params = [{transform_indices = @transform_0, window_bounds = array<i64: 96, 1088>}, {pipeline_mode = #tpu.pipeline_mode<synchronous>, transform_indices = @transform_1, window_bounds = array<i64: 1088, 768>}, {pipeline_mode = #tpu.pipeline_mode<synchronous>, transform_indices = @transform_2, window_bounds = array<i64: 1, 768>}, {transform_indices = @transform_3, window_bounds = array<i64: 96, 768>}]} {
    %c0 = arith.constant 0 : index
    %c0_0 = arith.constant 0 : index
    %0 = vector.load %arg1[%c0, %c0_0] : memref<96x1088xbf16, #tpu.memory_space<vmem>>, vector<96x1088xbf16>
    %c0_1 = arith.constant 0 : index
    %c0_2 = arith.constant 0 : index
    %1 = vector.load %arg2[%c0_1, %c0_2] : memref<1088x768xbf16, #tpu.memory_space<vmem>>, vector<1088x768xbf16>
    %cst = arith.constant dense<0.000000e+00> : vector<96x768xf32>
    %2 = tpu.matmul %0, %1, %cst {dimension_numbers = #tpu.dot_dimension_numbers<[1], [0], [0], [1], [0, 0, 1, 1], [], []>} : vector<96x1088xbf16>, vector<1088x768xbf16>, vector<96x768xf32> -> vector<96x768xf32>
    %c0_3 = arith.constant 0 : index
    %c0_4 = arith.constant 0 : index
    %3 = vector.load %arg3[%c0_3, %c0_4] : memref<1x768xf32, #tpu.memory_space<vmem>>, vector<1x768xf32>
    %4 = vector.broadcast %3 : vector<1x768xf32> to vector<96x768xf32>
    %5 = arith.addf %2, %4 : vector<96x768xf32>
    %cst_5 = arith.constant 0.000000e+00 : f32
    %6 = vector.broadcast %cst_5 : f32 to vector<96x768xf32>
    %7 = arith.maximumf %5, %6 : vector<96x768xf32>
    %c0_6 = arith.constant 0 : index
    %c0_7 = arith.constant 0 : index
    %8 = vector.load %arg4[%c0_6, %c0_7] : memref<96x768xf32, #tpu.memory_space<vmem>>, vector<96x768xf32>
    tpu.vector_store %arg4[%c0_6, %c0_7], %7 {strides = array<i32>} : memref<96x768xf32, #tpu.memory_space<vmem>>, vector<96x768xf32>,
    return
  }
  func.func @transform_0(%arg0: i32) -> (i32, i32) {
    %c0_i32 = arith.constant 0 : i32
    %c0_i32_0 = arith.constant 0 : i32
    return %arg0, %c0_i32 : i32, i32
  }
  func.func @transform_1(%arg0: i32) -> (i32, i32) {
    %c0_i32 = arith.constant 0 : i32
    %c0_i32_0 = arith.constant 0 : i32
    %c0_i32_1 = arith.constant 0 : i32
    return %c0_i32, %c0_i32_0 : i32, i32
  }
  func.func @transform_2(%arg0: i32) -> (i32, i32) {
    %c0_i32 = arith.constant 0 : i32
    %c0_i32_0 = arith.constant 0 : i32
    %c0_i32_1 = arith.constant 0 : i32
    return %c0_i32, %c0_i32_0 : i32, i32
  }
  func.func @transform_3(%arg0: i32) -> (i32, i32) {
    %c0_i32 = arith.constant 0 : i32
    %c0_i32_0 = arith.constant 0 : i32
    return %arg0, %c0_i32 : i32, i32
  }
}

module attributes {stable_mosaic.version = 11 : i64} {
  func.func @_matmul_bias_relu_kernel(%arg0: i32, %arg1: memref<16x2304xbf16, #tpu.memory_space<vmem>>, %arg2: memref<2304x384xbf16, #tpu.memory_space<vmem>>, %arg3: memref<1x384xf32, #tpu.memory_space<vmem>>, %arg4: memref<16x384xf32, #tpu.memory_space<vmem>>) attributes {dimension_semantics = [#tpu.dimension_semantics<parallel>], iteration_bounds = array<i64: 2>, scalar_prefetch = 0 : i64, scratch_operands = 0 : i64, tpu.core_type = #tpu.core_type<tc>, window_params = [{transform_indices = @transform_0, window_bounds = array<i64: 16, 2304>}, {pipeline_mode = #tpu.pipeline_mode<synchronous>, transform_indices = @transform_1, window_bounds = array<i64: 2304, 384>}, {pipeline_mode = #tpu.pipeline_mode<synchronous>, transform_indices = @transform_2, window_bounds = array<i64: 1, 384>}, {transform_indices = @transform_3, window_bounds = array<i64: 16, 384>}]} {
    %c0 = arith.constant 0 : index
    %c0_0 = arith.constant 0 : index
    %0 = vector.load %arg1[%c0, %c0_0] : memref<16x2304xbf16, #tpu.memory_space<vmem>>, vector<16x2304xbf16>
    %c0_1 = arith.constant 0 : index
    %c0_2 = arith.constant 0 : index
    %1 = vector.load %arg2[%c0_1, %c0_2] : memref<2304x384xbf16, #tpu.memory_space<vmem>>, vector<2304x384xbf16>
    %cst = arith.constant dense<0.000000e+00> : vector<16x384xf32>
    %2 = tpu.matmul %0, %1, %cst {dimension_numbers = #tpu.dot_dimension_numbers<[1], [0], [0], [1], [0, 0, 1, 1], [], []>} : vector<16x2304xbf16>, vector<2304x384xbf16>, vector<16x384xf32> -> vector<16x384xf32>
    %c0_3 = arith.constant 0 : index
    %c0_4 = arith.constant 0 : index
    %3 = vector.load %arg3[%c0_3, %c0_4] : memref<1x384xf32, #tpu.memory_space<vmem>>, vector<1x384xf32>
    %4 = vector.broadcast %3 : vector<1x384xf32> to vector<16x384xf32>
    %5 = arith.addf %2, %4 : vector<16x384xf32>
    %cst_5 = arith.constant 0.000000e+00 : f32
    %6 = vector.broadcast %cst_5 : f32 to vector<16x384xf32>
    %7 = arith.maximumf %5, %6 : vector<16x384xf32>
    %c0_6 = arith.constant 0 : index
    %c0_7 = arith.constant 0 : index
    %8 = vector.load %arg4[%c0_6, %c0_7] : memref<16x384xf32, #tpu.memory_space<vmem>>, vector<16x384xf32>
    tpu.vector_store %arg4[%c0_6, %c0_7], %7 {strides = array<i32>} : memref<16x384xf32, #tpu.memory_space<vmem>>, vector<16x384xf32>,
    return
  }
  func.func @transform_0(%arg0: i32) -> (i32, i32) {
    %c0_i32 = arith.constant 0 : i32
    %c0_i32_0 = arith.constant 0 : i32
    return %arg0, %c0_i32 : i32, i32
  }
  func.func @transform_1(%arg0: i32) -> (i32, i32) {
    %c0_i32 = arith.constant 0 : i32
    %c0_i32_0 = arith.constant 0 : i32
    %c0_i32_1 = arith.constant 0 : i32
    return %c0_i32, %c0_i32_0 : i32, i32
  }
  func.func @transform_2(%arg0: i32) -> (i32, i32) {
    %c0_i32 = arith.constant 0 : i32
    %c0_i32_0 = arith.constant 0 : i32
    %c0_i32_1 = arith.constant 0 : i32
    return %c0_i32, %c0_i32_0 : i32, i32
  }
  func.func @transform_3(%arg0: i32) -> (i32, i32) {
    %c0_i32 = arith.constant 0 : i32
    %c0_i32_0 = arith.constant 0 : i32
    return %arg0, %c0_i32 : i32, i32
  }
}

module attributes {stable_mosaic.version = 11 : i64} {
  func.func @_matmul_bias_relu_kernel(%arg0: i32, %arg1: memref<96x2304xbf16, #tpu.memory_space<vmem>>, %arg2: memref<2304x384xbf16, #tpu.memory_space<vmem>>, %arg3: memref<1x384xf32, #tpu.memory_space<vmem>>, %arg4: memref<96x384xf32, #tpu.memory_space<vmem>>) attributes {dimension_semantics = [#tpu.dimension_semantics<parallel>], iteration_bounds = array<i64: 2>, scalar_prefetch = 0 : i64, scratch_operands = 0 : i64, tpu.core_type = #tpu.core_type<tc>, window_params = [{transform_indices = @transform_0, window_bounds = array<i64: 96, 2304>}, {pipeline_mode = #tpu.pipeline_mode<synchronous>, transform_indices = @transform_1, window_bounds = array<i64: 2304, 384>}, {pipeline_mode = #tpu.pipeline_mode<synchronous>, transform_indices = @transform_2, window_bounds = array<i64: 1, 384>}, {transform_indices = @transform_3, window_bounds = array<i64: 96, 384>}]} {
    %c0 = arith.constant 0 : index
    %c0_0 = arith.constant 0 : index
    %0 = vector.load %arg1[%c0, %c0_0] : memref<96x2304xbf16, #tpu.memory_space<vmem>>, vector<96x2304xbf16>
    %c0_1 = arith.constant 0 : index
    %c0_2 = arith.constant 0 : index
    %1 = vector.load %arg2[%c0_1, %c0_2] : memref<2304x384xbf16, #tpu.memory_space<vmem>>, vector<2304x384xbf16>
    %cst = arith.constant dense<0.000000e+00> : vector<96x384xf32>
    %2 = tpu.matmul %0, %1, %cst {dimension_numbers = #tpu.dot_dimension_numbers<[1], [0], [0], [1], [0, 0, 1, 1], [], []>} : vector<96x2304xbf16>, vector<2304x384xbf16>, vector<96x384xf32> -> vector<96x384xf32>
    %c0_3 = arith.constant 0 : index
    %c0_4 = arith.constant 0 : index
    %3 = vector.load %arg3[%c0_3, %c0_4] : memref<1x384xf32, #tpu.memory_space<vmem>>, vector<1x384xf32>
    %4 = vector.broadcast %3 : vector<1x384xf32> to vector<96x384xf32>
    %5 = arith.addf %2, %4 : vector<96x384xf32>
    %cst_5 = arith.constant 0.000000e+00 : f32
    %6 = vector.broadcast %cst_5 : f32 to vector<96x384xf32>
    %7 = arith.maximumf %5, %6 : vector<96x384xf32>
    %c0_6 = arith.constant 0 : index
    %c0_7 = arith.constant 0 : index
    %8 = vector.load %arg4[%c0_6, %c0_7] : memref<96x384xf32, #tpu.memory_space<vmem>>, vector<96x384xf32>
    tpu.vector_store %arg4[%c0_6, %c0_7], %7 {strides = array<i32>} : memref<96x384xf32, #tpu.memory_space<vmem>>, vector<96x384xf32>,
    return
  }
  func.func @transform_0(%arg0: i32) -> (i32, i32) {
    %c0_i32 = arith.constant 0 : i32
    %c0_i32_0 = arith.constant 0 : i32
    return %arg0, %c0_i32 : i32, i32
  }
  func.func @transform_1(%arg0: i32) -> (i32, i32) {
    %c0_i32 = arith.constant 0 : i32
    %c0_i32_0 = arith.constant 0 : i32
    %c0_i32_1 = arith.constant 0 : i32
    return %c0_i32, %c0_i32_0 : i32, i32
  }
  func.func @transform_2(%arg0: i32) -> (i32, i32) {
    %c0_i32 = arith.constant 0 : i32
    %c0_i32_0 = arith.constant 0 : i32
    %c0_i32_1 = arith.constant 0 : i32
    return %c0_i32, %c0_i32_0 : i32, i32
  }
  func.func @transform_3(%arg0: i32) -> (i32, i32) {
    %c0_i32 = arith.constant 0 : i32
    %c0_i32_0 = arith.constant 0 : i32
    return %arg0, %c0_i32 : i32, i32
  }
}

module attributes {stable_mosaic.version = 11 : i64} {
  func.func @_matmul_bias_relu_kernel(%arg0: i32, %arg1: memref<16x2592xbf16, #tpu.memory_space<vmem>>, %arg2: memref<2592x384xbf16, #tpu.memory_space<vmem>>, %arg3: memref<1x384xf32, #tpu.memory_space<vmem>>, %arg4: memref<16x384xf32, #tpu.memory_space<vmem>>) attributes {dimension_semantics = [#tpu.dimension_semantics<parallel>], iteration_bounds = array<i64: 2>, scalar_prefetch = 0 : i64, scratch_operands = 0 : i64, tpu.core_type = #tpu.core_type<tc>, window_params = [{transform_indices = @transform_0, window_bounds = array<i64: 16, 2592>}, {pipeline_mode = #tpu.pipeline_mode<synchronous>, transform_indices = @transform_1, window_bounds = array<i64: 2592, 384>}, {pipeline_mode = #tpu.pipeline_mode<synchronous>, transform_indices = @transform_2, window_bounds = array<i64: 1, 384>}, {transform_indices = @transform_3, window_bounds = array<i64: 16, 384>}]} {
    %c0 = arith.constant 0 : index
    %c0_0 = arith.constant 0 : index
    %0 = vector.load %arg1[%c0, %c0_0] : memref<16x2592xbf16, #tpu.memory_space<vmem>>, vector<16x2592xbf16>
    %c0_1 = arith.constant 0 : index
    %c0_2 = arith.constant 0 : index
    %1 = vector.load %arg2[%c0_1, %c0_2] : memref<2592x384xbf16, #tpu.memory_space<vmem>>, vector<2592x384xbf16>
    %cst = arith.constant dense<0.000000e+00> : vector<16x384xf32>
    %2 = tpu.matmul %0, %1, %cst {dimension_numbers = #tpu.dot_dimension_numbers<[1], [0], [0], [1], [0, 0, 1, 1], [], []>} : vector<16x2592xbf16>, vector<2592x384xbf16>, vector<16x384xf32> -> vector<16x384xf32>
    %c0_3 = arith.constant 0 : index
    %c0_4 = arith.constant 0 : index
    %3 = vector.load %arg3[%c0_3, %c0_4] : memref<1x384xf32, #tpu.memory_space<vmem>>, vector<1x384xf32>
    %4 = vector.broadcast %3 : vector<1x384xf32> to vector<16x384xf32>
    %5 = arith.addf %2, %4 : vector<16x384xf32>
    %cst_5 = arith.constant 0.000000e+00 : f32
    %6 = vector.broadcast %cst_5 : f32 to vector<16x384xf32>
    %7 = arith.maximumf %5, %6 : vector<16x384xf32>
    %c0_6 = arith.constant 0 : index
    %c0_7 = arith.constant 0 : index
    %8 = vector.load %arg4[%c0_6, %c0_7] : memref<16x384xf32, #tpu.memory_space<vmem>>, vector<16x384xf32>
    tpu.vector_store %arg4[%c0_6, %c0_7], %7 {strides = array<i32>} : memref<16x384xf32, #tpu.memory_space<vmem>>, vector<16x384xf32>,
    return
  }
  func.func @transform_0(%arg0: i32) -> (i32, i32) {
    %c0_i32 = arith.constant 0 : i32
    %c0_i32_0 = arith.constant 0 : i32
    return %arg0, %c0_i32 : i32, i32
  }
  func.func @transform_1(%arg0: i32) -> (i32, i32) {
    %c0_i32 = arith.constant 0 : i32
    %c0_i32_0 = arith.constant 0 : i32
    %c0_i32_1 = arith.constant 0 : i32
    return %c0_i32, %c0_i32_0 : i32, i32
  }
  func.func @transform_2(%arg0: i32) -> (i32, i32) {
    %c0_i32 = arith.constant 0 : i32
    %c0_i32_0 = arith.constant 0 : i32
    %c0_i32_1 = arith.constant 0 : i32
    return %c0_i32, %c0_i32_0 : i32, i32
  }
  func.func @transform_3(%arg0: i32) -> (i32, i32) {
    %c0_i32 = arith.constant 0 : i32
    %c0_i32_0 = arith.constant 0 : i32
    return %arg0, %c0_i32 : i32, i32
  }
}

</mosaic_0001>

<bundles_post_ra>
// kernel: mixed_c_forward.5
= control target key start
LH: loop header
LB: loop body
LE: loop exit
PB: predicated region body
PF: predicated region fallthrough
CT: control target
= control target key end

     0   :  { %s6247_s12 = smov 0   ;;  %s8112_s0 = inlined_call_operand.vmem [shape: bf16[192,1088], index: 0, kind: input, shape index: {}]   ;;  %s8113_s1 = inlined_call_operand.vmem [shape: bf16[1088,768], index: 1, kind: input, shape index: {}]   ;;  %s8114_s2 = inlined_call_operand.vmem [shape: f32[1,768], index: 2, kind: input, shape index: {}]   ;;  %s8115_s3 = inlined_call_operand.vmem [shape: f32[192,768], index: 3, kind: output, shape index: {}]  }
   0x1 LB: > { %s4606_s13 = sadd.s32 4294967295, %s6224_s12   ;;  %p4610_p0 = scmp.ge.s32.totalorder %s6224_s12, 1  ;;  %s6224_s12 = sphi %s6247_s12, %s13_s12  }
   0x2   : > { %p139_p1 = scmp.lt.s32.totalorder %s6224_s12, 3 }
   0x4   : > { %p140_p2 = pnand %p4610_p0, %p139_p1 }
   0x5   : > { %v5474_v0 = vld [vmem:[%s8113_s1 + $0x4] ss:$24 sps:$4 sm:$0xff] (!%p140_p2)   ;;  %v5478_v2 = vld [vmem:[%s8113_s1] ss:$24 sps:$4 sm:$0xff] (!%p140_p2)   ;;  %v5480_v4 = vld [vmem:[%s8113_s1 + $0x34] ss:$24 sps:$4 sm:$0xff] (!%p140_p2)  }
   0x6   : > { %143 = sbr.rel (%p140_p2) target bundleno = 723 (0x2d3), region = 32  ;;  %v5476_v1 = vld [vmem:[%s8113_s1 + $0x604] ss:$24 sps:$4 sm:$0xff] (!%p140_p2)   ;;  %3009 = vmatprep.subr.bf16.mxu1 (!%p140_p2), %v5474_v0  ;;  %v5479_v3 = vld [vmem:[%s8113_s1 + $0x600] ss:$24 sps:$4 sm:$0xff] (!%p140_p2)   ;;  %vm2990_vm0 = vcmask (!%p140_p2), 523264  }
   0x7   : > { %3195 = vmatprep.subr.bf16.mxu0 (!%p140_p2), %v5476_v1  ;;  %3010 = vmatpush1.bf16.msra.mxu1 (!%p140_p2), %v5478_v2  ;;  %v5482_v5 = vld [vmem:[%s8113_s1 + $0x634] ss:$24 sps:$4 sm:$0xff] (!%p140_p2)   ;;  %v5484_v6 = vld [vmem:[%s8113_s1 + $0x30] ss:$24 sps:$4 sm:$0xff] (!%p140_p2)   ;;  %v5486_v8 = vld [vmem:[%s8113_s1 + $0x64] ss:$24 sps:$4 sm:$0xff] (!%p140_p2)  }
   0x8   : > { %3196 = vmatpush1.bf16.msra.mxu0 (!%p140_p2), %v5479_v3  ;;  %3011 = vmatprep.subr.bf16.mxu1 (!%p140_p2), %v5480_v4  ;;  %v5485_v7 = vld [vmem:[%s8113_s1 + $0x630] ss:$24 sps:$4 sm:$0xff] (!%p140_p2)   ;;  %v5488_v9 = vld [vmem:[%s8113_s1 + $0x664] ss:$24 sps:$4 sm:$0xff] (!%p140_p2)   ;;  %v5490_v10 = vld [vmem:[%s8113_s1 + $0x60] ss:$24 sps:$4 sm:$0xff] (!%p140_p2)  }
   0x9   : > { %3197 = vmatprep.subr.bf16.mxu0 (!%p140_p2), %v5482_v5  ;;  %v5491_v11 = vld [vmem:[%s8113_s1 + $0x660] ss:$24 sps:$4 sm:$0xff] (!%p140_p2)   ;;  %v5492_v12 = vld [vmem:[%s8113_s1 + $0x94] ss:$24 sps:$4 sm:$0xff] (!%p140_p2)   ;;  %v5496_v14 = vld [vmem:[%s8113_s1 + $0x90] ss:$24 sps:$4 sm:$0xff] (!%p140_p2)  }
   0xa   : > { %v5494_v13 = vld [vmem:[%s8113_s1 + $0x694] ss:$24 sps:$4 sm:$0xff] (!%p140_p2)   ;;  %v5497_v15 = vld [vmem:[%s8113_s1 + $0x690] ss:$24 sps:$4 sm:$0xff] (!%p140_p2)   ;;  %v5498_v16 = vld [vmem:[%s8113_s1 + $0xc4] ss:$24 sps:$4 sm:$0xff] (!%p140_p2)  }
   0xb   : > { %3012 = vmatpush1.bf16.msra.mxu1 (!%p140_p2), %v5484_v6  ;;  %v5500_v17 = vld [vmem:[%s8113_s1 + $0x6c4] ss:$24 sps:$4 sm:$0xff] (!%p140_p2)   ;;  %v5502_v18 = vld [vmem:[%s8113_s1 + $0xc0] ss:$24 sps:$4 sm:$0xff] (!%p140_p2)   ;;  %v5504_v20 = vld [vmem:[%s8113_s1 + $0xf4] ss:$24 sps:$4 sm:$0xff] (!%p140_p2)  }
   0xc   : > { %3198 = vmatpush1.bf16.msra.mxu0 (!%p140_p2), %v5485_v7  ;;  %3013 = vmatprep.subr.bf16.mxu1 (!%p140_p2), %v5486_v8  ;;  %v5503_v19 = vld [vmem:[%s8113_s1 + $0x6c0] ss:$24 sps:$4 sm:$0xff] (!%p140_p2)   ;;  %v5506_v21 = vld [vmem:[%s8113_s1 + $0x6f4] ss:$24 sps:$4 sm:$0xff] (!%p140_p2)   ;;  %v5508_v22 = vld [vmem:[%s8113_s1 + $0xf0] ss:$24 sps:$4 sm:$0xff] (!%p140_p2)  }
   0xd   : > { %3199 = vmatprep.subr.bf16.mxu0 %v5488_v9  ;;  %v5509_v23 = vld [vmem:[%s8113_s1 + $0x6f0] ss:$24 sps:$4 sm:$0xff]   ;;  %v5510_v24 = vld [vmem:[%s8113_s1 + $0x124] ss:$24 sps:$4 sm:$0xff]   ;;  %v5514_v26 = vld [vmem:[%s8113_s1 + $0x120] ss:$24 sps:$4 sm:$0xff]  }
   0xe   : > { %v5512_v25 = vld [vmem:[%s8113_s1 + $0x724] ss:$24 sps:$4 sm:$0xff]   ;;  %v5515_v27 = vld [vmem:[%s8113_s1 + $0x720] ss:$24 sps:$4 sm:$0xff]   ;;  %v5516_v28 = vld [vmem:[%s8113_s1 + $0x154] ss:$24 sps:$4 sm:$0xff]  }
   0xf   : > { %3014 = vmatpush1.bf16.msra.mxu1 %v5490_v10  ;;  %s165_s22 = smul.u32 12, %s4606_s13  ;;  %v5518_v29 = vld [vmem:[%s8113_s1 + $0x754] ss:$24 sps:$4 sm:$0xff]   ;;  %v5520_v30 = vld [vmem:[%s8113_s1 + $0x150] ss:$24 sps:$4 sm:$0xff]  }
  0x10   : > { %3200 = vmatpush1.bf16.msra.mxu0 %v5491_v11  ;;  %3015 = vmatprep.subr.bf16.mxu1 %v5492_v12  ;;  %v5521_v31 = vld [vmem:[%s8113_s1 + $0x750] ss:$24 sps:$4 sm:$0xff]   ;;  %v5522_v32 = vld [vmem:[%s8113_s1 + $0x184] ss:$24 sps:$4 sm:$0xff]   ;;  %v5526_v34 = vld [vmem:[%s8113_s1 + $0x180] ss:$24 sps:$4 sm:$0xff]  }
  0x11   : > { %3201 = vmatprep.subr.bf16.mxu0 %v5494_v13  ;;  %p166_p3 = scmp.lt.s32.totalorder %s165_s22, 23  ;;  %v5524_v33 = vld [vmem:[%s8113_s1 + $0x784] ss:$24 sps:$4 sm:$0xff]   ;;  %v5527_v35 = vld [vmem:[%s8113_s1 + $0x780] ss:$24 sps:$4 sm:$0xff]  }
  0x12   : > { %v5528_v36 = vld [vmem:[%s8113_s1 + $0x1b4] ss:$24 sps:$4 sm:$0xff]   ;;  %v5532_v38 = vld [vmem:[%s8113_s1 + $0x1b0] ss:$24 sps:$4 sm:$0xff]   ;;  %v5534_v40 = vld [vmem:[%s8113_s1 + $0x1e4] ss:$24 sps:$4 sm:$0xff]  }
  0x13   : > { %3016 = vmatpush1.bf16.msra.mxu1 %v5496_v14  ;;  %s8117_s22 = smov (!%p166_p3, %s165_s22), 23  ;;  %v5530_v37 = vld [vmem:[%s8113_s1 + $0x7b4] ss:$24 sps:$4 sm:$0xff]   ;;  %v5533_v39 = vld [vmem:[%s8113_s1 + $0x7b0] ss:$24 sps:$4 sm:$0xff]  }
  0x14   : > { %3202 = vmatpush1.bf16.msra.mxu0 %v5497_v15  ;;  %3017 = vmatprep.subr.bf16.mxu1 %v5498_v16  ;;  %s5463_s21 = smul.u32 36, %s8117_s22  ;;  %v5536_v41 = vld [vmem:[%s8113_s1 + $0x7e4] ss:$24 sps:$4 sm:$0xff]   ;;  %v5538_v42 = vld [vmem:[%s8113_s1 + $0x1e0] ss:$24 sps:$4 sm:$0xff]  }
  0x15   : > { %3203 = vmatprep.subr.bf16.mxu0 %v5500_v17  ;;  %v5539_v43 = vld [vmem:[%s8113_s1 + $0x7e0] ss:$24 sps:$4 sm:$0xff]   ;;  %v5540_v44 = vld [vmem:[%s8113_s1 + $0x214] ss:$24 sps:$4 sm:$0xff]   ;;  %v5544_v46 = vld [vmem:[%s8113_s1 + $0x210] ss:$24 sps:$4 sm:$0xff]  }
  0x16   : > { %s6398_s5 = scalar_lea.vmem %s8112_s0, %s5463_s21  ;;  %v5542_v45 = vld [vmem:[%s8113_s1 + $0x814] ss:$24 sps:$4 sm:$0xff]   ;;  %v5545_v47 = vld [vmem:[%s8113_s1 + $0x810] ss:$24 sps:$4 sm:$0xff]   ;;  %v5546_v49 = vld [vmem:[%s8113_s1 + $0x244] ss:$24 sps:$4 sm:$0xff]  }
  0x17   : > { %3018 = vmatpush1.bf16.msra.mxu1 %v5502_v18  ;;  %v5570_v48 = vld [vmem:[%s6398_s5 + $0x4] ss:$36 sps:$4 sm:$0xff]   ;;  %v5575_v51 = vld [vmem:[%s6398_s5 + $0x14] ss:$36 sps:$4 sm:$0xff]   ;;  %v5612_v10 = vld [vmem:[%s6398_s5 + $0x4c] ss:$36 sps:$4 sm:$0xff]  }
  0x18   : > { %3204 = vmatpush1.bf16.msra.mxu0 %v5503_v19  ;;  %3019 = vmatprep.subr.bf16.mxu1 %v5504_v20  ;;  %v5548_v50 = vld [vmem:[%s8113_s1 + $0x844] ss:$24 sps:$4 sm:$0xff]   ;;  %v5550_v52 = vld [vmem:[%s8113_s1 + $0x240] ss:$24 sps:$4 sm:$0xff]   ;;  %v5552_v54 = vld [vmem:[%s8113_s1 + $0x274] ss:$24 sps:$4 sm:$0xff]  }
  0x19   : > { %3205 = vmatprep.subr.bf16.mxu0 %v5506_v21  ;;  %3041 = vmatprep.mubr.bf16.mxu1 %v5570_v48  ;;  %v5551_v53 = vld [vmem:[%s8113_s1 + $0x840] ss:$24 sps:$4 sm:$0xff]   ;;  %v5554_v55 = vld [vmem:[%s8113_s1 + $0x874] ss:$24 sps:$4 sm:$0xff]   ;;  %v5556_v56 = vld [vmem:[%s8113_s1 + $0x270] ss:$24 sps:$4 sm:$0xff]  }
  0x1a   : > { %3227 = vmatprep.mubr.bf16.mxu0 %v5575_v51  ;;  %v5557_v57 = vld [vmem:[%s8113_s1 + $0x870] ss:$24 sps:$4 sm:$0xff]   ;;  %v5558_v58 = vld [vmem:[%s8113_s1 + $0x2a4] ss:$24 sps:$4 sm:$0xff]   ;;  %v5562_v60 = vld [vmem:[%s8113_s1 + $0x2a0] ss:$24 sps:$4 sm:$0xff]  }
  0x1b   : > { %3020 = vmatpush1.bf16.msra.mxu1 %v5508_v22  ;;  %v5560_v59 = vld [vmem:[%s8113_s1 + $0x8a4] ss:$24 sps:$4 sm:$0xff]   ;;  %v5563_v61 = vld [vmem:[%s8113_s1 + $0x8a0] ss:$24 sps:$4 sm:$0xff]   ;;  %v5564_v62 = vld [vmem:[%s8113_s1 + $0x2d4] ss:$24 sps:$4 sm:$0xff]  }
  0x1c   : > { %3206 = vmatpush1.bf16.msra.mxu0 %v5509_v23  ;;  %3021 = vmatprep.subr.bf16.mxu1 %v5510_v24  ;;  %v5566_v63 = vld [vmem:[%s8113_s1 + $0x8d4] ss:$24 sps:$4 sm:$0xff]   ;;  %v5568_v0 = vld [vmem:[%s8113_s1 + $0x2d0] ss:$24 sps:$4 sm:$0xff]   ;;  %v5574_v2 = vld [vmem:[%s8113_s1 + $0x304] ss:$24 sps:$4 sm:$0xff]  }
  0x1d   : > { %3207 = vmatprep.subr.bf16.mxu0 %v5512_v25  ;;  %v5569_v1 = vld [vmem:[%s8113_s1 + $0x8d0] ss:$24 sps:$4 sm:$0xff]   ;;  %v5579_v3 = vld [vmem:[%s8113_s1 + $0x904] ss:$24 sps:$4 sm:$0xff]   ;;  %v5572_v4 = vld [vmem:[%s8113_s1 + $0x300] ss:$24 sps:$4 sm:$0xff]  }
  0x1e   : > { %v5580_v5 = vld [vmem:[%s6398_s5] ss:$36 sps:$4 sm:$0xff]   ;;  %v5581_v6 = vld [vmem:[%s6398_s5 + $0x10] ss:$36 sps:$4 sm:$0xff]   ;;  %v5616_v17 = vld [vmem:[%s6398_s5 + $0x48] ss:$36 sps:$4 sm:$0xff]  }
  0x1f   : > { %3022 = vmatpush1.bf16.msra.mxu1 %v5514_v26  ;;  %v5577_v7 = vld [vmem:[%s8113_s1 + $0x900] ss:$24 sps:$4 sm:$0xff]   ;;  %v5584_v8 = vld [vmem:[%s8113_s1 + $0x334] ss:$24 sps:$4 sm:$0xff]   ;;  %v5582_v12 = vld [vmem:[%s8113_s1 + $0x330] ss:$24 sps:$4 sm:$0xff]  }
  0x20   : > { %3208 = vmatpush1.bf16.msra.mxu0 %v5515_v27  ;;  %3023 = vmatprep.subr.bf16.mxu1 %v5516_v28  ;;  %v5587_v9 = vld [vmem:[%s8113_s1 + $0x934] ss:$24 sps:$4 sm:$0xff]   ;;  %v5614_v11 = vld [vmem:[%s6398_s5 + $0x5c] ss:$36 sps:$4 sm:$0xff]   ;;  %v5585_v13 = vld [vmem:[%s8113_s1 + $0x930] ss:$24 sps:$4 sm:$0xff]  }
  0x21   : > { %3209 = vmatprep.subr.bf16.mxu0 %v5518_v29  ;;  %v5590_v14 = vld [vmem:[%s8113_s1 + $0x364] ss:$24 sps:$4 sm:$0xff]   ;;  %v5588_v16 = vld [vmem:[%s8113_s1 + $0x360] ss:$24 sps:$4 sm:$0xff]   ;;  %v5596_v20 = vld [vmem:[%s8113_s1 + $0x394] ss:$24 sps:$4 sm:$0xff]  }
  0x22   : > { %v5593_v15 = vld [vmem:[%s8113_s1 + $0x964] ss:$24 sps:$4 sm:$0xff]   ;;  %v5591_v19 = vld [vmem:[%s8113_s1 + $0x960] ss:$24 sps:$4 sm:$0xff]   ;;  %v5599_v21 = vld [vmem:[%s8113_s1 + $0x994] ss:$24 sps:$4 sm:$0xff]  }
  0x23   : > { %3024 = vmatpush1.bf16.msra.mxu1 %v5520_v30  ;;  %v5620_v18 = vld [vmem:[%s6398_s5 + $0x58] ss:$36 sps:$4 sm:$0xff]   ;;  %v5632_v23 = vld [vmem:[%s6398_s5 + $0xa4] ss:$36 sps:$4 sm:$0xff]   ;;  %v5634_v29 = vld [vmem:[%s6398_s5 + $0x90] ss:$36 sps:$4 sm:$0xff]  }
  0x24   : > { %3210 = vmatpush1.bf16.msra.mxu0 %v5521_v31  ;;  %3025 = vmatprep.subr.bf16.mxu1 %v5522_v32  ;;  %v5630_v22 = vld [vmem:[%s6398_s5 + $0x94] ss:$36 sps:$4 sm:$0xff]   ;;  %v5594_v24 = vld [vmem:[%s8113_s1 + $0x390] ss:$24 sps:$4 sm:$0xff]   ;;  %v5602_v26 = vld [vmem:[%s8113_s1 + $0x3c4] ss:$24 sps:$4 sm:$0xff]  }
  0x25   : > { %3211 = vmatprep.subr.bf16.mxu0 %v5524_v33  ;;  %v5597_v25 = vld [vmem:[%s8113_s1 + $0x990] ss:$24 sps:$4 sm:$0xff]   ;;  %v5605_v27 = vld [vmem:[%s8113_s1 + $0x9c4] ss:$24 sps:$4 sm:$0xff]   ;;  %v5600_v28 = vld [vmem:[%s8113_s1 + $0x3c0] ss:$24 sps:$4 sm:$0xff]  }
  0x26   : > { %v5638_v30 = vld [vmem:[%s6398_s5 + $0xa0] ss:$36 sps:$4 sm:$0xff]   ;;  %v5608_v32 = vld [vmem:[%s8113_s1 + $0x3f4] ss:$24 sps:$4 sm:$0xff]   ;;  %v5624_v48 = vld [vmem:[%s8113_s1 + $0x450] ss:$24 sps:$4 sm:$0xff]  }
  0x27   : > { %3026 = vmatpush1.bf16.msra.mxu1 %v5526_v34  ;;  %v5603_v31 = vld [vmem:[%s8113_s1 + $0x9c0] ss:$24 sps:$4 sm:$0xff]   ;;  %v5611_v33 = vld [vmem:[%s8113_s1 + $0x9f4] ss:$24 sps:$4 sm:$0xff]   ;;  %v5641_v51 = vld [vmem:[%s8113_s1 + $0xa84] ss:$24 sps:$4 sm:$0xff]  }
  0x28   : > { %3212 = vmatpush1.bf16.msra.mxu0 %v5527_v35  ;;  %3027 = vmatprep.subr.bf16.mxu1 %v5528_v36  ;;  %v5648_v34 = vld [vmem:[%s6398_s5 + $0xdc] ss:$36 sps:$4 sm:$0xff]   ;;  %v5650_v35 = vld [vmem:[%s6398_s5 + $0xec] ss:$36 sps:$4 sm:$0xff]   ;;  %s5464_s20 = smul.u32 48, %s8117_s22 }
  0x29   : > { %3213 = vmatprep.subr.bf16.mxu0 %v5530_v37  ;;  %v5606_v36 = vld [vmem:[%s8113_s1 + $0x3f0] ss:$24 sps:$4 sm:$0xff]  }
  0x2a   : > { %v5609_v37 = vld [vmem:[%s8113_s1 + $0x9f0] ss:$24 sps:$4 sm:$0xff]   ;;  %s7725_s13 = scalar_lea.vmem %s8115_s3, %s5464_s20 }
  0x2b   : > { %3028 = vmatpush1.bf16.msra.mxu1 %v5532_v38  ;;  %v5619_v38 = vld [vmem:[%s8113_s1 + $0x424] ss:$24 sps:$4 sm:$0xff]  }
  0x2c   : > { %3214 = vmatpush1.bf16.msra.mxu0 %v5533_v39  ;;  %3029 = vmatprep.subr.bf16.mxu1 %v5534_v40  ;;  %v5623_v39 = vld [vmem:[%s8113_s1 + $0xa24] ss:$24 sps:$4 sm:$0xff]   ;;  %v5617_v40 = vld [vmem:[%s8113_s1 + $0x420] ss:$24 sps:$4 sm:$0xff]  }
  0x2d   : > { %3215 = vmatprep.subr.bf16.mxu0 %v5536_v41  ;;  %v5652_v41 = vld [vmem:[%s6398_s5 + $0xd8] ss:$36 sps:$4 sm:$0xff]  }
  0x2f   : > { %3030 = vmatpush1.bf16.msra.mxu1 %v5538_v42  ;;  %v5656_v42 = vld [vmem:[%s6398_s5 + $0xe8] ss:$36 sps:$4 sm:$0xff]  }
  0x30   : > { %3216 = vmatpush1.bf16.msra.mxu0 %v5539_v43  ;;  %3031 = vmatprep.subr.bf16.mxu1 %v5540_v44  ;;  %v5621_v43 = vld [vmem:[%s8113_s1 + $0xa20] ss:$24 sps:$4 sm:$0xff]   ;;  %v5626_v44 = vld [vmem:[%s8113_s1 + $0x454] ss:$24 sps:$4 sm:$0xff]  }
  0x31   : > { %3217 = vmatprep.subr.bf16.mxu0 %v5542_v45  ;;  %v5629_v45 = vld [vmem:[%s8113_s1 + $0xa54] ss:$24 sps:$4 sm:$0xff]  }
  0x33   : > { %3032 = vmatpush1.bf16.msra.mxu1 %v5544_v46  ;;  %v5666_v46 = vld [vmem:[%s6398_s5 + $0x124] ss:$36 sps:$4 sm:$0xff]  }
  0x34   : > { %3218 = vmatpush1.bf16.msra.mxu0 %v5545_v47  ;;  %3033 = vmatprep.subr.bf16.mxu1 %v5546_v49  ;;  %v5668_v47 = vld [vmem:[%s6398_s5 + $0x134] ss:$36 sps:$4 sm:$0xff]   ;;  %v5627_v49 = vld [vmem:[%s8113_s1 + $0xa50] ss:$24 sps:$4 sm:$0xff]  }
  0x35   : > { %3219 = vmatprep.subr.bf16.mxu0 %v5548_v50  ;;  %v5637_v50 = vld [vmem:[%s8113_s1 + $0x484] ss:$24 sps:$4 sm:$0xff]  }
  0x37   : > { %3034 = vmatpush1.bf16.msra.mxu1 %v5550_v52  ;;  %v5635_v52 = vld [vmem:[%s8113_s1 + $0x480] ss:$24 sps:$4 sm:$0xff]  }
  0x38   : > { %3220 = vmatpush1.bf16.msra.mxu0 %v5551_v53  ;;  %3035 = vmatprep.subr.bf16.mxu1 %v5552_v54  ;;  %v5670_v53 = vld [vmem:[%s6398_s5 + $0x120] ss:$36 sps:$4 sm:$0xff]   ;;  %v5674_v54 = vld [vmem:[%s6398_s5 + $0x130] ss:$36 sps:$4 sm:$0xff]  }
  0x39   : > { %3221 = vmatprep.subr.bf16.mxu0 %v5554_v55  ;;  %v5639_v55 = vld [vmem:[%s8113_s1 + $0xa80] ss:$24 sps:$4 sm:$0xff]  }
  0x3b   : > { %3036 = vmatpush1.bf16.msra.mxu1 %v5556_v56  ;;  %v5644_v56 = vld [vmem:[%s8113_s1 + $0x4b4] ss:$24 sps:$4 sm:$0xff]  }
  0x3c   : > { %3222 = vmatpush1.bf16.msra.mxu0 %v5557_v57  ;;  %3037 = vmatprep.subr.bf16.mxu1 %v5558_v58  ;;  %v5647_v57 = vld [vmem:[%s8113_s1 + $0xab4] ss:$24 sps:$4 sm:$0xff]  }
  0x3d   : > { %3223 = vmatprep.subr.bf16.mxu0 %v5560_v59  ;;  %v5684_v58 = vld [vmem:[%s6398_s5 + $0x16c] ss:$36 sps:$4 sm:$0xff]   ;;  %v5686_v59 = vld [vmem:[%s6398_s5 + $0x17c] ss:$36 sps:$4 sm:$0xff]  }
  0x3f   : > { %3038 = vmatpush1.bf16.msra.mxu1 %v5562_v60  ;;  %v5642_v60 = vld [vmem:[%s8113_s1 + $0x4b0] ss:$24 sps:$4 sm:$0xff]  }
  0x40   : > { %3224 = vmatpush1.bf16.msra.mxu0 %v5563_v61  ;;  %3039 = vmatprep.subr.bf16.mxu1 %v5564_v62  ;;  %v5645_v61 = vld [vmem:[%s8113_s1 + $0xab0] ss:$24 sps:$4 sm:$0xff]   ;;  %v5655_v62 = vld [vmem:[%s8113_s1 + $0x4e4] ss:$24 sps:$4 sm:$0xff]  }
  0x41   : > { %3225 = vmatprep.subr.bf16.mxu0 %v5566_v63  ;;  %v5659_v63 = vld [vmem:[%s8113_s1 + $0xae4] ss:$24 sps:$4 sm:$0xff]  }
  0x43   : > { %3040 = vmatpush1.bf16.msra.mxu1 %v5568_v0  ;;  %v5653_v0 = vld [vmem:[%s8113_s1 + $0x4e0] ss:$24 sps:$4 sm:$0xff]  }
  0x44   : > { %3226 = vmatpush1.bf16.msra.mxu0 %v5569_v1  ;;  %3102 = vmatprep.subr.bf16.mxu1 %v5574_v2  ;;  %v5657_v1 = vld [vmem:[%s8113_s1 + $0xae0] ss:$24 sps:$4 sm:$0xff]   ;;  %v5688_v2 = vld [vmem:[%s6398_s5 + $0x168] ss:$36 sps:$4 sm:$0xff]  }
  0x45   : > { %3288 = vmatprep.subr.bf16.mxu0 %v5579_v3  ;;  %v5692_v3 = vld [vmem:[%s6398_s5 + $0x178] ss:$36 sps:$4 sm:$0xff]  }
  0x46   : > { %3042 = vmatmul.mubr.bf16.vlgmr.msra.gmra.mrb[0].mxu1 %v5580_v5  ;;  %v5665_v5 = vld [vmem:[%s8113_s1 + $0xb14] ss:$24 sps:$4 sm:$0xff]  }
  0x47   : > { %3228 = vmatmul.mubr.bf16.vlgmr.msra.gmra.mrb[0].mxu0 %v5581_v6  ;;  %3103 = vmatpush1.bf16.msra.mxu1 %v5572_v4  ;;  %v5662_v4 = vld [vmem:[%s8113_s1 + $0x514] ss:$24 sps:$4 sm:$0xff]  }
  0x48   : > { %3289 = vmatpush1.bf16.msra.mxu0 %v5577_v7  ;;  %3104 = vmatprep.subr.bf16.mxu1 %v5584_v8  ;;  %v5704_v6 = vld [vmem:[%s6398_s5 + $0xc] ss:$36 sps:$4 sm:$0xff]   ;;  %v5707_v7 = vld [vmem:[%s6398_s5 + $0x1c] ss:$36 sps:$4 sm:$0xff]  }
  0x49   : > { %3290 = vmatprep.subr.bf16.mxu0 %v5587_v9  ;;  %3051 = vmatprep.mubr.bf16.mxu1 %v5612_v10  ;;  %v5660_v8 = vld [vmem:[%s8113_s1 + $0x510] ss:$24 sps:$4 sm:$0xff]   ;;  %v5673_v10 = vld [vmem:[%s8113_s1 + $0x544] ss:$24 sps:$4 sm:$0xff]  }
  0x4a   : > { %3237 = vmatprep.mubr.bf16.mxu0 %v5614_v11  ;;  %v5663_v9 = vld [vmem:[%s8113_s1 + $0xb10] ss:$24 sps:$4 sm:$0xff]   ;;  %v5677_v11 = vld [vmem:[%s8113_s1 + $0xb44] ss:$24 sps:$4 sm:$0xff]  }
  0x4b   : > { %3105 = vmatpush1.bf16.msra.mxu1 %v5582_v12  ;;  %v5671_v12 = vld [vmem:[%s8113_s1 + $0x540] ss:$24 sps:$4 sm:$0xff]  }
  0x4c   : > { %3291 = vmatpush1.bf16.msra.mxu0 %v5585_v13  ;;  %3106 = vmatprep.subr.bf16.mxu1 %v5590_v14  ;;  %v5675_v13 = vld [vmem:[%s8113_s1 + $0xb40] ss:$24 sps:$4 sm:$0xff]   ;;  %v5680_v14 = vld [vmem:[%s8113_s1 + $0x574] ss:$24 sps:$4 sm:$0xff]  }
  0x4d   : > { %3292 = vmatprep.subr.bf16.mxu0 %v5593_v15  ;;  %v5683_v15 = vld [vmem:[%s8113_s1 + $0xb74] ss:$24 sps:$4 sm:$0xff]  }
  0x4e   : > { %3052 = vmatmul.mubr.bf16.gmra.mrb[4].mxu1 %v5616_v17  ;;  %v5681_v17 = vld [vmem:[%s8113_s1 + $0xb70] ss:$24 sps:$4 sm:$0xff]  }
  0x4f   : > { %3238 = vmatmul.mubr.bf16.gmra.mrb[4].mxu0 %v5620_v18  ;;  %3107 = vmatpush1.bf16.msra.mxu1 %v5588_v16  ;;  %v5678_v16 = vld [vmem:[%s8113_s1 + $0x570] ss:$24 sps:$4 sm:$0xff]   ;;  %v5691_v18 = vld [vmem:[%s8113_s1 + $0x5a4] ss:$24 sps:$4 sm:$0xff]  }
  0x50   : > { %3293 = vmatpush1.bf16.msra.mxu0 %v5591_v19  ;;  %3108 = vmatprep.subr.bf16.mxu1 %v5596_v20  ;;  %v5695_v19 = vld [vmem:[%s8113_s1 + $0xba4] ss:$24 sps:$4 sm:$0xff]   ;;  %v5689_v20 = vld [vmem:[%s8113_s1 + $0x5a0] ss:$24 sps:$4 sm:$0xff]  }
  0x51   : > { %3294 = vmatprep.subr.bf16.mxu0 %v5599_v21  ;;  %3061 = vmatprep.mubr.bf16.mxu1 %v5630_v22  ;;  %v5693_v21 = vld [vmem:[%s8113_s1 + $0xba0] ss:$24 sps:$4 sm:$0xff]   ;;  %v5698_v22 = vld [vmem:[%s8113_s1 + $0x5d4] ss:$24 sps:$4 sm:$0xff]  }
  0x52   : > { %3247 = vmatprep.mubr.bf16.mxu0 %v5632_v23  ;;  %v5701_v23 = vld [vmem:[%s8113_s1 + $0xbd4] ss:$24 sps:$4 sm:$0xff]  }
  0x53   : > { %3109 = vmatpush1.bf16.msra.mxu1 %v5594_v24  ;;  %v5696_v24 = vld [vmem:[%s8113_s1 + $0x5d0] ss:$24 sps:$4 sm:$0xff]  }
  0x54   : > { %3295 = vmatpush1.bf16.msra.mxu0 %v5597_v25  ;;  %3110 = vmatprep.subr.bf16.mxu1 %v5602_v26  ;;  %v5699_v25 = vld [vmem:[%s8113_s1 + $0xbd0] ss:$24 sps:$4 sm:$0xff]   ;;  %v5710_v26 = vld [vmem:[%s8113_s1 + $0xc] ss:$24 sps:$4 sm:$0xff]  }
  0x55   : > { %3296 = vmatprep.subr.bf16.mxu0 %v5605_v27  ;;  %v5713_v27 = vld [vmem:[%s8113_s1 + $0xc04] ss:$24 sps:$4 sm:$0xff]  }
  0x56   : > { %3062 = vmatmul.mubr.bf16.gmra.mrb[8].mxu1 %v5634_v29  ;;  %v5705_v29 = vld [vmem:[%s6398_s5 + $0x18] ss:$36 sps:$4 sm:$0xff]  }
  0x57   : > { %3248 = vmatmul.mubr.bf16.gmra.mrb[8].mxu0 %v5638_v30  ;;  %3111 = vmatpush1.bf16.msra.mxu1 %v5600_v28  ;;  %v5702_v28 = vld [vmem:[%s6398_s5 + $0x8] ss:$36 sps:$4 sm:$0xff]  }
  0x58   : > { %3297 = vmatpush1.bf16.msra.mxu0 %v5603_v31  ;;  %3112 = vmatprep.subr.bf16.mxu1 %v5608_v32  ;;  %v5708_v30 = vld [vmem:[%s8113_s1 + $0x8] ss:$24 sps:$4 sm:$0xff]   ;;  %v5716_v32 = vld [vmem:[%s8113_s1 + $0x3c] ss:$24 sps:$4 sm:$0xff]  }
  0x59   : > { %3298 = vmatprep.subr.bf16.mxu0 %v5611_v33  ;;  %3071 = vmatprep.mubr.bf16.mxu1 %v5648_v34  ;;  %v5711_v31 = vld [vmem:[%s8113_s1 + $0xc00] ss:$24 sps:$4 sm:$0xff]   ;;  %v5719_v34 = vld [vmem:[%s6398_s5 + $0x64] ss:$36 sps:$4 sm:$0xff]  }
  0x5a   : > { %3257 = vmatprep.mubr.bf16.mxu0 %v5650_v35  ;;  %v5717_v33 = vld [vmem:[%s6398_s5 + $0x54] ss:$36 sps:$4 sm:$0xff]  }
  0x5b   : > { %3113 = vmatpush1.bf16.msra.mxu1 %v5606_v36  ;;  %v5731_v35 = vld [vmem:[%s8113_s1 + $0xc34] ss:$24 sps:$4 sm:$0xff]   ;;  %v5714_v36 = vld [vmem:[%s8113_s1 + $0x38] ss:$24 sps:$4 sm:$0xff]  }
  0x5c   : > { %3299 = vmatpush1.bf16.msra.mxu0 %v5609_v37  ;;  %3114 = vmatprep.subr.bf16.mxu1 %v5619_v38  ;;  %v5725_v37 = vld [vmem:[%s8113_s1 + $0x6c] ss:$24 sps:$4 sm:$0xff]   ;;  %v5729_v38 = vld [vmem:[%s8113_s1 + $0xc30] ss:$24 sps:$4 sm:$0xff]  }
  0x5d   : > { %3300 = vmatprep.subr.bf16.mxu0 %v5623_v39  ;;  %v5755_v39 = vld [vmem:[%s8113_s1 + $0xc64] ss:$24 sps:$4 sm:$0xff]  }
  0x5e   : > { %3072 = vmatmul.mubr.bf16.gmra.mrb[12].mxu1 %v5652_v41  ;;  %v5722_v41 = vld [vmem:[%s6398_s5 + $0x60] ss:$36 sps:$4 sm:$0xff]  }
  0x5f   : > { %3258 = vmatmul.mubr.bf16.gmra.mrb[12].mxu0 %v5656_v42  ;;  %3115 = vmatpush1.bf16.msra.mxu1 %v5617_v40  ;;  %v5721_v40 = vld [vmem:[%s6398_s5 + $0x50] ss:$36 sps:$4 sm:$0xff]   ;;  %v5723_v42 = vld [vmem:[%s8113_s1 + $0x68] ss:$24 sps:$4 sm:$0xff]  }
  0x60   : > { %3301 = vmatpush1.bf16.msra.mxu0 %v5621_v43  ;;  %3116 = vmatprep.subr.bf16.mxu1 %v5626_v44  ;;  %v5728_v43 = vld [vmem:[%s8113_s1 + $0x9c] ss:$24 sps:$4 sm:$0xff]  }
  0x61   : > { %3302 = vmatprep.subr.bf16.mxu0 %v5629_v45  ;;  %3081 = vmatprep.mubr.bf16.mxu1 %v5666_v46  ;;  %v5732_v44 = vld [vmem:[%s6398_s5 + $0x9c] ss:$36 sps:$4 sm:$0xff]   ;;  %v5734_v45 = vld [vmem:[%s6398_s5 + $0xac] ss:$36 sps:$4 sm:$0xff]  }
  0x62   : > { %3267 = vmatprep.mubr.bf16.mxu0 %v5668_v47  ;;  %v5753_v46 = vld [vmem:[%s8113_s1 + $0xc60] ss:$24 sps:$4 sm:$0xff]   ;;  %v5773_v47 = vld [vmem:[%s8113_s1 + $0xc94] ss:$24 sps:$4 sm:$0xff]  }
  0x63   : > { %3117 = vmatpush1.bf16.msra.mxu1 %v5624_v48  ;;  %v5726_v48 = vld [vmem:[%s8113_s1 + $0x98] ss:$24 sps:$4 sm:$0xff]  }
  0x64   : > { %3303 = vmatpush1.bf16.msra.mxu0 %v5627_v49  ;;  %3118 = vmatprep.subr.bf16.mxu1 %v5637_v50  ;;  %v5736_v49 = vld [vmem:[%s6398_s5 + $0x98] ss:$36 sps:$4 sm:$0xff]   ;;  %v5740_v50 = vld [vmem:[%s8113_s1 + $0xcc] ss:$24 sps:$4 sm:$0xff]  }
  0x65   : > { %3304 = vmatprep.subr.bf16.mxu0 %v5641_v51  ;;  %v5771_v51 = vld [vmem:[%s8113_s1 + $0xc90] ss:$24 sps:$4 sm:$0xff]  }
  0x66   : > { %3082 = vmatmul.mubr.bf16.gmra.mrb[16].mxu1 %v5670_v53  ;;  %v5738_v53 = vld [vmem:[%s8113_s1 + $0xc8] ss:$24 sps:$4 sm:$0xff]  }
  0x67   : > { %3268 = vmatmul.mubr.bf16.gmra.mrb[16].mxu0 %v5674_v54  ;;  %3119 = vmatpush1.bf16.msra.mxu1 %v5635_v52  ;;  %v5737_v52 = vld [vmem:[%s6398_s5 + $0xa8] ss:$36 sps:$4 sm:$0xff]   ;;  %v5743_v54 = vld [vmem:[%s8113_s1 + $0xfc] ss:$24 sps:$4 sm:$0xff]  }
  0x68   : > { %3305 = vmatpush1.bf16.msra.mxu0 %v5639_v55  ;;  %3120 = vmatprep.subr.bf16.mxu1 %v5644_v56  ;;  %v5744_v55 = vld [vmem:[%s6398_s5 + $0xe4] ss:$36 sps:$4 sm:$0xff]   ;;  %v5746_v56 = vld [vmem:[%s6398_s5 + $0xf4] ss:$36 sps:$4 sm:$0xff]  }
  0x69   : > { %3306 = vmatprep.subr.bf16.mxu0 %v5647_v57  ;;  %3091 = vmatprep.mubr.bf16.mxu1 %v5684_v58  ;;  %v5788_v57 = vld [vmem:[%s8113_s1 + $0x14] ss:$24 sps:$4 sm:$0xff]   ;;  %v5741_v58 = vld [vmem:[%s8113_s1 + $0xf8] ss:$24 sps:$4 sm:$0xff]  }
  0x6a   : > { %3277 = vmatprep.mubr.bf16.mxu0 %v5686_v59  ;;  %v5748_v59 = vld [vmem:[%s6398_s5 + $0xe0] ss:$36 sps:$4 sm:$0xff]  }
  0x6b   : > { %3121 = vmatpush1.bf16.msra.mxu1 %v5642_v60  ;;  %v5752_v60 = vld [vmem:[%s8113_s1 + $0x12c] ss:$24 sps:$4 sm:$0xff]  }
  0x6c   : > { %3307 = vmatpush1.bf16.msra.mxu0 %v5645_v61  ;;  %3122 = vmatprep.subr.bf16.mxu1 %v5655_v62  ;;  %v5749_v61 = vld [vmem:[%s6398_s5 + $0xf0] ss:$36 sps:$4 sm:$0xff]   ;;  %v5750_v62 = vld [vmem:[%s8113_s1 + $0x128] ss:$24 sps:$4 sm:$0xff]  }
  0x6d   : > { %3308 = vmatprep.subr.bf16.mxu0 %v5659_v63  ;;  %v5758_v63 = vld [vmem:[%s8113_s1 + $0x15c] ss:$24 sps:$4 sm:$0xff]  }
  0x6e   : > { %3092 = vmatmul.mubr.bf16.gmra.mrb[20].mxu1 %v5688_v2  ;;  %v5756_v2 = vld [vmem:[%s8113_s1 + $0x158] ss:$24 sps:$4 sm:$0xff]  }
  0x6f   : > { %3278 = vmatmul.mubr.bf16.gmra.mrb[20].mxu0 %v5692_v3  ;;  %3123 = vmatpush1.bf16.msra.mxu1 %v5653_v0  ;;  %v5759_v0 = vld [vmem:[%s6398_s5 + $0x12c] ss:$36 sps:$4 sm:$0xff]  }
  0x70   : > { %3309 = vmatpush1.bf16.msra.mxu0 %v5657_v1  ;;  %3124 = vmatprep.subr.bf16.mxu1 %v5662_v4  ;;  %v5761_v1 = vld [vmem:[%s6398_s5 + $0x13c] ss:$36 sps:$4 sm:$0xff]   ;;  %v5763_v3 = vld [vmem:[%s6398_s5 + $0x128] ss:$36 sps:$4 sm:$0xff]  }
  0x71   : > { %3310 = vmatprep.subr.bf16.mxu0 %v5665_v5  ;;  %3134 = vmatprep.mubr.bf16.mxu1 %v5704_v6  ;;  %v5767_v4 = vld [vmem:[%s8113_s1 + $0x18c] ss:$24 sps:$4 sm:$0xff]   ;;  %v5764_v5 = vld [vmem:[%s6398_s5 + $0x138] ss:$36 sps:$4 sm:$0xff]   ;;  %v5765_v6 = vld [vmem:[%s8113_s1 + $0x188] ss:$24 sps:$4 sm:$0xff]  }
  0x72   : > { %3320 = vmatprep.mubr.bf16.mxu0 %v5707_v7  ;;  %v5770_v7 = vld [vmem:[%s8113_s1 + $0x1bc] ss:$24 sps:$4 sm:$0xff]  }
  0x73   : > { %3125 = vmatpush1.bf16.msra.mxu1 %v5660_v8  ;;  %v5774_v8 = vld [vmem:[%s6398_s5 + $0x174] ss:$36 sps:$4 sm:$0xff]  }
  0x74   : > { %3311 = vmatpush1.bf16.msra.mxu0 %v5663_v9  ;;  %3126 = vmatprep.subr.bf16.mxu1 %v5673_v10  ;;  %v5776_v9 = vld [vmem:[%s6398_s5 + $0x184] ss:$36 sps:$4 sm:$0xff]   ;;  %v5768_v10 = vld [vmem:[%s8113_s1 + $0x1b8] ss:$24 sps:$4 sm:$0xff]  }
  0x75   : > { %3312 = vmatprep.subr.bf16.mxu0 %v5677_v11  ;;  %v5782_v11 = vld [vmem:[%s8113_s1 + $0x1ec] ss:$24 sps:$4 sm:$0xff]  }
  0x77   : > { %3127 = vmatpush1.bf16.msra.mxu1 %v5671_v12  ;;  %v5778_v12 = vld [vmem:[%s6398_s5 + $0x170] ss:$36 sps:$4 sm:$0xff]  }
  0x78   : > { %3313 = vmatpush1.bf16.msra.mxu0 %v5675_v13  ;;  %3128 = vmatprep.subr.bf16.mxu1 %v5680_v14  ;;  %v5779_v13 = vld [vmem:[%s6398_s5 + $0x180] ss:$36 sps:$4 sm:$0xff]  }
  0x79   : > { %3314 = vmatprep.subr.bf16.mxu0 %v5683_v15  ;;  %v5780_v14 = vld [vmem:[%s8113_s1 + $0x1e8] ss:$24 sps:$4 sm:$0xff]   ;;  %v5785_v15 = vld [vmem:[%s8113_s1 + $0x21c] ss:$24 sps:$4 sm:$0xff]  }
  0x7b   : > { %3129 = vmatpush1.bf16.msra.mxu1 %v5678_v16  ;;  %v5783_v16 = vld [vmem:[%s8113_s1 + $0x218] ss:$24 sps:$4 sm:$0xff]  }
  0x7c   : > { %3315 = vmatpush1.bf16.msra.mxu0 %v5681_v17  ;;  %3130 = vmatprep.subr.bf16.mxu1 %v5691_v18  ;;  %v6226_v17 = vmov 0   ;;  %v5792_v18 = vld [vmem:[%s8113_s1 + $0x24c] ss:$24 sps:$4 sm:$0xff]  }
  0x7d   : > { %3316 = vmatprep.subr.bf16.mxu0 %v5695_v19  ;;  %v6801_v19 = vld [vmem:[%s6398_s5 + $0x4] ss:$36 sps:$4 sm:$0xff]  }
  0x7f   : > { %3131 = vmatpush1.bf16.msra.mxu1 %v5689_v20  ;;  %v5789_v20 = vld [vmem:[%s6398_s5 + $0x20] ss:$36 sps:$4 sm:$0xff]  }
  0x80   : > { %3317 = vmatpush1.bf16.msra.mxu0 %v5693_v21  ;;  %3132 = vmatprep.subr.bf16.mxu1 %v5698_v22  ;;  %v5786_v21 = vld [vmem:[%s8113_s1 + $0x10] ss:$24 sps:$4 sm:$0xff]  }
  0x81   : > { %3318 = vmatprep.subr.bf16.mxu0 %v5701_v23  ;;  %v5790_v22 = vld [vmem:[%s8113_s1 + $0x248] ss:$24 sps:$4 sm:$0xff]   ;;  %v5795_v23 = vld [vmem:[%s8113_s1 + $0x44] ss:$24 sps:$4 sm:$0xff]  }
  0x83   : > { %3133 = vmatpush1.bf16.msra.mxu1 %v5696_v24  ;;  %v5798_v24 = vld [vmem:[%s8113_s1 + $0x27c] ss:$24 sps:$4 sm:$0xff]  }
  0x84   : > { %3319 = vmatpush1.bf16.msra.mxu0 %v5699_v25  ;;  %3474 = vmatprep.subr.bf16.mxu1 %v5710_v26  ;;  %v5793_v25 = vld [vmem:[%s8113_s1 + $0x40] ss:$24 sps:$4 sm:$0xff]  }
  0x85   : > { %3381 = vmatprep.subr.bf16.mxu0 %v5713_v27  ;;  %v5796_v26 = vld [vmem:[%s8113_s1 + $0x278] ss:$24 sps:$4 sm:$0xff]   ;;  %v5801_v27 = vld [vmem:[%s8113_s1 + $0x74] ss:$24 sps:$4 sm:$0xff]  }
  0x86   : > { %3135 = vmatmul.mubr.bf16.vlgmr.msra.gmra.mrb[0].mxu1 %v5702_v28  ;;  %v5805_v28 = vld [vmem:[%s8113_s1 + $0x2ac] ss:$24 sps:$4 sm:$0xff]  }
  0x87   : > { %3321 = vmatmul.mubr.bf16.vlgmr.msra.gmra.mrb[0].mxu0 %v5705_v29  ;;  %3475 = vmatpush1.bf16.msra.mxu1 %v5708_v30  ;;  %v5802_v29 = vld [vmem:[%s6398_s5 + $0x68] ss:$36 sps:$4 sm:$0xff]  }
  0x88   : > { %3382 = vmatpush1.bf16.msra.mxu0 %v5711_v31  ;;  %3476 = vmatprep.subr.bf16.mxu1 %v5716_v32  ;;  %v5799_v30 = vld [vmem:[%s8113_s1 + $0x70] ss:$24 sps:$4 sm:$0xff]   ;;  %v5808_v32 = vld [vmem:[%s8113_s1 + $0xa4] ss:$24 sps:$4 sm:$0xff]  }
  0x89   : > { %3144 = vmatprep.mubr.bf16.mxu1 %v5717_v33  ;;  %3330 = vmatprep.mubr.bf16.mxu0 %v5719_v34  ;;  %v5803_v31 = vld [vmem:[%s8113_s1 + $0x2a8] ss:$24 sps:$4 sm:$0xff]   ;;  %v5811_v33 = vld [vmem:[%s8113_s1 + $0x2dc] ss:$24 sps:$4 sm:$0xff]  }
  0x8a   : > { %3383 = vmatprep.subr.bf16.mxu0 %v5731_v35  ;;  %v5806_v34 = vld [vmem:[%s8113_s1 + $0xa0] ss:$24 sps:$4 sm:$0xff]  }
  0x8b   : > { %3477 = vmatpush1.bf16.msra.mxu1 %v5714_v36  ;;  %v5809_v35 = vld [vmem:[%s8113_s1 + $0x2d8] ss:$24 sps:$4 sm:$0xff]   ;;  %v5814_v36 = vld [vmem:[%s8113_s1 + $0xd4] ss:$24 sps:$4 sm:$0xff]  }
  0x8c   : > { %3384 = vmatpush1.bf16.msra.mxu0 %v5729_v38  ;;  %3478 = vmatprep.subr.bf16.mxu1 %v5725_v37  ;;  %v5818_v37 = vld [vmem:[%s8113_s1 + $0x30c] ss:$24 sps:$4 sm:$0xff]   ;;  %v5815_v38 = vld [vmem:[%s6398_s5 + $0xb0] ss:$36 sps:$4 sm:$0xff]  }
  0x8d   : > { %3385 = vmatprep.subr.bf16.mxu0 %v5755_v39  ;;  %v5812_v39 = vld [vmem:[%s8113_s1 + $0xd0] ss:$24 sps:$4 sm:$0xff]  }
  0x8e   : > { %3145 = vmatmul.mubr.bf16.gmra.mrb[4].mxu1 %v5721_v40  ;;  %v5816_v40 = vld [vmem:[%s8113_s1 + $0x308] ss:$24 sps:$4 sm:$0xff]  }
  0x8f   : > { %3331 = vmatmul.mubr.bf16.gmra.mrb[4].mxu0 %v5722_v41  ;;  %3479 = vmatpush1.bf16.msra.mxu1 %v5723_v42  ;;  %v5821_v41 = vld [vmem:[%s8113_s1 + $0x104] ss:$24 sps:$4 sm:$0xff]  }
  0x90   : > { %3154 = vmatprep.mubr.bf16.mxu1 %v5732_v44  ;;  %3480 = vmatprep.subr.bf16.mxu1 %v5728_v43  ;;  %v5824_v42 = vld [vmem:[%s8113_s1 + $0x33c] ss:$24 sps:$4 sm:$0xff]   ;;  %v6873_v43 = vld [vmem:[%s6398_s5] ss:$36 sps:$4 sm:$0xff]  }
  0x91   : > { %3340 = vmatprep.mubr.bf16.mxu0 %v5734_v45  ;;  %3386 = vmatpush1.bf16.msra.mxu0 %v5753_v46  ;;  %v5819_v44 = vld [vmem:[%s8113_s1 + $0x100] ss:$24 sps:$4 sm:$0xff]   ;;  %v5827_v46 = vld [vmem:[%s8113_s1 + $0x134] ss:$24 sps:$4 sm:$0xff]  }
  0x92   : > { %3387 = vmatprep.subr.bf16.mxu0 %v5773_v47  ;;  %v5822_v45 = vld [vmem:[%s8113_s1 + $0x338] ss:$24 sps:$4 sm:$0xff]   ;;  %v5831_v47 = vld [vmem:[%s8113_s1 + $0x36c] ss:$24 sps:$4 sm:$0xff]  }
  0x93   : > { %3481 = vmatpush1.bf16.msra.mxu1 %v5726_v48  ;;  %v6890_v48 = vld [vmem:[%s6398_s5 + $0x4c] ss:$36 sps:$4 sm:$0xff]  }
  0x94   : > { %3482 = vmatprep.subr.bf16.mxu1 %v5740_v50  ;;  %v5825_v50 = vld [vmem:[%s8113_s1 + $0x130] ss:$24 sps:$4 sm:$0xff]  }
  0x95   : > { %3388 = vmatpush1.bf16.msra.mxu0 %v5771_v51  ;;  %v5829_v51 = vld [vmem:[%s8113_s1 + $0x368] ss:$24 sps:$4 sm:$0xff]  }
  0x96   : > { %3155 = vmatmul.mubr.bf16.gmra.mrb[8].mxu1 %v5736_v49  ;;  %3939 = vmatprep.subr.bf16.mxu0 %v5788_v57  ;;  %v5828_v49 = vld [vmem:[%s6398_s5 + $0xf8] ss:$36 sps:$4 sm:$0xff]   ;;  %v5840_v57 = vld [vmem:[%s8113_s1 + $0x194] ss:$24 sps:$4 sm:$0xff]  }
  0x97   : > { %3341 = vmatmul.mubr.bf16.gmra.mrb[8].mxu0 %v5737_v52  ;;  %3483 = vmatpush1.bf16.msra.mxu1 %v5738_v53  ;;  %v5834_v52 = vld [vmem:[%s8113_s1 + $0x164] ss:$24 sps:$4 sm:$0xff]  }
  0x98   : > { %3164 = vmatprep.mubr.bf16.mxu1 %v5744_v55  ;;  %3484 = vmatprep.subr.bf16.mxu1 %v5743_v54  ;;  %v5837_v53 = vld [vmem:[%s8113_s1 + $0x39c] ss:$24 sps:$4 sm:$0xff]   ;;  %v6908_v54 = vld [vmem:[%s6398_s5 + $0x48] ss:$36 sps:$4 sm:$0xff]   ;;  %v5832_v55 = vld [vmem:[%s8113_s1 + $0x160] ss:$24 sps:$4 sm:$0xff]  }
  0x99   : > { %3350 = vmatprep.mubr.bf16.mxu0 %v5746_v56  ;;  %v5835_v56 = vld [vmem:[%s8113_s1 + $0x398] ss:$24 sps:$4 sm:$0xff]  }
  0x9b   : > { %3485 = vmatpush1.bf16.msra.mxu1 %v5741_v58  ;;  %v5844_v58 = vld [vmem:[%s8113_s1 + $0x3cc] ss:$24 sps:$4 sm:$0xff]  }
  0x9c   : > { %3486 = vmatprep.subr.bf16.mxu1 %v5752_v60  ;;  %v5841_v60 = vld [vmem:[%s6398_s5 + $0x140] ss:$36 sps:$4 sm:$0xff]  }
  0x9e   : > { %3165 = vmatmul.mubr.bf16.gmra.mrb[12].mxu1 %v5748_v59  ;;  %v6925_v59 = vld [vmem:[%s6398_s5 + $0x94] ss:$36 sps:$4 sm:$0xff]  }
  0x9f   : > { %3351 = vmatmul.mubr.bf16.gmra.mrb[12].mxu0 %v5749_v61  ;;  %3487 = vmatpush1.bf16.msra.mxu1 %v5750_v62  ;;  %v5838_v61 = vld [vmem:[%s8113_s1 + $0x190] ss:$24 sps:$4 sm:$0xff]  }
  0xa0   : > { %3174 = vmatprep.mubr.bf16.mxu1 %v5759_v0  ;;  %3488 = vmatprep.subr.bf16.mxu1 %v5758_v63  ;;  %v5842_v62 = vld [vmem:[%s8113_s1 + $0x3c8] ss:$24 sps:$4 sm:$0xff]   ;;  %v5847_v63 = vld [vmem:[%s8113_s1 + $0x1c4] ss:$24 sps:$4 sm:$0xff]  }
  0xa1   : > { %3360 = vmatprep.mubr.bf16.mxu0 %v5761_v1  ;;  %v5850_v0 = vld [vmem:[%s8113_s1 + $0x3fc] ss:$24 sps:$4 sm:$0xff]  }
  0xa2   : > { %v6943_v1 = vld [vmem:[%s6398_s5 + $0x90] ss:$36 sps:$4 sm:$0xff]  }
  0xa3   : > { %3489 = vmatpush1.bf16.msra.mxu1 %v5756_v2  ;;  %v5845_v2 = vld [vmem:[%s8113_s1 + $0x1c0] ss:$24 sps:$4 sm:$0xff]  }
  0xa4   : > { %3490 = vmatprep.subr.bf16.mxu1 %v5767_v4  ;;  %v5853_v4 = vld [vmem:[%s8113_s1 + $0x1f4] ss:$24 sps:$4 sm:$0xff]  }
  0xa6   : > { %3175 = vmatmul.mubr.bf16.gmra.mrb[16].mxu1 %v5763_v3  ;;  %v5848_v3 = vld [vmem:[%s8113_s1 + $0x3f8] ss:$24 sps:$4 sm:$0xff]  }
  0xa7   : > { %3361 = vmatmul.mubr.bf16.gmra.mrb[16].mxu0 %v5764_v5  ;;  %3491 = vmatpush1.bf16.msra.mxu1 %v5765_v6  ;;  %v5857_v5 = vld [vmem:[%s8113_s1 + $0x42c] ss:$24 sps:$4 sm:$0xff]   ;;  %v6960_v6 = vld [vmem:[%s6398_s5 + $0xdc] ss:$36 sps:$4 sm:$0xff]  }
  0xa8   : > { %3184 = vmatprep.mubr.bf16.mxu1 %v5774_v8  ;;  %3492 = vmatprep.subr.bf16.mxu1 %v5770_v7  ;;  %v5854_v7 = vld [vmem:[%s6398_s5 + $0x188] ss:$36 sps:$4 sm:$0xff]  }
  0xa9   : > { %3370 = vmatprep.mubr.bf16.mxu0 %v5776_v9  ;;  %v5851_v8 = vld [vmem:[%s8113_s1 + $0x1f0] ss:$24 sps:$4 sm:$0xff]  }
  0xaa   : > { %v5855_v9 = vld [vmem:[%s8113_s1 + $0x428] ss:$24 sps:$4 sm:$0xff]  }
  0xab   : > { %3493 = vmatpush1.bf16.msra.mxu1 %v5768_v10  ;;  %v5860_v10 = vld [vmem:[%s8113_s1 + $0x224] ss:$24 sps:$4 sm:$0xff]  }
  0xac   : > { %3494 = vmatprep.subr.bf16.mxu1 %v5782_v11  ;;  %v5863_v11 = vld [vmem:[%s8113_s1 + $0x45c] ss:$24 sps:$4 sm:$0xff]  }
  0xae   : > { %3185 = vmatmul.mubr.bf16.gmra.mrb[20].mxu1 %v5778_v12  ;;  %v6978_v12 = vld [vmem:[%s6398_s5 + $0xd8] ss:$36 sps:$4 sm:$0xff]  }
  0xaf   : > { %3371 = vmatmul.mubr.bf16.gmra.mrb[20].mxu0 %v5779_v13  ;;  %3495 = vmatpush1.bf16.msra.mxu1 %v5780_v14  ;;  %v5858_v13 = vld [vmem:[%s8113_s1 + $0x220] ss:$24 sps:$4 sm:$0xff]  }
  0xb0   : > { %3413 = vmatprep.mubr.bf16.mxu0 %v6226_v17  ;;  %3496 = vmatprep.subr.bf16.mxu1 %v5785_v15  ;;  %v5861_v14 = vld [vmem:[%s8113_s1 + $0x458] ss:$24 sps:$4 sm:$0xff]   ;;  %v5866_v15 = vld [vmem:[%s8113_s1 + $0x254] ss:$24 sps:$4 sm:$0xff]  }
  0xb1   : > { %3506 = vmatprep.mubr.bf16.mxu1 %v6801_v19 }
  0xb3   : > { %3497 = vmatpush1.bf16.msra.mxu1 %v5783_v16  ;;  %v5869_v16 = vld [vmem:[%s8113_s1 + $0x48c] ss:$24 sps:$4 sm:$0xff]  }
  0xb4   : > { %3498 = vmatprep.subr.bf16.mxu1 %v5792_v18  ;;  %v6995_v18 = vld [vmem:[%s6398_s5 + $0x124] ss:$36 sps:$4 sm:$0xff]  }
  0xb7   : > { %5075 = vmatmul.mubr.msk.bf16.vlgmr.msra.gmra.mrb[0].mxu0 %vm2990_vm0, %v5789_v20  ;;  %3499 = vmatpush1.bf16.msra.mxu1 %v5790_v22  ;;  %v5864_v20 = vld [vmem:[%s8113_s1 + $0x250] ss:$24 sps:$4 sm:$0xff]   ;;  %v5875_v22 = vld [vmem:[%s8113_s1 + $0x4bc] ss:$24 sps:$4 sm:$0xff]  }
  0xb8   : > { %3940 = vmatpush1.bf16.msra.mxu0 %v5786_v21  ;;  %3500 = vmatprep.subr.bf16.mxu1 %v5798_v24  ;;  %v5867_v21 = vld [vmem:[%s8113_s1 + $0x488] ss:$24 sps:$4 sm:$0xff]  }
  0xb9   : > { %3941 = vmatprep.subr.bf16.mxu0 %v5795_v23  ;;  %3423 = vmatprep.mubr.bf16.mxu0 %v6226_v17  ;;  %v7011_v23 = vld [vmem:[%s6398_s5 + $0x120] ss:$36 sps:$4 sm:$0xff]  }
  0xba   : > { %v5870_v24 = vld [vmem:[%s8113_s1 + $0x280] ss:$24 sps:$4 sm:$0xff]  }
  0xbb   : > { %3501 = vmatpush1.bf16.msra.mxu1 %v5796_v26  ;;  %v5878_v26 = vld [vmem:[%s8113_s1 + $0x2b4] ss:$24 sps:$4 sm:$0xff]  }
  0xbc   : > { %3942 = vmatpush1.bf16.msra.mxu0 %v5793_v25  ;;  %3502 = vmatprep.subr.bf16.mxu1 %v5805_v28  ;;  %v5873_v25 = vld [vmem:[%s8113_s1 + $0x4b8] ss:$24 sps:$4 sm:$0xff]  }
  0xbd   : > { %3943 = vmatprep.subr.bf16.mxu0 %v5801_v27  ;;  %v5881_v27 = vld [vmem:[%s8113_s1 + $0x4ec] ss:$24 sps:$4 sm:$0xff]  }
  0xbe   : > { %v7027_v28 = vld [vmem:[%s6398_s5 + $0x16c] ss:$36 sps:$4 sm:$0xff]  }
  0xbf   : > { %5076 = vmatmul.mubr.msk.bf16.gmra.mrb[4].mxu0 %vm2990_vm0, %v5802_v29  ;;  %3503 = vmatpush1.bf16.msra.mxu1 %v5803_v31  ;;  %v5876_v29 = vld [vmem:[%s8113_s1 + $0x2b0] ss:$24 sps:$4 sm:$0xff]   ;;  %v5884_v31 = vld [vmem:[%s8113_s1 + $0x2e4] ss:$24 sps:$4 sm:$0xff]  }
  0xc0   : > { %3944 = vmatpush1.bf16.msra.mxu0 %v5799_v30  ;;  %3504 = vmatprep.subr.bf16.mxu1 %v5811_v33  ;;  %v5879_v30 = vld [vmem:[%s8113_s1 + $0x4e8] ss:$24 sps:$4 sm:$0xff]  }
  0xc1   : > { %3945 = vmatprep.subr.bf16.mxu0 %v5808_v32  ;;  %3433 = vmatprep.mubr.bf16.mxu0 %v6226_v17  ;;  %v5887_v32 = vld [vmem:[%s8113_s1 + $0x51c] ss:$24 sps:$4 sm:$0xff]   ;;  %v7043_v33 = vld [vmem:[%s6398_s5 + $0x168] ss:$36 sps:$4 sm:$0xff]  }
  0xc3   : > { %3505 = vmatpush1.bf16.msra.mxu1 %v5809_v35  ;;  %v5885_v35 = vld [vmem:[%s8113_s1 + $0x518] ss:$24 sps:$4 sm:$0xff]  }
  0xc4   : > { %3946 = vmatpush1.bf16.msra.mxu0 %v5806_v34  ;;  %3567 = vmatprep.subr.bf16.mxu1 %v5818_v37  ;;  %v5882_v34 = vld [vmem:[%s8113_s1 + $0x2e0] ss:$24 sps:$4 sm:$0xff]   ;;  %v5893_v37 = vld [vmem:[%s8113_s1 + $0x54c] ss:$24 sps:$4 sm:$0xff]  }
  0xc5   : > { %3947 = vmatprep.subr.bf16.mxu0 %v5814_v36  ;;  %v5890_v36 = vld [vmem:[%s8113_s1 + $0x314] ss:$24 sps:$4 sm:$0xff]  }
  0xc6   : > { %3507 = vmatmul.mubr.bf16.vlgmr.msra.gmra.mrb[24].mxu1 %v6873_v43 }
  0xc7   : > { %5077 = vmatmul.mubr.msk.bf16.gmra.mrb[8].mxu0 %vm2990_vm0, %v5815_v38  ;;  %3568 = vmatpush1.bf16.msra.mxu1 %v5816_v40  ;;  %v7059_v38 = vld [vmem:[%s6398_s5 + $0xc] ss:$36 sps:$4 sm:$0xff]   ;;  %v5891_v40 = vld [vmem:[%s8113_s1 + $0x548] ss:$24 sps:$4 sm:$0xff]  }
  0xc8   : > { %3948 = vmatpush1.bf16.msra.mxu0 %v5812_v39  ;;  %3569 = vmatprep.subr.bf16.mxu1 %v5824_v42  ;;  %v5888_v39 = vld [vmem:[%s8113_s1 + $0x310] ss:$24 sps:$4 sm:$0xff]   ;;  %v5899_v42 = vld [vmem:[%s8113_s1 + $0x57c] ss:$24 sps:$4 sm:$0xff]  }
  0xc9   : > { %3949 = vmatprep.subr.bf16.mxu0 %v5821_v41  ;;  %3443 = vmatprep.mubr.bf16.mxu0 %v6226_v17  ;;  %v5896_v41 = vld [vmem:[%s8113_s1 + $0x344] ss:$24 sps:$4 sm:$0xff]  }
  0xca   : > { %3516 = vmatprep.mubr.bf16.mxu1 %v6890_v48 }
  0xcb   : > { %3570 = vmatpush1.bf16.msra.mxu1 %v5822_v45  ;;  %v5897_v45 = vld [vmem:[%s8113_s1 + $0x578] ss:$24 sps:$4 sm:$0xff]  }
  0xcc   : > { %3950 = vmatpush1.bf16.msra.mxu0 %v5819_v44  ;;  %3571 = vmatprep.subr.bf16.mxu1 %v5831_v47  ;;  %v5894_v44 = vld [vmem:[%s8113_s1 + $0x340] ss:$24 sps:$4 sm:$0xff]   ;;  %v5900_v47 = vld [vmem:[%s8113_s1 + $0x370] ss:$24 sps:$4 sm:$0xff]  }
  0xcd   : > { %3951 = vmatprep.subr.bf16.mxu0 %v5827_v46  ;;  %v5902_v46 = vld [vmem:[%s8113_s1 + $0x374] ss:$24 sps:$4 sm:$0xff]  }
  0xce   : > { %3517 = vmatmul.mubr.bf16.gmra.mrb[28].mxu1 %v6908_v54 }
  0xcf   : > { %5078 = vmatmul.mubr.msk.bf16.gmra.mrb[12].mxu0 %vm2990_vm0, %v5828_v49  ;;  %3572 = vmatpush1.bf16.msra.mxu1 %v5829_v51  ;;  %v5903_v49 = vld [vmem:[%s8113_s1 + $0x5a8] ss:$24 sps:$4 sm:$0xff]  }
  0xd0   : > { %3952 = vmatpush1.bf16.msra.mxu0 %v5825_v50  ;;  %3573 = vmatprep.subr.bf16.mxu1 %v5837_v53  ;;  %v5908_v50 = vld [vmem:[%s8113_s1 + $0x3a4] ss:$24 sps:$4 sm:$0xff]   ;;  %v5906_v51 = vld [vmem:[%s8113_s1 + $0x3a0] ss:$24 sps:$4 sm:$0xff]   ;;  %v5914_v53 = vld [vmem:[%s8113_s1 + $0x3d4] ss:$24 sps:$4 sm:$0xff]  }
  0xd1   : > { %3953 = vmatprep.subr.bf16.mxu0 %v5834_v52  ;;  %3453 = vmatprep.mubr.bf16.mxu0 %v6226_v17  ;;  %v5909_v52 = vld [vmem:[%s8113_s1 + $0x5d8] ss:$24 sps:$4 sm:$0xff]  }
  0xd2   : > { %3526 = vmatprep.mubr.bf16.mxu1 %v6925_v59 }
  0xd3   : > { %3574 = vmatpush1.bf16.msra.mxu1 %v5835_v56  ;;  %v5915_v56 = vld [vmem:[%s8113_s1 + $0x608] ss:$24 sps:$4 sm:$0xff]  }
  0xd4   : > { %3954 = vmatpush1.bf16.msra.mxu0 %v5832_v55  ;;  %3575 = vmatprep.subr.bf16.mxu1 %v5844_v58  ;;  %v5912_v55 = vld [vmem:[%s8113_s1 + $0x3d0] ss:$24 sps:$4 sm:$0xff]   ;;  %v5923_v58 = vld [vmem:[%s8113_s1 + $0x63c] ss:$24 sps:$4 sm:$0xff]  }
  0xd5   : > { %3955 = vmatprep.subr.bf16.mxu0 %v5840_v57  ;;  %v5920_v57 = vld [vmem:[%s8113_s1 + $0x404] ss:$24 sps:$4 sm:$0xff]  }
  0xd6   : > { %3527 = vmatmul.mubr.bf16.gmra.mrb[32].mxu1 %v6943_v1 }
  0xd7   : > { %5079 = vmatmul.mubr.msk.bf16.gmra.mrb[16].mxu0 %vm2990_vm0, %v5841_v60  ;;  %3576 = vmatpush1.bf16.msra.mxu1 %v5842_v62  ;;  %v5918_v60 = vld [vmem:[%s8113_s1 + $0x400] ss:$24 sps:$4 sm:$0xff]   ;;  %v5926_v62 = vld [vmem:[%s8113_s1 + $0x434] ss:$24 sps:$4 sm:$0xff]  }
  0xd8   : > { %3956 = vmatpush1.bf16.msra.mxu0 %v5838_v61  ;;  %3577 = vmatprep.subr.bf16.mxu1 %v5850_v0  ;;  %v5921_v61 = vld [vmem:[%s8113_s1 + $0x638] ss:$24 sps:$4 sm:$0xff]  }
  0xd9   : > { %3957 = vmatprep.subr.bf16.mxu0 %v5847_v63  ;;  %3463 = vmatprep.mubr.bf16.mxu0 %v6226_v17  ;;  %v5929_v63 = vld [vmem:[%s8113_s1 + $0x66c] ss:$24 sps:$4 sm:$0xff]   ;;  %v7145_v0 = vld [vmem:[%s6398_s5 + $0x54] ss:$36 sps:$4 sm:$0xff]  }
  0xda   : > { %3536 = vmatprep.mubr.bf16.mxu1 %v6960_v6 }
  0xdb   : > { %3578 = vmatpush1.bf16.msra.mxu1 %v5848_v3  ;;  %v5932_v3 = vld [vmem:[%s8113_s1 + $0x464] ss:$24 sps:$4 sm:$0xff]  }
  0xdc   : > { %3958 = vmatpush1.bf16.msra.mxu0 %v5845_v2  ;;  %3579 = vmatprep.subr.bf16.mxu1 %v5857_v5  ;;  %v5927_v2 = vld [vmem:[%s8113_s1 + $0x668] ss:$24 sps:$4 sm:$0xff]  }
  0xdd   : > { %3959 = vmatprep.subr.bf16.mxu0 %v5853_v4  ;;  %v5935_v4 = vld [vmem:[%s8113_s1 + $0x69c] ss:$24 sps:$4 sm:$0xff]   ;;  %v5930_v5 = vld [vmem:[%s8113_s1 + $0x460] ss:$24 sps:$4 sm:$0xff]  }
  0xde   : > { %3537 = vmatmul.mubr.bf16.gmra.mrb[36].mxu1 %v6978_v12 }
  0xdf   : > { %5080 = vmatmul.mubr.msk.bf16.gmra.mrb[20].mxu0 %vm2990_vm0, %v5854_v7  ;;  %3580 = vmatpush1.bf16.msra.mxu1 %v5855_v9  ;;  %v5933_v7 = vld [vmem:[%s8113_s1 + $0x698] ss:$24 sps:$4 sm:$0xff]   ;;  %v5941_v9 = vld [vmem:[%s8113_s1 + $0x6cc] ss:$24 sps:$4 sm:$0xff]  }
  0xe0   : > { %3960 = vmatpush1.bf16.msra.mxu0 %v5851_v8  ;;  %3581 = vmatprep.subr.bf16.mxu1 %v5863_v11  ;;  %v5938_v8 = vld [vmem:[%s8113_s1 + $0x494] ss:$24 sps:$4 sm:$0xff]   ;;  %v5936_v11 = vld [vmem:[%s8113_s1 + $0x490] ss:$24 sps:$4 sm:$0xff]  }
  0xe1   : > { %3961 = vmatprep.subr.bf16.mxu0 %v5860_v10  ;;  %3971 = vmatprep.mubr.bf16.mxu0 %v6801_v19  ;;  %v5872_v19 = vld [vmem:[%s8113_s1 + $0x284] ss:$24 sps:$4 sm:$0xff]  }
  0xe2   : > { %3546 = vmatprep.mubr.bf16.mxu1 %v6995_v18  ;;  %v7179_v10 = vld [vmem:[%s6398_s5 + $0x9c] ss:$36 sps:$4 sm:$0xff]  }
  0xe3   : > { %3582 = vmatpush1.bf16.msra.mxu1 %v5861_v14  ;;  %v5947_v14 = vld [vmem:[%s8113_s1 + $0x6fc] ss:$24 sps:$4 sm:$0xff]  }
  0xe4   : > { %3962 = vmatpush1.bf16.msra.mxu0 %v5858_v13  ;;  %3583 = vmatprep.subr.bf16.mxu1 %v5869_v16  ;;  %v5944_v13 = vld [vmem:[%s8113_s1 + $0x4c4] ss:$24 sps:$4 sm:$0xff]  }
  0xe5   : > { %3963 = vmatprep.subr.bf16.mxu0 %v5866_v15  ;;  %v5942_v15 = vld [vmem:[%s8113_s1 + $0x4c0] ss:$24 sps:$4 sm:$0xff]  }
  0xe6   : > { %3547 = vmatmul.mubr.bf16.gmra.mrb[40].mxu1 %v7011_v23  ;;  %v7199_v16 = vld [vmem:[%s6398_s5 + $0x98] ss:$36 sps:$4 sm:$0xff]  }
  0xe7   : > { %3584 = vmatpush1.bf16.msra.mxu1 %v5867_v21  ;;  %3556 = vmatprep.mubr.bf16.mxu1 %v7027_v28  ;;  %v5953_v21 = vld [vmem:[%s8113_s1 + $0x72c] ss:$24 sps:$4 sm:$0xff]  }
  0xe8   : > { %3964 = vmatpush1.bf16.msra.mxu0 %v5864_v20  ;;  %3585 = vmatprep.subr.bf16.mxu1 %v5875_v22  ;;  %v5950_v20 = vld [vmem:[%s8113_s1 + $0x4f4] ss:$24 sps:$4 sm:$0xff]   ;;  %v5948_v22 = vld [vmem:[%s8113_s1 + $0x4f0] ss:$24 sps:$4 sm:$0xff]  }
  0xe9   : > { %3965 = vmatprep.subr.bf16.mxu0 %v5872_v19  ;;  %v7213_v19 = vld [vmem:[%s6398_s5 + $0xe4] ss:$36 sps:$4 sm:$0xff]  }
  0xeb   : > { %3586 = vmatpush1.bf16.msra.mxu1 %v5873_v25  ;;  %v5959_v25 = vld [vmem:[%s8113_s1 + $0x75c] ss:$24 sps:$4 sm:$0xff]  }
  0xec   : > { %3966 = vmatpush1.bf16.msra.mxu0 %v5870_v24  ;;  %3587 = vmatprep.subr.bf16.mxu1 %v5881_v27  ;;  %v5956_v24 = vld [vmem:[%s8113_s1 + $0x524] ss:$24 sps:$4 sm:$0xff]  }
  0xed   : > { %3967 = vmatprep.subr.bf16.mxu0 %v5878_v26  ;;  %v5954_v26 = vld [vmem:[%s8113_s1 + $0x520] ss:$24 sps:$4 sm:$0xff]  }
  0xee   : > { %3557 = vmatmul.mubr.bf16.gmra.mrb[44].mxu1 %v7043_v33  ;;  %v7233_v27 = vld [vmem:[%s6398_s5 + $0xe0] ss:$36 sps:$4 sm:$0xff]  }
  0xef   : > { %3588 = vmatpush1.bf16.msra.mxu1 %v5879_v30  ;;  %3599 = vmatprep.mubr.bf16.mxu1 %v7059_v38  ;;  %v5965_v30 = vld [vmem:[%s8113_s1 + $0x78c] ss:$24 sps:$4 sm:$0xff]  }
  0xf0   : > { %3968 = vmatpush1.bf16.msra.mxu0 %v5876_v29  ;;  %3589 = vmatprep.subr.bf16.mxu1 %v5887_v32  ;;  %v5962_v29 = vld [vmem:[%s8113_s1 + $0x554] ss:$24 sps:$4 sm:$0xff]   ;;  %v5960_v32 = vld [vmem:[%s8113_s1 + $0x550] ss:$24 sps:$4 sm:$0xff]  }
  0xf1   : > { %3969 = vmatprep.subr.bf16.mxu0 %v5884_v31  ;;  %v7247_v31 = vld [vmem:[%s6398_s5 + $0x12c] ss:$36 sps:$4 sm:$0xff]  }
  0xf3   : > { %3590 = vmatpush1.bf16.msra.mxu1 %v5885_v35  ;;  %v5971_v35 = vld [vmem:[%s8113_s1 + $0x7bc] ss:$24 sps:$4 sm:$0xff]  }
  0xf4   : > { %3970 = vmatpush1.bf16.msra.mxu0 %v5882_v34  ;;  %3591 = vmatprep.subr.bf16.mxu1 %v5893_v37  ;;  %v5968_v34 = vld [vmem:[%s8113_s1 + $0x584] ss:$24 sps:$4 sm:$0xff]   ;;  %v7266_v37 = vld [vmem:[%s6398_s5 + $0x128] ss:$36 sps:$4 sm:$0xff]  }
  0xf5   : > { %4032 = vmatprep.subr.bf16.mxu0 %v5890_v36  ;;  %v5966_v36 = vld [vmem:[%s8113_s1 + $0x580] ss:$24 sps:$4 sm:$0xff]  }
  0xf7   : > { %3972 = vmatmul.mubr.bf16.vlgmr.msra.gmra.mrb[24].mxu0 %v6873_v43  ;;  %3592 = vmatpush1.bf16.msra.mxu1 %v5891_v40  ;;  %v5905_v43 = vld [vmem:[%s8113_s1 + $0x5ac] ss:$24 sps:$4 sm:$0xff]  }
  0xf8   : > { %4033 = vmatpush1.bf16.msra.mxu0 %v5888_v39  ;;  %3593 = vmatprep.subr.bf16.mxu1 %v5899_v42  ;;  %v5974_v39 = vld [vmem:[%s8113_s1 + $0x5b4] ss:$24 sps:$4 sm:$0xff]   ;;  %v5972_v42 = vld [vmem:[%s8113_s1 + $0x5b0] ss:$24 sps:$4 sm:$0xff]  }
  0xf9   : > { %4034 = vmatprep.subr.bf16.mxu0 %v5896_v41  ;;  %3981 = vmatprep.mubr.bf16.mxu0 %v6890_v48  ;;  %v5911_v48 = vld [vmem:[%s8113_s1 + $0x5dc] ss:$24 sps:$4 sm:$0xff]   ;;  %v5977_v40 = vld [vmem:[%s8113_s1 + $0x7ec] ss:$24 sps:$4 sm:$0xff]  }
  0xfa   : > { %v7279_v41 = vld [vmem:[%s6398_s5 + $0x174] ss:$36 sps:$4 sm:$0xff]  }
  0xfb   : > { %3594 = vmatpush1.bf16.msra.mxu1 %v5897_v45  ;;  %v5980_v45 = vld [vmem:[%s8113_s1 + $0x5e4] ss:$24 sps:$4 sm:$0xff]  }
  0xfc   : > { %4035 = vmatpush1.bf16.msra.mxu0 %v5894_v44  ;;  %3595 = vmatprep.subr.bf16.mxu1 %v5905_v43  ;;  %v5975_v44 = vld [vmem:[%s8113_s1 + $0x7e8] ss:$24 sps:$4 sm:$0xff]  }
  0xfd   : > { %4036 = vmatprep.subr.bf16.mxu0 %v5902_v46  ;;  %v5983_v46 = vld [vmem:[%s8113_s1 + $0x81c] ss:$24 sps:$4 sm:$0xff]   ;;  %v5978_v43 = vld [vmem:[%s8113_s1 + $0x5e0] ss:$24 sps:$4 sm:$0xff]  }
  0xff   : > { %3982 = vmatmul.mubr.bf16.gmra.mrb[28].mxu0 %v6908_v54  ;;  %3596 = vmatpush1.bf16.msra.mxu1 %v5903_v49  ;;  %v5917_v54 = vld [vmem:[%s8113_s1 + $0x60c] ss:$24 sps:$4 sm:$0xff]   ;;  %v5981_v49 = vld [vmem:[%s8113_s1 + $0x818] ss:$24 sps:$4 sm:$0xff]  }
 0x100   : > { %4037 = vmatpush1.bf16.msra.mxu0 %v5900_v47  ;;  %3597 = vmatprep.subr.bf16.mxu1 %v5911_v48  ;;  %v7298_v47 = vld [vmem:[%s6398_s5 + $0x170] ss:$36 sps:$4 sm:$0xff]   ;;  %v5989_v48 = vld [vmem:[%s8113_s1 + $0x84c] ss:$24 sps:$4 sm:$0xff]  }
 0x101   : > { %4038 = vmatprep.subr.bf16.mxu0 %v5908_v50  ;;  %3991 = vmatprep.mubr.bf16.mxu0 %v6925_v59  ;;  %v7127_v59 = vld [vmem:[%s6398_s5 + $0x8] ss:$36 sps:$4 sm:$0xff]  }
 0x102   : > { %v5986_v50 = vld [vmem:[%s8113_s1 + $0x614] ss:$24 sps:$4 sm:$0xff]  }
 0x103   : > { %3598 = vmatpush1.bf16.msra.mxu1 %v5909_v52  ;;  %v5984_v52 = vld [vmem:[%s8113_s1 + $0x610] ss:$24 sps:$4 sm:$0xff]  }
 0x104   : > { %4039 = vmatpush1.bf16.msra.mxu0 %v5906_v51  ;;  %3660 = vmatprep.subr.bf16.mxu1 %v5917_v54  ;;  %v7311_v51 = vld [vmem:[%s6398_s5 + $0x14] ss:$36 sps:$4 sm:$0xff]   ;;  %v5992_v54 = vld [vmem:[%s8113_s1 + $0x644] ss:$24 sps:$4 sm:$0xff]  }
 0x105   : > { %4040 = vmatprep.subr.bf16.mxu0 %v5914_v53  ;;  %v5987_v53 = vld [vmem:[%s8113_s1 + $0x848] ss:$24 sps:$4 sm:$0xff]  }
 0x106   : > { %3600 = vmatmul.mubr.bf16.vlgmr.msra.gmra.mrb[24].mxu1 %v7127_v59 }
 0x107   : > { %3992 = vmatmul.mubr.bf16.gmra.mrb[32].mxu0 %v6943_v1  ;;  %3661 = vmatpush1.bf16.msra.mxu1 %v5915_v56  ;;  %v5924_v1 = vld [vmem:[%s8113_s1 + $0x430] ss:$24 sps:$4 sm:$0xff]   ;;  %v5990_v56 = vld [vmem:[%s8113_s1 + $0x640] ss:$24 sps:$4 sm:$0xff]  }
 0x108   : > { %4041 = vmatpush1.bf16.msra.mxu0 %v5912_v55  ;;  %3662 = vmatprep.subr.bf16.mxu1 %v5923_v58  ;;  %v5995_v55 = vld [vmem:[%s8113_s1 + $0x87c] ss:$24 sps:$4 sm:$0xff]  }
 0x109   : > { %4042 = vmatprep.subr.bf16.mxu0 %v5920_v57  ;;  %4001 = vmatprep.mubr.bf16.mxu0 %v6960_v6  ;;  %v7165_v6 = vld [vmem:[%s6398_s5 + $0x50] ss:$36 sps:$4 sm:$0xff]  }
 0x10a   : > { %3609 = vmatprep.mubr.bf16.mxu1 %v7145_v0  ;;  %v5993_v57 = vld [vmem:[%s8113_s1 + $0x878] ss:$24 sps:$4 sm:$0xff]   ;;  %v5998_v58 = vld [vmem:[%s8113_s1 + $0x674] ss:$24 sps:$4 sm:$0xff]  }
 0x10b   : > { %3663 = vmatpush1.bf16.msra.mxu1 %v5921_v61  ;;  %v5999_v61 = vld [vmem:[%s8113_s1 + $0x8a8] ss:$24 sps:$4 sm:$0xff]  }
 0x10c   : > { %4043 = vmatpush1.bf16.msra.mxu0 %v5918_v60  ;;  %3664 = vmatprep.subr.bf16.mxu1 %v5929_v63  ;;  %v5996_v60 = vld [vmem:[%s8113_s1 + $0x670] ss:$24 sps:$4 sm:$0xff]   ;;  %v6007_v63 = vld [vmem:[%s8113_s1 + $0x8dc] ss:$24 sps:$4 sm:$0xff]  }
 0x10d   : > { %4044 = vmatprep.subr.bf16.mxu0 %v5926_v62  ;;  %v6004_v62 = vld [vmem:[%s8113_s1 + $0x6a4] ss:$24 sps:$4 sm:$0xff]  }
 0x10e   : > { %3610 = vmatmul.mubr.bf16.gmra.mrb[28].mxu1 %v7165_v6 }
 0x10f   : > { %4002 = vmatmul.mubr.bf16.gmra.mrb[36].mxu0 %v6978_v12  ;;  %3665 = vmatpush1.bf16.msra.mxu1 %v5927_v2  ;;  %v5939_v12 = vld [vmem:[%s8113_s1 + $0x6c8] ss:$24 sps:$4 sm:$0xff]   ;;  %v6010_v2 = vld [vmem:[%s8113_s1 + $0x6d4] ss:$24 sps:$4 sm:$0xff]  }
 0x110   : > { %4045 = vmatpush1.bf16.msra.mxu0 %v5924_v1  ;;  %3666 = vmatprep.subr.bf16.mxu1 %v5935_v4  ;;  %v6005_v1 = vld [vmem:[%s8113_s1 + $0x8d8] ss:$24 sps:$4 sm:$0xff]  }
 0x111   : > { %4046 = vmatprep.subr.bf16.mxu0 %v5932_v3  ;;  %4011 = vmatprep.mubr.bf16.mxu0 %v6995_v18  ;;  %v5945_v18 = vld [vmem:[%s8113_s1 + $0x6f8] ss:$24 sps:$4 sm:$0xff]   ;;  %v6013_v3 = vld [vmem:[%s8113_s1 + $0x90c] ss:$24 sps:$4 sm:$0xff]  }
 0x112   : > { %3619 = vmatprep.mubr.bf16.mxu1 %v7179_v10  ;;  %v6008_v4 = vld [vmem:[%s8113_s1 + $0x6d0] ss:$24 sps:$4 sm:$0xff]  }
 0x113   : > { %3667 = vmatpush1.bf16.msra.mxu1 %v5933_v7  ;;  %v6019_v7 = vld [vmem:[%s8113_s1 + $0x93c] ss:$24 sps:$4 sm:$0xff]  }
 0x114   : > { %4047 = vmatpush1.bf16.msra.mxu0 %v5930_v5  ;;  %3668 = vmatprep.subr.bf16.mxu1 %v5941_v9  ;;  %v6011_v5 = vld [vmem:[%s8113_s1 + $0x908] ss:$24 sps:$4 sm:$0xff]  }
 0x115   : > { %4048 = vmatprep.subr.bf16.mxu0 %v5938_v8  ;;  %v7379_v8 = vld [vmem:[%s6398_s5 + $0x10] ss:$36 sps:$4 sm:$0xff]   ;;  %v6014_v9 = vld [vmem:[%s8113_s1 + $0x700] ss:$24 sps:$4 sm:$0xff]  }
 0x116   : > { %3620 = vmatmul.mubr.bf16.gmra.mrb[32].mxu1 %v7199_v16 }
 0x117   : > { %4012 = vmatmul.mubr.bf16.gmra.mrb[40].mxu0 %v7011_v23  ;;  %3669 = vmatpush1.bf16.msra.mxu1 %v5939_v12  ;;  %v5951_v23 = vld [vmem:[%s8113_s1 + $0x728] ss:$24 sps:$4 sm:$0xff]   ;;  %v6025_v12 = vld [vmem:[%s8113_s1 + $0x96c] ss:$24 sps:$4 sm:$0xff]  }
 0x118   : > { %4049 = vmatpush1.bf16.msra.mxu0 %v5936_v11  ;;  %3670 = vmatprep.subr.bf16.mxu1 %v5947_v14  ;;  %v6022_v11 = vld [vmem:[%s8113_s1 + $0x734] ss:$24 sps:$4 sm:$0xff]   ;;  %v6020_v14 = vld [vmem:[%s8113_s1 + $0x730] ss:$24 sps:$4 sm:$0xff]  }
 0x119   : > { %4050 = vmatprep.subr.bf16.mxu0 %v5944_v13  ;;  %4021 = vmatprep.mubr.bf16.mxu0 %v7027_v28  ;;  %v5957_v28 = vld [vmem:[%s8113_s1 + $0x758] ss:$24 sps:$4 sm:$0xff]   ;;  %v7396_v13 = vld [vmem:[%s6398_s5 + $0x5c] ss:$36 sps:$4 sm:$0xff]  }
 0x11a   : > { %3629 = vmatprep.mubr.bf16.mxu1 %v7213_v19 }
 0x11b   : > { %3671 = vmatpush1.bf16.msra.mxu1 %v5945_v18  ;;  %v6031_v18 = vld [vmem:[%s8113_s1 + $0x99c] ss:$24 sps:$4 sm:$0xff]  }
 0x11c   : > { %4051 = vmatpush1.bf16.msra.mxu0 %v5942_v15  ;;  %3672 = vmatprep.subr.bf16.mxu1 %v5953_v21  ;;  %v6023_v15 = vld [vmem:[%s8113_s1 + $0x968] ss:$24 sps:$4 sm:$0xff]  }
 0x11d   : > { %4052 = vmatprep.subr.bf16.mxu0 %v5950_v20  ;;  %v7413_v20 = vld [vmem:[%s6398_s5 + $0x58] ss:$36 sps:$4 sm:$0xff]  }
 0x11e   : > { %3630 = vmatmul.mubr.bf16.gmra.mrb[36].mxu1 %v7233_v27  ;;  %v6026_v21 = vld [vmem:[%s8113_s1 + $0x760] ss:$24 sps:$4 sm:$0xff]  }
 0x11f   : > { %4022 = vmatmul.mubr.bf16.gmra.mrb[44].mxu0 %v7043_v33  ;;  %3673 = vmatpush1.bf16.msra.mxu1 %v5951_v23  ;;  %v5963_v33 = vld [vmem:[%s8113_s1 + $0x788] ss:$24 sps:$4 sm:$0xff]   ;;  %v6037_v23 = vld [vmem:[%s8113_s1 + $0x9cc] ss:$24 sps:$4 sm:$0xff]  }
 0x120   : > { %4053 = vmatpush1.bf16.msra.mxu0 %v5948_v22  ;;  %3674 = vmatprep.subr.bf16.mxu1 %v5959_v25  ;;  %v6034_v22 = vld [vmem:[%s8113_s1 + $0x794] ss:$24 sps:$4 sm:$0xff]   ;;  %v6032_v25 = vld [vmem:[%s8113_s1 + $0x790] ss:$24 sps:$4 sm:$0xff]  }
 0x121   : > { %4054 = vmatprep.subr.bf16.mxu0 %v5956_v24  ;;  %4064 = vmatprep.mubr.bf16.mxu0 %v7059_v38  ;;  %v5969_v38 = vld [vmem:[%s8113_s1 + $0x7b8] ss:$24 sps:$4 sm:$0xff]   ;;  %v7430_v24 = vld [vmem:[%s6398_s5 + $0xa4] ss:$36 sps:$4 sm:$0xff]  }
 0x122   : > { %3639 = vmatprep.mubr.bf16.mxu1 %v7247_v31 }
 0x123   : > { %3675 = vmatpush1.bf16.msra.mxu1 %v5957_v28  ;;  %v6043_v28 = vld [vmem:[%s8113_s1 + $0x9fc] ss:$24 sps:$4 sm:$0xff]  }
 0x124   : > { %4055 = vmatpush1.bf16.msra.mxu0 %v5954_v26  ;;  %3676 = vmatprep.subr.bf16.mxu1 %v5965_v30  ;;  %v6035_v26 = vld [vmem:[%s8113_s1 + $0x9c8] ss:$24 sps:$4 sm:$0xff]  }
 0x125   : > { %4056 = vmatprep.subr.bf16.mxu0 %v5962_v29  ;;  %v7447_v29 = vld [vmem:[%s6398_s5 + $0xa0] ss:$36 sps:$4 sm:$0xff]  }
 0x126   : > { %3640 = vmatmul.mubr.bf16.gmra.mrb[40].mxu1 %v7266_v37  ;;  %v6038_v30 = vld [vmem:[%s8113_s1 + $0x7c0] ss:$24 sps:$4 sm:$0xff]  }
 0x127   : > { %3677 = vmatpush1.bf16.msra.mxu1 %v5963_v33  ;;  %3649 = vmatprep.mubr.bf16.mxu1 %v7279_v41  ;;  %v6049_v33 = vld [vmem:[%s8113_s1 + $0xa2c] ss:$24 sps:$4 sm:$0xff]  }
 0x128   : > { %4057 = vmatpush1.bf16.msra.mxu0 %v5960_v32  ;;  %3678 = vmatprep.subr.bf16.mxu1 %v5971_v35  ;;  %v6046_v32 = vld [vmem:[%s8113_s1 + $0x7f4] ss:$24 sps:$4 sm:$0xff]  }
 0x129   : > { %4058 = vmatprep.subr.bf16.mxu0 %v5968_v34  ;;  %v7466_v35 = vld [vmem:[%s6398_s5 + $0xec] ss:$36 sps:$4 sm:$0xff]  }
 0x12b   : > { %3679 = vmatpush1.bf16.msra.mxu1 %v5969_v38  ;;  %v6044_v38 = vld [vmem:[%s8113_s1 + $0x7f0] ss:$24 sps:$4 sm:$0xff]  }
 0x12c   : > { %4059 = vmatpush1.bf16.msra.mxu0 %v5966_v36  ;;  %3680 = vmatprep.subr.bf16.mxu1 %v5977_v40 }
 0x12d   : > { %4060 = vmatprep.subr.bf16.mxu0 %v5974_v39  ;;  %v6047_v39 = vld [vmem:[%s8113_s1 + $0xa28] ss:$24 sps:$4 sm:$0xff]  }
 0x12e   : > { %3650 = vmatmul.mubr.bf16.gmra.mrb[44].mxu1 %v7298_v47 }
 0x12f   : > { %3681 = vmatpush1.bf16.msra.mxu1 %v5975_v44  ;;  %3692 = vmatprep.mubr.bf16.mxu1 %v7311_v51  ;;  %v7489_v44 = vld [vmem:[%s6398_s5 + $0xe8] ss:$36 sps:$4 sm:$0xff]  }
 0x130   : > { %4061 = vmatpush1.bf16.msra.mxu0 %v5972_v42  ;;  %3682 = vmatprep.subr.bf16.mxu1 %v5983_v46  ;;  %v6055_v42 = vld [vmem:[%s8113_s1 + $0xa5c] ss:$24 sps:$4 sm:$0xff]   ;;  %v6053_v46 = vld [vmem:[%s8113_s1 + $0xa58] ss:$24 sps:$4 sm:$0xff]  }
 0x131   : > { %4062 = vmatprep.subr.bf16.mxu0 %v5980_v45  ;;  %v6050_v45 = vld [vmem:[%s8113_s1 + $0x820] ss:$24 sps:$4 sm:$0xff]  }
 0x133   : > { %3683 = vmatpush1.bf16.msra.mxu1 %v5981_v49 }
 0x134   : > { %4063 = vmatpush1.bf16.msra.mxu0 %v5978_v43  ;;  %3684 = vmatprep.subr.bf16.mxu1 %v5989_v48  ;;  %v6058_v43 = vld [vmem:[%s8113_s1 + $0x854] ss:$24 sps:$4 sm:$0xff]  }
 0x135   : > { %4125 = vmatprep.subr.bf16.mxu0 %v5986_v50  ;;  %v7508_v50 = vld [vmem:[%s6398_s5 + $0x134] ss:$36 sps:$4 sm:$0xff]  }
 0x137   : > { %4065 = vmatmul.mubr.bf16.vlgmr.msra.gmra.mrb[24].mxu0 %v7127_v59  ;;  %3685 = vmatpush1.bf16.msra.mxu1 %v5987_v53  ;;  %v6001_v59 = vld [vmem:[%s8113_s1 + $0x8ac] ss:$24 sps:$4 sm:$0xff]   ;;  %v6056_v53 = vld [vmem:[%s8113_s1 + $0x850] ss:$24 sps:$4 sm:$0xff]  }
 0x138   : > { %4126 = vmatpush1.bf16.msra.mxu0 %v5984_v52  ;;  %3686 = vmatprep.subr.bf16.mxu1 %v5995_v55 }
 0x139   : > { %4127 = vmatprep.subr.bf16.mxu0 %v5992_v54  ;;  %4074 = vmatprep.mubr.bf16.mxu0 %v7145_v0  ;;  %v6002_v0 = vld [vmem:[%s8113_s1 + $0x6a0] ss:$24 sps:$4 sm:$0xff]  }
 0x13a   : > { %v6059_v54 = vld [vmem:[%s8113_s1 + $0xa88] ss:$24 sps:$4 sm:$0xff]  }
 0x13b   : > { %3687 = vmatpush1.bf16.msra.mxu1 %v5993_v57  ;;  %v7531_v57 = vld [vmem:[%s6398_s5 + $0x130] ss:$36 sps:$4 sm:$0xff]  }
 0x13c   : > { %4128 = vmatpush1.bf16.msra.mxu0 %v5990_v56  ;;  %3688 = vmatprep.subr.bf16.mxu1 %v6001_v59  ;;  %v6067_v56 = vld [vmem:[%s8113_s1 + $0xabc] ss:$24 sps:$4 sm:$0xff]   ;;  %v6065_v59 = vld [vmem:[%s8113_s1 + $0xab8] ss:$24 sps:$4 sm:$0xff]  }
 0x13d   : > { %4129 = vmatprep.subr.bf16.mxu0 %v5998_v58  ;;  %v6062_v58 = vld [vmem:[%s8113_s1 + $0x880] ss:$24 sps:$4 sm:$0xff]  }
 0x13f   : > { %4075 = vmatmul.mubr.bf16.gmra.mrb[28].mxu0 %v7165_v6  ;;  %3689 = vmatpush1.bf16.msra.mxu1 %v5999_v61  ;;  %v6016_v6 = vld [vmem:[%s8113_s1 + $0x704] ss:$24 sps:$4 sm:$0xff]  }
 0x140   : > { %4130 = vmatpush1.bf16.msra.mxu0 %v5996_v60  ;;  %3690 = vmatprep.subr.bf16.mxu1 %v6007_v63  ;;  %v6070_v60 = vld [vmem:[%s8113_s1 + $0x8b4] ss:$24 sps:$4 sm:$0xff]   ;;  %v7549_v63 = vld [vmem:[%s6398_s5 + $0x17c] ss:$36 sps:$4 sm:$0xff]  }
 0x141   : > { %4131 = vmatprep.subr.bf16.mxu0 %v6004_v62  ;;  %4084 = vmatprep.mubr.bf16.mxu0 %v7179_v10  ;;  %v6017_v10 = vld [vmem:[%s8113_s1 + $0x938] ss:$24 sps:$4 sm:$0xff]   ;;  %v6073_v61 = vld [vmem:[%s8113_s1 + $0xaec] ss:$24 sps:$4 sm:$0xff]  }
 0x143   : > { %3691 = vmatpush1.bf16.msra.mxu1 %v6005_v1 }
 0x144   : > { %4132 = vmatpush1.bf16.msra.mxu0 %v6002_v0  ;;  %3753 = vmatprep.subr.bf16.mxu1 %v6013_v3  ;;  %v6071_v3 = vld [vmem:[%s8113_s1 + $0xae8] ss:$24 sps:$4 sm:$0xff]  }
 0x145   : > { %4133 = vmatprep.subr.bf16.mxu0 %v6010_v2  ;;  %v6068_v2 = vld [vmem:[%s8113_s1 + $0x8b0] ss:$24 sps:$4 sm:$0xff]  }
 0x146   : > { %3693 = vmatmul.mubr.bf16.vlgmr.msra.gmra.mrb[24].mxu1 %v7379_v8 }
 0x147   : > { %4085 = vmatmul.mubr.bf16.gmra.mrb[32].mxu0 %v7199_v16  ;;  %3754 = vmatpush1.bf16.msra.mxu1 %v6011_v5  ;;  %v6028_v16 = vld [vmem:[%s8113_s1 + $0x764] ss:$24 sps:$4 sm:$0xff]  }
 0x148   : > { %4134 = vmatpush1.bf16.msra.mxu0 %v6008_v4  ;;  %3755 = vmatprep.subr.bf16.mxu1 %v6019_v7  ;;  %v6076_v5 = vld [vmem:[%s8113_s1 + $0x8e4] ss:$24 sps:$4 sm:$0xff]  }
 0x149   : > { %4135 = vmatprep.subr.bf16.mxu0 %v6016_v6  ;;  %3702 = vmatprep.mubr.bf16.mxu1 %v7396_v13  ;;  %v6079_v6 = vld [vmem:[%s8113_s1 + $0xb1c] ss:$24 sps:$4 sm:$0xff]  }
 0x14a   : > { %4094 = vmatprep.mubr.bf16.mxu0 %v7213_v19  ;;  %v6029_v19 = vld [vmem:[%s8113_s1 + $0x998] ss:$24 sps:$4 sm:$0xff]  }
 0x14b   : > { %3756 = vmatpush1.bf16.msra.mxu1 %v6017_v10  ;;  %v7571_v7 = vld [vmem:[%s6398_s5 + $0x178] ss:$36 sps:$4 sm:$0xff]  }
 0x14c   : > { %4136 = vmatpush1.bf16.msra.mxu0 %v6014_v9  ;;  %3757 = vmatprep.subr.bf16.mxu1 %v6025_v12  ;;  %v6074_v9 = vld [vmem:[%s8113_s1 + $0x8e0] ss:$24 sps:$4 sm:$0xff]   ;;  %v6085_v12 = vld [vmem:[%s8113_s1 + $0xb4c] ss:$24 sps:$4 sm:$0xff]  }
 0x14d   : > { %4137 = vmatprep.subr.bf16.mxu0 %v6022_v11  ;;  %v6077_v10 = vld [vmem:[%s8113_s1 + $0xb18] ss:$24 sps:$4 sm:$0xff]   ;;  %v6082_v11 = vld [vmem:[%s8113_s1 + $0x914] ss:$24 sps:$4 sm:$0xff]  }
 0x14e   : > { %3703 = vmatmul.mubr.bf16.gmra.mrb[28].mxu1 %v7413_v20 }
 0x14f   : > { %4095 = vmatmul.mubr.bf16.gmra.mrb[36].mxu0 %v7233_v27  ;;  %3758 = vmatpush1.bf16.msra.mxu1 %v6023_v15  ;;  %v6040_v27 = vld [vmem:[%s8113_s1 + $0x7c4] ss:$24 sps:$4 sm:$0xff]  }
 0x150   : > { %4138 = vmatpush1.bf16.msra.mxu0 %v6020_v14  ;;  %3759 = vmatprep.subr.bf16.mxu1 %v6031_v18  ;;  %v7589_v15 = vld [vmem:[%s6398_s5 + $0x1c] ss:$36 sps:$4 sm:$0xff]  }
 0x151   : > { %4139 = vmatprep.subr.bf16.mxu0 %v6028_v16  ;;  %3712 = vmatprep.mubr.bf16.mxu1 %v7430_v24 }
 0x152   : > { %4104 = vmatprep.mubr.bf16.mxu0 %v7247_v31  ;;  %v6041_v31 = vld [vmem:[%s8113_s1 + $0x9f8] ss:$24 sps:$4 sm:$0xff]  }
 0x153   : > { %3760 = vmatpush1.bf16.msra.mxu1 %v6029_v19  ;;  %v6083_v19 = vld [vmem:[%s8113_s1 + $0xb48] ss:$24 sps:$4 sm:$0xff]  }
 0x154   : > { %4140 = vmatpush1.bf16.msra.mxu0 %v6026_v21  ;;  %3761 = vmatprep.subr.bf16.mxu1 %v6037_v23  ;;  %v6080_v21 = vld [vmem:[%s8113_s1 + $0x910] ss:$24 sps:$4 sm:$0xff]   ;;  %v6088_v23 = vld [vmem:[%s8113_s1 + $0x944] ss:$24 sps:$4 sm:$0xff]  }
 0x155   : > { %4141 = vmatprep.subr.bf16.mxu0 %v6034_v22 }
 0x156   : > { %3713 = vmatmul.mubr.bf16.gmra.mrb[32].mxu1 %v7447_v29 }
 0x157   : > { %4105 = vmatmul.mubr.bf16.gmra.mrb[40].mxu0 %v7266_v37  ;;  %3762 = vmatpush1.bf16.msra.mxu1 %v6035_v26  ;;  %v6086_v26 = vld [vmem:[%s8113_s1 + $0x940] ss:$24 sps:$4 sm:$0xff]  }
 0x158   : > { %4142 = vmatpush1.bf16.msra.mxu0 %v6032_v25  ;;  %3763 = vmatprep.subr.bf16.mxu1 %v6043_v28  ;;  %v6091_v25 = vld [vmem:[%s8113_s1 + $0xb7c] ss:$24 sps:$4 sm:$0xff]   ;;  %v650_v28 = vlaneseq }
 0x159   : > { %4143 = vmatprep.subr.bf16.mxu0 %v6040_v27  ;;  %v7463_v34 = vpop.f32.mrb[0].mxu1  ;;  %3722 = vmatprep.mubr.bf16.mxu1 %v7466_v35  ;;  %v6089_v27 = vld [vmem:[%s8113_s1 + $0xb78] ss:$24 sps:$4 sm:$0xff]  }
 0x15a   : > { %4114 = vmatprep.mubr.bf16.mxu0 %v7279_v41  ;;  %v7470_v36 = vpop.f32.mrb[1].mxu1  ;;  %v6052_v41 = vld [vmem:[%s8113_s1 + $0x824] ss:$24 sps:$4 sm:$0xff]  }
 0x15b   : > { %v7472_v37 = vpop.f32.mrb[2].mxu1  ;;  %3764 = vmatpush1.bf16.msra.mxu1 %v6041_v31 }
 0x15c   : > { %4144 = vmatpush1.bf16.msra.mxu0 %v6038_v30  ;;  %v7480_v40 = vpop.f32.mrb[3].mxu1  ;;  %3765 = vmatprep.subr.bf16.mxu1 %v6049_v33  ;;  %v6094_v30 = vld [vmem:[%s8113_s1 + $0x974] ss:$24 sps:$4 sm:$0xff]  }
 0x15d   : > { %4145 = vmatprep.subr.bf16.mxu0 %v6046_v32 }
 0x15e   : > { %3723 = vmatmul.mubr.bf16.gmra.mrb[36].mxu1 %v7489_v44 }
 0x15f   : > { %4115 = vmatmul.mubr.bf16.gmra.mrb[44].mxu0 %v7298_v47  ;;  %3766 = vmatpush1.bf16.msra.mxu1 %v6047_v39  ;;  %v6061_v47 = vld [vmem:[%s8113_s1 + $0xa8c] ss:$24 sps:$4 sm:$0xff]   ;;  %v6095_v39 = vld [vmem:[%s8113_s1 + $0xba8] ss:$24 sps:$4 sm:$0xff]  }
 0x160   : > { %4146 = vmatpush1.bf16.msra.mxu0 %v6044_v38  ;;  %3767 = vmatprep.subr.bf16.mxu1 %v6055_v42  ;;  %v6092_v38 = vld [vmem:[%s8113_s1 + $0x970] ss:$24 sps:$4 sm:$0xff]  }
 0x161   : > { %4147 = vmatprep.subr.bf16.mxu0 %v6052_v41  ;;  %v7505_v49 = vpop.f32.mrb[4].mxu1  ;;  %3732 = vmatprep.mubr.bf16.mxu1 %v7508_v50  ;;  %v7636_v41 = vshrl.u32 %v650_v28, 7 }
 0x162   : > { %4157 = vmatprep.mubr.bf16.mxu0 %v7311_v51  ;;  %v7512_v48 = vpop.f32.mrb[5].mxu1  ;;  %v6064_v51 = vld [vmem:[%s8113_s1 + $0x884] ss:$24 sps:$4 sm:$0xff]  }
 0x163   : > { %v7514_v52 = vpop.f32.mrb[6].mxu1  ;;  %3768 = vmatpush1.bf16.msra.mxu1 %v6053_v46  ;;  %v6098_v46 = vld [vmem:[%s8113_s1 + $0x9a0] ss:$24 sps:$4 sm:$0xff]  }
 0x164   : > { %4148 = vmatpush1.bf16.msra.mxu0 %v6050_v45  ;;  %v7522_v55 = vpop.f32.mrb[7].mxu1  ;;  %3769 = vmatprep.subr.bf16.mxu1 %v6061_v47  ;;  %v6103_v45 = vld [vmem:[%s8113_s1 + $0xbdc] ss:$24 sps:$4 sm:$0xff]   ;;  %v652_v47 = vsub.s32 0, %v7636_v41 }
 0x165   : > { %4149 = vmatprep.subr.bf16.mxu0 %v6058_v43  ;;  %v6101_v43 = vld [vmem:[%s8113_s1 + $0xbd8] ss:$24 sps:$4 sm:$0xff]  }
 0x166   : > { %3733 = vmatmul.mubr.bf16.gmra.mrb[40].mxu1 %v7531_v57 }
 0x167   : > { %3770 = vmatpush1.bf16.msra.mxu1 %v6059_v54  ;;  %3742 = vmatprep.mubr.bf16.mxu1 %v7549_v63  ;;  %v7663_v54 = vld [vmem:[%s8114_s2] sm:$0x3f] }
 0x168   : > { %4150 = vmatpush1.bf16.msra.mxu0 %v6056_v53  ;;  %3771 = vmatprep.subr.bf16.mxu1 %v6067_v56  ;;  %v6106_v53 = vld [vmem:[%s8113_s1 + $0x9d4] ss:$24 sps:$4 sm:$0xff]  }
 0x169   : > { %4151 = vmatprep.subr.bf16.mxu0 %v6064_v51  ;;  %v7546_v62 = vpop.f32.mrb[8].mxu1  ;;  %v656_v51 = vsub.s32 1, %v7636_v41 }
 0x16a   : > { %v7552_v0 = vpop.f32.mrb[9].mxu1 }
 0x16b   : > { %v7554_v1 = vpop.f32.mrb[10].mxu1  ;;  %3772 = vmatpush1.bf16.msra.mxu1 %v6065_v59 }
 0x16c   : > { %4152 = vmatpush1.bf16.msra.mxu0 %v6062_v58  ;;  %v7562_v4 = vpop.f32.mrb[11].mxu1  ;;  %3773 = vmatprep.subr.bf16.mxu1 %v6073_v61  ;;  %v6107_v61 = vld [vmem:[%s8113_s1 + $0xc08] ss:$24 sps:$4 sm:$0xff]  }
 0x16d   : > { %4153 = vmatprep.subr.bf16.mxu0 %v6070_v60  ;;  %v6104_v60 = vld [vmem:[%s8113_s1 + $0x9d0] ss:$24 sps:$4 sm:$0xff]  }
 0x16e   : > { %3743 = vmatmul.mubr.bf16.gmra.mrb[44].mxu1 %v7571_v7 }
 0x16f   : > { %3774 = vmatpush1.bf16.msra.mxu1 %v6071_v3  ;;  %3785 = vmatprep.mubr.bf16.mxu1 %v7589_v15 }
 0x170   : > { %4154 = vmatpush1.bf16.msra.mxu0 %v6068_v2  ;;  %3775 = vmatprep.subr.bf16.mxu1 %v6079_v6  ;;  %v7680_v2 = vrot.slane %v7663_v54, %v652_v47  ;;  %v6121_v6 = vld [vmem:[%s8113_s1 + $0xc3c] ss:$24 sps:$4 sm:$0xff]   ;;  %v7743_v47 = vld [vmem:[%s6398_s5 + $0x60] ss:$36 sps:$4 sm:$0xff]  }
 0x171   : > { %4155 = vmatprep.subr.bf16.mxu0 %v6076_v5  ;;  %v7586_v14 = vpop.f32.mrb[12].mxu1  ;;  %v7688_v5 = vrot.slane %v7663_v54, %v656_v51  ;;  %v7752_v51 = vld [vmem:[%s6398_s5 + $0xac] ss:$36 sps:$4 sm:$0xff]  }
 0x172   : > { %v7592_v16 = vpop.f32.mrb[13].mxu1 }
 0x173   : > { %v7594_v18 = vpop.f32.mrb[14].mxu1  ;;  %3776 = vmatpush1.bf16.msra.mxu1 %v6077_v10  ;;  %v6110_v10 = vld [vmem:[%s8113_s1 + $0xa00] ss:$24 sps:$4 sm:$0xff]   ;;  %v5109_v28 = vadd.f32 %v7480_v40, %v7688_v5  ;;  %v6118_v40 = vld [vmem:[%s8113_s1 + $0xa64] ss:$24 sps:$4 sm:$0xff]  }
 0x174   : > { %4156 = vmatpush1.bf16.msra.mxu0 %v6074_v9  ;;  %v7602_v22 = vpop.f32.mrb[15].mxu1  ;;  %3777 = vmatprep.subr.bf16.mxu1 %v6085_v12  ;;  %v7694_v9 = vld [vmem:[%s6398_s5 + $0x18] ss:$36 sps:$4 sm:$0xff]   ;;  %v5103_v12 = vadd.f32 %v7463_v34, %v7680_v2  ;;  %v5107_v34 = vadd.f32 %v7472_v37, %v7680_v2 }
 0x175   : > { %4218 = vmatprep.subr.bf16.mxu0 %v6082_v11  ;;  %v6119_v11 = vld [vmem:[%s8113_s1 + $0xc38] ss:$24 sps:$4 sm:$0xff]  }
 0x177   : > { %4158 = vmatmul.mubr.bf16.vlgmr.msra.gmra.mrb[24].mxu0 %v7379_v8  ;;  %3778 = vmatpush1.bf16.msra.mxu1 %v6083_v19  ;;  %v6097_v8 = vld [vmem:[%s8113_s1 + $0xbac] ss:$24 sps:$4 sm:$0xff]  }
 0x178   : > { %4219 = vmatpush1.bf16.msra.mxu0 %v6080_v21  ;;  %3779 = vmatprep.subr.bf16.mxu1 %v6091_v25  ;;  %v7708_v21 = vld [vmem:[%s6398_s5 + $0x64] ss:$36 sps:$4 sm:$0xff]  }
 0x179   : > { %4220 = vmatprep.subr.bf16.mxu0 %v6088_v23  ;;  %v7623_v31 = vpop.f32.mrb[16].mxu1  ;;  %4167 = vmatprep.mubr.bf16.mxu0 %v7396_v13  ;;  %v6100_v13 = vld [vmem:[%s8113_s1 + $0x9a4] ss:$24 sps:$4 sm:$0xff]   ;;  %v5105_v23 = vadd.f32 %v7470_v36, %v7688_v5 }
 0x17a   : > { %v7626_v32 = vpop.f32.mrb[17].mxu1  ;;  %v6133_v19 = vld [vmem:[%s8113_s1 + $0xc6c] ss:$24 sps:$4 sm:$0xff]  }
 0x17b   : > { %v7628_v33 = vpop.f32.mrb[18].mxu1  ;;  %3780 = vmatpush1.bf16.msra.mxu1 %v6089_v27 }
 0x17c   : > { %4221 = vmatpush1.bf16.msra.mxu0 %v6086_v26  ;;  %v7638_v42 = vpop.f32.mrb[19].mxu1  ;;  %3781 = vmatprep.subr.bf16.mxu1 %v6097_v8 }
 0x17d   : > { %4222 = vmatprep.subr.bf16.mxu0 %v6094_v30 }
 0x17f   : > { %4168 = vmatmul.mubr.bf16.gmra.mrb[28].mxu0 %v7413_v20  ;;  %3782 = vmatpush1.bf16.msra.mxu1 %v6095_v39  ;;  %v6109_v20 = vld [vmem:[%s8113_s1 + $0xc0c] ss:$24 sps:$4 sm:$0xff]   ;;  %v6131_v39 = vld [vmem:[%s8113_s1 + $0xc68] ss:$24 sps:$4 sm:$0xff]  }
 0x180   : > { %4223 = vmatpush1.bf16.msra.mxu0 %v6092_v38  ;;  %3783 = vmatprep.subr.bf16.mxu1 %v6103_v45 }
 0x181   : > { %4224 = vmatprep.subr.bf16.mxu0 %v6100_v13  ;;  %v7666_v56 = vpop.f32.mrb[20].mxu1  ;;  %4177 = vmatprep.mubr.bf16.mxu0 %v7430_v24  ;;  %v6112_v24 = vld [vmem:[%s8113_s1 + $0xa04] ss:$24 sps:$4 sm:$0xff]  }
 0x182   : > { %v7669_v58 = vpop.f32.mrb[21].mxu1 }
 0x183   : > { %v7671_v59 = vpop.f32.mrb[22].mxu1  ;;  %3784 = vmatpush1.bf16.msra.mxu1 %v6101_v43 }
 0x184   : > { %4225 = vmatpush1.bf16.msra.mxu0 %v6098_v46  ;;  %v7682_v3 = vpop.f32.mrb[23].mxu1  ;;  %3846 = vmatprep.subr.bf16.mxu1 %v6109_v20  ;;  %v6145_v46 = vld [vmem:[%s8113_s1 + $0xc9c] ss:$24 sps:$4 sm:$0xff]   ;;  %v6116_v20 = vld [vmem:[%s8113_s1 + $0xa60] ss:$24 sps:$4 sm:$0xff]  }
 0x185   : > { %4226 = vmatprep.subr.bf16.mxu0 %v6106_v53 }
 0x186   : > { %3786 = vmatmul.mubr.bf16.vlgmr.msra.gmra.mrb[24].mxu1 %v7694_v9 }
 0x187   : > { %4178 = vmatmul.mubr.bf16.gmra.mrb[32].mxu0 %v7447_v29  ;;  %3847 = vmatpush1.bf16.msra.mxu1 %v6107_v61  ;;  %v6115_v29 = vld [vmem:[%s8113_s1 + $0xa34] ss:$24 sps:$4 sm:$0xff]   ;;  %v6143_v61 = vld [vmem:[%s8113_s1 + $0xc98] ss:$24 sps:$4 sm:$0xff]  }
 0x188   : > { %4227 = vmatpush1.bf16.msra.mxu0 %v6104_v60  ;;  %3795 = vmatprep.mubr.bf16.mxu1 %v7708_v21  ;;  %v5111_v60 = vadd.f32 %v7505_v49, %v7680_v2  ;;  %v7771_v49 = vld [vmem:[%s8113_s1 + $0xc14] ss:$24 sps:$4 sm:$0xff]  }
 0x189   : > { %4228 = vmatprep.subr.bf16.mxu0 %v6112_v24  ;;  %3848 = vmatprep.subr.bf16.mxu1 %v6121_v6  ;;  %v5113_v24 = vadd.f32 %v7512_v48, %v7688_v5 }
 0x18a   : > { %v3415_v25 = vpop.f32.mrb[0].mxu0  ;;  %4187 = vmatprep.mubr.bf16.mxu0 %v7466_v35  ;;  %v6113_v35 = vld [vmem:[%s8113_s1 + $0xa30] ss:$24 sps:$4 sm:$0xff]  }
 0x18b   : > { %v5104_v26 = vadd.f32 %v5103_v12, %v3415_v25  ;;  %v3417_v27 = vpop.f32.mrb[1].mxu0  ;;  %3849 = vmatpush1.bf16.msra.mxu1 %v6119_v11 }
 0x18c   : > { %v5106_v30 = vadd.f32 %v5105_v23, %v3417_v27  ;;  %4229 = vmatpush1.bf16.msra.mxu0 %v6110_v10  ;;  %v3419_v36 = vpop.f32.mrb[2].mxu0  ;;  %3850 = vmatprep.subr.bf16.mxu1 %v6133_v19  ;;  %v5115_v10 = vadd.f32 %v7514_v52, %v7680_v2  ;;  %v6127_v52 = vld [vmem:[%s8113_s1 + $0xac4] ss:$24 sps:$4 sm:$0xff]  }
 0x18d   : > { %v4404_v37 = vmax.f32 %v5104_v26, 0.0  ;;  %v5108_v8 = vadd.f32 %v5107_v34, %v3419_v36  ;;  %v3421_v38 = vpop.f32.mrb[3].mxu0  ;;  %4230 = vmatprep.subr.bf16.mxu0 %v6115_v29  ;;  %v5117_v29 = vadd.f32 %v7522_v55, %v7688_v5  ;;  %v6125_v36 = vld [vmem:[%s8113_s1 + $0xac0] ss:$24 sps:$4 sm:$0xff]  }
 0x18e   : > { %v4405_v13 = vmax.f32 %v5106_v30, 0.0  ;;  %v5110_v45 = vadd.f32 %v5109_v28, %v3421_v38  ;;  %3796 = vmatmul.mubr.bf16.gmra.mrb[28].mxu1 %v7743_v47  ;;  %v7786_v28 = vld [vmem:[%s6398_s5 + $0xa8] ss:$36 sps:$4 sm:$0xff]  }
 0x18f   : > { %4476 = vst [vmem:[%s7725_s13] sm:$0xff] %v4404_v37  ;;  %v4410_v43 = vmax.f32 %v5108_v8, 0.0  ;;  %4188 = vmatmul.mubr.bf16.gmra.mrb[36].mxu0 %v7489_v44  ;;  %3805 = vmatprep.mubr.bf16.mxu1 %v7752_v51  ;;  %v6124_v44 = vld [vmem:[%s8113_s1 + $0xa94] ss:$24 sps:$4 sm:$0xff]   ;;  %v5119_v37 = vadd.f32 %v7546_v62, %v7680_v2  ;;  %v5121_v8 = vadd.f32 %v7552_v0, %v7688_v5 }
 0x190   : > { %4477 = vst [vmem:[%s7725_s13 + $0x8] sm:$0xff] %v4405_v13  ;;  %v4411_v53 = vmax.f32 %v5110_v45, 0.0  ;;  %4231 = vmatpush1.bf16.msra.mxu0 %v6113_v35  ;;  %3851 = vmatpush1.bf16.msra.mxu1 %v6131_v39  ;;  %v7795_v35 = vld [vmem:[%s6398_s5 + $0xf4] ss:$36 sps:$4 sm:$0xff]   ;;  %v5125_v13 = vadd.f32 %v7562_v4, %v7688_v5 }
 0x191   : > { %4482 = vst [vmem:[%s7725_s13 + $0x30] sm:$0xff] %v4410_v43  ;;  %4232 = vmatprep.subr.bf16.mxu0 %v6118_v40  ;;  %4197 = vmatprep.mubr.bf16.mxu0 %v7508_v50  ;;  %v6122_v50 = vld [vmem:[%s8113_s1 + $0xa90] ss:$24 sps:$4 sm:$0xff]   ;;  %v5123_v40 = vadd.f32 %v7554_v1, %v7680_v2  ;;  %v6136_v1 = vld [vmem:[%s8113_s1 + $0xb24] ss:$24 sps:$4 sm:$0xff]  }
 0x192   : > { %4483 = vst [vmem:[%s7725_s13 + $0x38] sm:$0xff] %v4411_v53  ;;  %v3425_v6 = vpop.f32.mrb[4].mxu0  ;;  %3852 = vmatprep.subr.bf16.mxu1 %v6145_v46 }
 0x193   : > { %v5112_v11 = vadd.f32 %v5111_v60, %v3425_v6  ;;  %v3427_v12 = vpop.f32.mrb[5].mxu0  ;;  %v7829_v6 = vld [vmem:[%s6398_s5 + $0x13c] ss:$36 sps:$4 sm:$0xff]  }
 0x194   : > { %v5114_v48 = vadd.f32 %v5113_v24, %v3427_v12  ;;  %4233 = vmatpush1.bf16.msra.mxu0 %v6116_v20  ;;  %v3429_v19 = vpop.f32.mrb[6].mxu0  ;;  %3853 = vmatpush1.bf16.msra.mxu1 %v6143_v61  ;;  %v6134_v24 = vld [vmem:[%s8113_s1 + $0xb20] ss:$24 sps:$4 sm:$0xff]  }
 0x195   : > { %v4416_v23 = vmax.f32 %v5112_v11, 0.0  ;;  %v5116_v25 = vadd.f32 %v5115_v10, %v3429_v19  ;;  %v3431_v34 = vpop.f32.mrb[7].mxu0  ;;  %4234 = vmatprep.subr.bf16.mxu0 %v6124_v44  ;;  %5095 = vmatprep.subr.bf16.mxu1 %v7771_v49  ;;  %v7820_v44 = vld [vmem:[%s6398_s5 + $0xf0] ss:$36 sps:$4 sm:$0xff]   ;;  %v5127_v10 = vadd.f32 %v7586_v14, %v7680_v2  ;;  %v5129_v11 = vadd.f32 %v7592_v16, %v7688_v5 }
 0x196   : > { %v4417_v55 = vmax.f32 %v5114_v48, 0.0  ;;  %v5118_v26 = vadd.f32 %v5117_v29, %v3431_v34  ;;  %3806 = vmatmul.mubr.bf16.gmra.mrb[32].mxu1 %v7786_v28  ;;  %v5131_v29 = vadd.f32 %v7594_v18, %v7680_v2  ;;  %v5133_v19 = vadd.f32 %v7602_v22, %v7688_v5  ;;  %v6142_v18 = vld [vmem:[%s8113_s1 + $0xb84] ss:$24 sps:$4 sm:$0xff]  }
 0x197   : > { %4488 = vst [vmem:[%s7725_s13 + $0x60] sm:$0xff] %v4416_v23  ;;  %v4422_v27 = vmax.f32 %v5116_v25, 0.0  ;;  %4198 = vmatmul.mubr.bf16.gmra.mrb[40].mxu0 %v7531_v57  ;;  %3815 = vmatprep.mubr.bf16.mxu1 %v7795_v35  ;;  %v6130_v57 = vld [vmem:[%s8113_s1 + $0xaf4] ss:$24 sps:$4 sm:$0xff]  }
 0x198   : > { %4489 = vst [vmem:[%s7725_s13 + $0x68] sm:$0xff] %v4417_v55  ;;  %v4423_v30 = vmax.f32 %v5118_v26, 0.0  ;;  %4235 = vmatpush1.bf16.msra.mxu0 %v6122_v50  ;;  %4207 = vmatprep.mubr.bf16.mxu0 %v7549_v63  ;;  %v6128_v63 = vld [vmem:[%s8113_s1 + $0xaf0] ss:$24 sps:$4 sm:$0xff]   ;;  %v7854_v26 = vld [vmem:[%s6398_s5 + $0x138] ss:$36 sps:$4 sm:$0xff]  }
 0x199   : > { %4494 = vst [vmem:[%s7725_s13 + $0x90] sm:$0xff] %v4422_v27  ;;  %4236 = vmatprep.subr.bf16.mxu0 %v6127_v52 }
 0x19a   : > { %4495 = vst [vmem:[%s7725_s13 + $0x98] sm:$0xff] %v4423_v30  ;;  %v3435_v38 = vpop.f32.mrb[8].mxu0  ;;  %v6140_v30 = vld [vmem:[%s8113_s1 + $0xb80] ss:$24 sps:$4 sm:$0xff]  }
 0x19b   : > { %v5120_v39 = vadd.f32 %v5119_v37, %v3435_v38  ;;  %v3437_v62 = vpop.f32.mrb[9].mxu0  ;;  %v5135_v37 = vadd.f32 %v7623_v31, %v7680_v2  ;;  %v5141_v31 = vadd.f32 %v7638_v42, %v7688_v5 }
 0x19c   : > { %v5122_v45 = vadd.f32 %v5121_v8, %v3437_v62  ;;  %4237 = vmatpush1.bf16.msra.mxu0 %v6125_v36  ;;  %v3439_v46 = vpop.f32.mrb[10].mxu0  ;;  %v7862_v36 = vld [vmem:[%s6398_s5 + $0x184] ss:$36 sps:$4 sm:$0xff]   ;;  %v5137_v8 = vadd.f32 %v7626_v32, %v7688_v5 }
 0x19d   : > { %v4428_v0 = vmax.f32 %v5120_v39, 0.0  ;;  %v5124_v43 = vadd.f32 %v5123_v40, %v3439_v46  ;;  %v3441_v53 = vpop.f32.mrb[11].mxu0  ;;  %4238 = vmatprep.subr.bf16.mxu0 %v6130_v57  ;;  %v6148_v57 = vld [vmem:[%s8113_s1 + $0xbb4] ss:$24 sps:$4 sm:$0xff]   ;;  %v5139_v40 = vadd.f32 %v7628_v33, %v7680_v2  ;;  %v6146_v32 = vld [vmem:[%s8113_s1 + $0xbb0] ss:$24 sps:$4 sm:$0xff]  }
 0x19e   : > { %v4429_v20 = vmax.f32 %v5122_v45, 0.0  ;;  %v5126_v4 = vadd.f32 %v5125_v13, %v3441_v53  ;;  %3816 = vmatmul.mubr.bf16.gmra.mrb[36].mxu1 %v7820_v44  ;;  %v6151_v33 = vld [vmem:[%s8113_s1 + $0xbe4] ss:$24 sps:$4 sm:$0xff]  }
 0x19f   : > { %4500 = vst [vmem:[%s7725_s13 + $0xc0] sm:$0xff] %v4428_v0  ;;  %v4434_v60 = vmax.f32 %v5124_v43, 0.0  ;;  %4208 = vmatmul.mubr.bf16.gmra.mrb[44].mxu0 %v7571_v7  ;;  %3825 = vmatprep.mubr.bf16.mxu1 %v7829_v6  ;;  %v6139_v7 = vld [vmem:[%s8113_s1 + $0xb54] ss:$24 sps:$4 sm:$0xff]  }
 0x1a0   : > { %4501 = vst [vmem:[%s7725_s13 + $0xc8] sm:$0xff] %v4429_v20  ;;  %v4435_v61 = vmax.f32 %v5126_v4, 0.0  ;;  %4239 = vmatpush1.bf16.msra.mxu0 %v6128_v63  ;;  %4250 = vmatprep.mubr.bf16.mxu0 %v7589_v15  ;;  %v6137_v15 = vld [vmem:[%s8113_s1 + $0xb50] ss:$24 sps:$4 sm:$0xff]   ;;  %v6149_v4 = vld [vmem:[%s8113_s1 + $0xbe0] ss:$24 sps:$4 sm:$0xff]  }
 0x1a1   : > { %4506 = vst [vmem:[%s7725_s13 + $0xf0] sm:$0xff] %v4434_v60  ;;  %4240 = vmatprep.subr.bf16.mxu0 %v6136_v1  ;;  %v7886_v1 = vld [vmem:[%s6398_s5 + $0x180] ss:$36 sps:$4 sm:$0xff]   ;;  %v5143_v60 = vadd.f32 %v7666_v56, %v7680_v2 }
 0x1a2   : > { %4507 = vst [vmem:[%s7725_s13 + $0xf8] sm:$0xff] %v4435_v61  ;;  %v3445_v12 = vpop.f32.mrb[12].mxu0  ;;  %v5145_v61 = vadd.f32 %v7669_v58, %v7688_v5  ;;  %v6152_v58 = vld [vmem:[%s8113_s1 + $0xc10] ss:$24 sps:$4 sm:$0xff]  }
 0x1a3   : > { %v5128_v48 = vadd.f32 %v5127_v10, %v3445_v12  ;;  %v3447_v14 = vpop.f32.mrb[13].mxu0  ;;  %v5147_v10 = vadd.f32 %v7671_v59, %v7680_v2  ;;  %v5149_v12 = vadd.f32 %v7682_v3, %v7688_v5  ;;  %v6157_v3 = vld [vmem:[%s8113_s1 + $0xc44] ss:$24 sps:$4 sm:$0xff]  }
 0x1a4   : > { %v5130_v50 = vadd.f32 %v5129_v11, %v3447_v14  ;;  %4241 = vmatpush1.bf16.msra.mxu0 %v6134_v24  ;;  %v3449_v23 = vpop.f32.mrb[14].mxu0 }
 0x1a5   : > { %v4440_v16 = vmax.f32 %v5128_v48, 0.0  ;;  %v5132_v25 = vadd.f32 %v5131_v29, %v3449_v23  ;;  %v3451_v34 = vpop.f32.mrb[15].mxu0  ;;  %4242 = vmatprep.subr.bf16.mxu0 %v6139_v7 }
 0x1a6   : > { %v4441_v52 = vmax.f32 %v5130_v50, 0.0  ;;  %v5134_v22 = vadd.f32 %v5133_v19, %v3451_v34  ;;  %3826 = vmatmul.mubr.bf16.gmra.mrb[40].mxu1 %v7854_v26  ;;  %v6212_v50 = vld [vmem:[%s6398_s5 + $0x20] ss:$36 sps:$4 sm:$0xff]  }
 0x1a7   : > { %4512 = vst [vmem:[%s7725_s13 + $0x120] sm:$0xff] %v4440_v16  ;;  %v4446_v55 = vmax.f32 %v5132_v25, 0.0  ;;  %3835 = vmatprep.mubr.bf16.mxu1 %v7862_v36  ;;  %v6213_v16 = vld [vmem:[%s6398_s5 + $0x68] ss:$36 sps:$4 sm:$0xff]   ;;  %v6161_v25 = vld [vmem:[%s8113_s1 + $0xca0] ss:$24 sps:$4 sm:$0xff]  }
 0x1a8   : > { %4513 = vst [vmem:[%s7725_s13 + $0x128] sm:$0xff] %v4441_v52  ;;  %v4447_v27 = vmax.f32 %v5134_v22, 0.0  ;;  %4243 = vmatpush1.bf16.msra.mxu0 %v6137_v15  ;;  %v6158_v15 = vld [vmem:[%s8113_s1 + $0xc70] ss:$24 sps:$4 sm:$0xff]  }
 0x1a9   : > { %4518 = vst [vmem:[%s7725_s13 + $0x150] sm:$0xff] %v4446_v55  ;;  %4244 = vmatprep.subr.bf16.mxu0 %v6142_v18 }
 0x1aa   : > { %4519 = vst [vmem:[%s7725_s13 + $0x158] sm:$0xff] %v4447_v27  ;;  %v3455_v38 = vpop.f32.mrb[16].mxu0 }
 0x1ab   : > { %v5136_v39 = vadd.f32 %v5135_v37, %v3455_v38  ;;  %v3457_v62 = vpop.f32.mrb[17].mxu0 }
 0x1ac   : > { %v5138_v13 = vadd.f32 %v5137_v8, %v3457_v62  ;;  %4245 = vmatpush1.bf16.msra.mxu0 %v6140_v30  ;;  %v3459_v45 = vpop.f32.mrb[18].mxu0 }
 0x1ad   : > { %v4452_v46 = vmax.f32 %v5136_v39, 0.0  ;;  %v5140_v63 = vadd.f32 %v5139_v40, %v3459_v45  ;;  %v3461_v0 = vpop.f32.mrb[19].mxu0  ;;  %4246 = vmatprep.subr.bf16.mxu0 %v6148_v57 }
 0x1ae   : > { %v4453_v43 = vmax.f32 %v5138_v13, 0.0  ;;  %v5142_v42 = vadd.f32 %v5141_v31, %v3461_v0  ;;  %3836 = vmatmul.mubr.bf16.gmra.mrb[44].mxu1 %v7886_v1 }
 0x1af   : > { %4524 = vst [vmem:[%s7725_s13 + $0x180] sm:$0xff] %v4452_v46  ;;  %v4458_v53 = vmax.f32 %v5140_v63, 0.0  ;;  %3878 = vmatprep.mubr.bf16.mxu1 %v6226_v17 }
 0x1b0   : > { %4525 = vst [vmem:[%s7725_s13 + $0x188] sm:$0xff] %v4453_v43  ;;  %v4459_v20 = vmax.f32 %v5142_v42, 0.0  ;;  %4247 = vmatpush1.bf16.msra.mxu0 %v6146_v32 }
 0x1b1   : > { %4530 = vst [vmem:[%s7725_s13 + $0x1b0] sm:$0xff] %v4458_v53  ;;  %4248 = vmatprep.subr.bf16.mxu0 %v6151_v33 }
 0x1b2   : > { %4531 = vst [vmem:[%s7725_s13 + $0x1b8] sm:$0xff] %v4459_v20  ;;  %v3465_v24 = vpop.f32.mrb[20].mxu0 }
 0x1b3   : > { %v5144_v7 = vadd.f32 %v5143_v60, %v3465_v24  ;;  %v3467_v11 = vpop.f32.mrb[21].mxu0 }
 0x1b4   : > { %v5146_v29 = vadd.f32 %v5145_v61, %v3467_v11  ;;  %4249 = vmatpush1.bf16.msra.mxu0 %v6149_v4  ;;  %v3469_v56 = vpop.f32.mrb[22].mxu0 }
 0x1b5   : > { %v4464_v48 = vmax.f32 %v5144_v7, 0.0  ;;  %v5148_v14 = vadd.f32 %v5147_v10, %v3469_v56  ;;  %v3471_v19 = vpop.f32.mrb[23].mxu0  ;;  %4311 = vmatprep.subr.bf16.mxu0 %v7771_v49  ;;  %v6155_v49 = vld [vmem:[%s8113_s1 + $0xc40] ss:$24 sps:$4 sm:$0xff]  }
 0x1b6   : > { %v4465_v59 = vmax.f32 %v5146_v29, 0.0  ;;  %v5150_v2 = vadd.f32 %v5149_v12, %v3471_v19  ;;  %5081 = vmatmul.mubr.msk.bf16.vlgmr.msra.gmra.mrb[24].mxu1 %vm2990_vm0, %v6212_v50 }
 0x1b7   : > { %4536 = vst [vmem:[%s7725_s13 + $0x1e0] sm:$0xff] %v4464_v48  ;;  %v4470_v5 = vmax.f32 %v5148_v14, 0.0  ;;  %4251 = vmatmul.mubr.bf16.vlgmr.msra.gmra.mrb[24].mxu0 %v7694_v9  ;;  %5099 = vmatpush1.bf16.msra.mxu1 %v6152_v58  ;;  %v6160_v9 = vld [vmem:[%s8113_s1 + $0xc74] ss:$24 sps:$4 sm:$0xff]  }
 0x1b8   : > { %4537 = vst [vmem:[%s7725_s13 + $0x1e8] sm:$0xff] %v4465_v59  ;;  %v4471_v23 = vmax.f32 %v5150_v2, 0.0  ;;  %4312 = vmatpush1.bf16.msra.mxu0 %v6152_v58  ;;  %4260 = vmatprep.mubr.bf16.mxu0 %v7708_v21  ;;  %v6163_v21 = vld [vmem:[%s8113_s1 + $0xca4] ss:$24 sps:$4 sm:$0xff]  }
 0x1b9   : > { %4542 = vst [vmem:[%s7725_s13 + $0x210] sm:$0xff] %v4470_v5  ;;  %3888 = vmatprep.mubr.bf16.mxu1 %v6226_v17  ;;  %4313 = vmatprep.subr.bf16.mxu0 %v6157_v3 }
 0x1ba   : > { %4543 = vst [vmem:[%s7725_s13 + $0x218] sm:$0xff] %v4471_v23  ;;  %5096 = vmatprep.subr.bf16.mxu1 %v6157_v3 }
 0x1bb   : > { %5100 = vmatpush1.bf16.msra.mxu1 %v6155_v49 }
 0x1bc   : > { %4314 = vmatpush1.bf16.msra.mxu0 %v6155_v49  ;;  %5097 = vmatprep.subr.bf16.mxu1 %v6160_v9 }
 0x1bd   : > { %4315 = vmatprep.subr.bf16.mxu0 %v6160_v9 }
 0x1be   : > { %5082 = vmatmul.mubr.msk.bf16.gmra.mrb[28].mxu1 %vm2990_vm0, %v6213_v16 }
 0x1bf   : > { %4261 = vmatmul.mubr.bf16.gmra.mrb[28].mxu0 %v7743_v47  ;;  %3898 = vmatprep.mubr.bf16.mxu1 %v6226_v17  ;;  %v6214_v47 = vld [vmem:[%s6398_s5 + $0xb0] ss:$36 sps:$4 sm:$0xff]  }
 0x1c0   : > { %4270 = vmatprep.mubr.bf16.mxu0 %v7752_v51  ;;  %4316 = vmatpush1.bf16.msra.mxu0 %v6158_v15  ;;  %v6215_v51 = vld [vmem:[%s6398_s5 + $0xf8] ss:$36 sps:$4 sm:$0xff]  }
 0x1c1   : > { %5101 = vmatpush1.bf16.msra.mxu1 %v6158_v15  ;;  %4317 = vmatprep.subr.bf16.mxu0 %v6163_v21 }
 0x1c2   : > { %5098 = vmatprep.subr.bf16.mxu1 %v6163_v21 }
 0x1c4   : > { %4318 = vmatpush1.bf16.msra.mxu0 %v6161_v25 }
 0x1c5   : > { %5102 = vmatpush1.bf16.msra.mxu1 %v6161_v25 }
 0x1c6   : > { %5083 = vmatmul.mubr.msk.bf16.gmra.mrb[32].mxu1 %vm2990_vm0, %v6214_v47 }
 0x1c7   : > { %4271 = vmatmul.mubr.bf16.gmra.mrb[32].mxu0 %v7786_v28  ;;  %3908 = vmatprep.mubr.bf16.mxu1 %v6226_v17  ;;  %v6216_v28 = vld [vmem:[%s6398_s5 + $0x140] ss:$36 sps:$4 sm:$0xff]  }
 0x1c8   : > { %4280 = vmatprep.mubr.bf16.mxu0 %v7795_v35  ;;  %v6217_v35 = vld [vmem:[%s6398_s5 + $0x188] ss:$36 sps:$4 sm:$0xff]  }
 0x1ce   : > { %5084 = vmatmul.mubr.msk.bf16.gmra.mrb[36].mxu1 %vm2990_vm0, %v6215_v51 }
 0x1cf   : > { %4281 = vmatmul.mubr.bf16.gmra.mrb[36].mxu0 %v7820_v44  ;;  %3918 = vmatprep.mubr.bf16.mxu1 %v6226_v17  ;;  %v660_v44 = vsub.s32 2, %v7636_v41 }
 0x1d0   : > { %4290 = vmatprep.mubr.bf16.mxu0 %v7829_v6  ;;  %v664_v6 = vsub.s32 3, %v7636_v41 }
 0x1d1   : > { %v7973_v34 = vrot.slane %v7663_v54, %v660_v44 }
 0x1d2   : > { %v7976_v18 = vrot.slane %v7663_v54, %v664_v6 }
 0x1d6   : > { %5085 = vmatmul.mubr.msk.bf16.gmra.mrb[40].mxu1 %vm2990_vm0, %v6216_v28 }
 0x1d7   : > { %4291 = vmatmul.mubr.bf16.gmra.mrb[40].mxu0 %v7854_v26  ;;  %3928 = vmatprep.mubr.bf16.mxu1 %v6226_v17 }
 0x1d8   : > { %4300 = vmatprep.mubr.bf16.mxu0 %v7862_v36 }
 0x1de   : > { %5086 = vmatmul.mubr.msk.bf16.gmra.mrb[44].mxu1 %vm2990_vm0, %v6217_v35 }
 0x1df   : > { %4301 = vmatmul.mubr.bf16.gmra.mrb[44].mxu0 %v7886_v1  ;;  %4373 = vmatprep.mubr.bf16.mxu1 %v6226_v17 }
 0x1e0   : > { %4343 = vmatprep.mubr.bf16.mxu0 %v6226_v17 }
 0x1e6   : > { %5090 = vmatmul.mubr.msk.bf16.vlgmr.msra.gmra.mrb[48].mxu1 %vm2990_vm0, %v6215_v51 }
 0x1e7   : > { %5087 = vmatmul.mubr.msk.bf16.vlgmr.msra.gmra.mrb[24].mxu0 %vm2990_vm0, %v6212_v50  ;;  %4383 = vmatprep.mubr.bf16.mxu1 %v6226_v17 }
 0x1e8   : > { %4353 = vmatprep.mubr.bf16.mxu0 %v6226_v17 }
 0x1ee   : > { %5091 = vmatmul.mubr.msk.bf16.gmra.mrb[52].mxu1 %vm2990_vm0, %v6216_v28 }
 0x1ef   : > { %5088 = vmatmul.mubr.msk.bf16.gmra.mrb[28].mxu0 %vm2990_vm0, %v6213_v16  ;;  %4393 = vmatprep.mubr.bf16.mxu1 %v6226_v17 }
 0x1f0   : > { %4363 = vmatprep.mubr.bf16.mxu0 %v6226_v17 }
 0x1f6   : > { %5092 = vmatmul.mubr.msk.bf16.gmra.mrb[56].mxu1 %vm2990_vm0, %v6217_v35 }
 0x1f7   : > { %5089 = vmatmul.mubr.msk.bf16.gmra.mrb[32].mxu0 %vm2990_vm0, %v6214_v47 }
 0x289   : > { %v3880_v52 = vpop.f32.mrb[24].mxu1 }
 0x28a   : > { %v5151_v17 = vadd.f32 %v3880_v52, %v7973_v34  ;;  %v3882_v22 = vpop.f32.mrb[25].mxu1 }
 0x28b   : > { %v5152_v55 = vadd.f32 %v3882_v22, %v7976_v18  ;;  %v3884_v26 = vpop.f32.mrb[26].mxu1 }
 0x28c   : > { %v4406_v27 = vmax.f32 %v5151_v17, 0.0  ;;  %v5153_v30 = vadd.f32 %v3884_v26, %v7973_v34  ;;  %v3886_v36 = vpop.f32.mrb[27].mxu1 }
 0x28d   : > { %v4407_v37 = vmax.f32 %v5152_v55, 0.0  ;;  %v5154_v57 = vadd.f32 %v3886_v36, %v7976_v18 }
 0x28e   : > { %4478 = vst [vmem:[%s7725_s13 + $0x10] sm:$0xff] %v4406_v27  ;;  %v4412_v8 = vmax.f32 %v5153_v30, 0.0 }
 0x28f   : > { %4479 = vst [vmem:[%s7725_s13 + $0x18] sm:$0xff] %v4407_v37  ;;  %v4413_v38 = vmax.f32 %v5154_v57, 0.0  ;;  %v668_v37 = vsub.s32 4, %v7636_v41  ;;  %v672_v57 = vsub.s32 5, %v7636_v41 }
 0x290   : > { %4484 = vst [vmem:[%s7725_s13 + $0x40] sm:$0xff] %v4412_v8 }
 0x291   : > { %4485 = vst [vmem:[%s7725_s13 + $0x48] sm:$0xff] %v4413_v38  ;;  %v3890_v40 = vpop.f32.mrb[28].mxu1  ;;  %v8039_v41 = vrot.slane %v7663_v54, %v668_v37 }
 0x292   : > { %v5155_v39 = vadd.f32 %v3890_v40, %v7973_v34  ;;  %v3892_v62 = vpop.f32.mrb[29].mxu1 }
 0x293   : > { %v5156_v31 = vadd.f32 %v3892_v62, %v7976_v18  ;;  %v3894_v13 = vpop.f32.mrb[30].mxu1 }
 0x294   : > { %v4418_v45 = vmax.f32 %v5155_v39, 0.0  ;;  %v5157_v32 = vadd.f32 %v3894_v13, %v7973_v34  ;;  %v3896_v46 = vpop.f32.mrb[31].mxu1 }
 0x295   : > { %v4419_v63 = vmax.f32 %v5156_v31, 0.0  ;;  %v5158_v0 = vadd.f32 %v3896_v46, %v7976_v18 }
 0x296   : > { %4490 = vst [vmem:[%s7725_s13 + $0x70] sm:$0xff] %v4418_v45  ;;  %v4424_v33 = vmax.f32 %v5157_v32, 0.0 }
 0x297   : > { %4491 = vst [vmem:[%s7725_s13 + $0x78] sm:$0xff] %v4419_v63  ;;  %v4425_v43 = vmax.f32 %v5158_v0, 0.0 }
 0x298   : > { %4496 = vst [vmem:[%s7725_s13 + $0xa0] sm:$0xff] %v4424_v33  ;;  %v8045_v33 = vrot.slane %v7663_v54, %v672_v57 }
 0x299   : > { %4497 = vst [vmem:[%s7725_s13 + $0xa8] sm:$0xff] %v4425_v43  ;;  %v3900_v42 = vpop.f32.mrb[32].mxu1 }
 0x29a   : > { %v5159_v53 = vadd.f32 %v3900_v42, %v7973_v34  ;;  %v3902_v1 = vpop.f32.mrb[33].mxu1 }
 0x29b   : > { %v5160_v20 = vadd.f32 %v3902_v1, %v7976_v18  ;;  %v3904_v4 = vpop.f32.mrb[34].mxu1 }
 0x29c   : > { %v4430_v60 = vmax.f32 %v5159_v53, 0.0  ;;  %v5161_v61 = vadd.f32 %v3904_v4, %v7973_v34  ;;  %v3906_v24 = vpop.f32.mrb[35].mxu1 }
 0x29d   : > { %v4431_v10 = vmax.f32 %v5160_v20, 0.0  ;;  %v5162_v7 = vadd.f32 %v3906_v24, %v7976_v18 }
 0x29e   : > { %4502 = vst [vmem:[%s7725_s13 + $0xd0] sm:$0xff] %v4430_v60  ;;  %v4436_v11 = vmax.f32 %v5161_v61, 0.0 }
 0x29f   : > { %4503 = vst [vmem:[%s7725_s13 + $0xd8] sm:$0xff] %v4431_v10  ;;  %v4437_v12 = vmax.f32 %v5162_v7, 0.0 }
 0x2a0   : > { %4508 = vst [vmem:[%s7725_s13 + $0x100] sm:$0xff] %v4436_v11 }
 0x2a1   : > { %4509 = vst [vmem:[%s7725_s13 + $0x108] sm:$0xff] %v4437_v12  ;;  %v3910_v56 = vpop.f32.mrb[36].mxu1 }
 0x2a2   : > { %v4282_v29 = vpop.f32.mrb[36].mxu0  ;;  %v5163_v58 = vadd.f32 %v3910_v56, %v7973_v34  ;;  %v3912_v14 = vpop.f32.mrb[37].mxu1 }
 0x2a3   : > { %v4284_v48 = vpop.f32.mrb[37].mxu0  ;;  %v5164_v19 = vadd.f32 %v3912_v14, %v7976_v18  ;;  %v3914_v2 = vpop.f32.mrb[38].mxu1  ;;  %v5187_v20 = vadd.f32 %v4282_v29, %v8039_v41 }
 0x2a4   : > { %v4286_v59 = vpop.f32.mrb[38].mxu0  ;;  %v4442_v3 = vmax.f32 %v5163_v58, 0.0  ;;  %v5165_v5 = vadd.f32 %v3914_v2, %v7973_v34  ;;  %v3916_v23 = vpop.f32.mrb[39].mxu1  ;;  %v5189_v4 = vadd.f32 %v4284_v48, %v8045_v33 }
 0x2a5   : > { %v8005_v50 = vpop.f32.mrb[39].mxu0  ;;  %v4443_v49 = vmax.f32 %v5164_v19, 0.0  ;;  %v5166_v9 = vadd.f32 %v3916_v23, %v7976_v18  ;;  %v5191_v61 = vadd.f32 %v4286_v59, %v8039_v41 }
 0x2a6   : > { %4514 = vst [vmem:[%s7725_s13 + $0x130] sm:$0xff] %v4442_v3  ;;  %v4448_v15 = vmax.f32 %v5165_v5, 0.0 }
 0x2a7   : > { %4515 = vst [vmem:[%s7725_s13 + $0x138] sm:$0xff] %v4443_v49  ;;  %v4449_v21 = vmax.f32 %v5166_v9, 0.0 }
 0x2a8   : > { %4520 = vst [vmem:[%s7725_s13 + $0x160] sm:$0xff] %v4448_v15 }
 0x2a9   : > { %4521 = vst [vmem:[%s7725_s13 + $0x168] sm:$0xff] %v4449_v21  ;;  %v3920_v25 = vpop.f32.mrb[40].mxu1 }
 0x2aa   : > { %v8012_v16 = vpop.f32.mrb[40].mxu0  ;;  %v5167_v47 = vadd.f32 %v3920_v25, %v7973_v34  ;;  %v3922_v28 = vpop.f32.mrb[41].mxu1 }
 0x2ab   : > { %v8015_v51 = vpop.f32.mrb[41].mxu0  ;;  %v5168_v35 = vadd.f32 %v3922_v28, %v7976_v18  ;;  %v3924_v6 = vpop.f32.mrb[42].mxu1  ;;  %v5195_v25 = vadd.f32 %v8012_v16, %v8039_v41 }
 0x2ac   : > { %v8018_v44 = vpop.f32.mrb[42].mxu0  ;;  %v4454_v52 = vmax.f32 %v5167_v47, 0.0  ;;  %v5169_v17 = vadd.f32 %v3924_v6, %v7973_v34  ;;  %v3926_v55 = vpop.f32.mrb[43].mxu1  ;;  %v5197_v47 = vadd.f32 %v8015_v51, %v8045_v33 }
 0x2ad   : > { %v8021_v22 = vpop.f32.mrb[43].mxu0  ;;  %v4455_v26 = vmax.f32 %v5168_v35, 0.0  ;;  %v5170_v27 = vadd.f32 %v3926_v55, %v7976_v18  ;;  %v5199_v6 = vadd.f32 %v8018_v44, %v8039_v41 }
 0x2ae   : > { %4526 = vst [vmem:[%s7725_s13 + $0x190] sm:$0xff] %v4454_v52  ;;  %v4460_v30 = vmax.f32 %v5169_v17, 0.0  ;;  %v5201_v16 = vadd.f32 %v8021_v22, %v8045_v33 }
 0x2af   : > { %4527 = vst [vmem:[%s7725_s13 + $0x198] sm:$0xff] %v4455_v26  ;;  %v4461_v36 = vmax.f32 %v5170_v27, 0.0 }
 0x2b0   : > { %4532 = vst [vmem:[%s7725_s13 + $0x1c0] sm:$0xff] %v4460_v30 }
 0x2b1   : > { %4533 = vst [vmem:[%s7725_s13 + $0x1c8] sm:$0xff] %v4461_v36  ;;  %v3930_v38 = vpop.f32.mrb[44].mxu1 }
 0x2b2   : > { %v8030_v8 = vpop.f32.mrb[44].mxu0  ;;  %v5171_v40 = vadd.f32 %v3930_v38, %v7973_v34  ;;  %v3932_v62 = vpop.f32.mrb[45].mxu1 }
 0x2b3   : > { %v8033_v39 = vpop.f32.mrb[45].mxu0  ;;  %v5172_v31 = vadd.f32 %v3932_v62, %v7976_v18  ;;  %v3934_v45 = vpop.f32.mrb[46].mxu1 }
 0x2b4   : > { %v8036_v13 = vpop.f32.mrb[46].mxu0  ;;  %v4466_v32 = vmax.f32 %v5171_v40, 0.0  ;;  %v5173_v46 = vadd.f32 %v3934_v45, %v7973_v34  ;;  %v3936_v0 = vpop.f32.mrb[47].mxu1 }
 0x2b5   : > { %v8042_v63 = vpop.f32.mrb[47].mxu0  ;;  %v4467_v43 = vmax.f32 %v5172_v31, 0.0  ;;  %v5174_v42 = vadd.f32 %v3936_v0, %v7976_v18  ;;  %v5193_v18 = vadd.f32 %v8005_v50, %v8045_v33 }
 0x2b6   : > { %4538 = vst [vmem:[%s7725_s13 + $0x1f0] sm:$0xff] %v4466_v32  ;;  %v4472_v53 = vmax.f32 %v5173_v46, 0.0 }
 0x2b7   : > { %4539 = vst [vmem:[%s7725_s13 + $0x1f8] sm:$0xff] %v4467_v43  ;;  %v4473_v1 = vmax.f32 %v5174_v42, 0.0 }
 0x2b8   : > { %4544 = vst [vmem:[%s7725_s13 + $0x220] sm:$0xff] %v4472_v53  ;;  %v5203_v53 = vadd.f32 %v8030_v8, %v8039_v41  ;;  %v5209_v8 = vadd.f32 %v8042_v63, %v8045_v33 }
 0x2b9   : > { %4545 = vst [vmem:[%s7725_s13 + $0x228] sm:$0xff] %v4473_v1  ;;  %v4375_v60 = vpop.f32.mrb[48].mxu1  ;;  %v5205_v1 = vadd.f32 %v8033_v39, %v8045_v33 }
 0x2ba   : > { %v4345_v34 = vpop.f32.mrb[24].mxu0  ;;  %v5188_v10 = vadd.f32 %v5187_v20, %v4375_v60  ;;  %v4377_v7 = vpop.f32.mrb[49].mxu1 }
 0x2bb   : > { %v5175_v54 = vadd.f32 %v4345_v34, %v8039_v41  ;;  %v4347_v24 = vpop.f32.mrb[25].mxu0  ;;  %v5190_v29 = vadd.f32 %v5189_v4, %v4377_v7  ;;  %v4379_v56 = vpop.f32.mrb[50].mxu1  ;;  %v5207_v34 = vadd.f32 %v8036_v13, %v8039_v41 }
 0x2bc   : > { %v5176_v11 = vadd.f32 %v4347_v24, %v8045_v33  ;;  %v4349_v12 = vpop.f32.mrb[26].mxu0  ;;  %v4444_v48 = vmax.f32 %v5188_v10, 0.0  ;;  %v5192_v59 = vadd.f32 %v5191_v61, %v4379_v56  ;;  %v4381_v2 = vpop.f32.mrb[51].mxu1 }
 0x2bd   : > { %v4408_v58 = vmax.f32 %v5175_v54, 0.0  ;;  %v5177_v14 = vadd.f32 %v4349_v12, %v8039_v41  ;;  %v4351_v19 = vpop.f32.mrb[27].mxu0  ;;  %v4445_v5 = vmax.f32 %v5190_v29, 0.0  ;;  %v5194_v23 = vadd.f32 %v5193_v18, %v4381_v2 }
 0x2be   : > { %v4409_v3 = vmax.f32 %v5176_v11, 0.0  ;;  %v5178_v50 = vadd.f32 %v4351_v19, %v8045_v33  ;;  %4516 = vst [vmem:[%s7725_s13 + $0x140] sm:$0xff] %v4444_v48  ;;  %v4450_v9 = vmax.f32 %v5192_v59, 0.0 }
 0x2bf   : > { %4480 = vst [vmem:[%s7725_s13 + $0x20] sm:$0xff] %v4408_v58  ;;  %v4414_v49 = vmax.f32 %v5177_v14, 0.0  ;;  %4517 = vst [vmem:[%s7725_s13 + $0x148] sm:$0xff] %v4445_v5  ;;  %v4451_v21 = vmax.f32 %v5194_v23, 0.0 }
 0x2c0   : > { %4481 = vst [vmem:[%s7725_s13 + $0x28] sm:$0xff] %v4409_v3  ;;  %v4415_v15 = vmax.f32 %v5178_v50, 0.0  ;;  %4522 = vst [vmem:[%s7725_s13 + $0x170] sm:$0xff] %v4450_v9 }
 0x2c1   : > { %4486 = vst [vmem:[%s7725_s13 + $0x50] sm:$0xff] %v4414_v49  ;;  %4523 = vst [vmem:[%s7725_s13 + $0x178] sm:$0xff] %v4451_v21  ;;  %v4385_v35 = vpop.f32.mrb[52].mxu1 }
 0x2c2   : > { %4487 = vst [vmem:[%s7725_s13 + $0x58] sm:$0xff] %v4415_v15  ;;  %v4355_v28 = vpop.f32.mrb[28].mxu0  ;;  %v5196_v55 = vadd.f32 %v5195_v25, %v4385_v35  ;;  %v4387_v26 = vpop.f32.mrb[53].mxu1 }
 0x2c3   : > { %v5179_v52 = vadd.f32 %v4355_v28, %v8039_v41  ;;  %v4357_v17 = vpop.f32.mrb[29].mxu0  ;;  %v5198_v30 = vadd.f32 %v5197_v47, %v4387_v26  ;;  %v4389_v36 = vpop.f32.mrb[54].mxu1 }
 0x2c4   : > { %v5180_v27 = vadd.f32 %v4357_v17, %v8045_v33  ;;  %v4359_v51 = vpop.f32.mrb[30].mxu0  ;;  %v4456_v57 = vmax.f32 %v5196_v55, 0.0  ;;  %v5200_v40 = vadd.f32 %v5199_v6, %v4389_v36  ;;  %v4391_v62 = vpop.f32.mrb[55].mxu1 }
 0x2c5   : > { %v4420_v37 = vmax.f32 %v5179_v52, 0.0  ;;  %v5181_v44 = vadd.f32 %v4359_v51, %v8039_v41  ;;  %v4361_v38 = vpop.f32.mrb[31].mxu0  ;;  %v4457_v22 = vmax.f32 %v5198_v30, 0.0  ;;  %v5202_v32 = vadd.f32 %v5201_v16, %v4391_v62 }
 0x2c6   : > { %v4421_v31 = vmax.f32 %v5180_v27, 0.0  ;;  %v5182_v45 = vadd.f32 %v4361_v38, %v8045_v33  ;;  %4528 = vst [vmem:[%s7725_s13 + $0x1a0] sm:$0xff] %v4456_v57  ;;  %v4462_v0 = vmax.f32 %v5200_v40, 0.0 }
 0x2c7   : > { %4492 = vst [vmem:[%s7725_s13 + $0x80] sm:$0xff] %v4420_v37  ;;  %v4426_v46 = vmax.f32 %v5181_v44, 0.0  ;;  %4529 = vst [vmem:[%s7725_s13 + $0x1a8] sm:$0xff] %v4457_v22  ;;  %v4463_v42 = vmax.f32 %v5202_v32, 0.0 }
 0x2c8   : > { %4493 = vst [vmem:[%s7725_s13 + $0x88] sm:$0xff] %v4421_v31  ;;  %v4427_v43 = vmax.f32 %v5182_v45, 0.0  ;;  %4534 = vst [vmem:[%s7725_s13 + $0x1d0] sm:$0xff] %v4462_v0 }
 0x2c9   : > { %4498 = vst [vmem:[%s7725_s13 + $0xb0] sm:$0xff] %v4426_v46  ;;  %4535 = vst [vmem:[%s7725_s13 + $0x1d8] sm:$0xff] %v4463_v42  ;;  %v4395_v4 = vpop.f32.mrb[56].mxu1 }
 0x2ca   : > { %4499 = vst [vmem:[%s7725_s13 + $0xb8] sm:$0xff] %v4427_v43  ;;  %v4365_v20 = vpop.f32.mrb[32].mxu0  ;;  %v5204_v54 = vadd.f32 %v5203_v53, %v4395_v4  ;;  %v4397_v24 = vpop.f32.mrb[57].mxu1 }
 0x2cb   : > { %v5183_v60 = vadd.f32 %v4365_v20, %v8039_v41  ;;  %v4367_v61 = vpop.f32.mrb[33].mxu0  ;;  %v5206_v7 = vadd.f32 %v5205_v1, %v4397_v24  ;;  %v4399_v18 = vpop.f32.mrb[58].mxu1 }
 0x2cc   : > { %v5184_v10 = vadd.f32 %v4367_v61, %v8045_v33  ;;  %v4369_v39 = vpop.f32.mrb[34].mxu0  ;;  %v4468_v12 = vmax.f32 %v5204_v54, 0.0  ;;  %v5208_v56 = vadd.f32 %v5207_v34, %v4399_v18  ;;  %v4401_v58 = vpop.f32.mrb[59].mxu1 }
 0x2cd   : > { %v4432_v11 = vmax.f32 %v5183_v60, 0.0  ;;  %v5185_v13 = vadd.f32 %v4369_v39, %v8039_v41  ;;  %v4371_v29 = vpop.f32.mrb[35].mxu0  ;;  %v4469_v48 = vmax.f32 %v5206_v7, 0.0  ;;  %v5210_v19 = vadd.f32 %v5209_v8, %v4401_v58 }
 0x2ce   : > { %v4433_v63 = vmax.f32 %v5184_v10, 0.0  ;;  %v5186_v14 = vadd.f32 %v4371_v29, %v8045_v33  ;;  %4540 = vst [vmem:[%s7725_s13 + $0x200] sm:$0xff] %v4468_v12  ;;  %v4474_v2 = vmax.f32 %v5208_v56, 0.0 }
 0x2cf   : > { %4504 = vst [vmem:[%s7725_s13 + $0xe0] sm:$0xff] %v4432_v11  ;;  %v4438_v59 = vmax.f32 %v5185_v13, 0.0  ;;  %4541 = vst [vmem:[%s7725_s13 + $0x208] sm:$0xff] %v4469_v48  ;;  %v4475_v41 = vmax.f32 %v5210_v19, 0.0 }
 0x2d0   : > { %4505 = vst [vmem:[%s7725_s13 + $0xe8] sm:$0xff] %v4433_v63  ;;  %v4439_v3 = vmax.f32 %v5186_v14, 0.0  ;;  %4546 = vst [vmem:[%s7725_s13 + $0x230] sm:$0xff] %v4474_v2 }
 0x2d1   : > { %4510 = vst [vmem:[%s7725_s13 + $0x110] sm:$0xff] %v4438_v59  ;;  %4547 = vst [vmem:[%s7725_s13 + $0x238] sm:$0xff] %v4475_v41 }
 0x2d2   : > { %4511 = vst [vmem:[%s7725_s13 + $0x118] sm:$0xff] %v4439_v3 }
 0x2d3 PF: > { %s13_s12 = sadd.s32 1, %s6224_s12  }
 0x2d4   : > { %p10_p4 = scmp.ge.s32.totalorder %s13_s12, 4  }
 0x2d6   :  { %12 = sbr.rel (!%p10_p4) target bundleno = 1 (0x1), region = 62 }

// kernel: mixed_c_forward.6
= control target key start
LH: loop header
LB: loop body
LE: loop exit
PB: predicated region body
PF: predicated region fallthrough
CT: control target
= control target key end

     0   :  { %s5351_s12 = smov 0   ;;  %s6769_s0 = inlined_call_operand.vmem [shape: bf16[32,2304], index: 0, kind: input, shape index: {}]   ;;  %s6770_s1 = inlined_call_operand.vmem [shape: bf16[2304,384], index: 1, kind: input, shape index: {}]   ;;  %s6771_s2 = inlined_call_operand.vmem [shape: f32[1,384], index: 2, kind: input, shape index: {}]   ;;  %s6772_s3 = inlined_call_operand.vmem [shape: f32[32,384], index: 3, kind: output, shape index: {}]  }
   0x1 LB: > { %s4011_s13 = sadd.s32 4294967295, %s5329_s12   ;;  %p4015_p0 = scmp.ge.s32.totalorder %s5329_s12, 1  ;;  %s5329_s12 = sphi %s5351_s12, %s13_s12  }
   0x2   : > { %p139_p1 = scmp.lt.s32.totalorder %s5329_s12, 3 }
   0x4   : > { %p140_p2 = pnand %p4015_p0, %p139_p1 }
   0x5   : > { %v4716_v0 = vld [vmem:[%s6770_s1 + $0x4] ss:$12 sps:$4 sm:$0xff] (!%p140_p2)   ;;  %v4720_v2 = vld [vmem:[%s6770_s1] ss:$12 sps:$4 sm:$0xff] (!%p140_p2)   ;;  %v4722_v4 = vld [vmem:[%s6770_s1 + $0x1c] ss:$12 sps:$4 sm:$0xff] (!%p140_p2)  }
   0x6   : > { %143 = sbr.rel (%p140_p2) target bundleno = 675 (0x2a3), region = 32  ;;  %v4718_v1 = vld [vmem:[%s6770_s1 + $0x304] ss:$12 sps:$4 sm:$0xff] (!%p140_p2)   ;;  %3185 = vmatprep.subr.bf16.mxu1 (!%p140_p2), %v4716_v0  ;;  %v4721_v3 = vld [vmem:[%s6770_s1 + $0x300] ss:$12 sps:$4 sm:$0xff] (!%p140_p2)   ;;  %s4016_s24 = sshll.u32 (!%p140_p2), %s4011_s13, 1 }
   0x7   : > { %3271 = vmatprep.subr.bf16.mxu0 (!%p140_p2), %v4718_v1  ;;  %3186 = vmatpush1.bf16.msra.mxu1 (!%p140_p2), %v4720_v2  ;;  %v4724_v5 = vld [vmem:[%s6770_s1 + $0x31c] ss:$12 sps:$4 sm:$0xff] (!%p140_p2)   ;;  %v4726_v6 = vld [vmem:[%s6770_s1 + $0x18] ss:$12 sps:$4 sm:$0xff] (!%p140_p2)   ;;  %v4728_v8 = vld [vmem:[%s6770_s1 + $0x34] ss:$12 sps:$4 sm:$0xff] (!%p140_p2)  }
   0x8   : > { %3272 = vmatpush1.bf16.msra.mxu0 (!%p140_p2), %v4721_v3  ;;  %3187 = vmatprep.subr.bf16.mxu1 (!%p140_p2), %v4722_v4  ;;  %v4727_v7 = vld [vmem:[%s6770_s1 + $0x318] ss:$12 sps:$4 sm:$0xff] (!%p140_p2)   ;;  %v4730_v9 = vld [vmem:[%s6770_s1 + $0x334] ss:$12 sps:$4 sm:$0xff] (!%p140_p2)   ;;  %v4732_v10 = vld [vmem:[%s6770_s1 + $0x30] ss:$12 sps:$4 sm:$0xff] (!%p140_p2)  }
   0x9   : > { %3273 = vmatprep.subr.bf16.mxu0 (!%p140_p2), %v4724_v5  ;;  %v4733_v11 = vld [vmem:[%s6770_s1 + $0x330] ss:$12 sps:$4 sm:$0xff] (!%p140_p2)   ;;  %v4734_v12 = vld [vmem:[%s6770_s1 + $0x4c] ss:$12 sps:$4 sm:$0xff] (!%p140_p2)   ;;  %v4738_v14 = vld [vmem:[%s6770_s1 + $0x48] ss:$12 sps:$4 sm:$0xff] (!%p140_p2)  }
   0xa   : > { %v4736_v13 = vld [vmem:[%s6770_s1 + $0x34c] ss:$12 sps:$4 sm:$0xff] (!%p140_p2)   ;;  %v4739_v15 = vld [vmem:[%s6770_s1 + $0x348] ss:$12 sps:$4 sm:$0xff] (!%p140_p2)   ;;  %v4740_v16 = vld [vmem:[%s6770_s1 + $0x64] ss:$12 sps:$4 sm:$0xff] (!%p140_p2)  }
   0xb   : > { %3188 = vmatpush1.bf16.msra.mxu1 (!%p140_p2), %v4726_v6  ;;  %v4742_v17 = vld [vmem:[%s6770_s1 + $0x364] ss:$12 sps:$4 sm:$0xff] (!%p140_p2)   ;;  %v4744_v18 = vld [vmem:[%s6770_s1 + $0x60] ss:$12 sps:$4 sm:$0xff] (!%p140_p2)   ;;  %v4746_v20 = vld [vmem:[%s6770_s1 + $0x7c] ss:$12 sps:$4 sm:$0xff] (!%p140_p2)  }
   0xc   : > { %3274 = vmatpush1.bf16.msra.mxu0 (!%p140_p2), %v4727_v7  ;;  %3189 = vmatprep.subr.bf16.mxu1 (!%p140_p2), %v4728_v8  ;;  %v4745_v19 = vld [vmem:[%s6770_s1 + $0x360] ss:$12 sps:$4 sm:$0xff] (!%p140_p2)   ;;  %v4748_v21 = vld [vmem:[%s6770_s1 + $0x37c] ss:$12 sps:$4 sm:$0xff] (!%p140_p2)   ;;  %v4750_v22 = vld [vmem:[%s6770_s1 + $0x78] ss:$12 sps:$4 sm:$0xff] (!%p140_p2)  }
   0xd   : > { %3275 = vmatprep.subr.bf16.mxu0 %v4730_v9  ;;  %v4751_v23 = vld [vmem:[%s6770_s1 + $0x378] ss:$12 sps:$4 sm:$0xff]   ;;  %v4752_v24 = vld [vmem:[%s6770_s1 + $0x94] ss:$12 sps:$4 sm:$0xff]   ;;  %v4756_v26 = vld [vmem:[%s6770_s1 + $0x90] ss:$12 sps:$4 sm:$0xff]  }
   0xe   : > { %v4754_v25 = vld [vmem:[%s6770_s1 + $0x394] ss:$12 sps:$4 sm:$0xff]   ;;  %v4757_v27 = vld [vmem:[%s6770_s1 + $0x390] ss:$12 sps:$4 sm:$0xff]   ;;  %v4758_v28 = vld [vmem:[%s6770_s1 + $0xac] ss:$12 sps:$4 sm:$0xff]  }
   0xf   : > { %3190 = vmatpush1.bf16.msra.mxu1 %v4732_v10  ;;  %v4760_v29 = vld [vmem:[%s6770_s1 + $0x3ac] ss:$12 sps:$4 sm:$0xff]   ;;  %v4762_v30 = vld [vmem:[%s6770_s1 + $0xa8] ss:$12 sps:$4 sm:$0xff]   ;;  %v4764_v32 = vld [vmem:[%s6770_s1 + $0xc4] ss:$12 sps:$4 sm:$0xff]  }
  0x10   : > { %3276 = vmatpush1.bf16.msra.mxu0 %v4733_v11  ;;  %3191 = vmatprep.subr.bf16.mxu1 %v4734_v12  ;;  %v4763_v31 = vld [vmem:[%s6770_s1 + $0x3a8] ss:$12 sps:$4 sm:$0xff]   ;;  %p166_p3 = scmp.lt.s32.totalorder %s4016_s24, 3  ;;  %v4766_v33 = vld [vmem:[%s6770_s1 + $0x3c4] ss:$12 sps:$4 sm:$0xff]  }
  0x11   : > { %3277 = vmatprep.subr.bf16.mxu0 %v4736_v13  ;;  %v4768_v34 = vld [vmem:[%s6770_s1 + $0xc0] ss:$12 sps:$4 sm:$0xff]   ;;  %v4770_v36 = vld [vmem:[%s6770_s1 + $0xdc] ss:$12 sps:$4 sm:$0xff]   ;;  %v4774_v38 = vld [vmem:[%s6770_s1 + $0xd8] ss:$12 sps:$4 sm:$0xff]  }
  0x12   : > { %v4769_v35 = vld [vmem:[%s6770_s1 + $0x3c0] ss:$12 sps:$4 sm:$0xff]   ;;  %s6774_s24 = smov (!%p166_p3, %s4016_s24), 3  ;;  %v4772_v37 = vld [vmem:[%s6770_s1 + $0x3dc] ss:$12 sps:$4 sm:$0xff]  }
  0x13   : > { %3192 = vmatpush1.bf16.msra.mxu1 %v4738_v14  ;;  %v4775_v39 = vld [vmem:[%s6770_s1 + $0x3d8] ss:$12 sps:$4 sm:$0xff]   ;;  %v4776_v40 = vld [vmem:[%s6770_s1 + $0xf4] ss:$12 sps:$4 sm:$0xff]   ;;  %s4706_s21 = smul.u32 72, %s6774_s24 }
  0x14   : > { %3278 = vmatpush1.bf16.msra.mxu0 %v4739_v15  ;;  %3193 = vmatprep.subr.bf16.mxu1 %v4740_v16  ;;  %v4778_v41 = vld [vmem:[%s6770_s1 + $0x3f4] ss:$12 sps:$4 sm:$0xff]   ;;  %v4780_v42 = vld [vmem:[%s6770_s1 + $0xf0] ss:$12 sps:$4 sm:$0xff]   ;;  %v4782_v44 = vld [vmem:[%s6770_s1 + $0x10c] ss:$12 sps:$4 sm:$0xff]  }
  0x15   : > { %3279 = vmatprep.subr.bf16.mxu0 %v4742_v17  ;;  %v4781_v43 = vld [vmem:[%s6770_s1 + $0x3f0] ss:$12 sps:$4 sm:$0xff]   ;;  %s5502_s13 = scalar_lea.vmem %s6769_s0, %s4706_s21  ;;  %v4784_v45 = vld [vmem:[%s6770_s1 + $0x40c] ss:$12 sps:$4 sm:$0xff]   ;;  %v4786_v46 = vld [vmem:[%s6770_s1 + $0x108] ss:$12 sps:$4 sm:$0xff]  }
  0x16   : > { %v4787_v47 = vld [vmem:[%s6770_s1 + $0x408] ss:$12 sps:$4 sm:$0xff]   ;;  %v5514_v48 = vld [vmem:[%s5502_s13 + $0x4] ss:$72 sps:$4 sm:$0xff]   ;;  %v4804_v60 = vld [vmem:[%s6770_s1 + $0x150] ss:$12 sps:$4 sm:$0xff]  }
  0x17   : > { %3194 = vmatpush1.bf16.msra.mxu1 %v4744_v18  ;;  %v4788_v49 = vld [vmem:[%s6770_s1 + $0x124] ss:$12 sps:$4 sm:$0xff]   ;;  %3217 = vmatprep.mubr.bf16.mxu1 %v5514_v48  ;;  %v4820_v51 = vld [vmem:[%s5502_s13 + $0x14] ss:$72 sps:$4 sm:$0xff]   ;;  %v4792_v52 = vld [vmem:[%s6770_s1 + $0x120] ss:$12 sps:$4 sm:$0xff]  }
  0x18   : > { %3280 = vmatpush1.bf16.msra.mxu0 %v4745_v19  ;;  %3195 = vmatprep.subr.bf16.mxu1 %v4746_v20  ;;  %v4790_v50 = vld [vmem:[%s6770_s1 + $0x424] ss:$12 sps:$4 sm:$0xff]   ;;  %v4793_v53 = vld [vmem:[%s6770_s1 + $0x420] ss:$12 sps:$4 sm:$0xff]   ;;  %v4794_v54 = vld [vmem:[%s6770_s1 + $0x13c] ss:$12 sps:$4 sm:$0xff]  }
  0x19   : > { %3281 = vmatprep.subr.bf16.mxu0 %v4748_v21  ;;  %v4796_v55 = vld [vmem:[%s6770_s1 + $0x43c] ss:$12 sps:$4 sm:$0xff]   ;;  %3303 = vmatprep.mubr.bf16.mxu0 %v4820_v51  ;;  %v4798_v56 = vld [vmem:[%s6770_s1 + $0x138] ss:$12 sps:$4 sm:$0xff]   ;;  %v4800_v58 = vld [vmem:[%s6770_s1 + $0x154] ss:$12 sps:$4 sm:$0xff]  }
  0x1a   : > { %v4799_v57 = vld [vmem:[%s6770_s1 + $0x438] ss:$12 sps:$4 sm:$0xff]   ;;  %v4802_v59 = vld [vmem:[%s6770_s1 + $0x454] ss:$12 sps:$4 sm:$0xff]   ;;  %v4805_v61 = vld [vmem:[%s6770_s1 + $0x450] ss:$12 sps:$4 sm:$0xff]  }
  0x1b   : > { %3196 = vmatpush1.bf16.msra.mxu1 %v4750_v22  ;;  %v4806_v62 = vld [vmem:[%s6770_s1 + $0x16c] ss:$12 sps:$4 sm:$0xff]   ;;  %v4810_v0 = vld [vmem:[%s6770_s1 + $0x168] ss:$12 sps:$4 sm:$0xff]   ;;  %v4817_v2 = vld [vmem:[%s6770_s1 + $0x184] ss:$12 sps:$4 sm:$0xff]  }
  0x1c   : > { %3282 = vmatpush1.bf16.msra.mxu0 %v4751_v23  ;;  %3197 = vmatprep.subr.bf16.mxu1 %v4752_v24  ;;  %v4808_v63 = vld [vmem:[%s6770_s1 + $0x46c] ss:$12 sps:$4 sm:$0xff]   ;;  %v4811_v1 = vld [vmem:[%s6770_s1 + $0x468] ss:$12 sps:$4 sm:$0xff]   ;;  %v4823_v3 = vld [vmem:[%s6770_s1 + $0x484] ss:$12 sps:$4 sm:$0xff]  }
  0x1d   : > { %3283 = vmatprep.subr.bf16.mxu0 %v4754_v25  ;;  %v5573_v4 = vld [vmem:[%s5502_s13] ss:$72 sps:$4 sm:$0xff]   ;;  %v4818_v6 = vld [vmem:[%s5502_s13 + $0x10] ss:$72 sps:$4 sm:$0xff]   ;;  %s4707_s15 = smul.u32 24, %s6774_s24 }
  0x1e   : > { %v4815_v5 = vld [vmem:[%s6770_s1 + $0x180] ss:$12 sps:$4 sm:$0xff]   ;;  %v4826_v8 = vld [vmem:[%s6770_s1 + $0x19c] ss:$12 sps:$4 sm:$0xff]   ;;  %v4824_v10 = vld [vmem:[%s6770_s1 + $0x198] ss:$12 sps:$4 sm:$0xff]  }
  0x1f   : > { %3198 = vmatpush1.bf16.msra.mxu1 %v4756_v26  ;;  %v4821_v7 = vld [vmem:[%s6770_s1 + $0x480] ss:$12 sps:$4 sm:$0xff]   ;;  %v4829_v9 = vld [vmem:[%s6770_s1 + $0x49c] ss:$12 sps:$4 sm:$0xff]   ;;  %v4827_v11 = vld [vmem:[%s6770_s1 + $0x498] ss:$12 sps:$4 sm:$0xff]   ;;  %s177_s17 = scalar_lea.vmem %s6772_s3, %s4707_s15 }
  0x20   : > { %3284 = vmatpush1.bf16.msra.mxu0 %v4757_v27  ;;  %3199 = vmatprep.subr.bf16.mxu1 %v4758_v28  ;;  %v4832_v12 = vld [vmem:[%s6770_s1 + $0x1b4] ss:$12 sps:$4 sm:$0xff]   ;;  %v4830_v14 = vld [vmem:[%s6770_s1 + $0x1b0] ss:$12 sps:$4 sm:$0xff]   ;;  %v4838_v16 = vld [vmem:[%s6770_s1 + $0x1cc] ss:$12 sps:$4 sm:$0xff]  }
  0x21   : > { %3285 = vmatprep.subr.bf16.mxu0 %v4760_v29  ;;  %v4835_v13 = vld [vmem:[%s6770_s1 + $0x4b4] ss:$12 sps:$4 sm:$0xff]   ;;  %v4833_v15 = vld [vmem:[%s6770_s1 + $0x4b0] ss:$12 sps:$4 sm:$0xff]   ;;  %v4841_v17 = vld [vmem:[%s6770_s1 + $0x4cc] ss:$12 sps:$4 sm:$0xff]  }
  0x22   : > { %v4836_v18 = vld [vmem:[%s6770_s1 + $0x1c8] ss:$12 sps:$4 sm:$0xff]   ;;  %v4844_v20 = vld [vmem:[%s6770_s1 + $0x1e4] ss:$12 sps:$4 sm:$0xff]   ;;  %v4842_v22 = vld [vmem:[%s6770_s1 + $0x1e0] ss:$12 sps:$4 sm:$0xff]  }
  0x23   : > { %3200 = vmatpush1.bf16.msra.mxu1 %v4762_v30  ;;  %v4839_v19 = vld [vmem:[%s6770_s1 + $0x4c8] ss:$12 sps:$4 sm:$0xff]   ;;  %v4847_v21 = vld [vmem:[%s6770_s1 + $0x4e4] ss:$12 sps:$4 sm:$0xff]   ;;  %v4845_v23 = vld [vmem:[%s6770_s1 + $0x4e0] ss:$12 sps:$4 sm:$0xff]  }
  0x24   : > { %3286 = vmatpush1.bf16.msra.mxu0 %v4763_v31  ;;  %3201 = vmatprep.subr.bf16.mxu1 %v4764_v32  ;;  %v4850_v24 = vld [vmem:[%s6770_s1 + $0x1fc] ss:$12 sps:$4 sm:$0xff]   ;;  %v4848_v26 = vld [vmem:[%s6770_s1 + $0x1f8] ss:$12 sps:$4 sm:$0xff]   ;;  %v4856_v28 = vld [vmem:[%s6770_s1 + $0x214] ss:$12 sps:$4 sm:$0xff]  }
  0x25   : > { %3287 = vmatprep.subr.bf16.mxu0 %v4766_v33  ;;  %v4853_v25 = vld [vmem:[%s6770_s1 + $0x4fc] ss:$12 sps:$4 sm:$0xff]   ;;  %v4851_v27 = vld [vmem:[%s6770_s1 + $0x4f8] ss:$12 sps:$4 sm:$0xff]   ;;  %v4859_v29 = vld [vmem:[%s6770_s1 + $0x514] ss:$12 sps:$4 sm:$0xff]  }
  0x26   : > { %v4854_v30 = vld [vmem:[%s6770_s1 + $0x210] ss:$12 sps:$4 sm:$0xff]   ;;  %v4862_v32 = vld [vmem:[%s6770_s1 + $0x22c] ss:$12 sps:$4 sm:$0xff]  }
  0x27   : > { %3202 = vmatpush1.bf16.msra.mxu1 %v4768_v34  ;;  %v4857_v31 = vld [vmem:[%s6770_s1 + $0x510] ss:$12 sps:$4 sm:$0xff]   ;;  %v4865_v33 = vld [vmem:[%s6770_s1 + $0x52c] ss:$12 sps:$4 sm:$0xff]  }
  0x28   : > { %3288 = vmatpush1.bf16.msra.mxu0 %v4769_v35  ;;  %3203 = vmatprep.subr.bf16.mxu1 %v4770_v36  ;;  %v5662_v34 = vld [vmem:[%s5502_s13 + $0xc] ss:$72 sps:$4 sm:$0xff]   ;;  %v4919_v35 = vld [vmem:[%s5502_s13 + $0x1c] ss:$72 sps:$4 sm:$0xff]  }
  0x29   : > { %3289 = vmatprep.subr.bf16.mxu0 %v4772_v37  ;;  %v4860_v36 = vld [vmem:[%s6770_s1 + $0x228] ss:$12 sps:$4 sm:$0xff]   ;;  %v4886_v51 = vld [vmem:[%s6770_s1 + $0x28c] ss:$12 sps:$4 sm:$0xff]  }
  0x2a   : > { %v4863_v37 = vld [vmem:[%s6770_s1 + $0x528] ss:$12 sps:$4 sm:$0xff]  }
  0x2b   : > { %3204 = vmatpush1.bf16.msra.mxu1 %v4774_v38  ;;  %v4868_v38 = vld [vmem:[%s6770_s1 + $0x244] ss:$12 sps:$4 sm:$0xff]  }
  0x2c   : > { %3290 = vmatpush1.bf16.msra.mxu0 %v4775_v39  ;;  %3205 = vmatprep.subr.bf16.mxu1 %v4776_v40  ;;  %v4871_v39 = vld [vmem:[%s6770_s1 + $0x544] ss:$12 sps:$4 sm:$0xff]   ;;  %v4866_v40 = vld [vmem:[%s6770_s1 + $0x240] ss:$12 sps:$4 sm:$0xff]  }
  0x2d   : > { %3291 = vmatprep.subr.bf16.mxu0 %v4778_v41  ;;  %v4869_v41 = vld [vmem:[%s6770_s1 + $0x540] ss:$12 sps:$4 sm:$0xff]  }
  0x2f   : > { %3206 = vmatpush1.bf16.msra.mxu1 %v4780_v42  ;;  %v4874_v42 = vld [vmem:[%s6770_s1 + $0x25c] ss:$12 sps:$4 sm:$0xff]  }
  0x30   : > { %3292 = vmatpush1.bf16.msra.mxu0 %v4781_v43  ;;  %3207 = vmatprep.subr.bf16.mxu1 %v4782_v44  ;;  %v4877_v43 = vld [vmem:[%s6770_s1 + $0x55c] ss:$12 sps:$4 sm:$0xff]   ;;  %v4872_v44 = vld [vmem:[%s6770_s1 + $0x258] ss:$12 sps:$4 sm:$0xff]  }
  0x31   : > { %3293 = vmatprep.subr.bf16.mxu0 %v4784_v45  ;;  %v4875_v45 = vld [vmem:[%s6770_s1 + $0x558] ss:$12 sps:$4 sm:$0xff]  }
  0x33   : > { %3208 = vmatpush1.bf16.msra.mxu1 %v4786_v46  ;;  %v4880_v46 = vld [vmem:[%s6770_s1 + $0x274] ss:$12 sps:$4 sm:$0xff]  }
  0x34   : > { %3294 = vmatpush1.bf16.msra.mxu0 %v4787_v47  ;;  %3209 = vmatprep.subr.bf16.mxu1 %v4788_v49  ;;  %v4883_v47 = vld [vmem:[%s6770_s1 + $0x574] ss:$12 sps:$4 sm:$0xff]   ;;  %v4878_v49 = vld [vmem:[%s6770_s1 + $0x270] ss:$12 sps:$4 sm:$0xff]  }
  0x35   : > { %3295 = vmatprep.subr.bf16.mxu0 %v4790_v50  ;;  %v4881_v50 = vld [vmem:[%s6770_s1 + $0x570] ss:$12 sps:$4 sm:$0xff]  }
  0x37   : > { %3210 = vmatpush1.bf16.msra.mxu1 %v4792_v52  ;;  %v4889_v52 = vld [vmem:[%s6770_s1 + $0x58c] ss:$12 sps:$4 sm:$0xff]  }
  0x38   : > { %3296 = vmatpush1.bf16.msra.mxu0 %v4793_v53  ;;  %3211 = vmatprep.subr.bf16.mxu1 %v4794_v54  ;;  %v4884_v53 = vld [vmem:[%s6770_s1 + $0x288] ss:$12 sps:$4 sm:$0xff]  }
  0x39   : > { %3297 = vmatprep.subr.bf16.mxu0 %v4796_v55  ;;  %v4887_v54 = vld [vmem:[%s6770_s1 + $0x588] ss:$12 sps:$4 sm:$0xff]   ;;  %v4892_v55 = vld [vmem:[%s6770_s1 + $0x2a4] ss:$12 sps:$4 sm:$0xff]  }
  0x3b   : > { %3212 = vmatpush1.bf16.msra.mxu1 %v4798_v56  ;;  %v4895_v56 = vld [vmem:[%s6770_s1 + $0x5a4] ss:$12 sps:$4 sm:$0xff]  }
  0x3c   : > { %3298 = vmatpush1.bf16.msra.mxu0 %v4799_v57  ;;  %3213 = vmatprep.subr.bf16.mxu1 %v4800_v58  ;;  %v4890_v57 = vld [vmem:[%s6770_s1 + $0x2a0] ss:$12 sps:$4 sm:$0xff]  }
  0x3d   : > { %3299 = vmatprep.subr.bf16.mxu0 %v4802_v59  ;;  %v4893_v58 = vld [vmem:[%s6770_s1 + $0x5a0] ss:$12 sps:$4 sm:$0xff]   ;;  %v4898_v59 = vld [vmem:[%s6770_s1 + $0x2bc] ss:$12 sps:$4 sm:$0xff]  }
  0x3f   : > { %3214 = vmatpush1.bf16.msra.mxu1 %v4804_v60  ;;  %v4901_v60 = vld [vmem:[%s6770_s1 + $0x5bc] ss:$12 sps:$4 sm:$0xff]  }
  0x40   : > { %3300 = vmatpush1.bf16.msra.mxu0 %v4805_v61  ;;  %3215 = vmatprep.subr.bf16.mxu1 %v4806_v62  ;;  %v4896_v61 = vld [vmem:[%s6770_s1 + $0x2b8] ss:$12 sps:$4 sm:$0xff]  }
  0x41   : > { %3301 = vmatprep.subr.bf16.mxu0 %v4808_v63  ;;  %v4899_v62 = vld [vmem:[%s6770_s1 + $0x5b8] ss:$12 sps:$4 sm:$0xff]   ;;  %v4904_v63 = vld [vmem:[%s6770_s1 + $0x2d4] ss:$12 sps:$4 sm:$0xff]  }
  0x43   : > { %3216 = vmatpush1.bf16.msra.mxu1 %v4810_v0  ;;  %v4907_v0 = vld [vmem:[%s6770_s1 + $0x5d4] ss:$12 sps:$4 sm:$0xff]  }
  0x44   : > { %3302 = vmatpush1.bf16.msra.mxu0 %v4811_v1  ;;  %3228 = vmatprep.subr.bf16.mxu1 %v4817_v2  ;;  %v4902_v1 = vld [vmem:[%s6770_s1 + $0x2d0] ss:$12 sps:$4 sm:$0xff]  }
  0x45   : > { %3314 = vmatprep.subr.bf16.mxu0 %v4823_v3  ;;  %v4905_v2 = vld [vmem:[%s6770_s1 + $0x5d0] ss:$12 sps:$4 sm:$0xff]   ;;  %v4910_v3 = vld [vmem:[%s6770_s1 + $0x2ec] ss:$12 sps:$4 sm:$0xff]  }
  0x46   : > { %3218 = vmatmul.mubr.bf16.vlgmr.msra.gmra.mrb[0].mxu1 %v5573_v4 }
  0x47   : > { %3304 = vmatmul.mubr.bf16.vlgmr.msra.gmra.mrb[0].mxu0 %v4818_v6  ;;  %3229 = vmatpush1.bf16.msra.mxu1 %v4815_v5  ;;  %v4913_v5 = vld [vmem:[%s6770_s1 + $0x5ec] ss:$12 sps:$4 sm:$0xff]   ;;  %v4908_v6 = vld [vmem:[%s6770_s1 + $0x2e8] ss:$12 sps:$4 sm:$0xff]  }
  0x48   : > { %3315 = vmatpush1.bf16.msra.mxu0 %v4821_v7  ;;  %3230 = vmatprep.subr.bf16.mxu1 %v4826_v8  ;;  %v4911_v7 = vld [vmem:[%s6770_s1 + $0x5e8] ss:$12 sps:$4 sm:$0xff]   ;;  %v4922_v8 = vld [vmem:[%s6770_s1 + $0x604] ss:$12 sps:$4 sm:$0xff]  }
  0x49   : > { %3316 = vmatprep.subr.bf16.mxu0 %v4829_v9  ;;  %3260 = vmatprep.mubr.bf16.mxu1 %v5662_v34  ;;  %v5772_v9 = vld [vmem:[%s5502_s13 + $0x8] ss:$72 sps:$4 sm:$0xff]  }
  0x4a   : > { %3346 = vmatprep.mubr.bf16.mxu0 %v4919_v35  ;;  %v4952_v35 = vld [vmem:[%s6770_s1 + $0x694] ss:$12 sps:$4 sm:$0xff]  }
  0x4b   : > { %3231 = vmatpush1.bf16.msra.mxu1 %v4824_v10  ;;  %v4923_v10 = vld [vmem:[%s6770_s1 + $0xc8] ss:$12 sps:$4 sm:$0xff]  }
  0x4c   : > { %3317 = vmatpush1.bf16.msra.mxu0 %v4827_v11  ;;  %3232 = vmatprep.subr.bf16.mxu1 %v4832_v12  ;;  %v4917_v11 = vld [vmem:[%s5502_s13 + $0x18] ss:$72 sps:$4 sm:$0xff]  }
  0x4d   : > { %3318 = vmatprep.subr.bf16.mxu0 %v4835_v13  ;;  %v4920_v12 = vld [vmem:[%s6770_s1 + $0x600] ss:$12 sps:$4 sm:$0xff]   ;;  %v4924_v13 = vld [vmem:[%s6770_s1 + $0x8] ss:$12 sps:$4 sm:$0xff]  }
  0x4f   : > { %3233 = vmatpush1.bf16.msra.mxu1 %v4830_v14  ;;  %v4927_v14 = vld [vmem:[%s6770_s1 + $0x61c] ss:$12 sps:$4 sm:$0xff]  }
  0x50   : > { %3319 = vmatpush1.bf16.msra.mxu0 %v4833_v15  ;;  %3234 = vmatprep.subr.bf16.mxu1 %v4838_v16  ;;  %v4928_v15 = vld [vmem:[%s6770_s1 + $0xe0] ss:$12 sps:$4 sm:$0xff]   ;;  %v4925_v16 = vld [vmem:[%s6770_s1 + $0x618] ss:$12 sps:$4 sm:$0xff]  }
  0x51   : > { %3320 = vmatprep.subr.bf16.mxu0 %v4841_v17  ;;  %v4929_v17 = vld [vmem:[%s6770_s1 + $0x20] ss:$12 sps:$4 sm:$0xff]  }
  0x53   : > { %3235 = vmatpush1.bf16.msra.mxu1 %v4836_v18  ;;  %v4932_v18 = vld [vmem:[%s6770_s1 + $0x634] ss:$12 sps:$4 sm:$0xff]  }
  0x54   : > { %3321 = vmatpush1.bf16.msra.mxu0 %v4839_v19  ;;  %3236 = vmatprep.subr.bf16.mxu1 %v4844_v20  ;;  %v4933_v19 = vld [vmem:[%s6770_s1 + $0xf8] ss:$12 sps:$4 sm:$0xff]   ;;  %v4930_v20 = vld [vmem:[%s6770_s1 + $0x630] ss:$12 sps:$4 sm:$0xff]  }
  0x55   : > { %3322 = vmatprep.subr.bf16.mxu0 %v4847_v21  ;;  %v4934_v21 = vld [vmem:[%s6770_s1 + $0x38] ss:$12 sps:$4 sm:$0xff]  }
  0x57   : > { %3237 = vmatpush1.bf16.msra.mxu1 %v4842_v22  ;;  %v4937_v22 = vld [vmem:[%s6770_s1 + $0x64c] ss:$12 sps:$4 sm:$0xff]  }
  0x58   : > { %3323 = vmatpush1.bf16.msra.mxu0 %v4845_v23  ;;  %3238 = vmatprep.subr.bf16.mxu1 %v4850_v24  ;;  %v4938_v23 = vld [vmem:[%s6770_s1 + $0x110] ss:$12 sps:$4 sm:$0xff]  }
  0x59   : > { %3324 = vmatprep.subr.bf16.mxu0 %v4853_v25  ;;  %v4939_v24 = vld [vmem:[%s6770_s1 + $0x50] ss:$12 sps:$4 sm:$0xff]  }
  0x5a   : > { %v4942_v25 = vld [vmem:[%s6770_s1 + $0x664] ss:$12 sps:$4 sm:$0xff]  }
  0x5b   : > { %3239 = vmatpush1.bf16.msra.mxu1 %v4848_v26  ;;  %v4943_v26 = vld [vmem:[%s6770_s1 + $0x128] ss:$12 sps:$4 sm:$0xff]  }
  0x5c   : > { %3325 = vmatpush1.bf16.msra.mxu0 %v4851_v27  ;;  %3240 = vmatprep.subr.bf16.mxu1 %v4856_v28  ;;  %v4940_v27 = vld [vmem:[%s6770_s1 + $0x660] ss:$12 sps:$4 sm:$0xff]   ;;  %v4944_v28 = vld [vmem:[%s6770_s1 + $0x68] ss:$12 sps:$4 sm:$0xff]  }
  0x5d   : > { %3326 = vmatprep.subr.bf16.mxu0 %v4859_v29  ;;  %v4947_v29 = vld [vmem:[%s6770_s1 + $0x67c] ss:$12 sps:$4 sm:$0xff]  }
  0x5f   : > { %3241 = vmatpush1.bf16.msra.mxu1 %v4854_v30  ;;  %v4948_v30 = vld [vmem:[%s6770_s1 + $0x140] ss:$12 sps:$4 sm:$0xff]  }
  0x60   : > { %3327 = vmatpush1.bf16.msra.mxu0 %v4857_v31  ;;  %3242 = vmatprep.subr.bf16.mxu1 %v4862_v32  ;;  %v5841_v31 = vld [vmem:[%s5502_s13 + $0x24] ss:$72 sps:$4 sm:$0xff]  }
  0x61   : > { %3328 = vmatprep.subr.bf16.mxu0 %v4865_v33  ;;  %v4945_v32 = vld [vmem:[%s6770_s1 + $0x678] ss:$12 sps:$4 sm:$0xff]   ;;  %v4949_v33 = vld [vmem:[%s6770_s1 + $0x80] ss:$12 sps:$4 sm:$0xff]  }
  0x63   : > { %3243 = vmatpush1.bf16.msra.mxu1 %v4860_v36  ;;  %v4953_v36 = vld [vmem:[%s6770_s1 + $0x158] ss:$12 sps:$4 sm:$0xff]  }
  0x64   : > { %3329 = vmatpush1.bf16.msra.mxu0 %v4863_v37  ;;  %3244 = vmatprep.subr.bf16.mxu1 %v4868_v38  ;;  %v4950_v37 = vld [vmem:[%s6770_s1 + $0x690] ss:$12 sps:$4 sm:$0xff]   ;;  %v4954_v38 = vld [vmem:[%s6770_s1 + $0x98] ss:$12 sps:$4 sm:$0xff]  }
  0x65   : > { %3330 = vmatprep.subr.bf16.mxu0 %v4871_v39  ;;  %v4957_v39 = vld [vmem:[%s6770_s1 + $0x6ac] ss:$12 sps:$4 sm:$0xff]  }
  0x67   : > { %3245 = vmatpush1.bf16.msra.mxu1 %v4866_v40  ;;  %v4958_v40 = vld [vmem:[%s6770_s1 + $0x170] ss:$12 sps:$4 sm:$0xff]  }
  0x68   : > { %3331 = vmatpush1.bf16.msra.mxu0 %v4869_v41  ;;  %3246 = vmatprep.subr.bf16.mxu1 %v4874_v42  ;;  %v4955_v41 = vld [vmem:[%s6770_s1 + $0x6a8] ss:$12 sps:$4 sm:$0xff]   ;;  %v4959_v42 = vld [vmem:[%s6770_s1 + $0xb0] ss:$12 sps:$4 sm:$0xff]  }
  0x69   : > { %3332 = vmatprep.subr.bf16.mxu0 %v4877_v43  ;;  %v4962_v43 = vld [vmem:[%s6770_s1 + $0x6c4] ss:$12 sps:$4 sm:$0xff]  }
  0x6b   : > { %3247 = vmatpush1.bf16.msra.mxu1 %v4872_v44  ;;  %v4963_v44 = vld [vmem:[%s6770_s1 + $0x248] ss:$12 sps:$4 sm:$0xff]  }
  0x6c   : > { %3333 = vmatpush1.bf16.msra.mxu0 %v4875_v45  ;;  %3248 = vmatprep.subr.bf16.mxu1 %v4880_v46  ;;  %v4960_v45 = vld [vmem:[%s6770_s1 + $0x6c0] ss:$12 sps:$4 sm:$0xff]   ;;  %v4964_v46 = vld [vmem:[%s6770_s1 + $0x188] ss:$12 sps:$4 sm:$0xff]  }
  0x6d   : > { %3334 = vmatprep.subr.bf16.mxu0 %v4883_v47  ;;  %v4967_v47 = vld [vmem:[%s6770_s1 + $0x6dc] ss:$12 sps:$4 sm:$0xff]  }
  0x6f   : > { %3249 = vmatpush1.bf16.msra.mxu1 %v4878_v49  ;;  %v4968_v49 = vld [vmem:[%s6770_s1 + $0x260] ss:$12 sps:$4 sm:$0xff]  }
  0x70   : > { %3335 = vmatpush1.bf16.msra.mxu0 %v4881_v50  ;;  %3250 = vmatprep.subr.bf16.mxu1 %v4886_v51  ;;  %v4965_v50 = vld [vmem:[%s6770_s1 + $0x6d8] ss:$12 sps:$4 sm:$0xff]   ;;  %v4969_v51 = vld [vmem:[%s6770_s1 + $0x1a0] ss:$12 sps:$4 sm:$0xff]  }
  0x71   : > { %3336 = vmatprep.subr.bf16.mxu0 %v4889_v52  ;;  %v4972_v52 = vld [vmem:[%s6770_s1 + $0x6f4] ss:$12 sps:$4 sm:$0xff]  }
  0x73   : > { %3251 = vmatpush1.bf16.msra.mxu1 %v4884_v53  ;;  %v4973_v53 = vld [vmem:[%s6770_s1 + $0x278] ss:$12 sps:$4 sm:$0xff]  }
  0x74   : > { %3337 = vmatpush1.bf16.msra.mxu0 %v4887_v54  ;;  %3252 = vmatprep.subr.bf16.mxu1 %v4892_v55  ;;  %v4974_v54 = vld [vmem:[%s6770_s1 + $0x1b8] ss:$12 sps:$4 sm:$0xff]  }
  0x75   : > { %3338 = vmatprep.subr.bf16.mxu0 %v4895_v56  ;;  %v4977_v55 = vld [vmem:[%s6770_s1 + $0x70c] ss:$12 sps:$4 sm:$0xff]   ;;  %v4975_v56 = vld [vmem:[%s6770_s1 + $0x708] ss:$12 sps:$4 sm:$0xff]  }
  0x77   : > { %3253 = vmatpush1.bf16.msra.mxu1 %v4890_v57  ;;  %v4979_v57 = vld [vmem:[%s6770_s1 + $0x1d0] ss:$12 sps:$4 sm:$0xff]  }
  0x78   : > { %3339 = vmatpush1.bf16.msra.mxu0 %v4893_v58  ;;  %3254 = vmatprep.subr.bf16.mxu1 %v4898_v59  ;;  %v4982_v58 = vld [vmem:[%s6770_s1 + $0x724] ss:$12 sps:$4 sm:$0xff]   ;;  %v4983_v59 = vld [vmem:[%s6770_s1 + $0x2a8] ss:$12 sps:$4 sm:$0xff]  }
  0x79   : > { %3340 = vmatprep.subr.bf16.mxu0 %v4901_v60  ;;  %v4980_v60 = vld [vmem:[%s6770_s1 + $0x720] ss:$12 sps:$4 sm:$0xff]  }
  0x7b   : > { %3255 = vmatpush1.bf16.msra.mxu1 %v4896_v61  ;;  %v4984_v61 = vld [vmem:[%s6770_s1 + $0x1e8] ss:$12 sps:$4 sm:$0xff]  }
  0x7c   : > { %3341 = vmatpush1.bf16.msra.mxu0 %v4899_v62  ;;  %3256 = vmatprep.subr.bf16.mxu1 %v4904_v63  ;;  %v4987_v62 = vld [vmem:[%s6770_s1 + $0x73c] ss:$12 sps:$4 sm:$0xff]   ;;  %v4988_v63 = vld [vmem:[%s6770_s1 + $0x2c0] ss:$12 sps:$4 sm:$0xff]  }
  0x7d   : > { %3342 = vmatprep.subr.bf16.mxu0 %v4907_v0  ;;  %v4985_v0 = vld [vmem:[%s6770_s1 + $0x738] ss:$12 sps:$4 sm:$0xff]  }
  0x7f   : > { %3257 = vmatpush1.bf16.msra.mxu1 %v4902_v1  ;;  %v4989_v1 = vld [vmem:[%s6770_s1 + $0x200] ss:$12 sps:$4 sm:$0xff]  }
  0x80   : > { %3343 = vmatpush1.bf16.msra.mxu0 %v4905_v2  ;;  %3258 = vmatprep.subr.bf16.mxu1 %v4910_v3  ;;  %v4992_v2 = vld [vmem:[%s6770_s1 + $0x754] ss:$12 sps:$4 sm:$0xff]   ;;  %v4993_v3 = vld [vmem:[%s6770_s1 + $0x2d8] ss:$12 sps:$4 sm:$0xff]  }
  0x81   : > { %3344 = vmatprep.subr.bf16.mxu0 %v4913_v5  ;;  %v4990_v5 = vld [vmem:[%s6770_s1 + $0x750] ss:$12 sps:$4 sm:$0xff]  }
  0x83   : > { %3259 = vmatpush1.bf16.msra.mxu1 %v4908_v6  ;;  %v4994_v6 = vld [vmem:[%s6770_s1 + $0x218] ss:$12 sps:$4 sm:$0xff]  }
  0x84   : > { %3345 = vmatpush1.bf16.msra.mxu0 %v4911_v7  ;;  %4472 = vmatprep.subr.bf16.mxu1 %v4923_v10  ;;  %v4997_v7 = vld [vmem:[%s6770_s1 + $0x76c] ss:$12 sps:$4 sm:$0xff]   ;;  %v4995_v10 = vld [vmem:[%s6770_s1 + $0x768] ss:$12 sps:$4 sm:$0xff]  }
  0x85   : > { %3357 = vmatprep.subr.bf16.mxu0 %v4922_v8  ;;  %v4998_v8 = vld [vmem:[%s6770_s1 + $0x2f0] ss:$12 sps:$4 sm:$0xff]  }
  0x86   : > { %3261 = vmatmul.mubr.bf16.vlgmr.msra.gmra.mrb[0].mxu1 %v5772_v9 }
  0x87   : > { %3347 = vmatmul.mubr.bf16.vlgmr.msra.gmra.mrb[0].mxu0 %v4917_v11  ;;  %4473 = vmatpush3.bf16.msra.mxu1 %v4924_v13  ;;  %v4999_v11 = vld [vmem:[%s6770_s1 + $0x230] ss:$12 sps:$4 sm:$0xff]  }
  0x88   : > { %3358 = vmatpush1.bf16.msra.mxu0 %v4920_v12  ;;  %4474 = vmatprep.subr.bf16.mxu1 %v4928_v15  ;;  %v5973_v12 = vld [vmem:[%s5502_s13 + $0x20] ss:$72 sps:$4 sm:$0xff]   ;;  %v5005_v13 = vld [vmem:[%s6770_s1 + $0x784] ss:$12 sps:$4 sm:$0xff]  }
  0x89   : > { %3359 = vmatprep.subr.bf16.mxu0 %v4927_v14  ;;  %3604 = vmatprep.mubr.bf16.mxu1 %v5514_v48  ;;  %v4935_v48 = vld [vmem:[%s6770_s1 + $0x648] ss:$12 sps:$4 sm:$0xff]   ;;  %v5003_v15 = vld [vmem:[%s6770_s1 + $0x780] ss:$12 sps:$4 sm:$0xff]  }
  0x8a   : > { %3389 = vmatprep.mubr.bf16.mxu0 %v5841_v31  ;;  %v5006_v14 = vld [vmem:[%s6770_s1 + $0x3c8] ss:$12 sps:$4 sm:$0xff]  }
  0x8b   : > { %4475 = vmatpush3.bf16.msra.mxu1 %v4929_v17  ;;  %v5010_v17 = vld [vmem:[%s6770_s1 + $0x79c] ss:$12 sps:$4 sm:$0xff]  }
  0x8c   : > { %3360 = vmatpush1.bf16.msra.mxu0 %v4925_v16  ;;  %4476 = vmatprep.subr.bf16.mxu1 %v4933_v19  ;;  %v5007_v16 = vld [vmem:[%s6770_s1 + $0x308] ss:$12 sps:$4 sm:$0xff]   ;;  %v5008_v19 = vld [vmem:[%s6770_s1 + $0x798] ss:$12 sps:$4 sm:$0xff]  }
  0x8d   : > { %3361 = vmatprep.subr.bf16.mxu0 %v4932_v18  ;;  %v5011_v18 = vld [vmem:[%s6770_s1 + $0x3e0] ss:$12 sps:$4 sm:$0xff]  }
  0x8f   : > { %4477 = vmatpush3.bf16.msra.mxu1 %v4934_v21  ;;  %v5015_v21 = vld [vmem:[%s6770_s1 + $0x7b4] ss:$12 sps:$4 sm:$0xff]  }
  0x90   : > { %3362 = vmatpush1.bf16.msra.mxu0 %v4930_v20  ;;  %4478 = vmatprep.subr.bf16.mxu1 %v4938_v23  ;;  %v5012_v20 = vld [vmem:[%s6770_s1 + $0x320] ss:$12 sps:$4 sm:$0xff]   ;;  %v5319_v23 = vld [vmem:[%s5502_s13 + $0x14] ss:$72 sps:$4 sm:$0xff]  }
  0x91   : > { %3363 = vmatprep.subr.bf16.mxu0 %v4937_v22  ;;  %v5013_v22 = vld [vmem:[%s6770_s1 + $0x7b0] ss:$12 sps:$4 sm:$0xff]  }
  0x93   : > { %4479 = vmatpush3.bf16.msra.mxu1 %v4939_v24  ;;  %v6015_v24 = vld [vmem:[%s5502_s13 + $0x2c] ss:$72 sps:$4 sm:$0xff]  }
  0x94   : > { %3364 = vmatpush1.bf16.msra.mxu0 %v4935_v48  ;;  %4480 = vmatprep.subr.bf16.mxu1 %v4943_v26  ;;  %v5017_v48 = vld [vmem:[%s6770_s1 + $0x338] ss:$12 sps:$4 sm:$0xff]   ;;  %v5021_v26 = vld [vmem:[%s6770_s1 + $0x410] ss:$12 sps:$4 sm:$0xff]  }
  0x95   : > { %3365 = vmatprep.subr.bf16.mxu0 %v4942_v25  ;;  %v5020_v25 = vld [vmem:[%s6770_s1 + $0x7cc] ss:$12 sps:$4 sm:$0xff]  }
  0x97   : > { %4481 = vmatpush3.bf16.msra.mxu1 %v4944_v28  ;;  %v5022_v28 = vld [vmem:[%s6770_s1 + $0x350] ss:$12 sps:$4 sm:$0xff]  }
  0x98   : > { %3366 = vmatpush1.bf16.msra.mxu0 %v4940_v27  ;;  %4482 = vmatprep.subr.bf16.mxu1 %v4948_v30  ;;  %v5018_v27 = vld [vmem:[%s6770_s1 + $0x7c8] ss:$12 sps:$4 sm:$0xff]  }
  0x99   : > { %3367 = vmatprep.subr.bf16.mxu0 %v4947_v29  ;;  %v5025_v29 = vld [vmem:[%s6770_s1 + $0x7e4] ss:$12 sps:$4 sm:$0xff]   ;;  %v5026_v30 = vld [vmem:[%s6770_s1 + $0x428] ss:$12 sps:$4 sm:$0xff]  }
  0x9b   : > { %4483 = vmatpush3.bf16.msra.mxu1 %v4949_v33  ;;  %v5027_v33 = vld [vmem:[%s6770_s1 + $0x368] ss:$12 sps:$4 sm:$0xff]  }
  0x9c   : > { %3368 = vmatpush1.bf16.msra.mxu0 %v4945_v32  ;;  %4484 = vmatprep.subr.bf16.mxu1 %v4953_v36  ;;  %v5023_v32 = vld [vmem:[%s6770_s1 + $0x7e0] ss:$12 sps:$4 sm:$0xff]  }
  0x9d   : > { %3369 = vmatprep.subr.bf16.mxu0 %v4952_v35  ;;  %v5030_v35 = vld [vmem:[%s6770_s1 + $0x7fc] ss:$12 sps:$4 sm:$0xff]   ;;  %v5031_v36 = vld [vmem:[%s6770_s1 + $0x440] ss:$12 sps:$4 sm:$0xff]  }
  0x9f   : > { %4485 = vmatpush3.bf16.msra.mxu1 %v4954_v38  ;;  %v5032_v38 = vld [vmem:[%s6770_s1 + $0x380] ss:$12 sps:$4 sm:$0xff]  }
  0xa0   : > { %3370 = vmatpush1.bf16.msra.mxu0 %v4950_v37  ;;  %4486 = vmatprep.subr.bf16.mxu1 %v4958_v40  ;;  %v5028_v37 = vld [vmem:[%s6770_s1 + $0x7f8] ss:$12 sps:$4 sm:$0xff]  }
  0xa1   : > { %3371 = vmatprep.subr.bf16.mxu0 %v4957_v39  ;;  %v5035_v39 = vld [vmem:[%s6770_s1 + $0x814] ss:$12 sps:$4 sm:$0xff]   ;;  %v5036_v40 = vld [vmem:[%s6770_s1 + $0x458] ss:$12 sps:$4 sm:$0xff]  }
  0xa3   : > { %4487 = vmatpush3.bf16.msra.mxu1 %v4959_v42  ;;  %v5037_v42 = vld [vmem:[%s6770_s1 + $0x398] ss:$12 sps:$4 sm:$0xff]  }
  0xa4   : > { %3372 = vmatpush1.bf16.msra.mxu0 %v4955_v41  ;;  %4494 = vmatprep.subr.bf16.mxu1 %v4963_v44  ;;  %v5033_v41 = vld [vmem:[%s6770_s1 + $0x810] ss:$12 sps:$4 sm:$0xff]  }
  0xa5   : > { %3373 = vmatprep.subr.bf16.mxu0 %v4962_v43  ;;  %v5040_v43 = vld [vmem:[%s6770_s1 + $0x82c] ss:$12 sps:$4 sm:$0xff]   ;;  %v5041_v44 = vld [vmem:[%s6770_s1 + $0x470] ss:$12 sps:$4 sm:$0xff]  }
  0xa6   : > { %3605 = vmatmul.mubr.bf16.vlgmr.msra.gmra.mrb[4].mxu1 %v5573_v4  ;;  %v4970_v4 = vld [vmem:[%s6770_s1 + $0x6f0] ss:$12 sps:$4 sm:$0xff]  }
  0xa7   : > { %4495 = vmatpush3.bf16.msra.mxu1 %v4964_v46  ;;  %3645 = vmatprep.mubr.bf16.mxu1 %v5662_v34  ;;  %v4978_v34 = vld [vmem:[%s6770_s1 + $0x290] ss:$12 sps:$4 sm:$0xff]  }
  0xa8   : > { %3374 = vmatpush1.bf16.msra.mxu0 %v4960_v45  ;;  %4496 = vmatprep.subr.bf16.mxu1 %v4968_v49  ;;  %v5038_v45 = vld [vmem:[%s6770_s1 + $0x828] ss:$12 sps:$4 sm:$0xff]   ;;  %v5042_v46 = vld [vmem:[%s6770_s1 + $0x3b0] ss:$12 sps:$4 sm:$0xff]  }
  0xa9   : > { %3375 = vmatprep.subr.bf16.mxu0 %v4967_v47  ;;  %v5045_v47 = vld [vmem:[%s6770_s1 + $0x844] ss:$12 sps:$4 sm:$0xff]   ;;  %v5046_v49 = vld [vmem:[%s6770_s1 + $0x548] ss:$12 sps:$4 sm:$0xff]  }
  0xab   : > { %4497 = vmatpush3.bf16.msra.mxu1 %v4969_v51  ;;  %v5047_v51 = vld [vmem:[%s6770_s1 + $0x488] ss:$12 sps:$4 sm:$0xff]  }
  0xac   : > { %3376 = vmatpush1.bf16.msra.mxu0 %v4965_v50  ;;  %4498 = vmatprep.subr.bf16.mxu1 %v4973_v53  ;;  %v5043_v50 = vld [vmem:[%s6770_s1 + $0x840] ss:$12 sps:$4 sm:$0xff]  }
  0xad   : > { %3377 = vmatprep.subr.bf16.mxu0 %v4972_v52  ;;  %v5050_v52 = vld [vmem:[%s6770_s1 + $0x85c] ss:$12 sps:$4 sm:$0xff]   ;;  %v5051_v53 = vld [vmem:[%s6770_s1 + $0x560] ss:$12 sps:$4 sm:$0xff]  }
  0xaf   : > { %4499 = vmatpush3.bf16.msra.mxu1 %v4974_v54  ;;  %v5048_v54 = vld [vmem:[%s6770_s1 + $0x858] ss:$12 sps:$4 sm:$0xff]  }
  0xb0   : > { %3378 = vmatpush1.bf16.msra.mxu0 %v4970_v4  ;;  %4500 = vmatprep.subr.bf16.mxu1 %v4978_v34  ;;  %v5320_v4 = vld [vmem:[%s5502_s13 + $0x10] ss:$72 sps:$4 sm:$0xff]   ;;  %v5055_v34 = vld [vmem:[%s6770_s1 + $0x874] ss:$12 sps:$4 sm:$0xff]  }
  0xb1   : > { %3379 = vmatprep.subr.bf16.mxu0 %v4977_v55  ;;  %v5052_v55 = vld [vmem:[%s6770_s1 + $0x4a0] ss:$12 sps:$4 sm:$0xff]  }
  0xb3   : > { %4501 = vmatpush3.bf16.msra.mxu1 %v4979_v57  ;;  %v5053_v57 = vld [vmem:[%s6770_s1 + $0x870] ss:$12 sps:$4 sm:$0xff]  }
  0xb4   : > { %3380 = vmatpush1.bf16.msra.mxu0 %v4975_v56  ;;  %4502 = vmatprep.subr.bf16.mxu1 %v4983_v59  ;;  %v5056_v56 = vld [vmem:[%s6770_s1 + $0x578] ss:$12 sps:$4 sm:$0xff]  }
  0xb5   : > { %3381 = vmatprep.subr.bf16.mxu0 %v4982_v58  ;;  %v5321_v58 = vld [vmem:[%s5502_s13 + $0x1c] ss:$72 sps:$4 sm:$0xff]  }
  0xb6   : > { %v5057_v59 = vld [vmem:[%s6770_s1 + $0x4b8] ss:$12 sps:$4 sm:$0xff]  }
  0xb7   : > { %4503 = vmatpush3.bf16.msra.mxu1 %v4984_v61  ;;  %v5061_v61 = vld [vmem:[%s6770_s1 + $0x590] ss:$12 sps:$4 sm:$0xff]  }
  0xb8   : > { %3382 = vmatpush1.bf16.msra.mxu0 %v4980_v60  ;;  %4504 = vmatprep.subr.bf16.mxu1 %v4988_v63  ;;  %v5060_v60 = vld [vmem:[%s6770_s1 + $0x88c] ss:$12 sps:$4 sm:$0xff]   ;;  %v5062_v63 = vld [vmem:[%s6770_s1 + $0x4d0] ss:$12 sps:$4 sm:$0xff]  }
  0xb9   : > { %3383 = vmatprep.subr.bf16.mxu0 %v4987_v62  ;;  %v5058_v62 = vld [vmem:[%s6770_s1 + $0x888] ss:$12 sps:$4 sm:$0xff]  }
  0xbb   : > { %4505 = vmatpush3.bf16.msra.mxu1 %v4989_v1  ;;  %v5066_v1 = vld [vmem:[%s6770_s1 + $0x5a8] ss:$12 sps:$4 sm:$0xff]  }
  0xbc   : > { %3384 = vmatpush1.bf16.msra.mxu0 %v4985_v0  ;;  %4506 = vmatprep.subr.bf16.mxu1 %v4993_v3  ;;  %v5065_v0 = vld [vmem:[%s6770_s1 + $0x8a4] ss:$12 sps:$4 sm:$0xff]   ;;  %v5067_v3 = vld [vmem:[%s6770_s1 + $0x4e8] ss:$12 sps:$4 sm:$0xff]  }
  0xbd   : > { %3385 = vmatprep.subr.bf16.mxu0 %v4992_v2  ;;  %v5063_v2 = vld [vmem:[%s6770_s1 + $0x8a0] ss:$12 sps:$4 sm:$0xff]  }
  0xbf   : > { %4507 = vmatpush3.bf16.msra.mxu1 %v4994_v6  ;;  %v5071_v6 = vld [vmem:[%s6770_s1 + $0x5c0] ss:$12 sps:$4 sm:$0xff]  }
  0xc0   : > { %3386 = vmatpush1.bf16.msra.mxu0 %v4990_v5  ;;  %4508 = vmatprep.subr.bf16.mxu1 %v4998_v8  ;;  %v5070_v5 = vld [vmem:[%s6770_s1 + $0x8bc] ss:$12 sps:$4 sm:$0xff]   ;;  %v5072_v8 = vld [vmem:[%s6770_s1 + $0x500] ss:$12 sps:$4 sm:$0xff]  }
  0xc1   : > { %3387 = vmatprep.subr.bf16.mxu0 %v4997_v7  ;;  %v5068_v7 = vld [vmem:[%s6770_s1 + $0x8b8] ss:$12 sps:$4 sm:$0xff]  }
  0xc3   : > { %4509 = vmatpush3.bf16.msra.mxu1 %v4999_v11  ;;  %v5076_v11 = vld [vmem:[%s6770_s1 + $0x5d8] ss:$12 sps:$4 sm:$0xff]  }
  0xc4   : > { %3388 = vmatpush1.bf16.msra.mxu0 %v4995_v10  ;;  %4516 = vmatprep.subr.bf16.mxu1 %v5006_v14  ;;  %v5075_v10 = vld [vmem:[%s6770_s1 + $0x8d4] ss:$12 sps:$4 sm:$0xff]   ;;  %v5077_v14 = vld [vmem:[%s6770_s1 + $0x518] ss:$12 sps:$4 sm:$0xff]  }
  0xc5   : > { %3400 = vmatprep.subr.bf16.mxu0 %v5005_v13  ;;  %v5073_v13 = vld [vmem:[%s6770_s1 + $0x8d0] ss:$12 sps:$4 sm:$0xff]  }
  0xc6   : > { %3646 = vmatmul.mubr.bf16.vlgmr.msra.gmra.mrb[8].mxu1 %v5772_v9  ;;  %v5016_v9 = vld [vmem:[%s6770_s1 + $0x3f8] ss:$12 sps:$4 sm:$0xff]  }
  0xc7   : > { %3390 = vmatmul.mubr.bf16.vlgmr.msra.gmra.mrb[0].mxu0 %v5973_v12  ;;  %4517 = vmatpush3.bf16.msra.mxu1 %v5007_v16  ;;  %v5081_v16 = vld [vmem:[%s6770_s1 + $0x5f0] ss:$12 sps:$4 sm:$0xff]  }
  0xc8   : > { %3401 = vmatpush1.bf16.msra.mxu0 %v5003_v15  ;;  %4518 = vmatprep.subr.bf16.mxu1 %v5011_v18  ;;  %v5080_v15 = vld [vmem:[%s6770_s1 + $0x8ec] ss:$12 sps:$4 sm:$0xff]   ;;  %v5082_v18 = vld [vmem:[%s6770_s1 + $0x530] ss:$12 sps:$4 sm:$0xff]  }
  0xc9   : > { %3402 = vmatprep.subr.bf16.mxu0 %v5010_v17  ;;  %3686 = vmatprep.mubr.bf16.mxu1 %v5319_v23  ;;  %v5078_v17 = vld [vmem:[%s6770_s1 + $0x8e8] ss:$12 sps:$4 sm:$0xff]  }
  0xca   : > { %3432 = vmatprep.mubr.bf16.mxu0 %v6015_v24  ;;  %v5093_v23 = vld [vmem:[%s6770_s1 + $0x91c] ss:$12 sps:$4 sm:$0xff]  }
  0xcb   : > { %4519 = vmatpush3.bf16.msra.mxu1 %v5012_v20  ;;  %v5089_v20 = vld [vmem:[%s6770_s1 + $0x6c8] ss:$12 sps:$4 sm:$0xff]  }
  0xcc   : > { %3403 = vmatpush1.bf16.msra.mxu0 %v5008_v19  ;;  %4520 = vmatprep.subr.bf16.mxu1 %v5016_v9  ;;  %v5088_v19 = vld [vmem:[%s6770_s1 + $0x904] ss:$12 sps:$4 sm:$0xff]   ;;  %v5086_v9 = vld [vmem:[%s6770_s1 + $0x900] ss:$12 sps:$4 sm:$0xff]  }
  0xcd   : > { %3404 = vmatprep.subr.bf16.mxu0 %v5015_v21  ;;  %v6183_v21 = vld [vmem:[%s5502_s13 + $0x28] ss:$72 sps:$4 sm:$0xff]  }
  0xcf   : > { %4521 = vmatpush3.bf16.msra.mxu1 %v5017_v48  ;;  %v5094_v48 = vld [vmem:[%s6770_s1 + $0x6e0] ss:$12 sps:$4 sm:$0xff]  }
  0xd0   : > { %3405 = vmatpush1.bf16.msra.mxu0 %v5013_v22  ;;  %4522 = vmatprep.subr.bf16.mxu1 %v5021_v26  ;;  %v5090_v22 = vld [vmem:[%s6770_s1 + $0x608] ss:$12 sps:$4 sm:$0xff]  }
  0xd1   : > { %3406 = vmatprep.subr.bf16.mxu0 %v5020_v25  ;;  %v5091_v25 = vld [vmem:[%s6770_s1 + $0x918] ss:$12 sps:$4 sm:$0xff]   ;;  %v6201_v26 = vld [vmem:[%s5502_s13 + $0x34] ss:$72 sps:$4 sm:$0xff]  }
  0xd3   : > { %4523 = vmatpush3.bf16.msra.mxu1 %v5022_v28  ;;  %v5095_v28 = vld [vmem:[%s6770_s1 + $0x620] ss:$12 sps:$4 sm:$0xff]  }
  0xd4   : > { %3407 = vmatpush1.bf16.msra.mxu0 %v5018_v27  ;;  %4524 = vmatprep.subr.bf16.mxu1 %v5026_v30  ;;  %v5322_v27 = vld [vmem:[%s5502_s13 + $0x18] ss:$72 sps:$4 sm:$0xff]  }
  0xd5   : > { %3408 = vmatprep.subr.bf16.mxu0 %v5025_v29  ;;  %v5098_v29 = vld [vmem:[%s6770_s1 + $0x934] ss:$12 sps:$4 sm:$0xff]   ;;  %v5099_v30 = vld [vmem:[%s6770_s1 + $0x6f8] ss:$12 sps:$4 sm:$0xff]  }
  0xd7   : > { %4525 = vmatpush3.bf16.msra.mxu1 %v5027_v33  ;;  %v5100_v33 = vld [vmem:[%s6770_s1 + $0x638] ss:$12 sps:$4 sm:$0xff]  }
  0xd8   : > { %3409 = vmatpush1.bf16.msra.mxu0 %v5023_v32  ;;  %4526 = vmatprep.subr.bf16.mxu1 %v5031_v36  ;;  %v5096_v32 = vld [vmem:[%s6770_s1 + $0x930] ss:$12 sps:$4 sm:$0xff]   ;;  %v5101_v36 = vld [vmem:[%s6770_s1 + $0x948] ss:$12 sps:$4 sm:$0xff]  }
  0xd9   : > { %3410 = vmatprep.subr.bf16.mxu0 %v5030_v35  ;;  %v5103_v35 = vld [vmem:[%s6770_s1 + $0x94c] ss:$12 sps:$4 sm:$0xff]  }
  0xdb   : > { %4527 = vmatpush3.bf16.msra.mxu1 %v5032_v38  ;;  %v5108_v38 = vld [vmem:[%s6770_s1 + $0x964] ss:$12 sps:$4 sm:$0xff]  }
  0xdc   : > { %3411 = vmatpush1.bf16.msra.mxu0 %v5028_v37  ;;  %4528 = vmatprep.subr.bf16.mxu1 %v5036_v40  ;;  %v5105_v37 = vld [vmem:[%s6770_s1 + $0x650] ss:$12 sps:$4 sm:$0xff]   ;;  %v5106_v40 = vld [vmem:[%s6770_s1 + $0x960] ss:$12 sps:$4 sm:$0xff]  }
  0xdd   : > { %3412 = vmatprep.subr.bf16.mxu0 %v5035_v39  ;;  %v5109_v39 = vld [vmem:[%s6770_s1 + $0x728] ss:$12 sps:$4 sm:$0xff]  }
  0xdf   : > { %4529 = vmatpush3.bf16.msra.mxu1 %v5037_v42  ;;  %v5113_v42 = vld [vmem:[%s6770_s1 + $0x97c] ss:$12 sps:$4 sm:$0xff]  }
  0xe0   : > { %3413 = vmatpush1.bf16.msra.mxu0 %v5033_v41  ;;  %4530 = vmatprep.subr.bf16.mxu1 %v5041_v44  ;;  %v5110_v41 = vld [vmem:[%s6770_s1 + $0x668] ss:$12 sps:$4 sm:$0xff]   ;;  %v5111_v44 = vld [vmem:[%s6770_s1 + $0x978] ss:$12 sps:$4 sm:$0xff]  }
  0xe1   : > { %3414 = vmatprep.subr.bf16.mxu0 %v5040_v43  ;;  %v5114_v43 = vld [vmem:[%s6770_s1 + $0x740] ss:$12 sps:$4 sm:$0xff]  }
  0xe3   : > { %4531 = vmatpush3.bf16.msra.mxu1 %v5042_v46  ;;  %v5118_v46 = vld [vmem:[%s6770_s1 + $0x994] ss:$12 sps:$4 sm:$0xff]  }
  0xe4   : > { %3415 = vmatpush1.bf16.msra.mxu0 %v5038_v45  ;;  %4538 = vmatprep.subr.bf16.mxu1 %v5046_v49  ;;  %v5115_v45 = vld [vmem:[%s6770_s1 + $0x680] ss:$12 sps:$4 sm:$0xff]   ;;  %v5116_v49 = vld [vmem:[%s6770_s1 + $0x990] ss:$12 sps:$4 sm:$0xff]  }
  0xe5   : > { %3416 = vmatprep.subr.bf16.mxu0 %v5045_v47  ;;  %v5119_v47 = vld [vmem:[%s6770_s1 + $0x758] ss:$12 sps:$4 sm:$0xff]  }
  0xe6   : > { %3687 = vmatmul.mubr.bf16.vlgmr.msra.gmra.mrb[12].mxu1 %v5320_v4  ;;  %v5125_v4 = vld [vmem:[%s6770_s1 + $0x6b0] ss:$12 sps:$4 sm:$0xff]  }
  0xe7   : > { %4539 = vmatpush3.bf16.msra.mxu1 %v5047_v51  ;;  %3727 = vmatprep.mubr.bf16.mxu1 %v5321_v58  ;;  %v5123_v51 = vld [vmem:[%s6770_s1 + $0x9ac] ss:$12 sps:$4 sm:$0xff]  }
  0xe8   : > { %3417 = vmatpush1.bf16.msra.mxu0 %v5043_v50  ;;  %4540 = vmatprep.subr.bf16.mxu1 %v5051_v53  ;;  %v5120_v50 = vld [vmem:[%s6770_s1 + $0x698] ss:$12 sps:$4 sm:$0xff]   ;;  %v5121_v53 = vld [vmem:[%s6770_s1 + $0x9a8] ss:$12 sps:$4 sm:$0xff]   ;;  %v5134_v58 = vld [vmem:[%s6770_s1 + $0x860] ss:$12 sps:$4 sm:$0xff]  }
  0xe9   : > { %3418 = vmatprep.subr.bf16.mxu0 %v5050_v52  ;;  %v5124_v52 = vld [vmem:[%s6770_s1 + $0x770] ss:$12 sps:$4 sm:$0xff]  }
  0xeb   : > { %4541 = vmatpush3.bf16.msra.mxu1 %v5052_v55  ;;  %v5129_v55 = vld [vmem:[%s6770_s1 + $0x848] ss:$12 sps:$4 sm:$0xff]  }
  0xec   : > { %3419 = vmatpush1.bf16.msra.mxu0 %v5048_v54  ;;  %4542 = vmatprep.subr.bf16.mxu1 %v5056_v56  ;;  %v5128_v54 = vld [vmem:[%s6770_s1 + $0x9c4] ss:$12 sps:$4 sm:$0xff]   ;;  %v5130_v56 = vld [vmem:[%s6770_s1 + $0x788] ss:$12 sps:$4 sm:$0xff]  }
  0xed   : > { %3420 = vmatprep.subr.bf16.mxu0 %v5055_v34  ;;  %v5126_v34 = vld [vmem:[%s6770_s1 + $0x9c0] ss:$12 sps:$4 sm:$0xff]  }
  0xef   : > { %4543 = vmatpush3.bf16.msra.mxu1 %v5057_v59  ;;  %v5131_v59 = vld [vmem:[%s6770_s1 + $0x9d8] ss:$12 sps:$4 sm:$0xff]  }
  0xf0   : > { %3421 = vmatpush1.bf16.msra.mxu0 %v5053_v57  ;;  %4544 = vmatprep.subr.bf16.mxu1 %v5061_v61  ;;  %v5133_v57 = vld [vmem:[%s6770_s1 + $0x9dc] ss:$12 sps:$4 sm:$0xff]   ;;  %v5138_v61 = vld [vmem:[%s6770_s1 + $0x9f4] ss:$12 sps:$4 sm:$0xff]  }
  0xf1   : > { %3422 = vmatprep.subr.bf16.mxu0 %v5060_v60  ;;  %v5135_v60 = vld [vmem:[%s6770_s1 + $0x7a0] ss:$12 sps:$4 sm:$0xff]  }
  0xf3   : > { %4545 = vmatpush3.bf16.msra.mxu1 %v5062_v63  ;;  %v5140_v63 = vld [vmem:[%s6770_s1 + $0x7b8] ss:$12 sps:$4 sm:$0xff]  }
  0xf4   : > { %3423 = vmatpush1.bf16.msra.mxu0 %v5058_v62  ;;  %4546 = vmatprep.subr.bf16.mxu1 %v5066_v1  ;;  %v5136_v62 = vld [vmem:[%s6770_s1 + $0x9f0] ss:$12 sps:$4 sm:$0xff]  }
  0xf5   : > { %3424 = vmatprep.subr.bf16.mxu0 %v5065_v0  ;;  %v5143_v0 = vld [vmem:[%s6770_s1 + $0xa0c] ss:$12 sps:$4 sm:$0xff]   ;;  %v5144_v1 = vld [vmem:[%s6770_s1 + $0x890] ss:$12 sps:$4 sm:$0xff]  }
  0xf7   : > { %4547 = vmatpush3.bf16.msra.mxu1 %v5067_v3  ;;  %v5148_v3 = vld [vmem:[%s6770_s1 + $0xa24] ss:$12 sps:$4 sm:$0xff]  }
  0xf8   : > { %3425 = vmatpush1.bf16.msra.mxu0 %v5063_v2  ;;  %4548 = vmatprep.subr.bf16.mxu1 %v5071_v6  ;;  %v5145_v2 = vld [vmem:[%s6770_s1 + $0x7d0] ss:$12 sps:$4 sm:$0xff]   ;;  %v5146_v6 = vld [vmem:[%s6770_s1 + $0xa20] ss:$12 sps:$4 sm:$0xff]  }
  0xf9   : > { %3426 = vmatprep.subr.bf16.mxu0 %v5070_v5  ;;  %v5149_v5 = vld [vmem:[%s6770_s1 + $0x8a8] ss:$12 sps:$4 sm:$0xff]  }
  0xfb   : > { %4549 = vmatpush3.bf16.msra.mxu1 %v5072_v8  ;;  %v5153_v8 = vld [vmem:[%s6770_s1 + $0xa3c] ss:$12 sps:$4 sm:$0xff]  }
  0xfc   : > { %3427 = vmatpush1.bf16.msra.mxu0 %v5068_v7  ;;  %4550 = vmatprep.subr.bf16.mxu1 %v5076_v11  ;;  %v5150_v7 = vld [vmem:[%s6770_s1 + $0x7e8] ss:$12 sps:$4 sm:$0xff]   ;;  %v5151_v11 = vld [vmem:[%s6770_s1 + $0xa38] ss:$12 sps:$4 sm:$0xff]  }
  0xfd   : > { %3428 = vmatprep.subr.bf16.mxu0 %v5075_v10  ;;  %v5154_v10 = vld [vmem:[%s6770_s1 + $0x8c0] ss:$12 sps:$4 sm:$0xff]  }
  0xff   : > { %4551 = vmatpush3.bf16.msra.mxu1 %v5077_v14  ;;  %v5158_v14 = vld [vmem:[%s6770_s1 + $0xa54] ss:$12 sps:$4 sm:$0xff]  }
 0x100   : > { %3429 = vmatpush1.bf16.msra.mxu0 %v5073_v13  ;;  %4552 = vmatprep.subr.bf16.mxu1 %v5081_v16  ;;  %v5155_v13 = vld [vmem:[%s6770_s1 + $0x800] ss:$12 sps:$4 sm:$0xff]   ;;  %v5156_v16 = vld [vmem:[%s6770_s1 + $0xa50] ss:$12 sps:$4 sm:$0xff]  }
 0x101   : > { %3430 = vmatprep.subr.bf16.mxu0 %v5080_v15  ;;  %v5159_v15 = vld [vmem:[%s6770_s1 + $0x8d8] ss:$12 sps:$4 sm:$0xff]  }
 0x103   : > { %4553 = vmatpush3.bf16.msra.mxu1 %v5082_v18  ;;  %v5163_v18 = vld [vmem:[%s6770_s1 + $0xa6c] ss:$12 sps:$4 sm:$0xff]  }
 0x104   : > { %3431 = vmatpush1.bf16.msra.mxu0 %v5078_v17  ;;  %4560 = vmatprep.subr.bf16.mxu1 %v5089_v20  ;;  %v5160_v17 = vld [vmem:[%s6770_s1 + $0x818] ss:$12 sps:$4 sm:$0xff]   ;;  %v5161_v20 = vld [vmem:[%s6770_s1 + $0xa68] ss:$12 sps:$4 sm:$0xff]  }
 0x105   : > { %3443 = vmatprep.subr.bf16.mxu0 %v5088_v19  ;;  %v5164_v19 = vld [vmem:[%s6770_s1 + $0x8f0] ss:$12 sps:$4 sm:$0xff]  }
 0x106   : > { %3728 = vmatmul.mubr.bf16.vlgmr.msra.gmra.mrb[16].mxu1 %v5322_v27  ;;  %v5173_v27 = vld [vmem:[%s6770_s1 + $0x908] ss:$12 sps:$4 sm:$0xff]  }
 0x107   : > { %3433 = vmatmul.mubr.bf16.vlgmr.msra.gmra.mrb[0].mxu0 %v6183_v21  ;;  %4561 = vmatpush3.bf16.msra.mxu1 %v5090_v22  ;;  %v5171_v22 = vld [vmem:[%s6770_s1 + $0xa84] ss:$12 sps:$4 sm:$0xff]  }
 0x108   : > { %3444 = vmatpush1.bf16.msra.mxu0 %v5086_v9  ;;  %4562 = vmatprep.subr.bf16.mxu1 %v5094_v48  ;;  %v5165_v9 = vld [vmem:[%s6770_s1 + $0x830] ss:$12 sps:$4 sm:$0xff]  }
 0x109   : > { %3445 = vmatprep.subr.bf16.mxu0 %v5093_v23  ;;  %3768 = vmatprep.mubr.bf16.mxu1 %v5841_v31  ;;  %v5104_v31 = vld [vmem:[%s6770_s1 + $0x710] ss:$12 sps:$4 sm:$0xff]   ;;  %v5172_v23 = vld [vmem:[%s6770_s1 + $0x9c8] ss:$12 sps:$4 sm:$0xff]  }
 0x10a   : > { %3475 = vmatprep.mubr.bf16.mxu0 %v6201_v26  ;;  %v6387_v48 = vld [vmem:[%s5502_s13 + $0x30] ss:$72 sps:$4 sm:$0xff]  }
 0x10b   : > { %4563 = vmatpush3.bf16.msra.mxu1 %v5095_v28  ;;  %v5176_v28 = vld [vmem:[%s6770_s1 + $0xa9c] ss:$12 sps:$4 sm:$0xff]  }
 0x10c   : > { %3446 = vmatpush1.bf16.msra.mxu0 %v5091_v25  ;;  %4564 = vmatprep.subr.bf16.mxu1 %v5099_v30  ;;  %v5169_v25 = vld [vmem:[%s6770_s1 + $0xa80] ss:$12 sps:$4 sm:$0xff]   ;;  %v5174_v30 = vld [vmem:[%s6770_s1 + $0xa98] ss:$12 sps:$4 sm:$0xff]  }
 0x10d   : > { %3447 = vmatprep.subr.bf16.mxu0 %v5098_v29  ;;  %v5177_v29 = vld [vmem:[%s6770_s1 + $0x9e0] ss:$12 sps:$4 sm:$0xff]  }
 0x10f   : > { %4565 = vmatpush3.bf16.msra.mxu1 %v5100_v33  ;;  %v5178_v33 = vld [vmem:[%s6770_s1 + $0x920] ss:$12 sps:$4 sm:$0xff]  }
 0x110   : > { %3448 = vmatpush1.bf16.msra.mxu0 %v5096_v32  ;;  %4566 = vmatprep.subr.bf16.mxu1 %v5104_v31  ;;  %v6405_v32 = vld [vmem:[%s5502_s13 + $0x3c] ss:$72 sps:$4 sm:$0xff]  }
 0x111   : > { %3449 = vmatprep.subr.bf16.mxu0 %v5103_v35  ;;  %v5181_v35 = vld [vmem:[%s6770_s1 + $0xab4] ss:$12 sps:$4 sm:$0xff]   ;;  %v5182_v31 = vld [vmem:[%s6770_s1 + $0x9f8] ss:$12 sps:$4 sm:$0xff]  }
 0x113   : > { %4567 = vmatpush3.bf16.msra.mxu1 %v5105_v37  ;;  %v5186_v37 = vld [vmem:[%s6770_s1 + $0xacc] ss:$12 sps:$4 sm:$0xff]  }
 0x114   : > { %3450 = vmatpush1.bf16.msra.mxu0 %v5101_v36  ;;  %4568 = vmatprep.subr.bf16.mxu1 %v5109_v39  ;;  %v5183_v36 = vld [vmem:[%s6770_s1 + $0x938] ss:$12 sps:$4 sm:$0xff]   ;;  %v5188_v39 = vld [vmem:[%s6770_s1 + $0x950] ss:$12 sps:$4 sm:$0xff]  }
 0x115   : > { %3451 = vmatprep.subr.bf16.mxu0 %v5108_v38  ;;  %v5184_v38 = vld [vmem:[%s6770_s1 + $0xac8] ss:$12 sps:$4 sm:$0xff]  }
 0x117   : > { %4569 = vmatpush3.bf16.msra.mxu1 %v5110_v41  ;;  %v5192_v41 = vld [vmem:[%s6770_s1 + $0xa28] ss:$12 sps:$4 sm:$0xff]  }
 0x118   : > { %3452 = vmatpush1.bf16.msra.mxu0 %v5106_v40  ;;  %4570 = vmatprep.subr.bf16.mxu1 %v5114_v43  ;;  %v5191_v40 = vld [vmem:[%s6770_s1 + $0xae4] ss:$12 sps:$4 sm:$0xff]   ;;  %v5193_v43 = vld [vmem:[%s6770_s1 + $0x968] ss:$12 sps:$4 sm:$0xff]  }
 0x119   : > { %3453 = vmatprep.subr.bf16.mxu0 %v5113_v42  ;;  %v5189_v42 = vld [vmem:[%s6770_s1 + $0xae0] ss:$12 sps:$4 sm:$0xff]  }
 0x11b   : > { %4571 = vmatpush3.bf16.msra.mxu1 %v5115_v45  ;;  %v5197_v45 = vld [vmem:[%s6770_s1 + $0xa40] ss:$12 sps:$4 sm:$0xff]  }
 0x11c   : > { %3454 = vmatpush1.bf16.msra.mxu0 %v5111_v44  ;;  %4572 = vmatprep.subr.bf16.mxu1 %v5119_v47  ;;  %v5196_v44 = vld [vmem:[%s6770_s1 + $0xafc] ss:$12 sps:$4 sm:$0xff]   ;;  %v5198_v47 = vld [vmem:[%s6770_s1 + $0x980] ss:$12 sps:$4 sm:$0xff]  }
 0x11d   : > { %3455 = vmatprep.subr.bf16.mxu0 %v5118_v46  ;;  %v5194_v46 = vld [vmem:[%s6770_s1 + $0xaf8] ss:$12 sps:$4 sm:$0xff]  }
 0x11f   : > { %4573 = vmatpush3.bf16.msra.mxu1 %v5120_v50  ;;  %v5202_v50 = vld [vmem:[%s6770_s1 + $0xa58] ss:$12 sps:$4 sm:$0xff]  }
 0x120   : > { %3456 = vmatpush1.bf16.msra.mxu0 %v5116_v49  ;;  %4574 = vmatprep.subr.bf16.mxu1 %v5124_v52  ;;  %v5201_v49 = vld [vmem:[%s6770_s1 + $0xb14] ss:$12 sps:$4 sm:$0xff]  }
 0x121   : > { %3457 = vmatprep.subr.bf16.mxu0 %v5123_v51 }
 0x123   : > { %4575 = vmatpush3.bf16.msra.mxu1 %v5125_v4 }
 0x124   : > { %3458 = vmatpush1.bf16.msra.mxu0 %v5121_v53  ;;  %4582 = vmatprep.subr.bf16.mxu1 %v5129_v55  ;;  %v5199_v53 = vld [vmem:[%s6770_s1 + $0xb10] ss:$12 sps:$4 sm:$0xff]  }
 0x125   : > { %3459 = vmatprep.subr.bf16.mxu0 %v5128_v54  ;;  %v5203_v54 = vld [vmem:[%s6770_s1 + $0x998] ss:$12 sps:$4 sm:$0xff]  }
 0x126   : > { %3769 = vmatmul.mubr.bf16.vlgmr.msra.gmra.mrb[20].mxu1 %v5973_v12  ;;  %v5139_v12 = vld [vmem:[%s6770_s1 + $0x878] ss:$12 sps:$4 sm:$0xff]  }
 0x127   : > { %4583 = vmatpush3.bf16.msra.mxu1 %v5130_v56  ;;  %3809 = vmatprep.mubr.bf16.mxu1 %v6015_v24  ;;  %v5141_v24 = vld [vmem:[%s6770_s1 + $0xa08] ss:$12 sps:$4 sm:$0xff]   ;;  %v5207_v56 = vld [vmem:[%s6770_s1 + $0xa70] ss:$12 sps:$4 sm:$0xff]  }
 0x128   : > { %3460 = vmatpush1.bf16.msra.mxu0 %v5126_v34  ;;  %4584 = vmatprep.subr.bf16.mxu1 %v5134_v58  ;;  %v5206_v34 = vld [vmem:[%s6770_s1 + $0xb2c] ss:$12 sps:$4 sm:$0xff]   ;;  %v5208_v58 = vld [vmem:[%s6770_s1 + $0x9b0] ss:$12 sps:$4 sm:$0xff]  }
 0x129   : > { %3461 = vmatprep.subr.bf16.mxu0 %v5133_v57  ;;  %v5204_v57 = vld [vmem:[%s6770_s1 + $0xb28] ss:$12 sps:$4 sm:$0xff]  }
 0x12b   : > { %4585 = vmatpush3.bf16.msra.mxu1 %v5135_v60  ;;  %v5212_v60 = vld [vmem:[%s6770_s1 + $0xb48] ss:$12 sps:$4 sm:$0xff]  }
 0x12c   : > { %3462 = vmatpush1.bf16.msra.mxu0 %v5131_v59  ;;  %4586 = vmatprep.subr.bf16.mxu1 %v5139_v12  ;;  %v5211_v59 = vld [vmem:[%s6770_s1 + $0xb44] ss:$12 sps:$4 sm:$0xff]   ;;  %v5213_v12 = vld [vmem:[%s6770_s1 + $0xa88] ss:$12 sps:$4 sm:$0xff]  }
 0x12d   : > { %3463 = vmatprep.subr.bf16.mxu0 %v5138_v61  ;;  %v5209_v61 = vld [vmem:[%s6770_s1 + $0xb40] ss:$12 sps:$4 sm:$0xff]  }
 0x12f   : > { %4587 = vmatpush3.bf16.msra.mxu1 %v5140_v63  ;;  %v5217_v63 = vld [vmem:[%s6770_s1 + $0xb60] ss:$12 sps:$4 sm:$0xff]  }
 0x130   : > { %3464 = vmatpush1.bf16.msra.mxu0 %v5136_v62  ;;  %4588 = vmatprep.subr.bf16.mxu1 %v5144_v1  ;;  %v5216_v62 = vld [vmem:[%s6770_s1 + $0xb5c] ss:$12 sps:$4 sm:$0xff]   ;;  %v5218_v1 = vld [vmem:[%s6770_s1 + $0xaa0] ss:$12 sps:$4 sm:$0xff]  }
 0x131   : > { %3465 = vmatprep.subr.bf16.mxu0 %v5143_v0  ;;  %v5214_v0 = vld [vmem:[%s6770_s1 + $0xb58] ss:$12 sps:$4 sm:$0xff]  }
 0x133   : > { %4589 = vmatpush3.bf16.msra.mxu1 %v5145_v2  ;;  %v5222_v2 = vld [vmem:[%s6770_s1 + $0xb78] ss:$12 sps:$4 sm:$0xff]  }
 0x134   : > { %3466 = vmatpush1.bf16.msra.mxu0 %v5141_v24  ;;  %4590 = vmatprep.subr.bf16.mxu1 %v5149_v5  ;;  %v5221_v24 = vld [vmem:[%s6770_s1 + $0xb74] ss:$12 sps:$4 sm:$0xff]   ;;  %v5223_v5 = vld [vmem:[%s6770_s1 + $0xab8] ss:$12 sps:$4 sm:$0xff]  }
 0x135   : > { %3467 = vmatprep.subr.bf16.mxu0 %v5148_v3  ;;  %v5219_v3 = vld [vmem:[%s6770_s1 + $0xb70] ss:$12 sps:$4 sm:$0xff]  }
 0x137   : > { %4591 = vmatpush3.bf16.msra.mxu1 %v5150_v7  ;;  %v5227_v7 = vld [vmem:[%s6770_s1 + $0xb90] ss:$12 sps:$4 sm:$0xff]  }
 0x138   : > { %3468 = vmatpush1.bf16.msra.mxu0 %v5146_v6  ;;  %4592 = vmatprep.subr.bf16.mxu1 %v5154_v10  ;;  %v5226_v6 = vld [vmem:[%s6770_s1 + $0xb8c] ss:$12 sps:$4 sm:$0xff]   ;;  %v5228_v10 = vld [vmem:[%s6770_s1 + $0xad0] ss:$12 sps:$4 sm:$0xff]  }
 0x139   : > { %3469 = vmatprep.subr.bf16.mxu0 %v5153_v8  ;;  %v5224_v8 = vld [vmem:[%s6770_s1 + $0xb88] ss:$12 sps:$4 sm:$0xff]  }
 0x13b   : > { %4593 = vmatpush3.bf16.msra.mxu1 %v5155_v13  ;;  %v5232_v13 = vld [vmem:[%s6770_s1 + $0xba8] ss:$12 sps:$4 sm:$0xff]  }
 0x13c   : > { %3470 = vmatpush1.bf16.msra.mxu0 %v5151_v11  ;;  %4594 = vmatprep.subr.bf16.mxu1 %v5159_v15  ;;  %v5231_v11 = vld [vmem:[%s6770_s1 + $0xba4] ss:$12 sps:$4 sm:$0xff]   ;;  %v5233_v15 = vld [vmem:[%s6770_s1 + $0xae8] ss:$12 sps:$4 sm:$0xff]  }
 0x13d   : > { %3471 = vmatprep.subr.bf16.mxu0 %v5158_v14  ;;  %v5229_v14 = vld [vmem:[%s6770_s1 + $0xba0] ss:$12 sps:$4 sm:$0xff]  }
 0x13f   : > { %4595 = vmatpush3.bf16.msra.mxu1 %v5160_v17  ;;  %v5237_v17 = vld [vmem:[%s6770_s1 + $0xbc0] ss:$12 sps:$4 sm:$0xff]  }
 0x140   : > { %3472 = vmatpush1.bf16.msra.mxu0 %v5156_v16  ;;  %4596 = vmatprep.subr.bf16.mxu1 %v5164_v19  ;;  %v5236_v16 = vld [vmem:[%s6770_s1 + $0xbbc] ss:$12 sps:$4 sm:$0xff]   ;;  %v5238_v19 = vld [vmem:[%s6770_s1 + $0xb00] ss:$12 sps:$4 sm:$0xff]  }
 0x141   : > { %3473 = vmatprep.subr.bf16.mxu0 %v5163_v18  ;;  %v5234_v18 = vld [vmem:[%s6770_s1 + $0xbb8] ss:$12 sps:$4 sm:$0xff]  }
 0x143   : > { %4597 = vmatpush3.bf16.msra.mxu1 %v5165_v9  ;;  %v5242_v9 = vld [vmem:[%s6770_s1 + $0xbd8] ss:$12 sps:$4 sm:$0xff]  }
 0x144   : > { %3474 = vmatpush1.bf16.msra.mxu0 %v5161_v20  ;;  %4604 = vmatprep.subr.bf16.mxu1 %v5172_v23  ;;  %v5241_v20 = vld [vmem:[%s6770_s1 + $0xbd4] ss:$12 sps:$4 sm:$0xff]  }
 0x145   : > { %3486 = vmatprep.subr.bf16.mxu0 %v5171_v22 }
 0x146   : > { %3810 = vmatmul.mubr.bf16.vlgmr.msra.gmra.mrb[24].mxu1 %v6183_v21  ;;  %v5179_v21 = vld [vmem:[%s6770_s1 + $0xab0] ss:$12 sps:$4 sm:$0xff]  }
 0x147   : > { %3476 = vmatmul.mubr.bf16.vlgmr.msra.gmra.mrb[0].mxu0 %v6387_v48  ;;  %4605 = vmatpush3.bf16.msra.mxu1 %v5173_v27 }
 0x148   : > { %3487 = vmatpush1.bf16.msra.mxu0 %v5169_v25  ;;  %4606 = vmatprep.subr.bf16.mxu1 %v5177_v29  ;;  %v5243_v25 = vld [vmem:[%s6770_s1 + $0xb18] ss:$12 sps:$4 sm:$0xff]  }
 0x149   : > { %3488 = vmatprep.subr.bf16.mxu0 %v5176_v28  ;;  %3850 = vmatprep.mubr.bf16.mxu1 %v6201_v26  ;;  %v5187_v26 = vld [vmem:[%s6770_s1 + $0xa10] ss:$12 sps:$4 sm:$0xff]   ;;  %v5246_v29 = vld [vmem:[%s6770_s1 + $0xbec] ss:$12 sps:$4 sm:$0xff]  }
 0x14a   : > { %3518 = vmatprep.mubr.bf16.mxu0 %v6405_v32 }
 0x14b   : > { %4607 = vmatpush3.bf16.msra.mxu1 %v5178_v33 }
 0x14c   : > { %3489 = vmatpush1.bf16.msra.mxu0 %v5174_v30  ;;  %4608 = vmatprep.subr.bf16.mxu1 %v5182_v31  ;;  %v5247_v30 = vld [vmem:[%s6770_s1 + $0xbf0] ss:$12 sps:$4 sm:$0xff]  }
 0x14d   : > { %3490 = vmatprep.subr.bf16.mxu0 %v5181_v35  ;;  %v5244_v35 = vld [vmem:[%s6770_s1 + $0xbe8] ss:$12 sps:$4 sm:$0xff]   ;;  %v5248_v31 = vld [vmem:[%s6770_s1 + $0xb30] ss:$12 sps:$4 sm:$0xff]  }
 0x14f   : > { %4609 = vmatpush3.bf16.msra.mxu1 %v5183_v36  ;;  %v5255_v36 = vld [vmem:[%s6770_s1 + $0xcc8] ss:$12 sps:$4 sm:$0xff]  }
 0x150   : > { %3491 = vmatpush1.bf16.msra.mxu0 %v5179_v21  ;;  %4610 = vmatprep.subr.bf16.mxu1 %v5187_v26  ;;  %v5254_v21 = vld [vmem:[%s6770_s1 + $0xc04] ss:$12 sps:$4 sm:$0xff]   ;;  %v5252_v26 = vld [vmem:[%s6770_s1 + $0xc00] ss:$12 sps:$4 sm:$0xff]  }
 0x151   : > { %3492 = vmatprep.subr.bf16.mxu0 %v5186_v37  ;;  %v5249_v37 = vld [vmem:[%s5502_s13 + $0x38] ss:$72 sps:$4 sm:$0xff]  }
 0x153   : > { %4611 = vmatpush3.bf16.msra.mxu1 %v5188_v39  ;;  %v5259_v39 = vld [vmem:[%s6770_s1 + $0xc1c] ss:$12 sps:$4 sm:$0xff]  }
 0x154   : > { %3493 = vmatpush1.bf16.msra.mxu0 %v5184_v38  ;;  %4612 = vmatprep.subr.bf16.mxu1 %v5192_v41  ;;  %v5256_v38 = vld [vmem:[%s6770_s1 + $0xc08] ss:$12 sps:$4 sm:$0xff]   ;;  %v5294_v41 = vld [vmem:[%s5502_s13 + $0x44] ss:$72 sps:$4 sm:$0xff]  }
 0x155   : > { %3494 = vmatprep.subr.bf16.mxu0 %v5191_v40  ;;  %v5260_v40 = vld [vmem:[%s6770_s1 + $0xce0] ss:$12 sps:$4 sm:$0xff]  }
 0x157   : > { %4613 = vmatpush3.bf16.msra.mxu1 %v5193_v43  ;;  %v5261_v43 = vld [vmem:[%s6770_s1 + $0xc20] ss:$12 sps:$4 sm:$0xff]  }
 0x158   : > { %3495 = vmatpush1.bf16.msra.mxu0 %v5189_v42  ;;  %4614 = vmatprep.subr.bf16.mxu1 %v5197_v45  ;;  %v5257_v42 = vld [vmem:[%s6770_s1 + $0xc18] ss:$12 sps:$4 sm:$0xff]  }
 0x159   : > { %3496 = vmatprep.subr.bf16.mxu0 %v5196_v44  ;;  %v6468_v51 = vpop.f32.mrb[0].mxu1  ;;  %v5264_v44 = vld [vmem:[%s6770_s1 + $0xc34] ss:$12 sps:$4 sm:$0xff]   ;;  %v5265_v45 = vld [vmem:[%s6770_s1 + $0xcf8] ss:$12 sps:$4 sm:$0xff]  }
 0x15a   : > { %v6470_v52 = vpop.f32.mrb[1].mxu1 }
 0x15b   : > { %v6475_v4 = vpop.f32.mrb[2].mxu1  ;;  %4615 = vmatpush3.bf16.msra.mxu1 %v5198_v47  ;;  %v5262_v47 = vld [vmem:[%s6770_s1 + $0xc30] ss:$12 sps:$4 sm:$0xff]  }
 0x15c   : > { %3497 = vmatpush1.bf16.msra.mxu0 %v5194_v46  ;;  %v6480_v55 = vpop.f32.mrb[3].mxu1  ;;  %4616 = vmatprep.subr.bf16.mxu1 %v5202_v50  ;;  %v776_v46 = vlaneseq  ;;  %v5269_v50 = vld [vmem:[%s6770_s1 + $0xc4c] ss:$12 sps:$4 sm:$0xff]  }
 0x15d   : > { %3498 = vmatprep.subr.bf16.mxu0 %v5201_v49  ;;  %v5266_v49 = vld [vmem:[%s6770_s1 + $0xc38] ss:$12 sps:$4 sm:$0xff]  }
 0x15f   : > { %4617 = vmatpush3.bf16.msra.mxu1 %v5203_v54  ;;  %v6640_v54 = vshrl.u32 %v776_v46, 7 }
 0x160   : > { %3499 = vmatpush1.bf16.msra.mxu0 %v5199_v53  ;;  %4618 = vmatprep.subr.bf16.mxu1 %v5207_v56  ;;  %v5270_v53 = vld [vmem:[%s6770_s1 + $0xd10] ss:$12 sps:$4 sm:$0xff]  }
 0x161   : > { %3500 = vmatprep.subr.bf16.mxu0 %v5206_v34  ;;  %v5267_v34 = vld [vmem:[%s6770_s1 + $0xc48] ss:$12 sps:$4 sm:$0xff]   ;;  %v5271_v56 = vld [vmem:[%s6770_s1 + $0xc50] ss:$12 sps:$4 sm:$0xff]  }
 0x163   : > { %4619 = vmatpush3.bf16.msra.mxu1 %v5208_v58  ;;  %v5275_v58 = vld [vmem:[%s6770_s1 + $0xd28] ss:$12 sps:$4 sm:$0xff]  }
 0x164   : > { %3501 = vmatpush1.bf16.msra.mxu0 %v5204_v57  ;;  %4626 = vmatprep.subr.bf16.mxu1 %v5212_v60  ;;  %v5274_v57 = vld [vmem:[%s6770_s1 + $0xc64] ss:$12 sps:$4 sm:$0xff]   ;;  %v5272_v60 = vld [vmem:[%s6770_s1 + $0xc60] ss:$12 sps:$4 sm:$0xff]  }
 0x165   : > { %3502 = vmatprep.subr.bf16.mxu0 %v5211_v59  ;;  %v786_v59 = vsub.s32 2, %v6640_v54 }
 0x166   : > { %3851 = vmatmul.mubr.bf16.vlgmr.msra.gmra.mrb[28].mxu1 %v6387_v48  ;;  %v5239_v48 = vld [vmem:[%s6770_s1 + $0xbd0] ss:$12 sps:$4 sm:$0xff]  }
 0x167   : > { %4627 = vmatpush3.bf16.msra.mxu1 %v5213_v12  ;;  %3891 = vmatprep.mubr.bf16.mxu1 %v6405_v32  ;;  %v6664_v12 = vld [vmem:[%s6771_s2] sm:$0x7] }
 0x168   : > { %3503 = vmatpush1.bf16.msra.mxu0 %v5209_v61  ;;  %4628 = vmatprep.subr.bf16.mxu1 %v5217_v63  ;;  %v5276_v61 = vld [vmem:[%s6770_s1 + $0xc68] ss:$12 sps:$4 sm:$0xff]   ;;  %v5280_v63 = vld [vmem:[%s6770_s1 + $0xd40] ss:$12 sps:$4 sm:$0xff]  }
 0x169   : > { %3504 = vmatprep.subr.bf16.mxu0 %v5216_v62  ;;  %v5279_v62 = vld [vmem:[%s6770_s1 + $0xc7c] ss:$12 sps:$4 sm:$0xff]  }
 0x16b   : > { %4629 = vmatpush3.bf16.msra.mxu1 %v5218_v1  ;;  %v5277_v1 = vld [vmem:[%s6770_s1 + $0xc78] ss:$12 sps:$4 sm:$0xff]  }
 0x16c   : > { %3505 = vmatpush1.bf16.msra.mxu0 %v5214_v0  ;;  %4630 = vmatprep.subr.bf16.mxu1 %v5222_v2  ;;  %v787_v0 = vrot.slane %v6664_v12, %v786_v59  ;;  %v5284_v2 = vld [vmem:[%s6770_s1 + $0xc94] ss:$12 sps:$4 sm:$0xff]  }
 0x16d   : > { %3506 = vmatprep.subr.bf16.mxu0 %v5221_v24  ;;  %v5281_v24 = vld [vmem:[%s6770_s1 + $0xc80] ss:$12 sps:$4 sm:$0xff]  }
 0x16f   : > { %4631 = vmatpush3.bf16.msra.mxu1 %v5223_v5 }
 0x170   : > { %3507 = vmatpush1.bf16.msra.mxu0 %v5219_v3  ;;  %4632 = vmatprep.subr.bf16.mxu1 %v5227_v7  ;;  %v5285_v3 = vld [vmem:[%s6770_s1 + $0xd58] ss:$12 sps:$4 sm:$0xff]  }
 0x171   : > { %3508 = vmatprep.subr.bf16.mxu0 %v5226_v6 }
 0x173   : > { %4633 = vmatpush3.bf16.msra.mxu1 %v5228_v10 }
 0x174   : > { %3509 = vmatpush1.bf16.msra.mxu0 %v5224_v8  ;;  %4634 = vmatprep.subr.bf16.mxu1 %v5232_v13  ;;  %v5286_v13 = vld [vmem:[%s6770_s1 + $0xc98] ss:$12 sps:$4 sm:$0xff]  }
 0x175   : > { %3510 = vmatprep.subr.bf16.mxu0 %v5231_v11  ;;  %v5282_v11 = vld [vmem:[%s6770_s1 + $0xc90] ss:$12 sps:$4 sm:$0xff]  }
 0x177   : > { %4635 = vmatpush3.bf16.msra.mxu1 %v5233_v15  ;;  %v5289_v15 = vld [vmem:[%s6770_s1 + $0xcac] ss:$12 sps:$4 sm:$0xff]  }
 0x178   : > { %3511 = vmatpush1.bf16.msra.mxu0 %v5229_v14  ;;  %4636 = vmatprep.subr.bf16.mxu1 %v5237_v17 }
 0x179   : > { %3512 = vmatprep.subr.bf16.mxu0 %v5236_v16  ;;  %v4488_v22 = vpop.f32.mrb[4].mxu1  ;;  %v5290_v16 = vld [vmem:[%s6770_s1 + $0xd70] ss:$12 sps:$4 sm:$0xff]  }
 0x17a   : > { %v4489_v23 = vpop.f32.mrb[5].mxu1 }
 0x17b   : > { %4637 = vmatpush3.bf16.msra.mxu1 %v5238_v19  ;;  %v6580_v27 = vadd.f32 %v4489_v23, %v4488_v22  ;;  %v4491_v28 = vpop.f32.mrb[6].mxu1  ;;  %v5291_v22 = vld [vmem:[%s6770_s1 + $0xcb0] ss:$12 sps:$4 sm:$0xff]  }
 0x17c   : > { %3513 = vmatpush1.bf16.msra.mxu0 %v5234_v18  ;;  %4638 = vmatprep.subr.bf16.mxu1 %v5242_v9  ;;  %v4492_v32 = vpop.f32.mrb[7].mxu1  ;;  %v5287_v9 = vld [vmem:[%s6770_s1 + $0xca8] ss:$12 sps:$4 sm:$0xff]   ;;  %v5297_v23 = vld [vmem:[%s6770_s1 + $0xcc4] ss:$12 sps:$4 sm:$0xff]  }
 0x17d   : > { %3514 = vmatprep.subr.bf16.mxu0 %v5241_v20  ;;  %v6588_v33 = vadd.f32 %v4492_v32, %v4491_v28  ;;  %v3607_v5 = vadd.f32 %v6580_v27, %v787_v0  ;;  %v5300_v27 = vld [vmem:[%s6770_s1 + $0xcdc] ss:$12 sps:$4 sm:$0xff]   ;;  %v5298_v28 = vld [vmem:[%s6770_s1 + $0xcd8] ss:$12 sps:$4 sm:$0xff]  }
 0x17e   : > { %v5306_v32 = vld [vmem:[%s6770_s1 + $0xd0c] ss:$12 sps:$4 sm:$0xff]  }
 0x17f   : > { %4639 = vmatpush3.bf16.msra.mxu1 %v5243_v25  ;;  %v3610_v17 = vadd.f32 %v6588_v33, %v787_v0  ;;  %v5295_v25 = vld [vmem:[%s6770_s1 + $0xcc0] ss:$12 sps:$4 sm:$0xff]   ;;  %v5304_v33 = vld [vmem:[%s6770_s1 + $0xd08] ss:$12 sps:$4 sm:$0xff]  }
 0x180   : > { %3515 = vmatpush1.bf16.msra.mxu0 %v5239_v48  ;;  %4640 = vmatprep.subr.bf16.mxu1 %v5247_v30  ;;  %v5292_v48 = vld [vmem:[%s5502_s13 + $0x40] ss:$72 sps:$4 sm:$0xff]   ;;  %v5301_v30 = vld [vmem:[%s6770_s1 + $0xcf0] ss:$12 sps:$4 sm:$0xff]  }
 0x181   : > { %3516 = vmatprep.subr.bf16.mxu0 %v5246_v29  ;;  %v5303_v29 = vld [vmem:[%s6770_s1 + $0xcf4] ss:$12 sps:$4 sm:$0xff]  }
 0x183   : > { %4641 = vmatpush3.bf16.msra.mxu1 %v5248_v31  ;;  %v5307_v31 = vld [vmem:[%s6770_s1 + $0xd20] ss:$12 sps:$4 sm:$0xff]  }
 0x184   : > { %3517 = vmatpush1.bf16.msra.mxu0 %v5244_v35  ;;  %4648 = vmatprep.subr.bf16.mxu1 %v5255_v36  ;;  %v5309_v35 = vld [vmem:[%s6770_s1 + $0xd24] ss:$12 sps:$4 sm:$0xff]  }
 0x185   : > { %3529 = vmatprep.subr.bf16.mxu0 %v5254_v21  ;;  %v5312_v21 = vld [vmem:[%s6770_s1 + $0xd3c] ss:$12 sps:$4 sm:$0xff]   ;;  %v5310_v36 = vld [vmem:[%s6770_s1 + $0xd38] ss:$12 sps:$4 sm:$0xff]  }
 0x186   : > { %3892 = vmatmul.mubr.bf16.vlgmr.msra.gmra.mrb[32].mxu1 %v5249_v37 }
 0x187   : > { %3519 = vmatmul.mubr.bf16.vlgmr.msra.gmra.mrb[0].mxu0 %v5249_v37  ;;  %4649 = vmatpush3.bf16.msra.mxu1 %v5256_v38  ;;  %v5315_v37 = vld [vmem:[%s6770_s1 + $0xd54] ss:$12 sps:$4 sm:$0xff]  }
 0x188   : > { %3530 = vmatpush1.bf16.msra.mxu0 %v5252_v26  ;;  %4650 = vmatprep.subr.bf16.mxu1 %v5260_v40 }
 0x189   : > { %3531 = vmatprep.subr.bf16.mxu0 %v5259_v39  ;;  %3932 = vmatprep.mubr.bf16.mxu1 %v5294_v41 }
 0x18a   : > { %3561 = vmatprep.mubr.bf16.mxu0 %v5294_v41  ;;  %v5313_v41 = vld [vmem:[%s6770_s1 + $0xd50] ss:$12 sps:$4 sm:$0xff]  }
 0x18b   : > { %4651 = vmatpush3.bf16.msra.mxu1 %v5261_v43  ;;  %v5318_v43 = vld [vmem:[%s6770_s1 + $0xd6c] ss:$12 sps:$4 sm:$0xff]  }
 0x18c   : > { %3532 = vmatpush1.bf16.msra.mxu0 %v5257_v42  ;;  %4652 = vmatprep.subr.bf16.mxu1 %v5265_v45 }
 0x18d   : > { %3533 = vmatprep.subr.bf16.mxu0 %v5264_v44 }
 0x18f   : > { %4653 = vmatpush3.bf16.msra.mxu1 %v5266_v49 }
 0x190   : > { %3534 = vmatpush1.bf16.msra.mxu0 %v5262_v47  ;;  %4654 = vmatprep.subr.bf16.mxu1 %v5270_v53  ;;  %v5316_v47 = vld [vmem:[%s6770_s1 + $0xd68] ss:$12 sps:$4 sm:$0xff]  }
 0x191   : > { %3535 = vmatprep.subr.bf16.mxu0 %v5269_v50 }
 0x193   : > { %4655 = vmatpush3.bf16.msra.mxu1 %v5271_v56 }
 0x194   : > { %3536 = vmatpush1.bf16.msra.mxu0 %v5267_v34  ;;  %4656 = vmatprep.subr.bf16.mxu1 %v5275_v58 }
 0x195   : > { %3537 = vmatprep.subr.bf16.mxu0 %v5274_v57 }
 0x197   : > { %4657 = vmatpush3.bf16.msra.mxu1 %v5276_v61 }
 0x198   : > { %3538 = vmatpush1.bf16.msra.mxu0 %v5272_v60  ;;  %4658 = vmatprep.subr.bf16.mxu1 %v5280_v63 }
 0x199   : > { %3539 = vmatprep.subr.bf16.mxu0 %v5279_v62  ;;  %v4510_v6 = vpop.f32.mrb[8].mxu1 }
 0x19a   : > { %v4511_v7 = vpop.f32.mrb[9].mxu1 }
 0x19b   : > { %v4512_v8 = vadd.f32 %v4511_v7, %v4510_v6  ;;  %v4513_v10 = vpop.f32.mrb[10].mxu1  ;;  %4659 = vmatpush3.bf16.msra.mxu1 %v5281_v24 }
 0x19c   : > { %3540 = vmatpush1.bf16.msra.mxu0 %v5277_v1  ;;  %v4514_v14 = vpop.f32.mrb[11].mxu1  ;;  %4660 = vmatprep.subr.bf16.mxu1 %v5285_v3 }
 0x19d   : > { %3541 = vmatprep.subr.bf16.mxu0 %v5284_v2  ;;  %v3648_v18 = vadd.f32 %v4512_v8, %v3607_v5  ;;  %v4515_v19 = vadd.f32 %v4514_v14, %v4513_v10 }
 0x19f   : > { %v3651_v20 = vadd.f32 %v4515_v19, %v3610_v17  ;;  %4661 = vmatpush3.bf16.msra.mxu1 %v5286_v13 }
 0x1a0   : > { %3542 = vmatpush1.bf16.msra.mxu0 %v5282_v11  ;;  %4662 = vmatprep.subr.bf16.mxu1 %v5290_v16 }
 0x1a1   : > { %3543 = vmatprep.subr.bf16.mxu0 %v5289_v15 }
 0x1a3   : > { %4663 = vmatpush3.bf16.msra.mxu1 %v5291_v22 }
 0x1a4   : > { %3544 = vmatpush1.bf16.msra.mxu0 %v5287_v9 }
 0x1a5   : > { %3545 = vmatprep.subr.bf16.mxu0 %v5297_v23 }
 0x1a6   : > { %3933 = vmatmul.mubr.bf16.vlgmr.msra.gmra.mrb[36].mxu1 %v5292_v48 }
 0x1a8   : > { %3546 = vmatpush1.bf16.msra.mxu0 %v5295_v25 }
 0x1a9   : > { %3547 = vmatprep.subr.bf16.mxu0 %v5300_v27 }
 0x1ac   : > { %3548 = vmatpush1.bf16.msra.mxu0 %v5298_v28 }
 0x1ad   : > { %3549 = vmatprep.subr.bf16.mxu0 %v5303_v29 }
 0x1b0   : > { %3550 = vmatpush1.bf16.msra.mxu0 %v5301_v30 }
 0x1b1   : > { %3551 = vmatprep.subr.bf16.mxu0 %v5306_v32 }
 0x1b4   : > { %3552 = vmatpush1.bf16.msra.mxu0 %v5304_v33 }
 0x1b5   : > { %3553 = vmatprep.subr.bf16.mxu0 %v5309_v35 }
 0x1b8   : > { %3554 = vmatpush1.bf16.msra.mxu0 %v5307_v31 }
 0x1b9   : > { %3555 = vmatprep.subr.bf16.mxu0 %v5312_v21  ;;  %v4532_v26 = vpop.f32.mrb[12].mxu1 }
 0x1ba   : > { %v4533_v38 = vpop.f32.mrb[13].mxu1 }
 0x1bb   : > { %v4534_v39 = vadd.f32 %v4533_v38, %v4532_v26  ;;  %v4535_v40 = vpop.f32.mrb[14].mxu1 }
 0x1bc   : > { %3556 = vmatpush1.bf16.msra.mxu0 %v5310_v36  ;;  %v4536_v42 = vpop.f32.mrb[15].mxu1 }
 0x1bd   : > { %3557 = vmatprep.subr.bf16.mxu0 %v5315_v37  ;;  %v3689_v44 = vadd.f32 %v4534_v39, %v3648_v18  ;;  %v4537_v45 = vadd.f32 %v4536_v42, %v4535_v40  ;;  %v778_v40 = vsub.s32 0, %v6640_v54 }
 0x1bf   : > { %v3692_v46 = vadd.f32 %v4537_v45, %v3651_v20  ;;  %v779_v42 = vrot.slane %v6664_v12, %v778_v40 }
 0x1c0   : > { %3558 = vmatpush1.bf16.msra.mxu0 %v5313_v41  ;;  %v782_v41 = vsub.s32 1, %v6640_v54 }
 0x1c1   : > { %3559 = vmatprep.subr.bf16.mxu0 %v5318_v43 }
 0x1c2   : > { %v783_v43 = vrot.slane %v6664_v12, %v782_v41 }
 0x1c4   : > { %3560 = vmatpush1.bf16.msra.mxu0 %v5316_v47  ;;  %v4672_v45 = vadd.f32 %v6470_v52, %v783_v43  ;;  %v4674_v47 = vadd.f32 %v6475_v4, %v779_v42 }
 0x1c7   : > { %3562 = vmatmul.mubr.bf16.vlgmr.msra.gmra.mrb[0].mxu0 %v5292_v48 }
 0x1d9   : > { %v4554_v49 = vpop.f32.mrb[16].mxu1 }
 0x1da   : > { %v4555_v50 = vpop.f32.mrb[17].mxu1 }
 0x1db   : > { %v4556_v53 = vadd.f32 %v4555_v50, %v4554_v49  ;;  %v4557_v34 = vpop.f32.mrb[18].mxu1 }
 0x1dc   : > { %v4558_v56 = vpop.f32.mrb[19].mxu1 }
 0x1dd   : > { %v3730_v57 = vadd.f32 %v4556_v53, %v3689_v44  ;;  %v4559_v58 = vadd.f32 %v4558_v56, %v4557_v34  ;;  %v4670_v44 = vadd.f32 %v6468_v51, %v779_v42  ;;  %v4676_v53 = vadd.f32 %v6480_v55, %v783_v43 }
 0x1df   : > { %v3733_v59 = vadd.f32 %v4559_v58, %v3692_v46 }
 0x1f9   : > { %v4576_v60 = vpop.f32.mrb[20].mxu1 }
 0x1fa   : > { %v4577_v61 = vpop.f32.mrb[21].mxu1 }
 0x1fb   : > { %v4578_v62 = vadd.f32 %v4577_v61, %v4576_v60  ;;  %v4579_v63 = vpop.f32.mrb[22].mxu1 }
 0x1fc   : > { %v4580_v0 = vpop.f32.mrb[23].mxu1 }
 0x1fd   : > { %v3771_v1 = vadd.f32 %v4578_v62, %v3730_v57  ;;  %v4581_v24 = vadd.f32 %v4580_v0, %v4579_v63 }
 0x1ff   : > { %v3774_v2 = vadd.f32 %v4581_v24, %v3733_v59 }
 0x219   : > { %v4598_v3 = vpop.f32.mrb[24].mxu1 }
 0x21a   : > { %v4599_v5 = vpop.f32.mrb[25].mxu1 }
 0x21b   : > { %v4600_v6 = vadd.f32 %v4599_v5, %v4598_v3  ;;  %v4601_v7 = vpop.f32.mrb[26].mxu1 }
 0x21c   : > { %v4602_v8 = vpop.f32.mrb[27].mxu1 }
 0x21d   : > { %v3812_v10 = vadd.f32 %v4600_v6, %v3771_v1  ;;  %v4603_v11 = vadd.f32 %v4602_v8, %v4601_v7 }
 0x21f   : > { %v3815_v13 = vadd.f32 %v4603_v11, %v3774_v2 }
 0x239   : > { %v4620_v14 = vpop.f32.mrb[28].mxu1 }
 0x23a   : > { %v4621_v15 = vpop.f32.mrb[29].mxu1 }
 0x23b   : > { %v4622_v16 = vadd.f32 %v4621_v15, %v4620_v14  ;;  %v4623_v17 = vpop.f32.mrb[30].mxu1 }
 0x23c   : > { %v4624_v18 = vpop.f32.mrb[31].mxu1 }
 0x23d   : > { %v3853_v19 = vadd.f32 %v4622_v16, %v3812_v10  ;;  %v4625_v20 = vadd.f32 %v4624_v18, %v4623_v17 }
 0x23f   : > { %v3856_v9 = vadd.f32 %v4625_v20, %v3815_v13 }
 0x259   : > { %v4642_v22 = vpop.f32.mrb[32].mxu1 }
 0x25a   : > { %v4643_v23 = vpop.f32.mrb[33].mxu1 }
 0x25b   : > { %v4644_v48 = vadd.f32 %v4643_v23, %v4642_v22  ;;  %v4645_v25 = vpop.f32.mrb[34].mxu1 }
 0x25c   : > { %v4646_v27 = vpop.f32.mrb[35].mxu1 }
 0x25d   : > { %v3894_v28 = vadd.f32 %v4644_v48, %v3853_v19  ;;  %v4647_v29 = vadd.f32 %v4646_v27, %v4645_v25 }
 0x25f   : > { %v3897_v30 = vadd.f32 %v4647_v29, %v3856_v9 }
 0x279   : > { %v4664_v32 = vpop.f32.mrb[36].mxu1 }
 0x27a   : > { %v4665_v33 = vpop.f32.mrb[37].mxu1 }
 0x27b   : > { %v4666_v35 = vadd.f32 %v4665_v33, %v4664_v32  ;;  %v4667_v31 = vpop.f32.mrb[38].mxu1 }
 0x27c   : > { %v4668_v21 = vpop.f32.mrb[39].mxu1 }
 0x27d   : > { %v3935_v36 = vadd.f32 %v4666_v35, %v3894_v28  ;;  %v4669_v37 = vadd.f32 %v4668_v21, %v4667_v31 }
 0x27f   : > { %v3943_v26 = vmax.f32 %v3935_v36, 0.0  ;;  %v3938_v38 = vadd.f32 %v4669_v37, %v3897_v30 }
 0x281   : > { %3949 = vst [vmem:[%s177_s17 + $0x10] sm:$0xff] %v3943_v26  ;;  %v3946_v39 = vmax.f32 %v3938_v38, 0.0 }
 0x283   : > { %3952 = vst [vmem:[%s177_s17 + $0x28] sm:$0xff] %v3946_v39 }
 0x29a   : > { %v3563_v46 = vpop.f32.mrb[0].mxu0 }
 0x29b   : > { %v4671_v49 = vadd.f32 %v4670_v44, %v3563_v46  ;;  %v3565_v50 = vpop.f32.mrb[1].mxu0 }
 0x29c   : > { %v4673_v34 = vadd.f32 %v4672_v45, %v3565_v50  ;;  %v3567_v56 = vpop.f32.mrb[2].mxu0 }
 0x29d   : > { %v3941_v57 = vmax.f32 %v4671_v49, 0.0  ;;  %v4675_v58 = vadd.f32 %v4674_v47, %v3567_v56  ;;  %v3569_v54 = vpop.f32.mrb[3].mxu0 }
 0x29e   : > { %v3942_v59 = vmax.f32 %v4673_v34, 0.0  ;;  %v4677_v60 = vadd.f32 %v4676_v53, %v3569_v54 }
 0x29f   : > { %3947 = vst [vmem:[%s177_s17] sm:$0xff] %v3941_v57  ;;  %v3944_v12 = vmax.f32 %v4675_v58, 0.0 }
 0x2a0   : > { %3948 = vst [vmem:[%s177_s17 + $0x8] sm:$0xff] %v3942_v59  ;;  %v3945_v51 = vmax.f32 %v4677_v60, 0.0 }
 0x2a1   : > { %3950 = vst [vmem:[%s177_s17 + $0x18] sm:$0xff] %v3944_v12 }
 0x2a2   : > { %3951 = vst [vmem:[%s177_s17 + $0x20] sm:$0xff] %v3945_v51 }
 0x2a3 PF: > { %s13_s12 = sadd.s32 1, %s5329_s12  }
 0x2a4   : > { %p10_p4 = scmp.ge.s32.totalorder %s13_s12, 4  }
 0x2a6   :  { %12 = sbr.rel (!%p10_p4) target bundleno = 1 (0x1), region = 62 }

// kernel: mixed_c_forward.8
= control target key start
LH: loop header
LB: loop body
LE: loop exit
PB: predicated region body
PF: predicated region fallthrough
CT: control target
= control target key end

     0   :  { %s7431_s12 = smov 0   ;;  %s9521_s0 = inlined_call_operand.vmem [shape: bf16[192,2304], index: 0, kind: input, shape index: {}]   ;;  %s9522_s1 = inlined_call_operand.vmem [shape: bf16[2304,384], index: 1, kind: input, shape index: {}]   ;;  %s9523_s2 = inlined_call_operand.vmem [shape: f32[1,384], index: 2, kind: input, shape index: {}]   ;;  %s9524_s3 = inlined_call_operand.vmem [shape: f32[192,384], index: 3, kind: output, shape index: {}]  }
   0x1 LB: > { %s5421_s13 = sadd.s32 4294967295, %s7409_s12   ;;  %p5425_p0 = scmp.ge.s32.totalorder %s7409_s12, 1  ;;  %s7409_s12 = sphi %s7431_s12, %s13_s12  }
   0x2   : > { %p139_p1 = scmp.lt.s32.totalorder %s7409_s12, 3 }
   0x4   : > { %p140_p2 = pnand %p5425_p0, %p139_p1 }
   0x5   : > { %v6664_v0 = vld [vmem:[%s9522_s1 + $0x4] ss:$12 sps:$4 sm:$0xff] (!%p140_p2)   ;;  %v6668_v2 = vld [vmem:[%s9522_s1] ss:$12 sps:$4 sm:$0xff] (!%p140_p2)   ;;  %v6670_v4 = vld [vmem:[%s9522_s1 + $0x1c] ss:$12 sps:$4 sm:$0xff] (!%p140_p2)  }
   0x6   : > { %143 = sbr.rel (%p140_p2) target bundleno = 779 (0x30b), region = 32  ;;  %v6666_v1 = vld [vmem:[%s9522_s1 + $0x184] ss:$12 sps:$4 sm:$0xff] (!%p140_p2)   ;;  %3725 = vmatprep.subr.bf16.mxu1 (!%p140_p2), %v6664_v0  ;;  %v6669_v3 = vld [vmem:[%s9522_s1 + $0x180] ss:$12 sps:$4 sm:$0xff] (!%p140_p2)  }
   0x7   : > { %3818 = vmatprep.subr.bf16.mxu0 (!%p140_p2), %v6666_v1  ;;  %3726 = vmatpush1.bf16.msra.mxu1 (!%p140_p2), %v6668_v2  ;;  %v6672_v5 = vld [vmem:[%s9522_s1 + $0x19c] ss:$12 sps:$4 sm:$0xff] (!%p140_p2)   ;;  %v6674_v6 = vld [vmem:[%s9522_s1 + $0x18] ss:$12 sps:$4 sm:$0xff] (!%p140_p2)   ;;  %v6676_v8 = vld [vmem:[%s9522_s1 + $0x34] ss:$12 sps:$4 sm:$0xff] (!%p140_p2)  }
   0x8   : > { %3819 = vmatpush1.bf16.msra.mxu0 (!%p140_p2), %v6669_v3  ;;  %3727 = vmatprep.subr.bf16.mxu1 (!%p140_p2), %v6670_v4  ;;  %v6675_v7 = vld [vmem:[%s9522_s1 + $0x198] ss:$12 sps:$4 sm:$0xff] (!%p140_p2)   ;;  %v6678_v9 = vld [vmem:[%s9522_s1 + $0x1b4] ss:$12 sps:$4 sm:$0xff] (!%p140_p2)   ;;  %v6680_v10 = vld [vmem:[%s9522_s1 + $0x30] ss:$12 sps:$4 sm:$0xff] (!%p140_p2)  }
   0x9   : > { %3820 = vmatprep.subr.bf16.mxu0 (!%p140_p2), %v6672_v5  ;;  %v6681_v11 = vld [vmem:[%s9522_s1 + $0x1b0] ss:$12 sps:$4 sm:$0xff] (!%p140_p2)   ;;  %v6682_v12 = vld [vmem:[%s9522_s1 + $0x4c] ss:$12 sps:$4 sm:$0xff] (!%p140_p2)   ;;  %v6686_v14 = vld [vmem:[%s9522_s1 + $0x48] ss:$12 sps:$4 sm:$0xff] (!%p140_p2)  }
   0xa   : > { %v6684_v13 = vld [vmem:[%s9522_s1 + $0x1cc] ss:$12 sps:$4 sm:$0xff] (!%p140_p2)   ;;  %v6687_v15 = vld [vmem:[%s9522_s1 + $0x1c8] ss:$12 sps:$4 sm:$0xff] (!%p140_p2)   ;;  %v6688_v16 = vld [vmem:[%s9522_s1 + $0x64] ss:$12 sps:$4 sm:$0xff] (!%p140_p2)  }
   0xb   : > { %3728 = vmatpush1.bf16.msra.mxu1 (!%p140_p2), %v6674_v6  ;;  %v6690_v17 = vld [vmem:[%s9522_s1 + $0x1e4] ss:$12 sps:$4 sm:$0xff] (!%p140_p2)   ;;  %v6692_v18 = vld [vmem:[%s9522_s1 + $0x60] ss:$12 sps:$4 sm:$0xff] (!%p140_p2)   ;;  %v6694_v20 = vld [vmem:[%s9522_s1 + $0x7c] ss:$12 sps:$4 sm:$0xff] (!%p140_p2)  }
   0xc   : > { %3821 = vmatpush1.bf16.msra.mxu0 (!%p140_p2), %v6675_v7  ;;  %3729 = vmatprep.subr.bf16.mxu1 (!%p140_p2), %v6676_v8  ;;  %v6693_v19 = vld [vmem:[%s9522_s1 + $0x1e0] ss:$12 sps:$4 sm:$0xff] (!%p140_p2)   ;;  %v6696_v21 = vld [vmem:[%s9522_s1 + $0x1fc] ss:$12 sps:$4 sm:$0xff] (!%p140_p2)   ;;  %v6698_v22 = vld [vmem:[%s9522_s1 + $0x78] ss:$12 sps:$4 sm:$0xff] (!%p140_p2)  }
   0xd   : > { %3822 = vmatprep.subr.bf16.mxu0 %v6678_v9  ;;  %v6699_v23 = vld [vmem:[%s9522_s1 + $0x1f8] ss:$12 sps:$4 sm:$0xff]   ;;  %v6700_v24 = vld [vmem:[%s9522_s1 + $0x94] ss:$12 sps:$4 sm:$0xff]   ;;  %v6704_v26 = vld [vmem:[%s9522_s1 + $0x90] ss:$12 sps:$4 sm:$0xff]  }
   0xe   : > { %v6702_v25 = vld [vmem:[%s9522_s1 + $0x214] ss:$12 sps:$4 sm:$0xff]   ;;  %v6705_v27 = vld [vmem:[%s9522_s1 + $0x210] ss:$12 sps:$4 sm:$0xff]   ;;  %v6706_v28 = vld [vmem:[%s9522_s1 + $0xac] ss:$12 sps:$4 sm:$0xff]  }
   0xf   : > { %3730 = vmatpush1.bf16.msra.mxu1 %v6680_v10  ;;  %s165_s22 = smul.u32 12, %s5421_s13  ;;  %v6708_v29 = vld [vmem:[%s9522_s1 + $0x22c] ss:$12 sps:$4 sm:$0xff]   ;;  %v6710_v30 = vld [vmem:[%s9522_s1 + $0xa8] ss:$12 sps:$4 sm:$0xff]  }
  0x10   : > { %3823 = vmatpush1.bf16.msra.mxu0 %v6681_v11  ;;  %3731 = vmatprep.subr.bf16.mxu1 %v6682_v12  ;;  %v6711_v31 = vld [vmem:[%s9522_s1 + $0x228] ss:$12 sps:$4 sm:$0xff]   ;;  %v6712_v32 = vld [vmem:[%s9522_s1 + $0xc4] ss:$12 sps:$4 sm:$0xff]   ;;  %v6716_v34 = vld [vmem:[%s9522_s1 + $0xc0] ss:$12 sps:$4 sm:$0xff]  }
  0x11   : > { %3824 = vmatprep.subr.bf16.mxu0 %v6684_v13  ;;  %p166_p3 = scmp.lt.s32.totalorder %s165_s22, 23  ;;  %v6714_v33 = vld [vmem:[%s9522_s1 + $0x244] ss:$12 sps:$4 sm:$0xff]   ;;  %v6717_v35 = vld [vmem:[%s9522_s1 + $0x240] ss:$12 sps:$4 sm:$0xff]  }
  0x12   : > { %v6718_v36 = vld [vmem:[%s9522_s1 + $0xdc] ss:$12 sps:$4 sm:$0xff]   ;;  %v6722_v38 = vld [vmem:[%s9522_s1 + $0xd8] ss:$12 sps:$4 sm:$0xff]   ;;  %v6724_v40 = vld [vmem:[%s9522_s1 + $0xf4] ss:$12 sps:$4 sm:$0xff]  }
  0x13   : > { %3732 = vmatpush1.bf16.msra.mxu1 %v6686_v14  ;;  %s9526_s22 = smov (!%p166_p3, %s165_s22), 23  ;;  %v6720_v37 = vld [vmem:[%s9522_s1 + $0x25c] ss:$12 sps:$4 sm:$0xff]   ;;  %v6723_v39 = vld [vmem:[%s9522_s1 + $0x258] ss:$12 sps:$4 sm:$0xff]  }
  0x14   : > { %3825 = vmatpush1.bf16.msra.mxu0 %v6687_v15  ;;  %3733 = vmatprep.subr.bf16.mxu1 %v6688_v16  ;;  %s6654_s21 = smul.u32 72, %s9526_s22  ;;  %v6726_v41 = vld [vmem:[%s9522_s1 + $0x274] ss:$12 sps:$4 sm:$0xff]   ;;  %v6728_v42 = vld [vmem:[%s9522_s1 + $0xf0] ss:$12 sps:$4 sm:$0xff]  }
  0x15   : > { %3826 = vmatprep.subr.bf16.mxu0 %v6690_v17  ;;  %v6729_v43 = vld [vmem:[%s9522_s1 + $0x270] ss:$12 sps:$4 sm:$0xff]   ;;  %v6730_v44 = vld [vmem:[%s9522_s1 + $0x10c] ss:$12 sps:$4 sm:$0xff]   ;;  %v6734_v46 = vld [vmem:[%s9522_s1 + $0x108] ss:$12 sps:$4 sm:$0xff]  }
  0x16   : > { %s7582_s5 = scalar_lea.vmem %s9521_s0, %s6654_s21  ;;  %v6732_v45 = vld [vmem:[%s9522_s1 + $0x28c] ss:$12 sps:$4 sm:$0xff]   ;;  %v6735_v47 = vld [vmem:[%s9522_s1 + $0x288] ss:$12 sps:$4 sm:$0xff]   ;;  %v6736_v48 = vld [vmem:[%s9522_s1 + $0x124] ss:$12 sps:$4 sm:$0xff]  }
  0x17   : > { %3734 = vmatpush1.bf16.msra.mxu1 %v6692_v18  ;;  %v7597_v49 = vld [vmem:[%s7582_s5 + $0x4] ss:$72 sps:$4 sm:$0xff]   ;;  %v6742_v54 = vld [vmem:[%s9522_s1 + $0x13c] ss:$12 sps:$4 sm:$0xff]   ;;  %v6748_v58 = vld [vmem:[%s9522_s1 + $0x154] ss:$12 sps:$4 sm:$0xff]  }
  0x18   : > { %3827 = vmatpush1.bf16.msra.mxu0 %v6693_v19  ;;  %3735 = vmatprep.subr.bf16.mxu1 %v6694_v20  ;;  %v6738_v50 = vld [vmem:[%s9522_s1 + $0x2a4] ss:$12 sps:$4 sm:$0xff]   ;;  %v7603_v51 = vld [vmem:[%s7582_s5 + $0xc] ss:$72 sps:$4 sm:$0xff]   ;;  %v6744_v55 = vld [vmem:[%s9522_s1 + $0x2bc] ss:$12 sps:$4 sm:$0xff]  }
  0x19   : > { %3828 = vmatprep.subr.bf16.mxu0 %v6696_v21  ;;  %3757 = vmatprep.mubr.bf16.mxu1 %v7597_v49  ;;  %v6740_v52 = vld [vmem:[%s9522_s1 + $0x120] ss:$12 sps:$4 sm:$0xff]   ;;  %v6746_v56 = vld [vmem:[%s9522_s1 + $0x138] ss:$12 sps:$4 sm:$0xff]   ;;  %v6752_v60 = vld [vmem:[%s9522_s1 + $0x150] ss:$12 sps:$4 sm:$0xff]  }
  0x1a   : > { %v6741_v53 = vld [vmem:[%s9522_s1 + $0x2a0] ss:$12 sps:$4 sm:$0xff]   ;;  %3850 = vmatprep.mubr.bf16.mxu0 %v7603_v51  ;;  %v6747_v57 = vld [vmem:[%s9522_s1 + $0x2b8] ss:$12 sps:$4 sm:$0xff]   ;;  %v6753_v61 = vld [vmem:[%s9522_s1 + $0x2d0] ss:$12 sps:$4 sm:$0xff]  }
  0x1b   : > { %3736 = vmatpush1.bf16.msra.mxu1 %v6698_v22  ;;  %v6750_v59 = vld [vmem:[%s9522_s1 + $0x2d4] ss:$12 sps:$4 sm:$0xff]   ;;  %v6754_v62 = vld [vmem:[%s9522_s1 + $0x16c] ss:$12 sps:$4 sm:$0xff]   ;;  %v6768_v2 = vld [vmem:[%s9522_s1 + $0x304] ss:$12 sps:$4 sm:$0xff]  }
  0x1c   : > { %3829 = vmatpush1.bf16.msra.mxu0 %v6699_v23  ;;  %3737 = vmatprep.subr.bf16.mxu1 %v6700_v24  ;;  %v6756_v63 = vld [vmem:[%s9522_s1 + $0x2ec] ss:$12 sps:$4 sm:$0xff]   ;;  %v6758_v0 = vld [vmem:[%s9522_s1 + $0x168] ss:$12 sps:$4 sm:$0xff]   ;;  %v7677_v11 = vld [vmem:[%s7582_s5 + $0x9c] ss:$72 sps:$4 sm:$0xff]  }
  0x1d   : > { %3830 = vmatprep.subr.bf16.mxu0 %v6702_v25  ;;  %v6759_v1 = vld [vmem:[%s9522_s1 + $0x2e8] ss:$12 sps:$4 sm:$0xff]   ;;  %v6766_v6 = vld [vmem:[%s9522_s1 + $0x300] ss:$12 sps:$4 sm:$0xff]   ;;  %v6769_v12 = vld [vmem:[%s9522_s1 + $0x318] ss:$12 sps:$4 sm:$0xff]  }
  0x1e   : > { %v7653_v3 = vld [vmem:[%s7582_s5] ss:$72 sps:$4 sm:$0xff]   ;;  %v7668_v8 = vld [vmem:[%s7582_s5 + $0x94] ss:$72 sps:$4 sm:$0xff]   ;;  %v7689_v14 = vld [vmem:[%s7582_s5 + $0x90] ss:$72 sps:$4 sm:$0xff]  }
  0x1f   : > { %3738 = vmatpush1.bf16.msra.mxu1 %v6704_v26  ;;  %v6781_v4 = vld [vmem:[%s9522_s1 + $0xc8] ss:$12 sps:$4 sm:$0xff]   ;;  %v6789_v10 = vld [vmem:[%s9522_s1 + $0xe0] ss:$12 sps:$4 sm:$0xff]   ;;  %v6775_v16 = vld [vmem:[%s9522_s1 + $0x330] ss:$12 sps:$4 sm:$0xff]  }
  0x20   : > { %3831 = vmatpush1.bf16.msra.mxu0 %v6705_v27  ;;  %3739 = vmatprep.subr.bf16.mxu1 %v6706_v28  ;;  %v7659_v5 = vld [vmem:[%s7582_s5 + $0x8] ss:$72 sps:$4 sm:$0xff]   ;;  %v6777_v13 = vld [vmem:[%s9522_s1 + $0x334] ss:$12 sps:$4 sm:$0xff]   ;;  %v6802_v17 = vld [vmem:[%s9522_s1 + $0xf8] ss:$12 sps:$4 sm:$0xff]  }
  0x21   : > { %3832 = vmatprep.subr.bf16.mxu0 %v6708_v29  ;;  %v6771_v7 = vld [vmem:[%s9522_s1 + $0x31c] ss:$12 sps:$4 sm:$0xff]   ;;  %v6793_v15 = vld [vmem:[%s9522_s1 + $0x20] ss:$12 sps:$4 sm:$0xff]   ;;  %v6804_v21 = vld [vmem:[%s9522_s1 + $0x38] ss:$12 sps:$4 sm:$0xff]  }
  0x22   : > { %v6782_v9 = vld [vmem:[%s9522_s1 + $0x8] ss:$12 sps:$4 sm:$0xff]   ;;  %v6780_v18 = vld [vmem:[%s9522_s1 + $0x34c] ss:$12 sps:$4 sm:$0xff]   ;;  %v6808_v22 = vld [vmem:[%s9522_s1 + $0x110] ss:$12 sps:$4 sm:$0xff]  }
  0x23   : > { %3740 = vmatpush1.bf16.msra.mxu1 %v6710_v30  ;;  %v7705_v19 = vld [vmem:[%s7582_s5 + $0x98] ss:$72 sps:$4 sm:$0xff]   ;;  %v7708_v20 = vld [vmem:[%s7582_s5 + $0x124] ss:$72 sps:$4 sm:$0xff]   ;;  %v6778_v24 = vld [vmem:[%s9522_s1 + $0x348] ss:$12 sps:$4 sm:$0xff]  }
  0x24   : > { %3833 = vmatpush1.bf16.msra.mxu0 %v6711_v31  ;;  %3741 = vmatprep.subr.bf16.mxu1 %v6712_v32  ;;  %v7717_v23 = vld [vmem:[%s7582_s5 + $0x12c] ss:$72 sps:$4 sm:$0xff]   ;;  %v6788_v25 = vld [vmem:[%s9522_s1 + $0x364] ss:$12 sps:$4 sm:$0xff]   ;;  %v7729_v26 = vld [vmem:[%s7582_s5 + $0x120] ss:$72 sps:$4 sm:$0xff]  }
  0x25   : > { %3834 = vmatprep.subr.bf16.mxu0 %v6714_v33  ;;  %v6809_v27 = vld [vmem:[%s9522_s1 + $0x50] ss:$12 sps:$4 sm:$0xff]   ;;  %v6786_v28 = vld [vmem:[%s9522_s1 + $0x360] ss:$12 sps:$4 sm:$0xff]   ;;  %v6818_v29 = vld [vmem:[%s9522_s1 + $0x128] ss:$12 sps:$4 sm:$0xff]  }
  0x26   : > { %v6792_v30 = vld [vmem:[%s9522_s1 + $0x37c] ss:$12 sps:$4 sm:$0xff]  }
  0x27   : > { %3742 = vmatpush1.bf16.msra.mxu1 %v6716_v34  ;;  %v7745_v31 = vld [vmem:[%s7582_s5 + $0x1b4] ss:$72 sps:$4 sm:$0xff]   ;;  %v7748_v32 = vld [vmem:[%s7582_s5 + $0x128] ss:$72 sps:$4 sm:$0xff]   ;;  %v6824_v34 = vld [vmem:[%s9522_s1 + $0x140] ss:$12 sps:$4 sm:$0xff]  }
  0x28   : > { %3835 = vmatpush1.bf16.msra.mxu0 %v6717_v35  ;;  %3743 = vmatprep.subr.bf16.mxu1 %v6718_v36  ;;  %v6820_v33 = vld [vmem:[%s9522_s1 + $0x68] ss:$12 sps:$4 sm:$0xff]   ;;  %v7757_v35 = vld [vmem:[%s7582_s5 + $0x1bc] ss:$72 sps:$4 sm:$0xff]  }
  0x29   : > { %3836 = vmatprep.subr.bf16.mxu0 %v6720_v37  ;;  %v6790_v36 = vld [vmem:[%s9522_s1 + $0x378] ss:$12 sps:$4 sm:$0xff]  }
  0x2a   : > { %v7766_v37 = vld [vmem:[%s7582_s5 + $0x1b0] ss:$72 sps:$4 sm:$0xff]  }
  0x2b   : > { %3744 = vmatpush1.bf16.msra.mxu1 %v6722_v38  ;;  %v6801_v38 = vld [vmem:[%s9522_s1 + $0x394] ss:$12 sps:$4 sm:$0xff]  }
  0x2c   : > { %3837 = vmatpush1.bf16.msra.mxu0 %v6723_v39  ;;  %3745 = vmatprep.subr.bf16.mxu1 %v6724_v40  ;;  %v6825_v39 = vld [vmem:[%s9522_s1 + $0x80] ss:$12 sps:$4 sm:$0xff]   ;;  %v6799_v40 = vld [vmem:[%s9522_s1 + $0x390] ss:$12 sps:$4 sm:$0xff]  }
  0x2d   : > { %3838 = vmatprep.subr.bf16.mxu0 %v6726_v41  ;;  %v6834_v41 = vld [vmem:[%s9522_s1 + $0x158] ss:$12 sps:$4 sm:$0xff]  }
  0x2f   : > { %3746 = vmatpush1.bf16.msra.mxu1 %v6728_v42  ;;  %v6807_v42 = vld [vmem:[%s9522_s1 + $0x3ac] ss:$12 sps:$4 sm:$0xff]  }
  0x30   : > { %3839 = vmatpush1.bf16.msra.mxu0 %v6729_v43  ;;  %3747 = vmatprep.subr.bf16.mxu1 %v6730_v44  ;;  %v7785_v43 = vld [vmem:[%s7582_s5 + $0x1b8] ss:$72 sps:$4 sm:$0xff]   ;;  %v7788_v44 = vld [vmem:[%s7582_s5 + $0x244] ss:$72 sps:$4 sm:$0xff]  }
  0x31   : > { %3840 = vmatprep.subr.bf16.mxu0 %v6732_v45  ;;  %v6836_v45 = vld [vmem:[%s9522_s1 + $0x98] ss:$12 sps:$4 sm:$0xff]  }
  0x33   : > { %3748 = vmatpush1.bf16.msra.mxu1 %v6734_v46  ;;  %v6840_v46 = vld [vmem:[%s9522_s1 + $0x170] ss:$12 sps:$4 sm:$0xff]  }
  0x34   : > { %3841 = vmatpush1.bf16.msra.mxu0 %v6735_v47  ;;  %3749 = vmatprep.subr.bf16.mxu1 %v6736_v48  ;;  %v7797_v47 = vld [vmem:[%s7582_s5 + $0x24c] ss:$72 sps:$4 sm:$0xff]  }
  0x35   : > { %3842 = vmatprep.subr.bf16.mxu0 %v6738_v50  ;;  %v6805_v48 = vld [vmem:[%s9522_s1 + $0x3a8] ss:$12 sps:$4 sm:$0xff]   ;;  %v6817_v50 = vld [vmem:[%s9522_s1 + $0x3c4] ss:$12 sps:$4 sm:$0xff]  }
  0x37   : > { %3750 = vmatpush1.bf16.msra.mxu1 %v6740_v52  ;;  %v6841_v52 = vld [vmem:[%s9522_s1 + $0xb0] ss:$12 sps:$4 sm:$0xff]  }
  0x38   : > { %3843 = vmatpush1.bf16.msra.mxu0 %v6741_v53  ;;  %3751 = vmatprep.subr.bf16.mxu1 %v6742_v54  ;;  %v7812_v53 = vld [vmem:[%s7582_s5 + $0x240] ss:$72 sps:$4 sm:$0xff]  }
  0x39   : > { %3844 = vmatprep.subr.bf16.mxu0 %v6744_v55  ;;  %v6815_v54 = vld [vmem:[%s9522_s1 + $0x3c0] ss:$12 sps:$4 sm:$0xff]   ;;  %v6823_v55 = vld [vmem:[%s9522_s1 + $0x3dc] ss:$12 sps:$4 sm:$0xff]  }
  0x3b   : > { %3752 = vmatpush1.bf16.msra.mxu1 %v6746_v56  ;;  %v7822_v56 = vld [vmem:[%s7582_s5 + $0x2d4] ss:$72 sps:$4 sm:$0xff]  }
  0x3c   : > { %3845 = vmatpush1.bf16.msra.mxu0 %v6747_v57  ;;  %3753 = vmatprep.subr.bf16.mxu1 %v6748_v58  ;;  %v7825_v57 = vld [vmem:[%s7582_s5 + $0x248] ss:$72 sps:$4 sm:$0xff]  }
  0x3d   : > { %3846 = vmatprep.subr.bf16.mxu0 %v6750_v59  ;;  %v6860_v58 = vld [vmem:[%s9522_s1 + $0x248] ss:$12 sps:$4 sm:$0xff]   ;;  %v7831_v59 = vld [vmem:[%s7582_s5 + $0x2dc] ss:$72 sps:$4 sm:$0xff]  }
  0x3f   : > { %3754 = vmatpush1.bf16.msra.mxu1 %v6752_v60  ;;  %v6821_v60 = vld [vmem:[%s9522_s1 + $0x3d8] ss:$12 sps:$4 sm:$0xff]  }
  0x40   : > { %3847 = vmatpush1.bf16.msra.mxu0 %v6753_v61  ;;  %3755 = vmatprep.subr.bf16.mxu1 %v6754_v62  ;;  %v6833_v61 = vld [vmem:[%s9522_s1 + $0x3f4] ss:$12 sps:$4 sm:$0xff]   ;;  %v7844_v62 = vld [vmem:[%s7582_s5 + $0x2d0] ss:$72 sps:$4 sm:$0xff]  }
  0x41   : > { %3848 = vmatprep.subr.bf16.mxu0 %v6756_v63  ;;  %v6831_v63 = vld [vmem:[%s9522_s1 + $0x3f0] ss:$12 sps:$4 sm:$0xff]  }
  0x43   : > { %3756 = vmatpush1.bf16.msra.mxu1 %v6758_v0  ;;  %v7850_v0 = vld [vmem:[%s7582_s5 + $0x2d8] ss:$72 sps:$4 sm:$0xff]  }
  0x44   : > { %3849 = vmatpush1.bf16.msra.mxu0 %v6759_v1  ;;  %5970 = vmatprep.subr.bf16.mxu1 %v6781_v4  ;;  %v6839_v1 = vld [vmem:[%s9522_s1 + $0x40c] ss:$12 sps:$4 sm:$0xff]   ;;  %v6837_v4 = vld [vmem:[%s9522_s1 + $0x408] ss:$12 sps:$4 sm:$0xff]  }
  0x45   : > { %3911 = vmatprep.subr.bf16.mxu0 %v6768_v2  ;;  %v7856_v2 = vld [vmem:[%s7582_s5 + $0x14] ss:$72 sps:$4 sm:$0xff]  }
  0x46   : > { %3758 = vmatmul.mubr.bf16.vlgmr.msra.gmra.mrb[0].mxu1 %v7653_v3 }
  0x47   : > { %3851 = vmatmul.mubr.bf16.vlgmr.msra.gmra.mrb[0].mxu0 %v7659_v5  ;;  %3767 = vmatprep.mubr.bf16.mxu1 %v7668_v8 }
  0x48   : > { %3912 = vmatpush1.bf16.msra.mxu0 %v6766_v6  ;;  %5971 = vmatpush3.bf16.msra.mxu1 %v6782_v9  ;;  %v6846_v6 = vld [vmem:[%s9522_s1 + $0x424] ss:$12 sps:$4 sm:$0xff]   ;;  %v6850_v9 = vld [vmem:[%s9522_s1 + $0x43c] ss:$12 sps:$4 sm:$0xff]  }
  0x49   : > { %3913 = vmatprep.subr.bf16.mxu0 %v6771_v7  ;;  %5972 = vmatprep.subr.bf16.mxu1 %v6789_v10  ;;  %v6844_v7 = vld [vmem:[%s9522_s1 + $0x420] ss:$12 sps:$4 sm:$0xff]  }
  0x4a   : > { %3860 = vmatprep.mubr.bf16.mxu0 %v7677_v11  ;;  %v6868_v10 = vld [vmem:[%s9522_s1 + $0x260] ss:$12 sps:$4 sm:$0xff]  }
  0x4c   : > { %3914 = vmatpush1.bf16.msra.mxu0 %v6769_v12  ;;  %5973 = vmatpush3.bf16.msra.mxu1 %v6793_v15  ;;  %v6848_v12 = vld [vmem:[%s9522_s1 + $0x438] ss:$12 sps:$4 sm:$0xff]   ;;  %v6872_v15 = vld [vmem:[%s9522_s1 + $0x1a0] ss:$12 sps:$4 sm:$0xff]  }
  0x4d   : > { %3915 = vmatprep.subr.bf16.mxu0 %v6777_v13  ;;  %5974 = vmatprep.subr.bf16.mxu1 %v6802_v17  ;;  %v6855_v13 = vld [vmem:[%s9522_s1 + $0x454] ss:$12 sps:$4 sm:$0xff]   ;;  %v6877_v17 = vld [vmem:[%s9522_s1 + $0x1b8] ss:$12 sps:$4 sm:$0xff]  }
  0x4e   : > { %3768 = vmatmul.mubr.bf16.gmra.mrb[4].mxu1 %v7689_v14 }
  0x4f   : > { %3861 = vmatmul.mubr.bf16.gmra.mrb[4].mxu0 %v7705_v19  ;;  %3777 = vmatprep.mubr.bf16.mxu1 %v7708_v20 }
  0x50   : > { %3916 = vmatpush1.bf16.msra.mxu0 %v6775_v16  ;;  %5975 = vmatpush3.bf16.msra.mxu1 %v6804_v21  ;;  %v6859_v16 = vld [vmem:[%s9522_s1 + $0x46c] ss:$12 sps:$4 sm:$0xff]   ;;  %v6857_v21 = vld [vmem:[%s9522_s1 + $0x468] ss:$12 sps:$4 sm:$0xff]  }
  0x51   : > { %3917 = vmatprep.subr.bf16.mxu0 %v6780_v18  ;;  %5976 = vmatprep.subr.bf16.mxu1 %v6808_v22  ;;  %v6881_v18 = vld [vmem:[%s9522_s1 + $0x290] ss:$12 sps:$4 sm:$0xff]  }
  0x52   : > { %3870 = vmatprep.mubr.bf16.mxu0 %v7717_v23  ;;  %v6867_v22 = vld [vmem:[%s9522_s1 + $0x484] ss:$12 sps:$4 sm:$0xff]  }
  0x54   : > { %3918 = vmatpush1.bf16.msra.mxu0 %v6778_v24  ;;  %5977 = vmatpush3.bf16.msra.mxu1 %v6809_v27  ;;  %v6882_v24 = vld [vmem:[%s9522_s1 + $0x1d0] ss:$12 sps:$4 sm:$0xff]  }
  0x55   : > { %3919 = vmatprep.subr.bf16.mxu0 %v6788_v25  ;;  %5978 = vmatprep.subr.bf16.mxu1 %v6818_v29  ;;  %v7921_v25 = vld [vmem:[%s7582_s5 + $0x10] ss:$72 sps:$4 sm:$0xff]   ;;  %v6871_v27 = vld [vmem:[%s9522_s1 + $0x49c] ss:$12 sps:$4 sm:$0xff]   ;;  %v6891_v29 = vld [vmem:[%s9522_s1 + $0x2c0] ss:$12 sps:$4 sm:$0xff]  }
  0x56   : > { %3778 = vmatmul.mubr.bf16.gmra.mrb[8].mxu1 %v7729_v26 }
  0x57   : > { %3871 = vmatmul.mubr.bf16.gmra.mrb[8].mxu0 %v7748_v32  ;;  %3787 = vmatprep.mubr.bf16.mxu1 %v7745_v31 }
  0x58   : > { %3920 = vmatpush1.bf16.msra.mxu0 %v6786_v28  ;;  %5979 = vmatpush3.bf16.msra.mxu1 %v6820_v33  ;;  %v6887_v28 = vld [vmem:[%s9522_s1 + $0x1e8] ss:$12 sps:$4 sm:$0xff]   ;;  %v6869_v33 = vld [vmem:[%s9522_s1 + $0x498] ss:$12 sps:$4 sm:$0xff]  }
  0x59   : > { %3921 = vmatprep.subr.bf16.mxu0 %v6792_v30  ;;  %5980 = vmatprep.subr.bf16.mxu1 %v6824_v34  ;;  %v7936_v30 = vld [vmem:[%s7582_s5 + $0xa4] ss:$72 sps:$4 sm:$0xff]   ;;  %v6875_v34 = vld [vmem:[%s9522_s1 + $0x4b4] ss:$12 sps:$4 sm:$0xff]  }
  0x5a   : > { %3880 = vmatprep.mubr.bf16.mxu0 %v7757_v35 }
  0x5c   : > { %3922 = vmatpush1.bf16.msra.mxu0 %v6790_v36  ;;  %5981 = vmatpush3.bf16.msra.mxu1 %v6825_v39  ;;  %v6898_v36 = vld [vmem:[%s9522_s1 + $0x2d8] ss:$12 sps:$4 sm:$0xff]  }
  0x5d   : > { %3923 = vmatprep.subr.bf16.mxu0 %v6801_v38  ;;  %5982 = vmatprep.subr.bf16.mxu1 %v6834_v41  ;;  %v7955_v38 = vld [vmem:[%s7582_s5 + $0xa0] ss:$72 sps:$4 sm:$0xff]   ;;  %v6880_v39 = vld [vmem:[%s9522_s1 + $0x4cc] ss:$12 sps:$4 sm:$0xff]   ;;  %v6904_v41 = vld [vmem:[%s9522_s1 + $0x2f0] ss:$12 sps:$4 sm:$0xff]  }
  0x5e   : > { %3788 = vmatmul.mubr.bf16.gmra.mrb[12].mxu1 %v7766_v37 }
  0x5f   : > { %3881 = vmatmul.mubr.bf16.gmra.mrb[12].mxu0 %v7785_v43  ;;  %3797 = vmatprep.mubr.bf16.mxu1 %v7788_v44 }
  0x60   : > { %3924 = vmatpush1.bf16.msra.mxu0 %v6799_v40  ;;  %5983 = vmatpush3.bf16.msra.mxu1 %v6836_v45  ;;  %v6900_v40 = vld [vmem:[%s9522_s1 + $0x218] ss:$12 sps:$4 sm:$0xff]   ;;  %v6878_v45 = vld [vmem:[%s9522_s1 + $0x4c8] ss:$12 sps:$4 sm:$0xff]  }
  0x61   : > { %3925 = vmatprep.subr.bf16.mxu0 %v6807_v42  ;;  %5984 = vmatprep.subr.bf16.mxu1 %v6840_v46  ;;  %v7970_v42 = vld [vmem:[%s7582_s5 + $0x134] ss:$72 sps:$4 sm:$0xff]   ;;  %v6885_v46 = vld [vmem:[%s9522_s1 + $0x4e4] ss:$12 sps:$4 sm:$0xff]  }
  0x62   : > { %3890 = vmatprep.mubr.bf16.mxu0 %v7797_v47 }
  0x64   : > { %3926 = vmatpush1.bf16.msra.mxu0 %v6805_v48  ;;  %5985 = vmatpush3.bf16.msra.mxu1 %v6841_v52  ;;  %v6924_v48 = vld [vmem:[%s9522_s1 + $0x3c8] ss:$12 sps:$4 sm:$0xff]  }
  0x65   : > { %3927 = vmatprep.subr.bf16.mxu0 %v6817_v50  ;;  %6022 = vmatprep.subr.bf16.mxu1 %v6860_v58  ;;  %v7989_v50 = vld [vmem:[%s7582_s5 + $0x130] ss:$72 sps:$4 sm:$0xff]   ;;  %v6890_v52 = vld [vmem:[%s9522_s1 + $0x4fc] ss:$12 sps:$4 sm:$0xff]   ;;  %v6897_v58 = vld [vmem:[%s9522_s1 + $0x514] ss:$12 sps:$4 sm:$0xff]  }
  0x66   : > { %3798 = vmatmul.mubr.bf16.gmra.mrb[16].mxu1 %v7812_v53 }
  0x67   : > { %3891 = vmatmul.mubr.bf16.gmra.mrb[16].mxu0 %v7825_v57  ;;  %3807 = vmatprep.mubr.bf16.mxu1 %v7822_v56 }
  0x68   : > { %3928 = vmatpush1.bf16.msra.mxu0 %v6815_v54  ;;  %3900 = vmatprep.mubr.bf16.mxu0 %v7831_v59  ;;  %v7998_v54 = vld [vmem:[%s7582_s5 + $0x1c4] ss:$72 sps:$4 sm:$0xff]  }
  0x69   : > { %3929 = vmatprep.subr.bf16.mxu0 %v6823_v55  ;;  %v6888_v55 = vld [vmem:[%s9522_s1 + $0x4f8] ss:$12 sps:$4 sm:$0xff]  }
  0x6c   : > { %3930 = vmatpush1.bf16.msra.mxu0 %v6821_v60  ;;  %v8014_v60 = vld [vmem:[%s7582_s5 + $0x1c0] ss:$72 sps:$4 sm:$0xff]  }
  0x6d   : > { %3931 = vmatprep.subr.bf16.mxu0 %v6833_v61  ;;  %v6903_v61 = vld [vmem:[%s9522_s1 + $0x52c] ss:$12 sps:$4 sm:$0xff]  }
  0x6e   : > { %3808 = vmatmul.mubr.bf16.gmra.mrb[20].mxu1 %v7844_v62 }
  0x6f   : > { %3901 = vmatmul.mubr.bf16.gmra.mrb[20].mxu0 %v7850_v0  ;;  %4594 = vmatprep.mubr.bf16.mxu1 %v7597_v49  ;;  %v6861_v49 = vld [vmem:[%s9522_s1 + $0x188] ss:$12 sps:$4 sm:$0xff]  }
  0x70   : > { %3932 = vmatpush1.bf16.msra.mxu0 %v6831_v63  ;;  %3943 = vmatprep.mubr.bf16.mxu0 %v7856_v2  ;;  %v6901_v63 = vld [vmem:[%s9522_s1 + $0x528] ss:$12 sps:$4 sm:$0xff]  }
  0x71   : > { %3933 = vmatprep.subr.bf16.mxu0 %v6839_v1  ;;  %v6910_v1 = vld [vmem:[%s9522_s1 + $0x544] ss:$12 sps:$4 sm:$0xff]  }
  0x74   : > { %3934 = vmatpush1.bf16.msra.mxu0 %v6837_v4  ;;  %v8036_v4 = vld [vmem:[%s7582_s5 + $0x250] ss:$72 sps:$4 sm:$0xff]  }
  0x75   : > { %3935 = vmatprep.subr.bf16.mxu0 %v6846_v6  ;;  %v6914_v6 = vld [vmem:[%s9522_s1 + $0x55c] ss:$12 sps:$4 sm:$0xff]  }
  0x76   : > { %4595 = vmatmul.mubr.bf16.vlgmr.msra.gmra.mrb[24].mxu1 %v7653_v3  ;;  %v6876_v3 = vld [vmem:[%s9522_s1 + $0x278] ss:$12 sps:$4 sm:$0xff]  }
  0x77   : > { %4602 = vmatprep.mubr.bf16.mxu1 %v7668_v8  ;;  %6023 = vmatpush3.bf16.msra.mxu1 %v6861_v49  ;;  %v6853_v8 = vld [vmem:[%s9522_s1 + $0x450] ss:$12 sps:$4 sm:$0xff]   ;;  %v6912_v49 = vld [vmem:[%s9522_s1 + $0x558] ss:$12 sps:$4 sm:$0xff]  }
  0x78   : > { %3936 = vmatpush1.bf16.msra.mxu0 %v6844_v7  ;;  %6024 = vmatprep.subr.bf16.mxu1 %v6868_v10  ;;  %v6932_v7 = vld [vmem:[%s9522_s1 + $0x3e0] ss:$12 sps:$4 sm:$0xff]  }
  0x79   : > { %3937 = vmatprep.subr.bf16.mxu0 %v6850_v9  ;;  %v8048_v9 = vld [vmem:[%s7582_s5 + $0x2e4] ss:$72 sps:$4 sm:$0xff]   ;;  %v6919_v10 = vld [vmem:[%s9522_s1 + $0x574] ss:$12 sps:$4 sm:$0xff]  }
  0x7b   : > { %6025 = vmatpush3.bf16.msra.mxu1 %v6872_v15  ;;  %v6923_v15 = vld [vmem:[%s9522_s1 + $0x58c] ss:$12 sps:$4 sm:$0xff]  }
  0x7c   : > { %3938 = vmatpush1.bf16.msra.mxu0 %v6848_v12  ;;  %6026 = vmatprep.subr.bf16.mxu1 %v6876_v3  ;;  %v6942_v12 = vld [vmem:[%s9522_s1 + $0x3f8] ss:$12 sps:$4 sm:$0xff]  }
  0x7d   : > { %3939 = vmatprep.subr.bf16.mxu0 %v6855_v13  ;;  %v8067_v13 = vld [vmem:[%s7582_s5 + $0x2e0] ss:$72 sps:$4 sm:$0xff]   ;;  %v6944_v3 = vld [vmem:[%s9522_s1 + $0x338] ss:$12 sps:$4 sm:$0xff]  }
  0x7e   : > { %4603 = vmatmul.mubr.bf16.gmra.mrb[28].mxu1 %v7689_v14  ;;  %v6886_v14 = vld [vmem:[%s9522_s1 + $0x2a8] ss:$12 sps:$4 sm:$0xff]  }
  0x7f   : > { %4610 = vmatprep.mubr.bf16.mxu1 %v7708_v20  ;;  %6027 = vmatpush3.bf16.msra.mxu1 %v6877_v17  ;;  %v6865_v20 = vld [vmem:[%s9522_s1 + $0x480] ss:$12 sps:$4 sm:$0xff]   ;;  %v6921_v17 = vld [vmem:[%s9522_s1 + $0x588] ss:$12 sps:$4 sm:$0xff]  }
  0x80   : > { %3940 = vmatpush1.bf16.msra.mxu0 %v6853_v8  ;;  %6028 = vmatprep.subr.bf16.mxu1 %v6881_v18  ;;  %v6948_v8 = vld [vmem:[%s9522_s1 + $0x410] ss:$12 sps:$4 sm:$0xff]  }
  0x81   : > { %3941 = vmatprep.subr.bf16.mxu0 %v6859_v16  ;;  %v8082_v16 = vld [vmem:[%s7582_s5 + $0x1c] ss:$72 sps:$4 sm:$0xff]  }
  0x82   : > { %v6930_v18 = vld [vmem:[%s9522_s1 + $0x5a4] ss:$12 sps:$4 sm:$0xff]  }
  0x83   : > { %6029 = vmatpush3.bf16.msra.mxu1 %v6882_v24  ;;  %v6957_v24 = vld [vmem:[%s9522_s1 + $0x368] ss:$12 sps:$4 sm:$0xff]  }
  0x84   : > { %3942 = vmatpush1.bf16.msra.mxu0 %v6857_v21  ;;  %6030 = vmatprep.subr.bf16.mxu1 %v6886_v14  ;;  %v6949_v21 = vld [vmem:[%s9522_s1 + $0x350] ss:$12 sps:$4 sm:$0xff]   ;;  %v6961_v14 = vld [vmem:[%s9522_s1 + $0x440] ss:$12 sps:$4 sm:$0xff]  }
  0x85   : > { %4004 = vmatprep.subr.bf16.mxu0 %v6867_v22  ;;  %v6935_v22 = vld [vmem:[%s9522_s1 + $0x5bc] ss:$12 sps:$4 sm:$0xff]  }
  0x86   : > { %4611 = vmatmul.mubr.bf16.gmra.mrb[32].mxu1 %v7729_v26  ;;  %v6892_v26 = vld [vmem:[%s9522_s1 + $0x200] ss:$12 sps:$4 sm:$0xff]  }
  0x87   : > { %3944 = vmatmul.mubr.bf16.vlgmr.msra.gmra.mrb[0].mxu0 %v7921_v25  ;;  %4618 = vmatprep.mubr.bf16.mxu1 %v7745_v31  ;;  %v6873_v31 = vld [vmem:[%s9522_s1 + $0x4b0] ss:$12 sps:$4 sm:$0xff]  }
  0x88   : > { %4005 = vmatpush1.bf16.msra.mxu0 %v6865_v20  ;;  %6031 = vmatpush3.bf16.msra.mxu1 %v6887_v28  ;;  %v6933_v20 = vld [vmem:[%s9522_s1 + $0x5b8] ss:$12 sps:$4 sm:$0xff]   ;;  %v6962_v28 = vld [vmem:[%s9522_s1 + $0x380] ss:$12 sps:$4 sm:$0xff]  }
  0x89   : > { %4006 = vmatprep.subr.bf16.mxu0 %v6871_v27  ;;  %6032 = vmatprep.subr.bf16.mxu1 %v6891_v29  ;;  %v6941_v27 = vld [vmem:[%s9522_s1 + $0x5d4] ss:$12 sps:$4 sm:$0xff]   ;;  %v6947_v29 = vld [vmem:[%s9522_s1 + $0x5ec] ss:$12 sps:$4 sm:$0xff]  }
  0x8a   : > { %3953 = vmatprep.mubr.bf16.mxu0 %v7936_v30 }
  0x8c   : > { %4007 = vmatpush1.bf16.msra.mxu0 %v6869_v33  ;;  %6033 = vmatpush3.bf16.msra.mxu1 %v6892_v26  ;;  %v6967_v33 = vld [vmem:[%s9522_s1 + $0x398] ss:$12 sps:$4 sm:$0xff]   ;;  %v6945_v26 = vld [vmem:[%s9522_s1 + $0x5e8] ss:$12 sps:$4 sm:$0xff]  }
  0x8d   : > { %4008 = vmatprep.subr.bf16.mxu0 %v6875_v34  ;;  %6034 = vmatprep.subr.bf16.mxu1 %v6898_v36  ;;  %v6971_v34 = vld [vmem:[%s9522_s1 + $0x470] ss:$12 sps:$4 sm:$0xff]  }
  0x8e   : > { %4619 = vmatmul.mubr.bf16.gmra.mrb[36].mxu1 %v7766_v37  ;;  %v6905_v37 = vld [vmem:[%s9522_s1 + $0x230] ss:$12 sps:$4 sm:$0xff]  }
  0x8f   : > { %3954 = vmatmul.mubr.bf16.gmra.mrb[4].mxu0 %v7955_v38  ;;  %4626 = vmatprep.mubr.bf16.mxu1 %v7788_v44  ;;  %v6883_v44 = vld [vmem:[%s9522_s1 + $0x4e0] ss:$12 sps:$4 sm:$0xff]   ;;  %v6955_v36 = vld [vmem:[%s9522_s1 + $0x604] ss:$12 sps:$4 sm:$0xff]  }
  0x90   : > { %4009 = vmatpush1.bf16.msra.mxu0 %v6873_v31  ;;  %6035 = vmatpush3.bf16.msra.mxu1 %v6900_v40  ;;  %v6972_v31 = vld [vmem:[%s9522_s1 + $0x3b0] ss:$12 sps:$4 sm:$0xff]  }
  0x91   : > { %4010 = vmatprep.subr.bf16.mxu0 %v6880_v39  ;;  %6036 = vmatprep.subr.bf16.mxu1 %v6904_v41  ;;  %v8153_v39 = vld [vmem:[%s7582_s5 + $0x18] ss:$72 sps:$4 sm:$0xff]   ;;  %v6960_v40 = vld [vmem:[%s9522_s1 + $0x61c] ss:$12 sps:$4 sm:$0xff]   ;;  %v8162_v41 = vld [vmem:[%s7582_s5 + $0xac] ss:$72 sps:$4 sm:$0xff]  }
  0x92   : > { %3963 = vmatprep.mubr.bf16.mxu0 %v7970_v42 }
  0x94   : > { %4011 = vmatpush1.bf16.msra.mxu0 %v6878_v45  ;;  %6037 = vmatpush3.bf16.msra.mxu1 %v6905_v37  ;;  %v6958_v45 = vld [vmem:[%s9522_s1 + $0x618] ss:$12 sps:$4 sm:$0xff]   ;;  %v8175_v37 = vld [vmem:[%s7582_s5 + $0xa8] ss:$72 sps:$4 sm:$0xff]  }
  0x95   : > { %4012 = vmatprep.subr.bf16.mxu0 %v6885_v46  ;;  %6074 = vmatprep.subr.bf16.mxu1 %v6924_v48  ;;  %v6965_v46 = vld [vmem:[%s9522_s1 + $0x634] ss:$12 sps:$4 sm:$0xff]   ;;  %v6970_v48 = vld [vmem:[%s9522_s1 + $0x64c] ss:$12 sps:$4 sm:$0xff]  }
  0x96   : > { %4627 = vmatmul.mubr.bf16.gmra.mrb[40].mxu1 %v7812_v53  ;;  %v6895_v53 = vld [vmem:[%s9522_s1 + $0x510] ss:$12 sps:$4 sm:$0xff]  }
  0x97   : > { %3964 = vmatmul.mubr.bf16.gmra.mrb[8].mxu0 %v7989_v50  ;;  %4634 = vmatprep.mubr.bf16.mxu1 %v7822_v56  ;;  %v8020_v56 = vld [vmem:[%s7582_s5 + $0x254] ss:$72 sps:$4 sm:$0xff]  }
  0x98   : > { %4013 = vmatpush1.bf16.msra.mxu0 %v6883_v44  ;;  %3973 = vmatprep.mubr.bf16.mxu0 %v7998_v54  ;;  %v6968_v44 = vld [vmem:[%s9522_s1 + $0x648] ss:$12 sps:$4 sm:$0xff]  }
  0x99   : > { %4014 = vmatprep.subr.bf16.mxu0 %v6890_v52  ;;  %v6975_v52 = vld [vmem:[%s9522_s1 + $0x664] ss:$12 sps:$4 sm:$0xff]  }
  0x9c   : > { %4015 = vmatpush1.bf16.msra.mxu0 %v6888_v55  ;;  %v6978_v55 = vld [vmem:[%s9522_s1 + $0x67c] ss:$12 sps:$4 sm:$0xff]  }
  0x9d   : > { %4016 = vmatprep.subr.bf16.mxu0 %v6897_v58  ;;  %v8203_v58 = vld [vmem:[%s7582_s5 + $0x138] ss:$72 sps:$4 sm:$0xff]  }
  0x9e   : > { %4635 = vmatmul.mubr.bf16.gmra.mrb[44].mxu1 %v7844_v62  ;;  %v6908_v62 = vld [vmem:[%s9522_s1 + $0x540] ss:$12 sps:$4 sm:$0xff]  }
  0x9f   : > { %3974 = vmatmul.mubr.bf16.gmra.mrb[12].mxu0 %v8014_v60  ;;  %4675 = vmatprep.mubr.bf16.mxu1 %v7603_v51  ;;  %v6925_v51 = vld [vmem:[%s9522_s1 + $0x308] ss:$12 sps:$4 sm:$0xff]  }
  0xa0   : > { %4017 = vmatpush1.bf16.msra.mxu0 %v6895_v53  ;;  %3983 = vmatprep.mubr.bf16.mxu0 %v8020_v56  ;;  %v6996_v53 = vld [vmem:[%s9522_s1 + $0x560] ss:$12 sps:$4 sm:$0xff]  }
  0xa1   : > { %4018 = vmatprep.subr.bf16.mxu0 %v6903_v61  ;;  %v8212_v61 = vld [vmem:[%s7582_s5 + $0x1cc] ss:$72 sps:$4 sm:$0xff]  }
  0xa4   : > { %4019 = vmatpush1.bf16.msra.mxu0 %v6901_v63  ;;  %v6976_v63 = vld [vmem:[%s9522_s1 + $0x678] ss:$12 sps:$4 sm:$0xff]  }
  0xa5   : > { %4020 = vmatprep.subr.bf16.mxu0 %v6910_v1  ;;  %v6983_v1 = vld [vmem:[%s9522_s1 + $0x694] ss:$12 sps:$4 sm:$0xff]  }
  0xa6   : > { %4676 = vmatmul.mubr.bf16.vlgmr.msra.gmra.mrb[48].mxu1 %v7659_v5  ;;  %v6936_v5 = vld [vmem:[%s9522_s1 + $0x320] ss:$12 sps:$4 sm:$0xff]  }
  0xa7   : > { %3984 = vmatmul.mubr.bf16.gmra.mrb[16].mxu0 %v8036_v4  ;;  %4683 = vmatprep.mubr.bf16.mxu1 %v7677_v11  ;;  %v6917_v11 = vld [vmem:[%s9522_s1 + $0x570] ss:$12 sps:$4 sm:$0xff]  }
  0xa8   : > { %4021 = vmatpush1.bf16.msra.mxu0 %v6908_v62  ;;  %6075 = vmatpush3.bf16.msra.mxu1 %v6925_v51  ;;  %v6981_v62 = vld [vmem:[%s9522_s1 + $0x690] ss:$12 sps:$4 sm:$0xff]  }
  0xa9   : > { %4022 = vmatprep.subr.bf16.mxu0 %v6914_v6  ;;  %6076 = vmatprep.subr.bf16.mxu1 %v6932_v7  ;;  %v6987_v6 = vld [vmem:[%s9522_s1 + $0x6ac] ss:$12 sps:$4 sm:$0xff]   ;;  %v8237_v51 = vld [vmem:[%s7582_s5 + $0x1c8] ss:$72 sps:$4 sm:$0xff]  }
  0xaa   : > { %3993 = vmatprep.mubr.bf16.mxu0 %v8048_v9  ;;  %v7008_v7 = vld [vmem:[%s9522_s1 + $0x4b8] ss:$12 sps:$4 sm:$0xff]  }
  0xac   : > { %4023 = vmatpush1.bf16.msra.mxu0 %v6912_v49  ;;  %6077 = vmatpush3.bf16.msra.mxu1 %v6936_v5  ;;  %v7012_v49 = vld [vmem:[%s9522_s1 + $0x590] ss:$12 sps:$4 sm:$0xff]   ;;  %v6985_v5 = vld [vmem:[%s9522_s1 + $0x6a8] ss:$12 sps:$4 sm:$0xff]  }
  0xad   : > { %4024 = vmatprep.subr.bf16.mxu0 %v6919_v10  ;;  %6078 = vmatprep.subr.bf16.mxu1 %v6942_v12  ;;  %v8246_v10 = vld [vmem:[%s7582_s5 + $0x25c] ss:$72 sps:$4 sm:$0xff]  }
  0xae   : > { %4684 = vmatmul.mubr.bf16.gmra.mrb[52].mxu1 %v7705_v19  ;;  %v6956_v19 = vld [vmem:[%s9522_s1 + $0x428] ss:$12 sps:$4 sm:$0xff]   ;;  %v6994_v12 = vld [vmem:[%s9522_s1 + $0x6c4] ss:$12 sps:$4 sm:$0xff]  }
  0xaf   : > { %3994 = vmatmul.mubr.bf16.gmra.mrb[20].mxu0 %v8067_v13  ;;  %4691 = vmatprep.mubr.bf16.mxu1 %v7717_v23  ;;  %v6928_v23 = vld [vmem:[%s9522_s1 + $0x5a0] ss:$12 sps:$4 sm:$0xff]  }
  0xb0   : > { %4025 = vmatpush1.bf16.msra.mxu0 %v6917_v11  ;;  %6079 = vmatpush3.bf16.msra.mxu1 %v6944_v3  ;;  %v6992_v11 = vld [vmem:[%s9522_s1 + $0x6c0] ss:$12 sps:$4 sm:$0xff]   ;;  %v6999_v3 = vld [vmem:[%s9522_s1 + $0x6dc] ss:$12 sps:$4 sm:$0xff]  }
  0xb1   : > { %4026 = vmatprep.subr.bf16.mxu0 %v6923_v15  ;;  %6080 = vmatprep.subr.bf16.mxu1 %v6948_v8  ;;  %v8268_v15 = vld [vmem:[%s7582_s5 + $0x258] ss:$72 sps:$4 sm:$0xff]   ;;  %v7021_v8 = vld [vmem:[%s9522_s1 + $0x4e8] ss:$12 sps:$4 sm:$0xff]  }
  0xb2   : > { %4036 = vmatprep.mubr.bf16.mxu0 %v8082_v16 }
  0xb4   : > { %4027 = vmatpush1.bf16.msra.mxu0 %v6921_v17  ;;  %6081 = vmatpush3.bf16.msra.mxu1 %v6949_v21  ;;  %v7025_v17 = vld [vmem:[%s9522_s1 + $0x5c0] ss:$12 sps:$4 sm:$0xff]   ;;  %v6997_v21 = vld [vmem:[%s9522_s1 + $0x6d8] ss:$12 sps:$4 sm:$0xff]  }
  0xb5   : > { %4028 = vmatprep.subr.bf16.mxu0 %v6930_v18  ;;  %6082 = vmatprep.subr.bf16.mxu1 %v6956_v19  ;;  %v8280_v18 = vld [vmem:[%s7582_s5 + $0x2ec] ss:$72 sps:$4 sm:$0xff]  }
  0xb6   : > { %4692 = vmatmul.mubr.bf16.gmra.mrb[56].mxu1 %v7748_v32  ;;  %v6966_v32 = vld [vmem:[%s9522_s1 + $0x458] ss:$12 sps:$4 sm:$0xff]   ;;  %v7005_v19 = vld [vmem:[%s9522_s1 + $0x6f4] ss:$12 sps:$4 sm:$0xff]  }
  0xb7   : > { %4699 = vmatprep.mubr.bf16.mxu1 %v7757_v35  ;;  %v6939_v35 = vld [vmem:[%s9522_s1 + $0x5d0] ss:$12 sps:$4 sm:$0xff]  }
  0xb8   : > { %4029 = vmatpush1.bf16.msra.mxu0 %v6928_v23  ;;  %6083 = vmatpush3.bf16.msra.mxu1 %v6957_v24  ;;  %v7003_v23 = vld [vmem:[%s9522_s1 + $0x6f0] ss:$12 sps:$4 sm:$0xff]   ;;  %v7011_v24 = vld [vmem:[%s9522_s1 + $0x70c] ss:$12 sps:$4 sm:$0xff]  }
  0xb9   : > { %4030 = vmatprep.subr.bf16.mxu0 %v6935_v22  ;;  %6084 = vmatprep.subr.bf16.mxu1 %v6961_v14  ;;  %v8302_v22 = vld [vmem:[%s7582_s5 + $0x2e8] ss:$72 sps:$4 sm:$0xff]   ;;  %v7034_v14 = vld [vmem:[%s9522_s1 + $0x518] ss:$12 sps:$4 sm:$0xff]  }
  0xbc   : > { %4031 = vmatpush1.bf16.msra.mxu0 %v6933_v20  ;;  %6085 = vmatpush3.bf16.msra.mxu1 %v6962_v28  ;;  %v7038_v20 = vld [vmem:[%s9522_s1 + $0x5f0] ss:$12 sps:$4 sm:$0xff]   ;;  %v7009_v28 = vld [vmem:[%s9522_s1 + $0x708] ss:$12 sps:$4 sm:$0xff]  }
  0xbd   : > { %4032 = vmatprep.subr.bf16.mxu0 %v6941_v27  ;;  %6086 = vmatprep.subr.bf16.mxu1 %v6966_v32  ;;  %v8314_v27 = vld [vmem:[%s7582_s5 + $0x24] ss:$72 sps:$4 sm:$0xff]  }
  0xbe   : > { %4700 = vmatmul.mubr.bf16.gmra.mrb[60].mxu1 %v7785_v43  ;;  %v6988_v43 = vld [vmem:[%s9522_s1 + $0x548] ss:$12 sps:$4 sm:$0xff]   ;;  %v7018_v32 = vld [vmem:[%s9522_s1 + $0x724] ss:$12 sps:$4 sm:$0xff]  }
  0xbf   : > { %4707 = vmatprep.mubr.bf16.mxu1 %v7797_v47  ;;  %v6953_v47 = vld [vmem:[%s9522_s1 + $0x600] ss:$12 sps:$4 sm:$0xff]  }
  0xc0   : > { %4033 = vmatpush1.bf16.msra.mxu0 %v6939_v35  ;;  %6087 = vmatpush3.bf16.msra.mxu1 %v6967_v33  ;;  %v7039_v35 = vld [vmem:[%s9522_s1 + $0x530] ss:$12 sps:$4 sm:$0xff]   ;;  %v7022_v33 = vld [vmem:[%s9522_s1 + $0x738] ss:$12 sps:$4 sm:$0xff]  }
  0xc1   : > { %4034 = vmatprep.subr.bf16.mxu0 %v6947_v29  ;;  %6088 = vmatprep.subr.bf16.mxu1 %v6971_v34  ;;  %v7024_v29 = vld [vmem:[%s9522_s1 + $0x73c] ss:$12 sps:$4 sm:$0xff]   ;;  %v7031_v34 = vld [vmem:[%s9522_s1 + $0x754] ss:$12 sps:$4 sm:$0xff]  }
  0xc4   : > { %4035 = vmatpush1.bf16.msra.mxu0 %v6945_v26  ;;  %6089 = vmatpush3.bf16.msra.mxu1 %v6972_v31  ;;  %v7029_v26 = vld [vmem:[%s9522_s1 + $0x750] ss:$12 sps:$4 sm:$0xff]   ;;  %v8361_v31 = vld [vmem:[%s7582_s5 + $0x20] ss:$72 sps:$4 sm:$0xff]  }
  0xc5   : > { %4097 = vmatprep.subr.bf16.mxu0 %v6955_v36  ;;  %6126 = vmatprep.subr.bf16.mxu1 %v6988_v43  ;;  %v7045_v36 = vld [vmem:[%s9522_s1 + $0x784] ss:$12 sps:$4 sm:$0xff]   ;;  %v7043_v43 = vld [vmem:[%s9522_s1 + $0x780] ss:$12 sps:$4 sm:$0xff]  }
  0xc6   : > { %4708 = vmatmul.mubr.bf16.gmra.mrb[64].mxu1 %v7825_v57  ;;  %v6963_v57 = vld [vmem:[%s9522_s1 + $0x630] ss:$12 sps:$4 sm:$0xff]  }
  0xc7   : > { %4037 = vmatmul.mubr.bf16.vlgmr.msra.gmra.mrb[0].mxu0 %v8153_v39  ;;  %4715 = vmatprep.mubr.bf16.mxu1 %v7831_v59  ;;  %v8184_v59 = vld [vmem:[%s7582_s5 + $0x13c] ss:$72 sps:$4 sm:$0xff]  }
  0xc8   : > { %4098 = vmatpush1.bf16.msra.mxu0 %v6953_v47  ;;  %4046 = vmatprep.mubr.bf16.mxu0 %v8162_v41  ;;  %v7060_v47 = vld [vmem:[%s9522_s1 + $0x6e0] ss:$12 sps:$4 sm:$0xff]  }
  0xc9   : > { %4099 = vmatprep.subr.bf16.mxu0 %v6960_v40  ;;  %v8376_v40 = vld [vmem:[%s7582_s5 + $0xb4] ss:$72 sps:$4 sm:$0xff]  }
  0xcc   : > { %4100 = vmatpush1.bf16.msra.mxu0 %v6958_v45  ;;  %v7046_v45 = vld [vmem:[%s9522_s1 + $0x798] ss:$12 sps:$4 sm:$0xff]  }
  0xcd   : > { %4101 = vmatprep.subr.bf16.mxu0 %v6965_v46  ;;  %v7051_v46 = vld [vmem:[%s9522_s1 + $0x7b4] ss:$12 sps:$4 sm:$0xff]  }
  0xce   : > { %4716 = vmatmul.mubr.bf16.gmra.mrb[68].mxu1 %v7850_v0  ;;  %v6973_v0 = vld [vmem:[%s9522_s1 + $0x660] ss:$12 sps:$4 sm:$0xff]  }
  0xcf   : > { %4047 = vmatmul.mubr.bf16.gmra.mrb[4].mxu0 %v8175_v37  ;;  %4756 = vmatprep.mubr.bf16.mxu1 %v7856_v2  ;;  %v6989_v2 = vld [vmem:[%s9522_s1 + $0x488] ss:$12 sps:$4 sm:$0xff]  }
  0xd0   : > { %4102 = vmatpush1.bf16.msra.mxu0 %v6963_v57  ;;  %4056 = vmatprep.mubr.bf16.mxu0 %v8184_v59  ;;  %v7049_v57 = vld [vmem:[%s9522_s1 + $0x7b0] ss:$12 sps:$4 sm:$0xff]  }
  0xd1   : > { %4103 = vmatprep.subr.bf16.mxu0 %v6970_v48  ;;  %v7054_v48 = vld [vmem:[%s9522_s1 + $0x7cc] ss:$12 sps:$4 sm:$0xff]  }
  0xd4   : > { %4104 = vmatpush1.bf16.msra.mxu0 %v6968_v44  ;;  %v8401_v44 = vld [vmem:[%s7582_s5 + $0xb0] ss:$72 sps:$4 sm:$0xff]  }
  0xd5   : > { %4105 = vmatprep.subr.bf16.mxu0 %v6975_v52  ;;  %v7072_v52 = vld [vmem:[%s9522_s1 + $0x638] ss:$12 sps:$4 sm:$0xff]  }
  0xd6   : > { %4757 = vmatmul.mubr.bf16.vlgmr.msra.gmra.mrb[72].mxu1 %v7921_v25  ;;  %v7000_v25 = vld [vmem:[%s9522_s1 + $0x4a0] ss:$12 sps:$4 sm:$0xff]  }
  0xd7   : > { %4057 = vmatmul.mubr.bf16.gmra.mrb[8].mxu0 %v8203_v58  ;;  %4764 = vmatprep.mubr.bf16.mxu1 %v7936_v30  ;;  %v7006_v30 = vld [vmem:[%s9522_s1 + $0x578] ss:$12 sps:$4 sm:$0xff]  }
  0xd8   : > { %4106 = vmatpush1.bf16.msra.mxu0 %v6973_v0  ;;  %6127 = vmatpush3.bf16.msra.mxu1 %v6989_v2  ;;  %v7076_v0 = vld [vmem:[%s9522_s1 + $0x710] ss:$12 sps:$4 sm:$0xff]   ;;  %v7052_v2 = vld [vmem:[%s9522_s1 + $0x7c8] ss:$12 sps:$4 sm:$0xff]  }
  0xd9   : > { %4107 = vmatprep.subr.bf16.mxu0 %v6978_v55  ;;  %6128 = vmatprep.subr.bf16.mxu1 %v6996_v53  ;;  %v8410_v55 = vld [vmem:[%s7582_s5 + $0x144] ss:$72 sps:$4 sm:$0xff]  }
  0xda   : > { %4066 = vmatprep.mubr.bf16.mxu0 %v8212_v61  ;;  %v7059_v53 = vld [vmem:[%s9522_s1 + $0x7e4] ss:$12 sps:$4 sm:$0xff]  }
  0xdc   : > { %4108 = vmatpush1.bf16.msra.mxu0 %v6976_v63  ;;  %6129 = vmatpush3.bf16.msra.mxu1 %v7000_v25  ;;  %v7057_v63 = vld [vmem:[%s9522_s1 + $0x7e0] ss:$12 sps:$4 sm:$0xff]  }
  0xdd   : > { %4109 = vmatprep.subr.bf16.mxu0 %v6983_v1  ;;  %6130 = vmatprep.subr.bf16.mxu1 %v7006_v30  ;;  %v7063_v1 = vld [vmem:[%s9522_s1 + $0x7fc] ss:$12 sps:$4 sm:$0xff]   ;;  %v7089_v30 = vld [vmem:[%s9522_s1 + $0x740] ss:$12 sps:$4 sm:$0xff]  }
  0xde   : > { %4765 = vmatmul.mubr.bf16.gmra.mrb[76].mxu1 %v7955_v38  ;;  %v7013_v38 = vld [vmem:[%s9522_s1 + $0x4d0] ss:$12 sps:$4 sm:$0xff]   ;;  %v8435_v25 = vld [vmem:[%s7582_s5 + $0x140] ss:$72 sps:$4 sm:$0xff]  }
  0xdf   : > { %4067 = vmatmul.mubr.bf16.gmra.mrb[12].mxu0 %v8237_v51  ;;  %4772 = vmatprep.mubr.bf16.mxu1 %v7970_v42  ;;  %v7019_v42 = vld [vmem:[%s9522_s1 + $0x5a8] ss:$12 sps:$4 sm:$0xff]  }
  0xe0   : > { %4110 = vmatpush1.bf16.msra.mxu0 %v6981_v62  ;;  %6131 = vmatpush3.bf16.msra.mxu1 %v7008_v7  ;;  %v7085_v62 = vld [vmem:[%s9522_s1 + $0x668] ss:$12 sps:$4 sm:$0xff]   ;;  %v7061_v7 = vld [vmem:[%s9522_s1 + $0x7f8] ss:$12 sps:$4 sm:$0xff]  }
  0xe1   : > { %4111 = vmatprep.subr.bf16.mxu0 %v6987_v6  ;;  %6132 = vmatprep.subr.bf16.mxu1 %v7012_v49  ;;  %v8444_v6 = vld [vmem:[%s7582_s5 + $0x1d4] ss:$72 sps:$4 sm:$0xff]  }
  0xe2   : > { %4076 = vmatprep.mubr.bf16.mxu0 %v8246_v10  ;;  %v7069_v49 = vld [vmem:[%s9522_s1 + $0x814] ss:$12 sps:$4 sm:$0xff]  }
  0xe4   : > { %4112 = vmatpush1.bf16.msra.mxu0 %v6985_v5  ;;  %6133 = vmatpush3.bf16.msra.mxu1 %v7013_v38  ;;  %v7090_v5 = vld [vmem:[%s9522_s1 + $0x680] ss:$12 sps:$4 sm:$0xff]  }
  0xe5   : > { %4113 = vmatprep.subr.bf16.mxu0 %v6994_v12  ;;  %6134 = vmatprep.subr.bf16.mxu1 %v7019_v42  ;;  %v7067_v12 = vld [vmem:[%s9522_s1 + $0x810] ss:$12 sps:$4 sm:$0xff]   ;;  %v7075_v42 = vld [vmem:[%s9522_s1 + $0x82c] ss:$12 sps:$4 sm:$0xff]  }
  0xe6   : > { %4773 = vmatmul.mubr.bf16.gmra.mrb[80].mxu1 %v7989_v50  ;;  %v7026_v50 = vld [vmem:[%s9522_s1 + $0x500] ss:$12 sps:$4 sm:$0xff]  }
  0xe7   : > { %4077 = vmatmul.mubr.bf16.gmra.mrb[16].mxu0 %v8268_v15  ;;  %4780 = vmatprep.mubr.bf16.mxu1 %v7998_v54  ;;  %v7032_v54 = vld [vmem:[%s9522_s1 + $0x5d8] ss:$12 sps:$4 sm:$0xff]  }
  0xe8   : > { %4114 = vmatpush1.bf16.msra.mxu0 %v6992_v11  ;;  %6135 = vmatpush3.bf16.msra.mxu1 %v7021_v8  ;;  %v8470_v11 = vld [vmem:[%s7582_s5 + $0x1d0] ss:$72 sps:$4 sm:$0xff]  }
  0xe9   : > { %4115 = vmatprep.subr.bf16.mxu0 %v6999_v3  ;;  %6136 = vmatprep.subr.bf16.mxu1 %v7025_v17  ;;  %v7098_v17 = vld [vmem:[%s9522_s1 + $0x698] ss:$12 sps:$4 sm:$0xff]  }
  0xea   : > { %4086 = vmatprep.mubr.bf16.mxu0 %v8280_v18 }
  0xec   : > { %4116 = vmatpush1.bf16.msra.mxu0 %v6997_v21  ;;  %6137 = vmatpush3.bf16.msra.mxu1 %v7026_v50  ;;  %v7102_v21 = vld [vmem:[%s9522_s1 + $0x770] ss:$12 sps:$4 sm:$0xff]   ;;  %v7073_v50 = vld [vmem:[%s9522_s1 + $0x828] ss:$12 sps:$4 sm:$0xff]  }
  0xed   : > { %4117 = vmatprep.subr.bf16.mxu0 %v7005_v19  ;;  %6138 = vmatprep.subr.bf16.mxu1 %v7032_v54  ;;  %v8486_v19 = vld [vmem:[%s7582_s5 + $0x264] ss:$72 sps:$4 sm:$0xff]   ;;  %v8501_v54 = vld [vmem:[%s7582_s5 + $0x260] ss:$72 sps:$4 sm:$0xff]  }
  0xee   : > { %4781 = vmatmul.mubr.bf16.gmra.mrb[84].mxu1 %v8014_v60  ;;  %v7055_v60 = vld [vmem:[%s9522_s1 + $0x6c8] ss:$12 sps:$4 sm:$0xff]  }
  0xef   : > { %4087 = vmatmul.mubr.bf16.gmra.mrb[20].mxu0 %v8302_v22  ;;  %4788 = vmatprep.mubr.bf16.mxu1 %v8020_v56  ;;  %v7016_v56 = vld [vmem:[%s9522_s1 + $0x720] ss:$12 sps:$4 sm:$0xff]  }
  0xf0   : > { %4118 = vmatpush1.bf16.msra.mxu0 %v7003_v23  ;;  %6139 = vmatpush3.bf16.msra.mxu1 %v7034_v14  ;;  %v7082_v23 = vld [vmem:[%s9522_s1 + $0x844] ss:$12 sps:$4 sm:$0xff]  }
  0xf1   : > { %4119 = vmatprep.subr.bf16.mxu0 %v7011_v24  ;;  %6140 = vmatprep.subr.bf16.mxu1 %v7038_v20  ;;  %v7080_v20 = vld [vmem:[%s9522_s1 + $0x840] ss:$12 sps:$4 sm:$0xff]  }
  0xf2   : > { %4129 = vmatprep.mubr.bf16.mxu0 %v8314_v27 }
  0xf4   : > { %4120 = vmatpush1.bf16.msra.mxu0 %v7009_v28  ;;  %6141 = vmatpush3.bf16.msra.mxu1 %v7039_v35 }
  0xf5   : > { %4121 = vmatprep.subr.bf16.mxu0 %v7018_v32  ;;  %6178 = vmatprep.subr.bf16.mxu1 %v7055_v60  ;;  %v7088_v32 = vld [vmem:[%s9522_s1 + $0x85c] ss:$12 sps:$4 sm:$0xff]  }
  0xf6   : > { %4789 = vmatmul.mubr.bf16.gmra.mrb[88].mxu1 %v8036_v4  ;;  %v7037_v4 = vld [vmem:[%s9522_s1 + $0x76c] ss:$12 sps:$4 sm:$0xff]   ;;  %v8522_v60 = vld [vmem:[%s7582_s5 + $0x2f4] ss:$72 sps:$4 sm:$0xff]  }
  0xf7   : > { %4796 = vmatprep.mubr.bf16.mxu1 %v8048_v9  ;;  %v7035_v9 = vld [vmem:[%s9522_s1 + $0x768] ss:$12 sps:$4 sm:$0xff]  }
  0xf8   : > { %4122 = vmatpush1.bf16.msra.mxu0 %v7016_v56  ;;  %v7086_v56 = vld [vmem:[%s9522_s1 + $0x858] ss:$12 sps:$4 sm:$0xff]  }
  0xf9   : > { %4123 = vmatprep.subr.bf16.mxu0 %v7024_v29  ;;  %v7095_v29 = vld [vmem:[%s9522_s1 + $0x874] ss:$12 sps:$4 sm:$0xff]  }
  0xfc   : > { %4124 = vmatpush1.bf16.msra.mxu0 %v7022_v33 }
  0xfd   : > { %4125 = vmatprep.subr.bf16.mxu0 %v7031_v34 }
  0xfe   : > { %4797 = vmatmul.mubr.bf16.gmra.mrb[92].mxu1 %v8067_v13  ;;  %v7048_v13 = vld [vmem:[%s9522_s1 + $0x79c] ss:$12 sps:$4 sm:$0xff]  }
  0xff   : > { %4837 = vmatprep.mubr.bf16.mxu1 %v8082_v16  ;;  %v7056_v16 = vld [vmem:[%s9522_s1 + $0x608] ss:$12 sps:$4 sm:$0xff]  }
 0x100   : > { %4126 = vmatpush1.bf16.msra.mxu0 %v7029_v26  ;;  %v8542_v26 = vld [vmem:[%s7582_s5 + $0x2f0] ss:$72 sps:$4 sm:$0xff]  }
 0x101   : > { %4127 = vmatprep.subr.bf16.mxu0 %v7037_v4 }
 0x104   : > { %4128 = vmatpush1.bf16.msra.mxu0 %v7035_v9 }
 0x105   : > { %4190 = vmatprep.subr.bf16.mxu0 %v7045_v36  ;;  %v8552_v36 = vld [vmem:[%s7582_s5 + $0x2c] ss:$72 sps:$4 sm:$0xff]  }
 0x106   : > { %4838 = vmatmul.mubr.bf16.vlgmr.msra.gmra.mrb[96].mxu1 %v8153_v39  ;;  %v7064_v39 = vld [vmem:[%s9522_s1 + $0x620] ss:$12 sps:$4 sm:$0xff]  }
 0x107   : > { %4130 = vmatmul.mubr.bf16.vlgmr.msra.gmra.mrb[0].mxu0 %v8361_v31  ;;  %4845 = vmatprep.mubr.bf16.mxu1 %v8162_v41  ;;  %v7070_v41 = vld [vmem:[%s9522_s1 + $0x6f8] ss:$12 sps:$4 sm:$0xff]  }
 0x108   : > { %4191 = vmatpush1.bf16.msra.mxu0 %v7043_v43  ;;  %6179 = vmatpush3.bf16.msra.mxu1 %v7056_v16  ;;  %v7099_v43 = vld [vmem:[%s9522_s1 + $0x888] ss:$12 sps:$4 sm:$0xff]  }
 0x109   : > { %4192 = vmatprep.subr.bf16.mxu0 %v7048_v13  ;;  %6180 = vmatprep.subr.bf16.mxu1 %v7060_v47  ;;  %v7108_v13 = vld [vmem:[%s9522_s1 + $0x8a4] ss:$12 sps:$4 sm:$0xff]  }
 0x10a   : > { %4139 = vmatprep.mubr.bf16.mxu0 %v8376_v40 }
 0x10c   : > { %4193 = vmatpush1.bf16.msra.mxu0 %v7046_v45  ;;  %6181 = vmatpush3.bf16.msra.mxu1 %v7064_v39  ;;  %v7123_v39 = vld [vmem:[%s9522_s1 + $0x788] ss:$12 sps:$4 sm:$0xff]  }
 0x10d   : > { %4194 = vmatprep.subr.bf16.mxu0 %v7051_v46  ;;  %6182 = vmatprep.subr.bf16.mxu1 %v7070_v41  ;;  %v7110_v41 = vld [vmem:[%s9522_s1 + $0x8b8] ss:$12 sps:$4 sm:$0xff]  }
 0x10e   : > { %4846 = vmatmul.mubr.bf16.gmra.mrb[100].mxu1 %v8175_v37  ;;  %v7077_v37 = vld [vmem:[%s9522_s1 + $0x650] ss:$12 sps:$4 sm:$0xff]  }
 0x10f   : > { %4140 = vmatmul.mubr.bf16.gmra.mrb[4].mxu0 %v8401_v44  ;;  %4853 = vmatprep.mubr.bf16.mxu1 %v8184_v59  ;;  %v7083_v59 = vld [vmem:[%s9522_s1 + $0x728] ss:$12 sps:$4 sm:$0xff]  }
 0x110   : > { %4195 = vmatpush1.bf16.msra.mxu0 %v7049_v57  ;;  %6183 = vmatpush3.bf16.msra.mxu1 %v7072_v52  ;;  %v7130_v57 = vld [vmem:[%s9522_s1 + $0x860] ss:$12 sps:$4 sm:$0xff]  }
 0x111   : > { %4196 = vmatprep.subr.bf16.mxu0 %v7054_v48  ;;  %6184 = vmatprep.subr.bf16.mxu1 %v7076_v0  ;;  %v7117_v48 = vld [vmem:[%s9522_s1 + $0x8d4] ss:$12 sps:$4 sm:$0xff]  }
 0x112   : > { %4149 = vmatprep.mubr.bf16.mxu0 %v8410_v55  ;;  %v7134_v52 = vld [vmem:[%s9522_s1 + $0x7a0] ss:$12 sps:$4 sm:$0xff]  }
 0x114   : > { %4197 = vmatpush1.bf16.msra.mxu0 %v7052_v2  ;;  %6185 = vmatpush3.bf16.msra.mxu1 %v7077_v37 }
 0x115   : > { %4198 = vmatprep.subr.bf16.mxu0 %v7059_v53  ;;  %6186 = vmatprep.subr.bf16.mxu1 %v7083_v59  ;;  %v7121_v53 = vld [vmem:[%s9522_s1 + $0x8ec] ss:$12 sps:$4 sm:$0xff]  }
 0x116   : > { %4854 = vmatmul.mubr.bf16.gmra.mrb[104].mxu1 %v8203_v58  ;;  %v7139_v59 = vld [vmem:[%s9522_s1 + $0x7b8] ss:$12 sps:$4 sm:$0xff]  }
 0x117   : > { %4150 = vmatmul.mubr.bf16.gmra.mrb[8].mxu0 %v8435_v25  ;;  %4861 = vmatprep.mubr.bf16.mxu1 %v8212_v61  ;;  %v7096_v61 = vld [vmem:[%s9522_s1 + $0x758] ss:$12 sps:$4 sm:$0xff]  }
 0x118   : > { %4199 = vmatpush1.bf16.msra.mxu0 %v7057_v63  ;;  %6187 = vmatpush3.bf16.msra.mxu1 %v7085_v62  ;;  %v7119_v62 = vld [vmem:[%s9522_s1 + $0x8e8] ss:$12 sps:$4 sm:$0xff]  }
 0x119   : > { %4200 = vmatprep.subr.bf16.mxu0 %v7063_v1  ;;  %v8458_v58 = vpop.f32.mrb[0].mxu1  ;;  %6188 = vmatprep.subr.bf16.mxu1 %v7089_v30  ;;  %v7143_v1 = vld [vmem:[%s9522_s1 + $0x890] ss:$12 sps:$4 sm:$0xff]  }
 0x11a   : > { %4159 = vmatprep.mubr.bf16.mxu0 %v8444_v6  ;;  %v8467_v38 = vpop.f32.mrb[1].mxu1  ;;  %v7129_v30 = vld [vmem:[%s9522_s1 + $0x904] ss:$12 sps:$4 sm:$0xff]  }
 0x11b   : > { %v8475_v3 = vpop.f32.mrb[2].mxu1 }
 0x11c   : > { %4201 = vmatpush1.bf16.msra.mxu0 %v7061_v7  ;;  %v8477_v8 = vpop.f32.mrb[3].mxu1  ;;  %6189 = vmatpush3.bf16.msra.mxu1 %v7090_v5  ;;  %v7144_v7 = vld [vmem:[%s9522_s1 + $0x7d0] ss:$12 sps:$4 sm:$0xff]  }
 0x11d   : > { %4202 = vmatprep.subr.bf16.mxu0 %v7069_v49  ;;  %6190 = vmatprep.subr.bf16.mxu1 %v7096_v61  ;;  %v8635_v5 = vld [vmem:[%s7582_s5 + $0x28] ss:$72 sps:$4 sm:$0xff]   ;;  %v7127_v61 = vld [vmem:[%s9522_s1 + $0x900] ss:$12 sps:$4 sm:$0xff]  }
 0x11e   : > { %4862 = vmatmul.mubr.bf16.gmra.mrb[108].mxu1 %v8237_v51  ;;  %v7103_v51 = vld [vmem:[%s9522_s1 + $0x6b0] ss:$12 sps:$4 sm:$0xff]  }
 0x11f   : > { %4160 = vmatmul.mubr.bf16.gmra.mrb[12].mxu0 %v8470_v11  ;;  %4869 = vmatprep.mubr.bf16.mxu1 %v8246_v10  ;;  %v7122_v10 = vld [vmem:[%s9522_s1 + $0x848] ss:$12 sps:$4 sm:$0xff]  }
 0x120   : > { %4203 = vmatpush1.bf16.msra.mxu0 %v7067_v12  ;;  %6191 = vmatpush3.bf16.msra.mxu1 %v7098_v17 }
 0x121   : > { %4204 = vmatprep.subr.bf16.mxu0 %v7075_v42  ;;  %v8503_v24 = vpop.f32.mrb[4].mxu1  ;;  %6192 = vmatprep.subr.bf16.mxu1 %v7102_v21  ;;  %v7133_v42 = vld [vmem:[%s9522_s1 + $0x91c] ss:$12 sps:$4 sm:$0xff]  }
 0x122   : > { %4169 = vmatprep.mubr.bf16.mxu0 %v8486_v19  ;;  %v8509_v14 = vpop.f32.mrb[5].mxu1  ;;  %v7149_v21 = vld [vmem:[%s9522_s1 + $0x7e8] ss:$12 sps:$4 sm:$0xff]  }
 0x123   : > { %v8514_v28 = vpop.f32.mrb[6].mxu1 }
 0x124   : > { %4205 = vmatpush1.bf16.msra.mxu0 %v7073_v50  ;;  %v8519_v35 = vpop.f32.mrb[7].mxu1  ;;  %6193 = vmatpush3.bf16.msra.mxu1 %v7103_v51  ;;  %v7153_v50 = vld [vmem:[%s9522_s1 + $0x8c0] ss:$12 sps:$4 sm:$0xff]   ;;  %v7131_v51 = vld [vmem:[%s9522_s1 + $0x918] ss:$12 sps:$4 sm:$0xff]  }
 0x125   : > { %4206 = vmatprep.subr.bf16.mxu0 %v7082_v23  ;;  %6230 = vmatprep.subr.bf16.mxu1 %v7122_v10  ;;  %v8656_v23 = vld [vmem:[%s7582_s5 + $0xbc] ss:$72 sps:$4 sm:$0xff]   ;;  %v7137_v10 = vld [vmem:[%s9522_s1 + $0x934] ss:$12 sps:$4 sm:$0xff]  }
 0x126   : > { %4870 = vmatmul.mubr.bf16.gmra.mrb[112].mxu1 %v8268_v15  ;;  %v7093_v15 = vld [vmem:[%s9522_s1 + $0x870] ss:$12 sps:$4 sm:$0xff]  }
 0x127   : > { %4170 = vmatmul.mubr.bf16.gmra.mrb[16].mxu0 %v8501_v54  ;;  %4877 = vmatprep.mubr.bf16.mxu1 %v8280_v18  ;;  %v7101_v18 = vld [vmem:[%s9522_s1 + $0x88c] ss:$12 sps:$4 sm:$0xff]  }
 0x128   : > { %4207 = vmatpush1.bf16.msra.mxu0 %v7080_v20  ;;  %4179 = vmatprep.mubr.bf16.mxu0 %v8522_v60  ;;  %v7135_v20 = vld [vmem:[%s9522_s1 + $0x930] ss:$12 sps:$4 sm:$0xff]  }
 0x129   : > { %4208 = vmatprep.subr.bf16.mxu0 %v7088_v32  ;;  %v8534_v33 = vpop.f32.mrb[8].mxu1 }
 0x12a   : > { %v8539_v34 = vpop.f32.mrb[9].mxu1 }
 0x12b   : > { %v8544_v4 = vpop.f32.mrb[10].mxu1 }
 0x12c   : > { %4209 = vmatpush1.bf16.msra.mxu0 %v7086_v56  ;;  %v8549_v9 = vpop.f32.mrb[11].mxu1  ;;  %v7142_v56 = vld [vmem:[%s9522_s1 + $0x94c] ss:$12 sps:$4 sm:$0xff]  }
 0x12d   : > { %4210 = vmatprep.subr.bf16.mxu0 %v7095_v29 }
 0x12e   : > { %4878 = vmatmul.mubr.bf16.gmra.mrb[116].mxu1 %v8302_v22  ;;  %v7106_v22 = vld [vmem:[%s9522_s1 + $0x8a0] ss:$12 sps:$4 sm:$0xff]  }
 0x12f   : > { %4180 = vmatmul.mubr.bf16.gmra.mrb[20].mxu0 %v8542_v26  ;;  %4918 = vmatprep.mubr.bf16.mxu1 %v8314_v27  ;;  %v7112_v27 = vld [vmem:[%s9522_s1 + $0x8bc] ss:$12 sps:$4 sm:$0xff]  }
 0x130   : > { %4211 = vmatpush1.bf16.msra.mxu0 %v7093_v15  ;;  %4222 = vmatprep.mubr.bf16.mxu0 %v8552_v36  ;;  %v8681_v15 = vld [vmem:[%s7582_s5 + $0xb8] ss:$72 sps:$4 sm:$0xff]  }
 0x131   : > { %4212 = vmatprep.subr.bf16.mxu0 %v7101_v18  ;;  %v8564_v16 = vpop.f32.mrb[12].mxu1 }
 0x132   : > { %v8569_v47 = vpop.f32.mrb[13].mxu1 }
 0x133   : > { %v8574_v45 = vpop.f32.mrb[14].mxu1 }
 0x134   : > { %4213 = vmatpush1.bf16.msra.mxu0 %v7099_v43  ;;  %v8576_v46 = vpop.f32.mrb[15].mxu1 }
 0x135   : > { %4214 = vmatprep.subr.bf16.mxu0 %v7108_v13 }
 0x136   : > { %4919 = vmatmul.mubr.bf16.vlgmr.msra.gmra.mrb[120].mxu1 %v8361_v31  ;;  %v7115_v31 = vld [vmem:[%s9522_s1 + $0x8d0] ss:$12 sps:$4 sm:$0xff]  }
 0x137   : > { %4926 = vmatprep.mubr.bf16.mxu1 %v8376_v40  ;;  %6231 = vmatpush3.bf16.msra.mxu1 %v7123_v39  ;;  %v7138_v40 = vld [vmem:[%s9522_s1 + $0x878] ss:$12 sps:$4 sm:$0xff]  }
 0x138   : > { %4215 = vmatpush1.bf16.msra.mxu0 %v7106_v22  ;;  %6232 = vmatprep.subr.bf16.mxu1 %v7130_v57  ;;  %v7162_v22 = vld [vmem:[%s9522_s1 + $0x818] ss:$12 sps:$4 sm:$0xff]   ;;  %v8694_v57 = vld [vmem:[%s7582_s5 + $0x14c] ss:$72 sps:$4 sm:$0xff]  }
 0x139   : > { %4216 = vmatprep.subr.bf16.mxu0 %v7112_v27  ;;  %v8598_v0 = vpop.f32.mrb[16].mxu1  ;;  %v7166_v27 = vld [vmem:[%s9522_s1 + $0x8f0] ss:$12 sps:$4 sm:$0xff]  }
 0x13a   : > { %v8603_v2 = vpop.f32.mrb[17].mxu1 }
 0x13b   : > { %v8608_v37 = vpop.f32.mrb[18].mxu1  ;;  %6233 = vmatpush3.bf16.msra.mxu1 %v7134_v52  ;;  %v8709_v52 = vld [vmem:[%s7582_s5 + $0x148] ss:$72 sps:$4 sm:$0xff]  }
 0x13c   : > { %4217 = vmatpush1.bf16.msra.mxu0 %v7110_v41  ;;  %v8610_v63 = vpop.f32.mrb[19].mxu1  ;;  %6234 = vmatprep.subr.bf16.mxu1 %v7138_v40  ;;  %v7140_v41 = vld [vmem:[%s9522_s1 + $0x948] ss:$12 sps:$4 sm:$0xff]  }
 0x13d   : > { %4218 = vmatprep.subr.bf16.mxu0 %v7117_v48  ;;  %v7147_v48 = vld [vmem:[%s9522_s1 + $0x964] ss:$12 sps:$4 sm:$0xff]  }
 0x13e   : > { %4927 = vmatmul.mubr.bf16.gmra.mrb[124].mxu1 %v8401_v44  ;;  %v7148_v44 = vld [vmem:[%s9522_s1 + $0x8a8] ss:$12 sps:$4 sm:$0xff]  }
 0x13f   : > { %4934 = vmatprep.mubr.bf16.mxu1 %v8410_v55  ;;  %6235 = vmatpush3.bf16.msra.mxu1 %v7139_v59  ;;  %v7152_v59 = vld [vmem:[%s9522_s1 + $0x97c] ss:$12 sps:$4 sm:$0xff]  }
 0x140   : > { %4219 = vmatpush1.bf16.msra.mxu0 %v7115_v31  ;;  %6236 = vmatprep.subr.bf16.mxu1 %v7143_v1 }
 0x141   : > { %4220 = vmatprep.subr.bf16.mxu0 %v7121_v53  ;;  %v8629_v49 = vpop.f32.mrb[20].mxu1  ;;  %v7145_v53 = vld [vmem:[%s9522_s1 + $0x960] ss:$12 sps:$4 sm:$0xff]  }
 0x142   : > { %v8637_v55 = vpop.f32.mrb[21].mxu1 }
 0x143   : > { %v8642_v12 = vpop.f32.mrb[22].mxu1  ;;  %6237 = vmatpush3.bf16.msra.mxu1 %v7144_v7  ;;  %v8724_v7 = vld [vmem:[%s7582_s5 + $0x1dc] ss:$72 sps:$4 sm:$0xff]  }
 0x144   : > { %4221 = vmatpush1.bf16.msra.mxu0 %v7119_v62  ;;  %v8647_v17 = vpop.f32.mrb[23].mxu1  ;;  %6238 = vmatprep.subr.bf16.mxu1 %v7148_v44 }
 0x145   : > { %4283 = vmatprep.subr.bf16.mxu0 %v7129_v30 }
 0x146   : > { %4935 = vmatmul.mubr.bf16.gmra.mrb[128].mxu1 %v8435_v25  ;;  %v7154_v25 = vld [vmem:[%s9522_s1 + $0x800] ss:$12 sps:$4 sm:$0xff]  }
 0x147   : > { %4223 = vmatmul.mubr.bf16.vlgmr.msra.gmra.mrb[0].mxu0 %v8635_v5  ;;  %4942 = vmatprep.mubr.bf16.mxu1 %v8444_v6  ;;  %v7160_v6 = vld [vmem:[%s9522_s1 + $0x8d8] ss:$12 sps:$4 sm:$0xff]  }
 0x148   : > { %4284 = vmatpush1.bf16.msra.mxu0 %v7127_v61  ;;  %6239 = vmatpush3.bf16.msra.mxu1 %v7149_v21  ;;  %v7150_v61 = vld [vmem:[%s9522_s1 + $0x978] ss:$12 sps:$4 sm:$0xff]  }
 0x149   : > { %4285 = vmatprep.subr.bf16.mxu0 %v7133_v42  ;;  %v5986_v32 = vpop.f32.mrb[24].mxu1  ;;  %6240 = vmatprep.subr.bf16.mxu1 %v7153_v50  ;;  %v7159_v42 = vld [vmem:[%s9522_s1 + $0x994] ss:$12 sps:$4 sm:$0xff]  }
 0x14a   : > { %4232 = vmatprep.mubr.bf16.mxu0 %v8656_v23  ;;  %v5987_v29 = vpop.f32.mrb[25].mxu1  ;;  %v8739_v50 = vld [vmem:[%s7582_s5 + $0x1d8] ss:$72 sps:$4 sm:$0xff]  }
 0x14b   : > { %v8683_v18 = vadd.f32 %v5987_v29, %v5986_v32  ;;  %v5989_v43 = vpop.f32.mrb[26].mxu1  ;;  %v8750_v32 = vld [vmem:[%s7582_s5 + $0x26c] ss:$72 sps:$4 sm:$0xff]   ;;  %v7172_v29 = vld [vmem:[%s9522_s1 + $0x9c4] ss:$12 sps:$4 sm:$0xff]  }
 0x14c   : > { %4286 = vmatpush1.bf16.msra.mxu0 %v7131_v51  ;;  %v5990_v13 = vpop.f32.mrb[27].mxu1  ;;  %6241 = vmatpush3.bf16.msra.mxu1 %v7154_v25  ;;  %v7157_v51 = vld [vmem:[%s9522_s1 + $0x990] ss:$12 sps:$4 sm:$0xff]  }
 0x14d   : > { %4287 = vmatprep.subr.bf16.mxu0 %v7137_v10  ;;  %v8691_v39 = vadd.f32 %v5990_v13, %v5989_v43  ;;  %6242 = vmatprep.subr.bf16.mxu1 %v7160_v6  ;;  %v8768_v13 = vld [vmem:[%s7582_s5 + $0x268] ss:$72 sps:$4 sm:$0xff]  }
 0x14e   : > { %4943 = vmatmul.mubr.bf16.gmra.mrb[132].mxu1 %v8470_v11  ;;  %v7167_v11 = vld [vmem:[%s9522_s1 + $0x830] ss:$12 sps:$4 sm:$0xff]  }
 0x14f   : > { %4233 = vmatmul.mubr.bf16.gmra.mrb[4].mxu0 %v8681_v15  ;;  %4950 = vmatprep.mubr.bf16.mxu1 %v8486_v19  ;;  %v7186_v19 = vld [vmem:[%s9522_s1 + $0x9c8] ss:$12 sps:$4 sm:$0xff]  }
 0x150   : > { %4288 = vmatpush1.bf16.msra.mxu0 %v7135_v20  ;;  %6243 = vmatpush3.bf16.msra.mxu1 %v7162_v22 }
 0x151   : > { %4289 = vmatprep.subr.bf16.mxu0 %v7142_v56  ;;  %v5992_v31 = vpop.f32.mrb[28].mxu1  ;;  %6244 = vmatprep.subr.bf16.mxu1 %v7166_v27  ;;  %v7163_v56 = vld [vmem:[%s9522_s1 + $0x9a8] ss:$12 sps:$4 sm:$0xff]  }
 0x152   : > { %4242 = vmatprep.mubr.bf16.mxu0 %v8694_v57  ;;  %v5993_v40 = vpop.f32.mrb[29].mxu1 }
 0x153   : > { %v8721_v1 = vadd.f32 %v5993_v40, %v5992_v31  ;;  %v5995_v62 = vpop.f32.mrb[30].mxu1  ;;  %v7194_v31 = vld [vmem:[%s9522_s1 + $0x9e0] ss:$12 sps:$4 sm:$0xff]   ;;  %v8784_v40 = vld [vmem:[%s7582_s5 + $0x2fc] ss:$72 sps:$4 sm:$0xff]  }
 0x154   : > { %4290 = vmatpush1.bf16.msra.mxu0 %v7140_v41  ;;  %v5996_v30 = vpop.f32.mrb[31].mxu1  ;;  %6245 = vmatpush3.bf16.msra.mxu1 %v7167_v11 }
 0x155   : > { %4291 = vmatprep.subr.bf16.mxu0 %v7147_v48  ;;  %v8726_v44 = vadd.f32 %v5996_v30, %v5995_v62  ;;  %6282 = vmatprep.subr.bf16.mxu1 %v7186_v19  ;;  %v7187_v48 = vld [vmem:[%s9522_s1 + $0x908] ss:$12 sps:$4 sm:$0xff]   ;;  %v7198_v62 = vld [vmem:[%s9522_s1 + $0x920] ss:$12 sps:$4 sm:$0xff]   ;;  %v7204_v30 = vld [vmem:[%s9522_s1 + $0x9f8] ss:$12 sps:$4 sm:$0xff]  }
 0x156   : > { %4951 = vmatmul.mubr.bf16.gmra.mrb[136].mxu1 %v8501_v54 }
 0x157   : > { %4243 = vmatmul.mubr.bf16.gmra.mrb[8].mxu0 %v8709_v52  ;;  %4958 = vmatprep.mubr.bf16.mxu1 %v8522_v60  ;;  %v7165_v60 = vld [vmem:[%s9522_s1 + $0x9ac] ss:$12 sps:$4 sm:$0xff]  }
 0x158   : > { %4292 = vmatpush1.bf16.msra.mxu0 %v7145_v53  ;;  %4252 = vmatprep.mubr.bf16.mxu0 %v8724_v7  ;;  %v7174_v53 = vld [vmem:[%s9522_s1 + $0x9d8] ss:$12 sps:$4 sm:$0xff]  }
 0x159   : > { %4293 = vmatprep.subr.bf16.mxu0 %v7152_v59  ;;  %v5998_v21 = vpop.f32.mrb[32].mxu1  ;;  %v7181_v59 = vld [vmem:[%s9522_s1 + $0x9f4] ss:$12 sps:$4 sm:$0xff]  }
 0x15a   : > { %v5999_v54 = vpop.f32.mrb[33].mxu1 }
 0x15b   : > { %v8747_v10 = vadd.f32 %v5999_v54, %v5998_v21  ;;  %v6001_v25 = vpop.f32.mrb[34].mxu1 }
 0x15c   : > { %4294 = vmatpush1.bf16.msra.mxu0 %v7150_v61  ;;  %v6002_v20 = vpop.f32.mrb[35].mxu1  ;;  %v8803_v61 = vld [vmem:[%s7582_s5 + $0x2f8] ss:$72 sps:$4 sm:$0xff]  }
 0x15d   : > { %4295 = vmatprep.subr.bf16.mxu0 %v7159_v42  ;;  %v8752_v6 = vadd.f32 %v6002_v20, %v6001_v25  ;;  %v7179_v42 = vld [vmem:[%s9522_s1 + $0x9f0] ss:$12 sps:$4 sm:$0xff]   ;;  %v7206_v20 = vld [vmem:[%s9522_s1 + $0x938] ss:$12 sps:$4 sm:$0xff]  }
 0x15e   : > { %4959 = vmatmul.mubr.bf16.gmra.mrb[140].mxu1 %v8542_v26  ;;  %v7170_v26 = vld [vmem:[%s9522_s1 + $0x9c0] ss:$12 sps:$4 sm:$0xff]  }
 0x15f   : > { %4253 = vmatmul.mubr.bf16.gmra.mrb[12].mxu0 %v8739_v50  ;;  %4999 = vmatprep.mubr.bf16.mxu1 %v8552_v36  ;;  %v7176_v36 = vld [vmem:[%s9522_s1 + $0x9dc] ss:$12 sps:$4 sm:$0xff]  }
 0x160   : > { %4296 = vmatpush1.bf16.msra.mxu0 %v7157_v51  ;;  %4262 = vmatprep.mubr.bf16.mxu0 %v8750_v32  ;;  %v866_v51 = vlaneseq }
 0x161   : > { %4297 = vmatprep.subr.bf16.mxu0 %v7165_v60  ;;  %v6004_v43 = vpop.f32.mrb[36].mxu1  ;;  %v7185_v60 = vld [vmem:[%s9522_s1 + $0xa0c] ss:$12 sps:$4 sm:$0xff]  }
 0x162   : > { %v6005_v22 = vpop.f32.mrb[37].mxu1 }
 0x163   : > { %v8773_v27 = vadd.f32 %v6005_v22, %v6004_v43  ;;  %v6007_v41 = vpop.f32.mrb[38].mxu1  ;;  %v7183_v43 = vld [vmem:[%s9522_s1 + $0xa08] ss:$12 sps:$4 sm:$0xff]   ;;  %v7192_v22 = vld [vmem:[%s9522_s1 + $0xa24] ss:$12 sps:$4 sm:$0xff]  }
 0x164   : > { %4298 = vmatpush1.bf16.msra.mxu0 %v7163_v56  ;;  %v6008_v11 = vpop.f32.mrb[39].mxu1 }
 0x165   : > { %4299 = vmatprep.subr.bf16.mxu0 %v7172_v29  ;;  %v8781_v19 = vadd.f32 %v6008_v11, %v6007_v41  ;;  %v7210_v29 = vld [vmem:[%s9522_s1 + $0xa10] ss:$12 sps:$4 sm:$0xff]   ;;  %v7190_v11 = vld [vmem:[%s9522_s1 + $0xa20] ss:$12 sps:$4 sm:$0xff]  }
 0x166   : > { %5000 = vmatmul.mubr.bf16.vlgmr.msra.gmra.mrb[144].mxu1 %v8635_v5 }
 0x167   : > { %4263 = vmatmul.mubr.bf16.gmra.mrb[16].mxu0 %v8768_v13  ;;  %5007 = vmatprep.mubr.bf16.mxu1 %v8656_v23 }
 0x168   : > { %4300 = vmatpush1.bf16.msra.mxu0 %v7170_v26  ;;  %6283 = vmatpush3.bf16.msra.mxu1 %v7187_v48  ;;  %v8822_v26 = vld [vmem:[%s7582_s5 + $0x34] ss:$72 sps:$4 sm:$0xff]  }
 0x169   : > { %4301 = vmatprep.subr.bf16.mxu0 %v7176_v36  ;;  %v6010_v5 = vpop.f32.mrb[40].mxu1  ;;  %6284 = vmatprep.subr.bf16.mxu1 %v7194_v31  ;;  %v8833_v36 = vshrl.u32 %v866_v51, 7 }
 0x16a   : > { %4272 = vmatprep.mubr.bf16.mxu0 %v8784_v40  ;;  %v6011_v23 = vpop.f32.mrb[41].mxu1 }
 0x16b   : > { %v8808_v21 = vadd.f32 %v6011_v23, %v6010_v5  ;;  %v6013_v54 = vpop.f32.mrb[42].mxu1  ;;  %v876_v48 = vsub.s32 2, %v8833_v36  ;;  %v7197_v5 = vld [vmem:[%s9522_s1 + $0xa3c] ss:$12 sps:$4 sm:$0xff]  }
 0x16c   : > { %4302 = vmatpush1.bf16.msra.mxu0 %v7174_v53  ;;  %v6014_v25 = vpop.f32.mrb[43].mxu1  ;;  %6285 = vmatpush3.bf16.msra.mxu1 %v7198_v62 }
 0x16d   : > { %4303 = vmatprep.subr.bf16.mxu0 %v7181_v59  ;;  %v8816_v56 = vadd.f32 %v6014_v25, %v6013_v54  ;;  %6286 = vmatprep.subr.bf16.mxu1 %v7204_v30  ;;  %v7219_v30 = vld [vmem:[%s9522_s1 + $0x968] ss:$12 sps:$4 sm:$0xff]   ;;  %v864_v54 = vld [vmem:[%s9523_s2] sm:$0x7] }
 0x16e   : > { %5008 = vmatmul.mubr.bf16.gmra.mrb[148].mxu1 %v8681_v15  ;;  %v7211_v15 = vld [vmem:[%s9522_s1 + $0x950] ss:$12 sps:$4 sm:$0xff]   ;;  %v8863_v51 = vrot.slane %v864_v54, %v876_v48  ;;  %v7203_v25 = vld [vmem:[%s9522_s1 + $0xa54] ss:$12 sps:$4 sm:$0xff]  }
 0x16f   : > { %4273 = vmatmul.mubr.bf16.gmra.mrb[20].mxu0 %v8803_v61  ;;  %5015 = vmatprep.mubr.bf16.mxu1 %v8694_v57  ;;  %v7218_v57 = vld [vmem:[%s9522_s1 + $0xa28] ss:$12 sps:$4 sm:$0xff]  }
 0x170   : > { %4304 = vmatpush1.bf16.msra.mxu0 %v7179_v42  ;;  %6287 = vmatpush3.bf16.msra.mxu1 %v7206_v20  ;;  %v7223_v42 = vld [vmem:[%s9522_s1 + $0xa40] ss:$12 sps:$4 sm:$0xff]  }
 0x171   : > { %4305 = vmatprep.subr.bf16.mxu0 %v7185_v60  ;;  %v6016_v41 = vpop.f32.mrb[44].mxu1  ;;  %6288 = vmatprep.subr.bf16.mxu1 %v7210_v29  ;;  %v7195_v60 = vld [vmem:[%s9522_s1 + $0xa38] ss:$12 sps:$4 sm:$0xff]   ;;  %v7224_v20 = vld [vmem:[%s9522_s1 + $0x980] ss:$12 sps:$4 sm:$0xff]  }
 0x172   : > { %4315 = vmatprep.mubr.bf16.mxu0 %v8822_v26  ;;  %v6017_v31 = vpop.f32.mrb[45].mxu1  ;;  %v7228_v29 = vld [vmem:[%s9522_s1 + $0xa58] ss:$12 sps:$4 sm:$0xff]  }
 0x173   : > { %v8846_v53 = vadd.f32 %v6017_v31, %v6016_v41  ;;  %v6019_v59 = vpop.f32.mrb[46].mxu1  ;;  %v7201_v41 = vld [vmem:[%s9522_s1 + $0xa50] ss:$12 sps:$4 sm:$0xff]  }
 0x174   : > { %4306 = vmatpush1.bf16.msra.mxu0 %v7183_v43  ;;  %v6020_v62 = vpop.f32.mrb[47].mxu1  ;;  %6289 = vmatpush3.bf16.msra.mxu1 %v7211_v15 }
 0x175   : > { %4307 = vmatprep.subr.bf16.mxu0 %v7192_v22  ;;  %v8854_v23 = vadd.f32 %v6020_v62, %v6019_v59  ;;  %6290 = vmatprep.subr.bf16.mxu1 %v7218_v57  ;;  %v7209_v57 = vld [vmem:[%s9522_s1 + $0xa6c] ss:$12 sps:$4 sm:$0xff]   ;;  %v7233_v62 = vld [vmem:[%s9522_s1 + $0xa70] ss:$12 sps:$4 sm:$0xff]  }
 0x176   : > { %5016 = vmatmul.mubr.bf16.gmra.mrb[152].mxu1 %v8709_v52 }
 0x177   : > { %5023 = vmatprep.mubr.bf16.mxu1 %v8724_v7  ;;  %v4597_v7 = vadd.f32 %v8683_v18, %v8863_v51  ;;  %v4600_v18 = vadd.f32 %v8691_v39, %v8863_v51  ;;  %v8904_v39 = vld [vmem:[%s7582_s5 + $0x30] ss:$72 sps:$4 sm:$0xff]  }
 0x178   : > { %4308 = vmatpush1.bf16.msra.mxu0 %v7190_v11  ;;  %6291 = vmatpush3.bf16.msra.mxu1 %v7219_v30  ;;  %v7229_v11 = vld [vmem:[%s9522_s1 + $0x998] ss:$12 sps:$4 sm:$0xff]   ;;  %v7207_v30 = vld [vmem:[%s9522_s1 + $0xa68] ss:$12 sps:$4 sm:$0xff]  }
 0x179   : > { %4309 = vmatprep.subr.bf16.mxu0 %v7197_v5  ;;  %v6038_v52 = vpop.f32.mrb[48].mxu1  ;;  %6292 = vmatprep.subr.bf16.mxu1 %v7223_v42  ;;  %v7217_v42 = vld [vmem:[%s9522_s1 + $0xa84] ss:$12 sps:$4 sm:$0xff]  }
 0x17a   : > { %v6039_v43 = vpop.f32.mrb[49].mxu1 }
 0x17b   : > { %v6040_v22 = vadd.f32 %v6039_v43, %v6038_v52  ;;  %v6041_v15 = vpop.f32.mrb[50].mxu1  ;;  %v7222_v43 = vld [vmem:[%s9522_s1 + $0xa9c] ss:$12 sps:$4 sm:$0xff]  }
 0x17c   : > { %4310 = vmatpush1.bf16.msra.mxu0 %v7195_v60  ;;  %v6042_v48 = vpop.f32.mrb[51].mxu1  ;;  %6293 = vmatpush3.bf16.msra.mxu1 %v7224_v20  ;;  %v7250_v60 = vld [vmem:[%s9522_s1 + $0xb48] ss:$12 sps:$4 sm:$0xff]  }
 0x17d   : > { %4311 = vmatprep.subr.bf16.mxu0 %v7203_v25  ;;  %v8891_v31 = vadd.f32 %v6040_v22, %v4597_v7  ;;  %v6043_v59 = vadd.f32 %v6042_v48, %v6041_v15  ;;  %6294 = vmatprep.subr.bf16.mxu1 %v7228_v29  ;;  %v4605_v25 = vadd.f32 %v8721_v1, %v8863_v51  ;;  %v7215_v29 = vld [vmem:[%s9522_s1 + $0xa80] ss:$12 sps:$4 sm:$0xff]   ;;  %v7220_v48 = vld [vmem:[%s9522_s1 + $0xa98] ss:$12 sps:$4 sm:$0xff]  }
 0x17e   : > { %5024 = vmatmul.mubr.bf16.gmra.mrb[156].mxu1 %v8739_v50  ;;  %v7234_v50 = vld [vmem:[%s9522_s1 + $0x9b0] ss:$12 sps:$4 sm:$0xff]   ;;  %v7241_v22 = vld [vmem:[%s7582_s5 + $0xc4] ss:$72 sps:$4 sm:$0xff]   ;;  %v4608_v15 = vadd.f32 %v8726_v44, %v8863_v51  ;;  %v7227_v44 = vld [vmem:[%s9522_s1 + $0xab4] ss:$12 sps:$4 sm:$0xff]  }
 0x17f   : > { %v8897_v5 = vadd.f32 %v6043_v59, %v4600_v18  ;;  %5031 = vmatprep.mubr.bf16.mxu1 %v8750_v32  ;;  %v4613_v59 = vadd.f32 %v8747_v10, %v8863_v51 }
 0x180   : > { %4312 = vmatpush1.bf16.msra.mxu0 %v7201_v41  ;;  %6295 = vmatpush3.bf16.msra.mxu1 %v7229_v11 }
 0x181   : > { %4313 = vmatprep.subr.bf16.mxu0 %v7209_v57  ;;  %v6044_v54 = vpop.f32.mrb[52].mxu1  ;;  %6296 = vmatprep.subr.bf16.mxu1 %v7233_v62 }
 0x182   : > { %v6045_v32 = vpop.f32.mrb[53].mxu1 }
 0x183   : > { %v6046_v20 = vadd.f32 %v6045_v32, %v6044_v54  ;;  %v6047_v52 = vpop.f32.mrb[54].mxu1  ;;  %v8951_v54 = vld [vmem:[%s7582_s5 + $0x154] ss:$72 sps:$4 sm:$0xff]  }
 0x184   : > { %4314 = vmatpush1.bf16.msra.mxu0 %v7207_v30  ;;  %v6048_v7 = vpop.f32.mrb[55].mxu1  ;;  %6297 = vmatpush3.bf16.msra.mxu1 %v7234_v50 }
 0x185   : > { %4376 = vmatprep.subr.bf16.mxu0 %v7217_v42  ;;  %v8926_v1 = vadd.f32 %v6046_v20, %v4605_v25  ;;  %v6049_v41 = vadd.f32 %v6048_v7, %v6047_v52  ;;  %6334 = vmatprep.subr.bf16.mxu1 %v7250_v60  ;;  %v7232_v42 = vld [vmem:[%s9522_s1 + $0xacc] ss:$12 sps:$4 sm:$0xff]   ;;  %v4616_v60 = vadd.f32 %v8752_v6, %v8863_v51  ;;  %v7230_v20 = vld [vmem:[%s9522_s1 + $0xac8] ss:$12 sps:$4 sm:$0xff]   ;;  %v7237_v6 = vld [vmem:[%s9522_s1 + $0xae4] ss:$12 sps:$4 sm:$0xff]  }
 0x186   : > { %5032 = vmatmul.mubr.bf16.gmra.mrb[160].mxu1 %v8768_v13  ;;  %v8940_v13 = vld [vmem:[%s7582_s5 + $0xc0] ss:$72 sps:$4 sm:$0xff]  }
 0x187   : > { %4316 = vmatmul.mubr.bf16.vlgmr.msra.gmra.mrb[0].mxu0 %v8904_v39  ;;  %v8930_v57 = vadd.f32 %v6049_v41, %v4608_v15  ;;  %5039 = vmatprep.mubr.bf16.mxu1 %v8784_v40  ;;  %v7225_v40 = vld [vmem:[%s9522_s1 + $0xab0] ss:$12 sps:$4 sm:$0xff]  }
 0x188   : > { %4377 = vmatpush1.bf16.msra.mxu0 %v7215_v29  ;;  %4325 = vmatprep.mubr.bf16.mxu0 %v7241_v22  ;;  %v8970_v29 = vld [vmem:[%s7582_s5 + $0x150] ss:$72 sps:$4 sm:$0xff]  }
 0x189   : > { %4378 = vmatprep.subr.bf16.mxu0 %v7222_v43  ;;  %v6050_v11 = vpop.f32.mrb[56].mxu1  ;;  %v4621_v43 = vadd.f32 %v8773_v27, %v8863_v51  ;;  %v4624_v27 = vadd.f32 %v8781_v19, %v8863_v51  ;;  %v7238_v19 = vld [vmem:[%s9522_s1 + $0xaf8] ss:$12 sps:$4 sm:$0xff]  }
 0x18a   : > { %v6051_v18 = vpop.f32.mrb[57].mxu1 }
 0x18b   : > { %v6052_v62 = vadd.f32 %v6051_v18, %v6050_v11  ;;  %v6053_v30 = vpop.f32.mrb[58].mxu1 }
 0x18c   : > { %4379 = vmatpush1.bf16.msra.mxu0 %v7220_v48  ;;  %v6054_v50 = vpop.f32.mrb[59].mxu1  ;;  %v7240_v48 = vld [vmem:[%s9522_s1 + $0xafc] ss:$12 sps:$4 sm:$0xff]  }
 0x18d   : > { %4380 = vmatprep.subr.bf16.mxu0 %v7227_v44  ;;  %v8955_v10 = vadd.f32 %v6052_v62, %v4613_v59  ;;  %v6055_v32 = vadd.f32 %v6054_v50, %v6053_v30  ;;  %v7251_v44 = vld [vmem:[%s9522_s1 + $0xa88] ss:$12 sps:$4 sm:$0xff]   ;;  %v7258_v59 = vld [vmem:[%s9522_s1 + $0xb60] ss:$12 sps:$4 sm:$0xff]   ;;  %v7269_v50 = vld [vmem:[%s9522_s1 + $0xb78] ss:$12 sps:$4 sm:$0xff]  }
 0x18e   : > { %5040 = vmatmul.mubr.bf16.gmra.mrb[164].mxu1 %v8803_v61  ;;  %v8991_v62 = vld [vmem:[%s7582_s5 + $0x1e4] ss:$72 sps:$4 sm:$0xff]  }
 0x18f   : > { %4326 = vmatmul.mubr.bf16.gmra.mrb[4].mxu0 %v8940_v13  ;;  %v8959_v25 = vadd.f32 %v6055_v32, %v4616_v60  ;;  %5080 = vmatprep.mubr.bf16.mxu1 %v8822_v26  ;;  %v7235_v26 = vld [vmem:[%s9522_s1 + $0xae0] ss:$12 sps:$4 sm:$0xff]   ;;  %v4629_v32 = vadd.f32 %v8808_v21, %v8863_v51  ;;  %v4632_v21 = vadd.f32 %v8816_v56, %v8863_v51  ;;  %v7247_v56 = vld [vmem:[%s9522_s1 + $0xb28] ss:$12 sps:$4 sm:$0xff]  }
 0x190   : > { %4381 = vmatpush1.bf16.msra.mxu0 %v7225_v40  ;;  %4335 = vmatprep.mubr.bf16.mxu0 %v8951_v54  ;;  %v7245_v40 = vld [vmem:[%s9522_s1 + $0xb14] ss:$12 sps:$4 sm:$0xff]  }
 0x191   : > { %4382 = vmatprep.subr.bf16.mxu0 %v7232_v42  ;;  %v6056_v52 = vpop.f32.mrb[60].mxu1 }
 0x192   : > { %v6057_v61 = vpop.f32.mrb[61].mxu1 }
 0x193   : > { %v6058_v7 = vadd.f32 %v6057_v61, %v6056_v52  ;;  %v6059_v15 = vpop.f32.mrb[62].mxu1  ;;  %v7243_v52 = vld [vmem:[%s9522_s1 + $0xb10] ss:$12 sps:$4 sm:$0xff]  }
 0x194   : > { %4383 = vmatpush1.bf16.msra.mxu0 %v7230_v20  ;;  %v6060_v41 = vpop.f32.mrb[63].mxu1 }
 0x195   : > { %4384 = vmatprep.subr.bf16.mxu0 %v7237_v6  ;;  %v8985_v11 = vadd.f32 %v6058_v7, %v4621_v43  ;;  %v6061_v18 = vadd.f32 %v6060_v41, %v6059_v15  ;;  %v7249_v43 = vld [vmem:[%s9522_s1 + $0xb2c] ss:$12 sps:$4 sm:$0xff]   ;;  %v7274_v41 = vld [vmem:[%s9522_s1 + $0xb90] ss:$12 sps:$4 sm:$0xff]  }
 0x196   : > { %5081 = vmatmul.mubr.bf16.vlgmr.msra.gmra.mrb[168].mxu1 %v8904_v39  ;;  %v7262_v39 = vld [vmem:[%s9522_s1 + $0xaa0] ss:$12 sps:$4 sm:$0xff]   ;;  %v7270_v7 = vld [vmem:[%s9522_s1 + $0xab8] ss:$12 sps:$4 sm:$0xff]  }
 0x197   : > { %4336 = vmatmul.mubr.bf16.gmra.mrb[8].mxu0 %v8970_v29  ;;  %v8995_v30 = vadd.f32 %v6061_v18, %v4624_v27  ;;  %5088 = vmatprep.mubr.bf16.mxu1 %v7241_v22  ;;  %v9011_v22 = vld [vmem:[%s7582_s5 + $0x1e0] ss:$72 sps:$4 sm:$0xff]   ;;  %v7256_v27 = vld [vmem:[%s9522_s1 + $0xb44] ss:$12 sps:$4 sm:$0xff]  }
 0x198   : > { %4385 = vmatpush1.bf16.msra.mxu0 %v7235_v26  ;;  %6335 = vmatpush3.bf16.msra.mxu1 %v7251_v44 }
 0x199   : > { %4386 = vmatprep.subr.bf16.mxu0 %v7240_v48  ;;  %v6062_v42 = vpop.f32.mrb[64].mxu1  ;;  %6336 = vmatprep.subr.bf16.mxu1 %v7258_v59  ;;  %v9032_v48 = vld [vmem:[%s7582_s5 + $0x274] ss:$72 sps:$4 sm:$0xff]  }
 0x19a   : > { %4345 = vmatprep.mubr.bf16.mxu0 %v8991_v62  ;;  %v6063_v60 = vpop.f32.mrb[65].mxu1  ;;  %v7282_v59 = vld [vmem:[%s9522_s1 + $0xba8] ss:$12 sps:$4 sm:$0xff]  }
 0x19b   : > { %v6064_v20 = vadd.f32 %v6063_v60, %v6062_v42  ;;  %v6065_v6 = vpop.f32.mrb[66].mxu1 }
 0x19c   : > { %4387 = vmatpush1.bf16.msra.mxu0 %v7238_v19  ;;  %v6066_v61 = vpop.f32.mrb[67].mxu1  ;;  %6337 = vmatpush3.bf16.msra.mxu1 %v7262_v39 }
 0x19d   : > { %4388 = vmatprep.subr.bf16.mxu0 %v7245_v40  ;;  %v9026_v15 = vadd.f32 %v6064_v20, %v4629_v32  ;;  %v6067_v26 = vadd.f32 %v6066_v61, %v6065_v6  ;;  %6338 = vmatprep.subr.bf16.mxu1 %v7269_v50  ;;  %v4637_v40 = vadd.f32 %v8846_v53, %v8863_v51  ;;  %v7254_v50 = vld [vmem:[%s9522_s1 + $0xb40] ss:$12 sps:$4 sm:$0xff]   ;;  %v7261_v32 = vld [vmem:[%s9522_s1 + $0xb5c] ss:$12 sps:$4 sm:$0xff]  }
 0x19e   : > { %5089 = vmatmul.mubr.bf16.gmra.mrb[172].mxu1 %v8940_v13  ;;  %v7275_v13 = vld [vmem:[%s9522_s1 + $0xad0] ss:$12 sps:$4 sm:$0xff]   ;;  %v7283_v20 = vld [vmem:[%s9522_s1 + $0xae8] ss:$12 sps:$4 sm:$0xff]   ;;  %v4640_v53 = vadd.f32 %v8854_v23, %v8863_v51  ;;  %v7287_v61 = vld [vmem:[%s9522_s1 + $0xbc0] ss:$12 sps:$4 sm:$0xff]  }
 0x19f   : > { %4346 = vmatmul.mubr.bf16.gmra.mrb[12].mxu0 %v9011_v22  ;;  %v9036_v44 = vadd.f32 %v6067_v26, %v4632_v21  ;;  %5096 = vmatprep.mubr.bf16.mxu1 %v8951_v54  ;;  %v9053_v54 = vld [vmem:[%s7582_s5 + $0x270] ss:$72 sps:$4 sm:$0xff]   ;;  %v7267_v51 = vld [vmem:[%s9522_s1 + $0xb74] ss:$12 sps:$4 sm:$0xff]  }
 0x1a0   : > { %4389 = vmatpush1.bf16.msra.mxu0 %v7243_v52  ;;  %6339 = vmatpush3.bf16.msra.mxu1 %v7270_v7  ;;  %v7259_v23 = vld [vmem:[%s9522_s1 + $0xb58] ss:$12 sps:$4 sm:$0xff]  }
 0x1a1   : > { %4390 = vmatprep.subr.bf16.mxu0 %v7249_v43  ;;  %v6068_v18 = vpop.f32.mrb[68].mxu1  ;;  %6340 = vmatprep.subr.bf16.mxu1 %v7274_v41  ;;  %v7289_v43 = vld [vmem:[%s7582_s5 + $0x304] ss:$72 sps:$4 sm:$0xff]  }
 0x1a2   : > { %4355 = vmatprep.mubr.bf16.mxu0 %v9032_v48  ;;  %v6069_v19 = vpop.f32.mrb[69].mxu1  ;;  %v7295_v26 = vld [vmem:[%s9522_s1 + $0xbd8] ss:$12 sps:$4 sm:$0xff]  }
 0x1a3   : > { %v6070_v39 = vadd.f32 %v6069_v19, %v6068_v18  ;;  %v6071_v42 = vpop.f32.mrb[70].mxu1  ;;  %v7296_v19 = vld [vmem:[%s9522_s1 + $0xb18] ss:$12 sps:$4 sm:$0xff]  }
 0x1a4   : > { %4391 = vmatpush1.bf16.msra.mxu0 %v7247_v56  ;;  %v6072_v60 = vpop.f32.mrb[71].mxu1  ;;  %6341 = vmatpush3.bf16.msra.mxu1 %v7275_v13  ;;  %v7265_v13 = vld [vmem:[%s9522_s1 + $0xb70] ss:$12 sps:$4 sm:$0xff]  }
 0x1a5   : > { %4392 = vmatprep.subr.bf16.mxu0 %v7256_v27  ;;  %v9068_v6 = vadd.f32 %v6070_v39, %v4637_v40  ;;  %v6073_v52 = vadd.f32 %v6072_v60, %v6071_v42  ;;  %6342 = vmatprep.subr.bf16.mxu1 %v7282_v59  ;;  %v7273_v59 = vld [vmem:[%s9522_s1 + $0xb8c] ss:$12 sps:$4 sm:$0xff]   ;;  %v7300_v42 = vld [vmem:[%s9522_s1 + $0xbf0] ss:$12 sps:$4 sm:$0xff]  }
 0x1a6   : > { %5097 = vmatmul.mubr.bf16.gmra.mrb[176].mxu1 %v8970_v29  ;;  %v7288_v29 = vld [vmem:[%s9522_s1 + $0xb00] ss:$12 sps:$4 sm:$0xff]  }
 0x1a7   : > { %4356 = vmatmul.mubr.bf16.gmra.mrb[16].mxu0 %v9053_v54  ;;  %v9076_v7 = vadd.f32 %v6073_v52, %v4640_v53  ;;  %5104 = vmatprep.mubr.bf16.mxu1 %v8991_v62  ;;  %v7294_v62 = vld [vmem:[%s7582_s5 + $0x300] ss:$72 sps:$4 sm:$0xff]  }
 0x1a8   : > { %4393 = vmatpush1.bf16.msra.mxu0 %v7254_v50  ;;  %6343 = vmatpush3.bf16.msra.mxu1 %v7283_v20  ;;  %v7304_v50 = vld [vmem:[%s7582_s5 + $0x3c] ss:$72 sps:$4 sm:$0xff]  }
 0x1a9   : > { %4394 = vmatprep.subr.bf16.mxu0 %v7261_v32  ;;  %v6090_v21 = vpop.f32.mrb[72].mxu1  ;;  %6344 = vmatprep.subr.bf16.mxu1 %v7287_v61  ;;  %v7271_v32 = vld [vmem:[%s9522_s1 + $0xb88] ss:$12 sps:$4 sm:$0xff]   ;;  %v7278_v61 = vld [vmem:[%s9522_s1 + $0xba0] ss:$12 sps:$4 sm:$0xff]  }
 0x1aa   : > { %4365 = vmatprep.mubr.bf16.mxu0 %v7289_v43  ;;  %v6091_v41 = vpop.f32.mrb[73].mxu1 }
 0x1ab   : > { %v6092_v56 = vadd.f32 %v6091_v41, %v6090_v21  ;;  %v6093_v27 = vpop.f32.mrb[74].mxu1  ;;  %v7284_v41 = vld [vmem:[%s9522_s1 + $0xbb8] ss:$12 sps:$4 sm:$0xff]  }
 0x1ac   : > { %4395 = vmatpush1.bf16.msra.mxu0 %v7259_v23  ;;  %v6094_v18 = vpop.f32.mrb[75].mxu1  ;;  %6345 = vmatpush3.bf16.msra.mxu1 %v7288_v29 }
 0x1ad   : > { %4396 = vmatprep.subr.bf16.mxu0 %v7267_v51  ;;  %v9102_v40 = vadd.f32 %v6092_v56, %v8891_v31  ;;  %v6095_v39 = vadd.f32 %v6094_v18, %v6093_v27  ;;  %6346 = vmatprep.subr.bf16.mxu1 %v7295_v26  ;;  %v7280_v31 = vld [vmem:[%s9522_s1 + $0xba4] ss:$12 sps:$4 sm:$0xff]   ;;  %v7286_v51 = vld [vmem:[%s9522_s1 + $0xbbc] ss:$12 sps:$4 sm:$0xff]   ;;  %v7293_v56 = vld [vmem:[%s9522_s1 + $0xbd4] ss:$12 sps:$4 sm:$0xff]  }
 0x1ae   : > { %5105 = vmatmul.mubr.bf16.gmra.mrb[180].mxu1 %v9011_v22  ;;  %v7301_v22 = vld [vmem:[%s9522_s1 + $0xb30] ss:$12 sps:$4 sm:$0xff]  }
 0x1af   : > { %4366 = vmatmul.mubr.bf16.gmra.mrb[20].mxu0 %v7294_v62  ;;  %v9110_v60 = vadd.f32 %v6095_v39, %v8897_v5  ;;  %5112 = vmatprep.mubr.bf16.mxu1 %v9032_v48  ;;  %v7320_v5 = vld [vmem:[%s9522_s1 + $0xcc8] ss:$12 sps:$4 sm:$0xff]  }
 0x1b0   : > { %4397 = vmatpush1.bf16.msra.mxu0 %v7265_v13  ;;  %6347 = vmatpush3.bf16.msra.mxu1 %v7296_v19 }
 0x1b1   : > { %4398 = vmatprep.subr.bf16.mxu0 %v7273_v59  ;;  %v6096_v20 = vpop.f32.mrb[76].mxu1  ;;  %6348 = vmatprep.subr.bf16.mxu1 %v7300_v42  ;;  %v7297_v42 = vld [vmem:[%s9522_s1 + $0xbe8] ss:$12 sps:$4 sm:$0xff]  }
 0x1b2   : > { %4408 = vmatprep.mubr.bf16.mxu0 %v7304_v50  ;;  %v6097_v53 = vpop.f32.mrb[77].mxu1 }
 0x1b3   : > { %v6098_v52 = vadd.f32 %v6097_v53, %v6096_v20  ;;  %v6099_v48 = vpop.f32.mrb[78].mxu1 }
 0x1b4   : > { %4399 = vmatpush1.bf16.msra.mxu0 %v7271_v32  ;;  %v6100_v23 = vpop.f32.mrb[79].mxu1  ;;  %6349 = vmatpush3.bf16.msra.mxu1 %v7301_v22  ;;  %v7307_v32 = vld [vmem:[%s9522_s1 + $0xc04] ss:$12 sps:$4 sm:$0xff]   ;;  %v7302_v22 = vld [vmem:[%s7582_s5 + $0x38] ss:$72 sps:$4 sm:$0xff]  }
 0x1b5   : > { %4400 = vmatprep.subr.bf16.mxu0 %v7280_v31  ;;  %v9132_v29 = vadd.f32 %v6098_v52, %v8926_v1  ;;  %v6101_v21 = vadd.f32 %v6100_v23, %v6099_v48  ;;  %6386 = vmatprep.subr.bf16.mxu1 %v7320_v5  ;;  %v7311_v5 = vld [vmem:[%s7582_s5 + $0xcc] ss:$72 sps:$4 sm:$0xff]  }
 0x1b6   : > { %5113 = vmatmul.mubr.bf16.gmra.mrb[184].mxu1 %v9053_v54  ;;  %v7321_v52 = vld [vmem:[%s9522_s1 + $0xc08] ss:$12 sps:$4 sm:$0xff]   ;;  %v7328_v23 = vld [vmem:[%s9522_s1 + $0xce0] ss:$12 sps:$4 sm:$0xff]  }
 0x1b7   : > { %v9136_v26 = vadd.f32 %v6101_v21, %v8930_v57  ;;  %5120 = vmatprep.mubr.bf16.mxu1 %v7289_v43  ;;  %v7291_v57 = vld [vmem:[%s9522_s1 + $0xbd0] ss:$12 sps:$4 sm:$0xff]   ;;  %v7299_v43 = vld [vmem:[%s9522_s1 + $0xbec] ss:$12 sps:$4 sm:$0xff]  }
 0x1b8   : > { %4401 = vmatpush1.bf16.msra.mxu0 %v7278_v61  ;;  %v7308_v21 = vld [vmem:[%s9522_s1 + $0xc18] ss:$12 sps:$4 sm:$0xff]  }
 0x1b9   : > { %4402 = vmatprep.subr.bf16.mxu0 %v7286_v51  ;;  %v6102_v1 = vpop.f32.mrb[80].mxu1 }
 0x1ba   : > { %v6103_v27 = vpop.f32.mrb[81].mxu1 }
 0x1bb   : > { %v6104_v13 = vadd.f32 %v6103_v27, %v6102_v1  ;;  %v6105_v18 = vpop.f32.mrb[82].mxu1  ;;  %v7316_v27 = vld [vmem:[%s7582_s5 + $0xc8] ss:$72 sps:$4 sm:$0xff]  }
 0x1bc   : > { %4403 = vmatpush1.bf16.msra.mxu0 %v7284_v41  ;;  %v6106_v54 = vpop.f32.mrb[83].mxu1  ;;  %v7332_v41 = vld [vmem:[%s9522_s1 + $0xc20] ss:$12 sps:$4 sm:$0xff]  }
 0x1bd   : > { %4404 = vmatprep.subr.bf16.mxu0 %v7293_v56  ;;  %v9151_v59 = vadd.f32 %v6104_v13, %v8955_v10  ;;  %v6107_v19 = vadd.f32 %v6106_v54, %v6105_v18  ;;  %v7322_v54 = vld [vmem:[%s7582_s5 + $0x15c] ss:$72 sps:$4 sm:$0xff]  }
 0x1be   : > { %5121 = vmatmul.mubr.bf16.gmra.mrb[188].mxu1 %v7294_v62 }
 0x1bf   : > { %v9154_v39 = vadd.f32 %v6107_v19, %v8959_v25  ;;  %5161 = vmatprep.mubr.bf16.mxu1 %v7304_v50  ;;  %v7305_v25 = vld [vmem:[%s9522_s1 + $0xc00] ss:$12 sps:$4 sm:$0xff]   ;;  %v7310_v50 = vld [vmem:[%s9522_s1 + $0xc1c] ss:$12 sps:$4 sm:$0xff]  }
 0x1c0   : > { %4405 = vmatpush1.bf16.msra.mxu0 %v7291_v57  ;;  %v7313_v57 = vld [vmem:[%s9522_s1 + $0xc30] ss:$12 sps:$4 sm:$0xff]   ;;  %v7319_v19 = vld [vmem:[%s9522_s1 + $0xc4c] ss:$12 sps:$4 sm:$0xff]  }
 0x1c1   : > { %4406 = vmatprep.subr.bf16.mxu0 %v7299_v43  ;;  %v6108_v31 = vpop.f32.mrb[84].mxu1 }
 0x1c2   : > { %v6109_v10 = vpop.f32.mrb[85].mxu1 }
 0x1c3   : > { %v6110_v20 = vadd.f32 %v6109_v10, %v6108_v31  ;;  %v6111_v62 = vpop.f32.mrb[86].mxu1  ;;  %v7344_v10 = vld [vmem:[%s9522_s1 + $0xd10] ss:$12 sps:$4 sm:$0xff]  }
 0x1c4   : > { %4407 = vmatpush1.bf16.msra.mxu0 %v7297_v42  ;;  %v6112_v53 = vpop.f32.mrb[87].mxu1  ;;  %v7340_v42 = vld [vmem:[%s9522_s1 + $0xc38] ss:$12 sps:$4 sm:$0xff]  }
 0x1c5   : > { %4469 = vmatprep.subr.bf16.mxu0 %v7307_v32  ;;  %v9174_v48 = vadd.f32 %v6110_v20, %v8985_v11  ;;  %v6113_v61 = vadd.f32 %v6112_v53, %v6111_v62  ;;  %v7315_v11 = vld [vmem:[%s9522_s1 + $0xc34] ss:$12 sps:$4 sm:$0xff]   ;;  %v7345_v62 = vld [vmem:[%s9522_s1 + $0xc50] ss:$12 sps:$4 sm:$0xff]  }
 0x1c6   : > { %5162 = vmatmul.mubr.bf16.vlgmr.msra.gmra.mrb[192].mxu1 %v7302_v22  ;;  %v7317_v20 = vld [vmem:[%s9522_s1 + $0xc48] ss:$12 sps:$4 sm:$0xff]   ;;  %v7327_v53 = vld [vmem:[%s7582_s5 + $0x158] ss:$72 sps:$4 sm:$0xff]  }
 0x1c7   : > { %4409 = vmatmul.mubr.bf16.vlgmr.msra.gmra.mrb[0].mxu0 %v7302_v22  ;;  %v9180_v51 = vadd.f32 %v6113_v61, %v8995_v30  ;;  %5169 = vmatprep.mubr.bf16.mxu1 %v7311_v5  ;;  %v7339_v30 = vld [vmem:[%s9522_s1 + $0xcf8] ss:$12 sps:$4 sm:$0xff]   ;;  %v7324_v61 = vld [vmem:[%s9522_s1 + $0xc60] ss:$12 sps:$4 sm:$0xff]  }
 0x1c8   : > { %4470 = vmatpush1.bf16.msra.mxu0 %v7305_v25  ;;  %6387 = vmatpush3.bf16.msra.mxu1 %v7321_v52 }
 0x1c9   : > { %4471 = vmatprep.subr.bf16.mxu0 %v7310_v50  ;;  %v6114_v56 = vpop.f32.mrb[88].mxu1  ;;  %6388 = vmatprep.subr.bf16.mxu1 %v7328_v23  ;;  %v7333_v23 = vld [vmem:[%s7582_s5 + $0x1ec] ss:$72 sps:$4 sm:$0xff]  }
 0x1ca   : > { %4418 = vmatprep.mubr.bf16.mxu0 %v7311_v5  ;;  %v6115_v1 = vpop.f32.mrb[89].mxu1 }
 0x1cb   : > { %v6116_v13 = vadd.f32 %v6115_v1, %v6114_v56  ;;  %v6117_v18 = vpop.f32.mrb[90].mxu1  ;;  %v7357_v1 = vld [vmem:[%s9522_s1 + $0xd40] ss:$12 sps:$4 sm:$0xff]  }
 0x1cc   : > { %4472 = vmatpush1.bf16.msra.mxu0 %v7308_v21  ;;  %v6118_v43 = vpop.f32.mrb[91].mxu1  ;;  %6389 = vmatpush3.bf16.msra.mxu1 %v7332_v41  ;;  %v7353_v41 = vld [vmem:[%s9522_s1 + $0xc68] ss:$12 sps:$4 sm:$0xff]  }
 0x1cd   : > { %4473 = vmatprep.subr.bf16.mxu0 %v7315_v11  ;;  %v9206_v32 = vadd.f32 %v6116_v13, %v9026_v15  ;;  %v6119_v31 = vadd.f32 %v6118_v43, %v6117_v18  ;;  %6390 = vmatprep.subr.bf16.mxu1 %v7339_v30  ;;  %v7326_v15 = vld [vmem:[%s9522_s1 + $0xc64] ss:$12 sps:$4 sm:$0xff]   ;;  %v7331_v11 = vld [vmem:[%s9522_s1 + $0xc7c] ss:$12 sps:$4 sm:$0xff]   ;;  %v7358_v18 = vld [vmem:[%s9522_s1 + $0xc80] ss:$12 sps:$4 sm:$0xff]  }
 0x1ce   : > { %5170 = vmatmul.mubr.bf16.gmra.mrb[196].mxu1 %v7316_v27  ;;  %v7329_v13 = vld [vmem:[%s9522_s1 + $0xc78] ss:$12 sps:$4 sm:$0xff]   ;;  %v7338_v43 = vld [vmem:[%s7582_s5 + $0x1e8] ss:$72 sps:$4 sm:$0xff]  }
 0x1cf   : > { %4419 = vmatmul.mubr.bf16.gmra.mrb[4].mxu0 %v7316_v27  ;;  %v9212_v22 = vadd.f32 %v6119_v31, %v9036_v44  ;;  %5177 = vmatprep.mubr.bf16.mxu1 %v7322_v54  ;;  %v7352_v44 = vld [vmem:[%s9522_s1 + $0xd28] ss:$12 sps:$4 sm:$0xff]   ;;  %v7335_v31 = vld [vmem:[%s9522_s1 + $0xc90] ss:$12 sps:$4 sm:$0xff]  }
 0x1d0   : > { %4474 = vmatpush1.bf16.msra.mxu0 %v7313_v57  ;;  %6391 = vmatpush3.bf16.msra.mxu1 %v7340_v42 }
 0x1d1   : > { %4475 = vmatprep.subr.bf16.mxu0 %v7319_v19  ;;  %v6120_v25 = vpop.f32.mrb[92].mxu1  ;;  %6392 = vmatprep.subr.bf16.mxu1 %v7344_v10  ;;  %v7346_v10 = vld [vmem:[%s7582_s5 + $0x27c] ss:$72 sps:$4 sm:$0xff]  }
 0x1d2   : > { %4428 = vmatprep.mubr.bf16.mxu0 %v7322_v54  ;;  %v6121_v5 = vpop.f32.mrb[93].mxu1 }
 0x1d3   : > { %v6122_v50 = vadd.f32 %v6121_v5, %v6120_v25  ;;  %v6123_v52 = vpop.f32.mrb[94].mxu1  ;;  %v7370_v5 = vld [vmem:[%s9522_s1 + $0xd70] ss:$12 sps:$4 sm:$0xff]  }
 0x1d4   : > { %4476 = vmatpush1.bf16.msra.mxu0 %v7317_v20  ;;  %v6124_v21 = vpop.f32.mrb[95].mxu1  ;;  %6393 = vmatpush3.bf16.msra.mxu1 %v7345_v62  ;;  %v7366_v62 = vld [vmem:[%s9522_s1 + $0xc98] ss:$12 sps:$4 sm:$0xff]  }
 0x1d5   : > { %4477 = vmatprep.subr.bf16.mxu0 %v7326_v15  ;;  %v9238_v56 = vadd.f32 %v6122_v50, %v9068_v6  ;;  %v6125_v30 = vadd.f32 %v6124_v21, %v6123_v52  ;;  %6394 = vmatprep.subr.bf16.mxu1 %v7352_v44  ;;  %v7337_v6 = vld [vmem:[%s9522_s1 + $0xc94] ss:$12 sps:$4 sm:$0xff]   ;;  %v7343_v15 = vld [vmem:[%s9522_s1 + $0xcac] ss:$12 sps:$4 sm:$0xff]   ;;  %v7371_v52 = vld [vmem:[%s9522_s1 + $0xcb0] ss:$12 sps:$4 sm:$0xff]  }
 0x1d6   : > { %5178 = vmatmul.mubr.bf16.gmra.mrb[200].mxu1 %v7327_v53  ;;  %v7341_v50 = vld [vmem:[%s9522_s1 + $0xca8] ss:$12 sps:$4 sm:$0xff]  }
 0x1d7   : > { %4429 = vmatmul.mubr.bf16.gmra.mrb[8].mxu0 %v7327_v53  ;;  %v9244_v27 = vadd.f32 %v6125_v30, %v9076_v7  ;;  %5185 = vmatprep.mubr.bf16.mxu1 %v7333_v23  ;;  %v7365_v7 = vld [vmem:[%s9522_s1 + $0xd58] ss:$12 sps:$4 sm:$0xff]   ;;  %v7359_v30 = vld [vmem:[%s7582_s5 + $0x30c] ss:$72 sps:$4 sm:$0xff]  }
 0x1d8   : > { %4478 = vmatpush1.bf16.msra.mxu0 %v7324_v61  ;;  %6395 = vmatpush3.bf16.msra.mxu1 %v7353_v41  ;;  %v7348_v41 = vld [vmem:[%s9522_s1 + $0xcc0] ss:$12 sps:$4 sm:$0xff]  }
 0x1d9   : > { %4479 = vmatprep.subr.bf16.mxu0 %v7331_v11  ;;  %v6142_v57 = vpop.f32.mrb[96].mxu1  ;;  %6396 = vmatprep.subr.bf16.mxu1 %v7357_v1 }
 0x1da   : > { %4438 = vmatprep.mubr.bf16.mxu0 %v7333_v23  ;;  %v6143_v54 = vpop.f32.mrb[97].mxu1  ;;  %v7351_v23 = vld [vmem:[%s7582_s5 + $0x278] ss:$72 sps:$4 sm:$0xff]  }
 0x1db   : > { %v6144_v19 = vadd.f32 %v6143_v54, %v6142_v57  ;;  %v6145_v42 = vpop.f32.mrb[98].mxu1  ;;  %v7363_v54 = vld [vmem:[%s9522_s1 + $0xcf4] ss:$12 sps:$4 sm:$0xff]  }
 0x1dc   : > { %4480 = vmatpush1.bf16.msra.mxu0 %v7329_v13  ;;  %v6146_v20 = vpop.f32.mrb[99].mxu1  ;;  %6397 = vmatpush3.bf16.msra.mxu1 %v7358_v18  ;;  %v7356_v13 = vld [vmem:[%s9522_s1 + $0xcdc] ss:$12 sps:$4 sm:$0xff]  }
 0x1dd   : > { %4481 = vmatprep.subr.bf16.mxu0 %v7337_v6  ;;  %v9270_v25 = vadd.f32 %v6144_v19, %v9102_v40  ;;  %v6147_v44 = vadd.f32 %v6146_v20, %v6145_v42  ;;  %6398 = vmatprep.subr.bf16.mxu1 %v7365_v7  ;;  %v7350_v40 = vld [vmem:[%s9522_s1 + $0xcc4] ss:$12 sps:$4 sm:$0xff]  }
 0x1de   : > { %5186 = vmatmul.mubr.bf16.gmra.mrb[204].mxu1 %v7338_v43  ;;  %v7354_v7 = vld [vmem:[%s9522_s1 + $0xcd8] ss:$12 sps:$4 sm:$0xff]   ;;  %v7364_v19 = vld [vmem:[%s7582_s5 + $0x308] ss:$72 sps:$4 sm:$0xff]  }
 0x1df   : > { %4439 = vmatmul.mubr.bf16.gmra.mrb[12].mxu0 %v7338_v43  ;;  %v9276_v53 = vadd.f32 %v6147_v44, %v9110_v60  ;;  %5193 = vmatprep.mubr.bf16.mxu1 %v7346_v10 }
 0x1e0   : > { %4482 = vmatpush1.bf16.msra.mxu0 %v7335_v31  ;;  %6399 = vmatpush3.bf16.msra.mxu1 %v7366_v62 }
 0x1e1   : > { %4483 = vmatprep.subr.bf16.mxu0 %v7343_v15  ;;  %v6148_v61 = vpop.f32.mrb[100].mxu1  ;;  %6400 = vmatprep.subr.bf16.mxu1 %v7370_v5  ;;  %v7369_v15 = vld [vmem:[%s9522_s1 + $0xd0c] ss:$12 sps:$4 sm:$0xff]  }
 0x1e2   : > { %4448 = vmatprep.mubr.bf16.mxu0 %v7346_v10  ;;  %v6149_v60 = vpop.f32.mrb[101].mxu1  ;;  %v7374_v10 = vld [vmem:[%s7582_s5 + $0x44] ss:$72 sps:$4 sm:$0xff]  }
 0x1e3   : > { %v6150_v21 = vadd.f32 %v6149_v60, %v6148_v61  ;;  %v6151_v11 = vpop.f32.mrb[102].mxu1  ;;  %v7372_v61 = vld [vmem:[%s7582_s5 + $0x40] ss:$72 sps:$4 sm:$0xff]  }
 0x1e4   : > { %4484 = vmatpush1.bf16.msra.mxu0 %v7341_v50  ;;  %v6152_v1 = vpop.f32.mrb[103].mxu1  ;;  %6401 = vmatpush3.bf16.msra.mxu1 %v7371_v52  ;;  %v7367_v50 = vld [vmem:[%s9522_s1 + $0xd08] ss:$12 sps:$4 sm:$0xff]  }
 0x1e5   : > { %4485 = vmatprep.subr.bf16.mxu0 %v7350_v40  ;;  %v9296_v6 = vadd.f32 %v6150_v21, %v9132_v29  ;;  %v6153_v18 = vadd.f32 %v6152_v1, %v6151_v11  ;;  %v7377_v40 = vld [vmem:[%s9522_s1 + $0xd24] ss:$12 sps:$4 sm:$0xff]   ;;  %v7381_v21 = vld [vmem:[%s7582_s5 + $0xd4] ss:$72 sps:$4 sm:$0xff]  }
 0x1e6   : > { %5194 = vmatmul.mubr.bf16.gmra.mrb[208].mxu1 %v7351_v23 }
 0x1e7   : > { %4449 = vmatmul.mubr.bf16.gmra.mrb[16].mxu0 %v7351_v23  ;;  %v9299_v57 = vadd.f32 %v6153_v18, %v9136_v26  ;;  %5201 = vmatprep.mubr.bf16.mxu1 %v7359_v30  ;;  %v7361_v26 = vld [vmem:[%s9522_s1 + $0xcf0] ss:$12 sps:$4 sm:$0xff]   ;;  %v7378_v18 = vld [vmem:[%s9522_s1 + $0xd38] ss:$12 sps:$4 sm:$0xff]  }
 0x1e8   : > { %4486 = vmatpush1.bf16.msra.mxu0 %v7348_v41  ;;  %4458 = vmatprep.mubr.bf16.mxu0 %v7359_v30  ;;  %v7380_v41 = vld [vmem:[%s9522_s1 + $0xd3c] ss:$12 sps:$4 sm:$0xff]  }
 0x1e9   : > { %4487 = vmatprep.subr.bf16.mxu0 %v7356_v13  ;;  %v6154_v29 = vpop.f32.mrb[104].mxu1 }
 0x1ea   : > { %v6155_v43 = vpop.f32.mrb[105].mxu1 }
 0x1eb   : > { %v6156_v42 = vadd.f32 %v6155_v43, %v6154_v29  ;;  %v6157_v31 = vpop.f32.mrb[106].mxu1  ;;  %v7386_v29 = vld [vmem:[%s7582_s5 + $0xd0] ss:$72 sps:$4 sm:$0xff]  }
 0x1ec   : > { %4488 = vmatpush1.bf16.msra.mxu0 %v7354_v7  ;;  %v6158_v20 = vpop.f32.mrb[107].mxu1  ;;  %v7385_v7 = vld [vmem:[%s9522_s1 + $0xd54] ss:$12 sps:$4 sm:$0xff]  }
 0x1ed   : > { %4489 = vmatprep.subr.bf16.mxu0 %v7363_v54  ;;  %v9316_v62 = vadd.f32 %v6156_v42, %v9151_v59  ;;  %v6159_v44 = vadd.f32 %v6158_v20, %v6157_v31  ;;  %v7390_v42 = vld [vmem:[%s7582_s5 + $0x164] ss:$72 sps:$4 sm:$0xff]  }
 0x1ee   : > { %5202 = vmatmul.mubr.bf16.gmra.mrb[212].mxu1 %v7364_v19 }
 0x1ef   : > { %4459 = vmatmul.mubr.bf16.gmra.mrb[20].mxu0 %v7364_v19  ;;  %v9319_v5 = vadd.f32 %v6159_v44, %v9154_v39  ;;  %5242 = vmatprep.mubr.bf16.mxu1 %v7374_v10  ;;  %v7375_v39 = vld [vmem:[%s9522_s1 + $0xd20] ss:$12 sps:$4 sm:$0xff]   ;;  %v7387_v44 = vld [vmem:[%s9522_s1 + $0xd68] ss:$12 sps:$4 sm:$0xff]  }
 0x1f0   : > { %4490 = vmatpush1.bf16.msra.mxu0 %v7361_v26  ;;  %4501 = vmatprep.mubr.bf16.mxu0 %v7374_v10  ;;  %v7389_v26 = vld [vmem:[%s9522_s1 + $0xd6c] ss:$12 sps:$4 sm:$0xff]  }
 0x1f1   : > { %4491 = vmatprep.subr.bf16.mxu0 %v7369_v15  ;;  %v6160_v59 = vpop.f32.mrb[108].mxu1 }
 0x1f2   : > { %v6161_v52 = vpop.f32.mrb[109].mxu1 }
 0x1f3   : > { %v6162_v60 = vadd.f32 %v6161_v52, %v6160_v59  ;;  %v6163_v23 = vpop.f32.mrb[110].mxu1  ;;  %v7392_v59 = vld [vmem:[%s7582_s5 + $0x160] ss:$72 sps:$4 sm:$0xff]  }
 0x1f4   : > { %4492 = vmatpush1.bf16.msra.mxu0 %v7367_v50  ;;  %v6164_v11 = vpop.f32.mrb[111].mxu1 }
 0x1f5   : > { %4493 = vmatprep.subr.bf16.mxu0 %v7377_v40  ;;  %v9336_v30 = vadd.f32 %v6162_v60, %v9174_v48  ;;  %v6165_v1 = vadd.f32 %v6164_v11, %v6163_v23  ;;  %v7393_v60 = vld [vmem:[%s7582_s5 + $0x1f4] ss:$72 sps:$4 sm:$0xff]  }
 0x1f6   : > { %5243 = vmatmul.mubr.bf16.vlgmr.msra.gmra.mrb[216].mxu1 %v7372_v61 }
 0x1f7   : > { %v9339_v13 = vadd.f32 %v6165_v1, %v9180_v51  ;;  %5250 = vmatprep.mubr.bf16.mxu1 %v7381_v21  ;;  %v7383_v51 = vld [vmem:[%s9522_s1 + $0xd50] ss:$12 sps:$4 sm:$0xff]  }
 0x1f8   : > { %4494 = vmatpush1.bf16.msra.mxu0 %v7375_v39 }
 0x1f9   : > { %4495 = vmatprep.subr.bf16.mxu0 %v7380_v41  ;;  %v6166_v54 = vpop.f32.mrb[112].mxu1 }
 0x1fa   : > { %v6167_v48 = vpop.f32.mrb[113].mxu1 }
 0x1fb   : > { %v6168_v43 = vadd.f32 %v6167_v48, %v6166_v54  ;;  %v6169_v19 = vpop.f32.mrb[114].mxu1  ;;  %v7396_v48 = vld [vmem:[%s7582_s5 + $0x284] ss:$72 sps:$4 sm:$0xff]  }
 0x1fc   : > { %4496 = vmatpush1.bf16.msra.mxu0 %v7378_v18  ;;  %v6170_v31 = vpop.f32.mrb[115].mxu1  ;;  %v7395_v18 = vld [vmem:[%s7582_s5 + $0x1f0] ss:$72 sps:$4 sm:$0xff]  }
 0x1fd   : > { %4497 = vmatprep.subr.bf16.mxu0 %v7385_v7  ;;  %v9356_v10 = vadd.f32 %v6168_v43, %v9206_v32  ;;  %v6171_v20 = vadd.f32 %v6170_v31, %v6169_v19 }
 0x1fe   : > { %5251 = vmatmul.mubr.bf16.gmra.mrb[220].mxu1 %v7386_v29 }
 0x1ff   : > { %v9359_v15 = vadd.f32 %v6171_v20, %v9212_v22  ;;  %5258 = vmatprep.mubr.bf16.mxu1 %v7390_v42  ;;  %v7399_v20 = vld [vmem:[%s7582_s5 + $0x314] ss:$72 sps:$4 sm:$0xff]  }
 0x200   : > { %4498 = vmatpush1.bf16.msra.mxu0 %v7383_v51  ;;  %v7398_v51 = vld [vmem:[%s7582_s5 + $0x280] ss:$72 sps:$4 sm:$0xff]  }
 0x201   : > { %4499 = vmatprep.subr.bf16.mxu0 %v7389_v26  ;;  %v6172_v50 = vpop.f32.mrb[116].mxu1 }
 0x202   : > { %v6173_v40 = vpop.f32.mrb[117].mxu1 }
 0x203   : > { %v6174_v52 = vadd.f32 %v6173_v40, %v6172_v50  ;;  %v6175_v32 = vpop.f32.mrb[118].mxu1  ;;  %v7401_v40 = vld [vmem:[%s7582_s5 + $0x310] ss:$72 sps:$4 sm:$0xff]   ;;  %s6655_s5 = smul.u32 24, %s9526_s22 }
 0x204   : > { %4500 = vmatpush1.bf16.msra.mxu0 %v7387_v44  ;;  %v6176_v23 = vpop.f32.mrb[119].mxu1 }
 0x205   : > { %v9367_v22 = vadd.f32 %v6174_v52, %v9238_v56  ;;  %v6177_v39 = vadd.f32 %v6176_v23, %v6175_v32  ;;  %s9415_s18 = scalar_lea.vmem %s9524_s3, %s6655_s5 }
 0x206   : > { %5259 = vmatmul.mubr.bf16.gmra.mrb[224].mxu1 %v7392_v59 }
 0x207   : > { %4502 = vmatmul.mubr.bf16.vlgmr.msra.gmra.mrb[0].mxu0 %v7372_v61  ;;  %v9370_v11 = vadd.f32 %v6177_v39, %v9244_v27  ;;  %5266 = vmatprep.mubr.bf16.mxu1 %v7393_v60 }
 0x208   : > { %4511 = vmatprep.mubr.bf16.mxu0 %v7381_v21 }
 0x209   : > { %v6194_v41 = vpop.f32.mrb[120].mxu1 }
 0x20a   : > { %v6195_v1 = vpop.f32.mrb[121].mxu1 }
 0x20b   : > { %v6196_v7 = vadd.f32 %v6195_v1, %v6194_v41  ;;  %v6197_v54 = vpop.f32.mrb[122].mxu1 }
 0x20c   : > { %v6198_v43 = vpop.f32.mrb[123].mxu1 }
 0x20d   : > { %v9375_v56 = vadd.f32 %v6196_v7, %v9270_v25  ;;  %v6199_v19 = vadd.f32 %v6198_v43, %v6197_v54 }
 0x20e   : > { %5267 = vmatmul.mubr.bf16.gmra.mrb[228].mxu1 %v7395_v18 }
 0x20f   : > { %4512 = vmatmul.mubr.bf16.gmra.mrb[4].mxu0 %v7386_v29  ;;  %v9378_v27 = vadd.f32 %v6199_v19, %v9276_v53  ;;  %5274 = vmatprep.mubr.bf16.mxu1 %v7396_v48 }
 0x210   : > { %4521 = vmatprep.mubr.bf16.mxu0 %v7390_v42 }
 0x211   : > { %v6200_v61 = vpop.f32.mrb[124].mxu1 }
 0x212   : > { %v6201_v21 = vpop.f32.mrb[125].mxu1 }
 0x213   : > { %v6202_v31 = vadd.f32 %v6201_v21, %v6200_v61  ;;  %v6203_v26 = vpop.f32.mrb[126].mxu1 }
 0x214   : > { %v6204_v44 = vpop.f32.mrb[127].mxu1 }
 0x215   : > { %v4929_v50 = vadd.f32 %v6202_v31, %v9296_v6  ;;  %v6205_v25 = vadd.f32 %v6204_v44, %v6203_v26 }
 0x216   : > { %5275 = vmatmul.mubr.bf16.gmra.mrb[232].mxu1 %v7398_v51 }
 0x217   : > { %4522 = vmatmul.mubr.bf16.gmra.mrb[8].mxu0 %v7392_v59  ;;  %v4932_v29 = vadd.f32 %v6205_v25, %v9299_v57  ;;  %5282 = vmatprep.mubr.bf16.mxu1 %v7399_v20 }
 0x218   : > { %4531 = vmatprep.mubr.bf16.mxu0 %v7393_v60 }
 0x219   : > { %v6206_v53 = vpop.f32.mrb[128].mxu1 }
 0x21a   : > { %v6207_v42 = vpop.f32.mrb[129].mxu1 }
 0x21b   : > { %v6208_v52 = vadd.f32 %v6207_v42, %v6206_v53  ;;  %v6209_v32 = vpop.f32.mrb[130].mxu1 }
 0x21c   : > { %v6210_v23 = vpop.f32.mrb[131].mxu1 }
 0x21d   : > { %v4937_v39 = vadd.f32 %v6208_v52, %v9316_v62  ;;  %v6211_v41 = vadd.f32 %v6210_v23, %v6209_v32 }
 0x21e   : > { %5283 = vmatmul.mubr.bf16.gmra.mrb[236].mxu1 %v7401_v40 }
 0x21f   : > { %4532 = vmatmul.mubr.bf16.gmra.mrb[12].mxu0 %v7395_v18  ;;  %v4940_v6 = vadd.f32 %v6211_v41, %v9319_v5 }
 0x220   : > { %4541 = vmatprep.mubr.bf16.mxu0 %v7396_v48 }
 0x221   : > { %v6212_v59 = vpop.f32.mrb[132].mxu1 }
 0x222   : > { %v6213_v1 = vpop.f32.mrb[133].mxu1 }
 0x223   : > { %v6214_v7 = vadd.f32 %v6213_v1, %v6212_v59  ;;  %v6215_v57 = vpop.f32.mrb[134].mxu1 }
 0x224   : > { %v6216_v60 = vpop.f32.mrb[135].mxu1 }
 0x225   : > { %v4945_v54 = vadd.f32 %v6214_v7, %v9336_v30  ;;  %v6217_v43 = vadd.f32 %v6216_v60, %v6215_v57 }
 0x227   : > { %4542 = vmatmul.mubr.bf16.gmra.mrb[16].mxu0 %v7398_v51  ;;  %v4948_v19 = vadd.f32 %v6217_v43, %v9339_v13 }
 0x228   : > { %4551 = vmatprep.mubr.bf16.mxu0 %v7399_v20 }
 0x229   : > { %v6218_v61 = vpop.f32.mrb[136].mxu1 }
 0x22a   : > { %v6219_v62 = vpop.f32.mrb[137].mxu1 }
 0x22b   : > { %v6220_v21 = vadd.f32 %v6219_v62, %v6218_v61  ;;  %v6221_v18 = vpop.f32.mrb[138].mxu1 }
 0x22c   : > { %v6222_v31 = vpop.f32.mrb[139].mxu1 }
 0x22d   : > { %v4953_v5 = vadd.f32 %v6220_v21, %v9356_v10  ;;  %v6223_v48 = vadd.f32 %v6222_v31, %v6221_v18 }
 0x22f   : > { %4552 = vmatmul.mubr.bf16.gmra.mrb[20].mxu0 %v7401_v40  ;;  %v4956_v26 = vadd.f32 %v6223_v48, %v9359_v15 }
 0x231   : > { %v6224_v44 = vpop.f32.mrb[140].mxu1 }
 0x232   : > { %v6225_v25 = vpop.f32.mrb[141].mxu1 }
 0x233   : > { %v6226_v53 = vadd.f32 %v6225_v25, %v6224_v44  ;;  %v6227_v30 = vpop.f32.mrb[142].mxu1 }
 0x234   : > { %v6228_v42 = vpop.f32.mrb[143].mxu1 }
 0x235   : > { %v4961_v51 = vadd.f32 %v6226_v53, %v9367_v22  ;;  %v6229_v13 = vadd.f32 %v6228_v42, %v6227_v30 }
 0x237   : > { %v4964_v20 = vadd.f32 %v6229_v13, %v9370_v11 }
 0x239   : > { %v6246_v52 = vpop.f32.mrb[144].mxu1 }
 0x23a   : > { %v6247_v32 = vpop.f32.mrb[145].mxu1 }
 0x23b   : > { %v6248_v23 = vadd.f32 %v6247_v32, %v6246_v52  ;;  %v6249_v41 = vpop.f32.mrb[146].mxu1 }
 0x23c   : > { %v6250_v59 = vpop.f32.mrb[147].mxu1 }
 0x23d   : > { %v5002_v10 = vadd.f32 %v6248_v23, %v9375_v56  ;;  %v6251_v40 = vadd.f32 %v6250_v59, %v6249_v41 }
 0x23f   : > { %v5005_v15 = vadd.f32 %v6251_v40, %v9378_v27 }
 0x241   : > { %v6252_v1 = vpop.f32.mrb[148].mxu1 }
 0x242   : > { %v6253_v7 = vpop.f32.mrb[149].mxu1 }
 0x243   : > { %v6254_v57 = vadd.f32 %v6253_v7, %v6252_v1  ;;  %v6255_v60 = vpop.f32.mrb[150].mxu1 }
 0x244   : > { %v6256_v43 = vpop.f32.mrb[151].mxu1 }
 0x245   : > { %v5010_v61 = vadd.f32 %v6254_v57, %v4929_v50  ;;  %v6257_v22 = vadd.f32 %v6256_v43, %v6255_v60 }
 0x247   : > { %v5013_v62 = vadd.f32 %v6257_v22, %v4932_v29 }
 0x249   : > { %v6258_v21 = vpop.f32.mrb[152].mxu1 }
 0x24a   : > { %v6259_v11 = vpop.f32.mrb[153].mxu1 }
 0x24b   : > { %v6260_v18 = vadd.f32 %v6259_v11, %v6258_v21  ;;  %v6261_v31 = vpop.f32.mrb[154].mxu1 }
 0x24c   : > { %v6262_v48 = vpop.f32.mrb[155].mxu1 }
 0x24d   : > { %v5018_v44 = vadd.f32 %v6260_v18, %v4937_v39  ;;  %v6263_v25 = vadd.f32 %v6262_v48, %v6261_v31 }
 0x24f   : > { %v5021_v53 = vadd.f32 %v6263_v25, %v4940_v6 }
 0x251   : > { %v6264_v56 = vpop.f32.mrb[156].mxu1 }
 0x252   : > { %v6265_v30 = vpop.f32.mrb[157].mxu1 }
 0x253   : > { %v6266_v42 = vadd.f32 %v6265_v30, %v6264_v56  ;;  %v6267_v27 = vpop.f32.mrb[158].mxu1 }
 0x254   : > { %v6268_v13 = vpop.f32.mrb[159].mxu1 }
 0x255   : > { %v5026_v52 = vadd.f32 %v6266_v42, %v4945_v54  ;;  %v6269_v32 = vadd.f32 %v6268_v13, %v6267_v27 }
 0x257   : > { %v5029_v23 = vadd.f32 %v6269_v32, %v4948_v19 }
 0x259   : > { %v6270_v41 = vpop.f32.mrb[160].mxu1 }
 0x25a   : > { %v6271_v50 = vpop.f32.mrb[161].mxu1 }
 0x25b   : > { %v6272_v59 = vadd.f32 %v6271_v50, %v6270_v41  ;;  %v6273_v29 = vpop.f32.mrb[162].mxu1 }
 0x25c   : > { %v6274_v40 = vpop.f32.mrb[163].mxu1 }
 0x25d   : > { %v5034_v1 = vadd.f32 %v6272_v59, %v4953_v5  ;;  %v6275_v7 = vadd.f32 %v6274_v40, %v6273_v29 }
 0x25f   : > { %v5037_v57 = vadd.f32 %v6275_v7, %v4956_v26 }
 0x261   : > { %v6276_v60 = vpop.f32.mrb[164].mxu1 }
 0x262   : > { %v6277_v39 = vpop.f32.mrb[165].mxu1 }
 0x263   : > { %v6278_v43 = vadd.f32 %v6277_v39, %v6276_v60  ;;  %v6279_v6 = vpop.f32.mrb[166].mxu1 }
 0x264   : > { %v6280_v22 = vpop.f32.mrb[167].mxu1 }
 0x265   : > { %v5042_v21 = vadd.f32 %v6278_v43, %v4961_v51  ;;  %v6281_v11 = vadd.f32 %v6280_v22, %v6279_v6 }
 0x267   : > { %v5045_v18 = vadd.f32 %v6281_v11, %v4964_v20 }
 0x269   : > { %v6298_v31 = vpop.f32.mrb[168].mxu1 }
 0x26a   : > { %v6299_v54 = vpop.f32.mrb[169].mxu1 }
 0x26b   : > { %v6300_v48 = vadd.f32 %v6299_v54, %v6298_v31  ;;  %v6301_v19 = vpop.f32.mrb[170].mxu1 }
 0x26c   : > { %v6302_v25 = vpop.f32.mrb[171].mxu1 }
 0x26d   : > { %v5083_v56 = vadd.f32 %v6300_v48, %v5002_v10  ;;  %v6303_v30 = vadd.f32 %v6302_v25, %v6301_v19 }
 0x26f   : > { %v5086_v42 = vadd.f32 %v6303_v30, %v5005_v15 }
 0x271   : > { %v6304_v27 = vpop.f32.mrb[172].mxu1 }
 0x272   : > { %v6305_v5 = vpop.f32.mrb[173].mxu1 }
 0x273   : > { %v6306_v13 = vadd.f32 %v6305_v5, %v6304_v27  ;;  %v6307_v26 = vpop.f32.mrb[174].mxu1 }
 0x274   : > { %v6308_v32 = vpop.f32.mrb[175].mxu1 }
 0x275   : > { %v5091_v41 = vadd.f32 %v6306_v13, %v5010_v61  ;;  %v6309_v50 = vadd.f32 %v6308_v32, %v6307_v26 }
 0x277   : > { %v5094_v59 = vadd.f32 %v6309_v50, %v5013_v62 }
 0x279   : > { %v6310_v29 = vpop.f32.mrb[176].mxu1 }
 0x27a   : > { %v6311_v51 = vpop.f32.mrb[177].mxu1 }
 0x27b   : > { %v6312_v40 = vadd.f32 %v6311_v51, %v6310_v29  ;;  %v6313_v20 = vpop.f32.mrb[178].mxu1 }
 0x27c   : > { %v6314_v7 = vpop.f32.mrb[179].mxu1 }
 0x27d   : > { %v5099_v60 = vadd.f32 %v6312_v40, %v5018_v44  ;;  %v6315_v39 = vadd.f32 %v6314_v7, %v6313_v20 }
 0x27f   : > { %v5102_v43 = vadd.f32 %v6315_v39, %v5021_v53 }
 0x281   : > { %v6316_v6 = vpop.f32.mrb[180].mxu1 }
 0x282   : > { %v6317_v10 = vpop.f32.mrb[181].mxu1 }
 0x283   : > { %v6318_v22 = vadd.f32 %v6317_v10, %v6316_v6  ;;  %v6319_v15 = vpop.f32.mrb[182].mxu1 }
 0x284   : > { %v6320_v11 = vpop.f32.mrb[183].mxu1 }
 0x285   : > { %v5107_v31 = vadd.f32 %v6318_v22, %v5026_v52  ;;  %v6321_v54 = vadd.f32 %v6320_v11, %v6319_v15 }
 0x287   : > { %v5110_v48 = vadd.f32 %v6321_v54, %v5029_v23 }
 0x289   : > { %v6322_v19 = vpop.f32.mrb[184].mxu1 }
 0x28a   : > { %v6323_v61 = vpop.f32.mrb[185].mxu1 }
 0x28b   : > { %v6324_v25 = vadd.f32 %v6323_v61, %v6322_v19  ;;  %v6325_v62 = vpop.f32.mrb[186].mxu1 }
 0x28c   : > { %v6326_v30 = vpop.f32.mrb[187].mxu1 }
 0x28d   : > { %v5115_v27 = vadd.f32 %v6324_v25, %v5034_v1  ;;  %v6327_v5 = vadd.f32 %v6326_v30, %v6325_v62 }
 0x28f   : > { %v5118_v13 = vadd.f32 %v6327_v5, %v5037_v57 }
 0x291   : > { %v6328_v26 = vpop.f32.mrb[188].mxu1 }
 0x292   : > { %v6329_v44 = vpop.f32.mrb[189].mxu1 }
 0x293   : > { %v6330_v32 = vadd.f32 %v6329_v44, %v6328_v26  ;;  %v6331_v53 = vpop.f32.mrb[190].mxu1 }
 0x294   : > { %v6332_v50 = vpop.f32.mrb[191].mxu1 }
 0x295   : > { %v5123_v29 = vadd.f32 %v6330_v32, %v5042_v21  ;;  %v6333_v51 = vadd.f32 %v6332_v50, %v6331_v53 }
 0x297   : > { %v5126_v40 = vadd.f32 %v6333_v51, %v5045_v18 }
 0x299   : > { %v6350_v20 = vpop.f32.mrb[192].mxu1 }
 0x29a   : > { %v6351_v52 = vpop.f32.mrb[193].mxu1 }
 0x29b   : > { %v6352_v7 = vadd.f32 %v6351_v52, %v6350_v20  ;;  %v6353_v23 = vpop.f32.mrb[194].mxu1 }
 0x29c   : > { %v6354_v39 = vpop.f32.mrb[195].mxu1 }
 0x29d   : > { %v5164_v6 = vadd.f32 %v6352_v7, %v5083_v56  ;;  %v6355_v10 = vadd.f32 %v6354_v39, %v6353_v23 }
 0x29f   : > { %v5167_v22 = vadd.f32 %v6355_v10, %v5086_v42 }
 0x2a1   : > { %v6356_v15 = vpop.f32.mrb[196].mxu1 }
 0x2a2   : > { %v6357_v1 = vpop.f32.mrb[197].mxu1 }
 0x2a3   : > { %v6358_v11 = vadd.f32 %v6357_v1, %v6356_v15  ;;  %v6359_v57 = vpop.f32.mrb[198].mxu1 }
 0x2a4   : > { %v6360_v54 = vpop.f32.mrb[199].mxu1 }
 0x2a5   : > { %v5172_v19 = vadd.f32 %v6358_v11, %v5091_v41  ;;  %v6361_v61 = vadd.f32 %v6360_v54, %v6359_v57 }
 0x2a7   : > { %v5175_v25 = vadd.f32 %v6361_v61, %v5094_v59 }
 0x2a9   : > { %v6362_v62 = vpop.f32.mrb[200].mxu1 }
 0x2aa   : > { %v6363_v21 = vpop.f32.mrb[201].mxu1 }
 0x2ab   : > { %v6364_v30 = vadd.f32 %v6363_v21, %v6362_v62  ;;  %v6365_v18 = vpop.f32.mrb[202].mxu1 }
 0x2ac   : > { %v6366_v5 = vpop.f32.mrb[203].mxu1 }
 0x2ad   : > { %v9395_v26 = vadd.f32 %v6364_v30, %v5099_v60  ;;  %v6367_v44 = vadd.f32 %v6366_v5, %v6365_v18 }
 0x2af   : > { %v9397_v32 = vadd.f32 %v6367_v44, %v5102_v43 }
 0x2b1   : > { %v6368_v56 = vpop.f32.mrb[204].mxu1 }
 0x2b2   : > { %v6369_v42 = vpop.f32.mrb[205].mxu1 }
 0x2b3   : > { %v6370_v53 = vadd.f32 %v6369_v42, %v6368_v56  ;;  %v6371_v50 = vpop.f32.mrb[206].mxu1  ;;  %v872_v42 = vsub.s32 1, %v8833_v36 }
 0x2b4   : > { %v6372_v51 = vpop.f32.mrb[207].mxu1 }
 0x2b5   : > { %v9399_v20 = vadd.f32 %v6370_v53, %v5107_v31  ;;  %v6373_v41 = vadd.f32 %v6372_v51, %v6371_v50 }
 0x2b7   : > { %v9401_v52 = vadd.f32 %v6373_v41, %v5110_v48 }
 0x2b9   : > { %v6374_v59 = vpop.f32.mrb[208].mxu1 }
 0x2ba   : > { %v6375_v7 = vpop.f32.mrb[209].mxu1 }
 0x2bb   : > { %v6376_v23 = vadd.f32 %v6375_v7, %v6374_v59  ;;  %v6377_v39 = vpop.f32.mrb[210].mxu1  ;;  %v7402_v59 = vld [vmem:[%s9523_s2] sm:$0x7] }
 0x2bc   : > { %v6378_v60 = vpop.f32.mrb[211].mxu1 }
 0x2bd   : > { %v9403_v10 = vadd.f32 %v6376_v23, %v5115_v27  ;;  %v6379_v43 = vadd.f32 %v6378_v60, %v6377_v39 }
 0x2bf   : > { %v9405_v15 = vadd.f32 %v6379_v43, %v5118_v13 }
 0x2c1   : > { %v6380_v1 = vpop.f32.mrb[212].mxu1 }
 0x2c2   : > { %v6381_v11 = vpop.f32.mrb[213].mxu1 }
 0x2c3   : > { %v6382_v57 = vadd.f32 %v6381_v11, %v6380_v1  ;;  %v6383_v54 = vpop.f32.mrb[214].mxu1 }
 0x2c4   : > { %v6384_v31 = vpop.f32.mrb[215].mxu1 }
 0x2c5   : > { %v9407_v61 = vadd.f32 %v6382_v57, %v5123_v29  ;;  %v6385_v48 = vadd.f32 %v6384_v31, %v6383_v54 }
 0x2c7   : > { %v9409_v62 = vadd.f32 %v6385_v48, %v5126_v40  ;;  %v868_v40 = vsub.s32 0, %v8833_v36 }
 0x2c9   : > { %v6402_v21 = vpop.f32.mrb[216].mxu1  ;;  %v9424_v7 = vrot.slane %v7402_v59, %v868_v40 }
 0x2ca   : > { %v6403_v30 = vpop.f32.mrb[217].mxu1 }
 0x2cb   : > { %v6404_v18 = vadd.f32 %v6403_v30, %v6402_v21  ;;  %v6405_v5 = vpop.f32.mrb[218].mxu1  ;;  %v3760_v1 = vadd.f32 %v8458_v58, %v9424_v7  ;;  %v3764_v48 = vadd.f32 %v8475_v3, %v9424_v7 }
 0x2cc   : > { %v6406_v27 = vpop.f32.mrb[219].mxu1 }
 0x2cd   : > { %v5245_v44 = vadd.f32 %v6404_v18, %v5164_v6  ;;  %v6407_v56 = vadd.f32 %v6406_v27, %v6405_v5 }
 0x2cf   : > { %v5293_v13 = vmax.f32 %v5245_v44, 0.0  ;;  %v5248_v29 = vadd.f32 %v6407_v56, %v5167_v22  ;;  %v9426_v22 = vrot.slane %v7402_v59, %v872_v42 }
 0x2d1   : > { %5329 = vst [vmem:[%s9415_s18 + $0x10] sm:$0xff] %v5293_v13  ;;  %v5296_v53 = vmax.f32 %v5248_v29, 0.0  ;;  %v6408_v50 = vpop.f32.mrb[220].mxu1  ;;  %v3762_v11 = vadd.f32 %v8467_v38, %v9426_v22 }
 0x2d2   : > { %v6409_v51 = vpop.f32.mrb[221].mxu1 }
 0x2d3   : > { %5332 = vst [vmem:[%s9415_s18 + $0x28] sm:$0xff] %v5296_v53  ;;  %v6410_v6 = vadd.f32 %v6409_v51, %v6408_v50  ;;  %v6411_v41 = vpop.f32.mrb[222].mxu1 }
 0x2d4   : > { %v6412_v23 = vpop.f32.mrb[223].mxu1 }
 0x2d5   : > { %v5253_v39 = vadd.f32 %v6410_v6, %v5172_v19  ;;  %v6413_v36 = vadd.f32 %v6412_v23, %v6411_v41  ;;  %v3770_v6 = vadd.f32 %v8503_v24, %v9424_v7  ;;  %v3772_v41 = vadd.f32 %v8509_v14, %v9426_v22 }
 0x2d7   : > { %v5299_v60 = vmax.f32 %v5253_v39, 0.0  ;;  %v5256_v43 = vadd.f32 %v6413_v36, %v5175_v25  ;;  %v3766_v25 = vadd.f32 %v8477_v8, %v9426_v22  ;;  %v3774_v39 = vadd.f32 %v8514_v28, %v9424_v7 }
 0x2d9   : > { %5335 = vst [vmem:[%s9415_s18 + $0x40] sm:$0xff] %v5299_v60  ;;  %v5302_v57 = vmax.f32 %v5256_v43, 0.0  ;;  %v6414_v31 = vpop.f32.mrb[224].mxu1 }
 0x2da   : > { %v4503_v54 = vpop.f32.mrb[0].mxu0  ;;  %v6415_v19 = vpop.f32.mrb[225].mxu1 }
 0x2db   : > { %v6439_v21 = vadd.f32 %v4503_v54, %v3760_v1  ;;  %v4505_v30 = vpop.f32.mrb[1].mxu0  ;;  %5338 = vst [vmem:[%s9415_s18 + $0x58] sm:$0xff] %v5302_v57  ;;  %v6416_v18 = vadd.f32 %v6415_v19, %v6414_v31  ;;  %v6417_v38 = vpop.f32.mrb[226].mxu1 }
 0x2dc   : > { %v6441_v58 = vadd.f32 %v4505_v30, %v3762_v11  ;;  %v4507_v5 = vpop.f32.mrb[2].mxu0  ;;  %v6418_v3 = vpop.f32.mrb[227].mxu1 }
 0x2dd   : > { %v5291_v27 = vmax.f32 %v6439_v21, 0.0  ;;  %v6443_v44 = vadd.f32 %v4507_v5, %v3764_v48  ;;  %v4509_v56 = vpop.f32.mrb[3].mxu0  ;;  %v5261_v29 = vadd.f32 %v6416_v18, %v9395_v26  ;;  %v6419_v42 = vadd.f32 %v6418_v3, %v6417_v38 }
 0x2de   : > { %v5292_v13 = vmax.f32 %v6441_v58, 0.0  ;;  %v6445_v40 = vadd.f32 %v4509_v56, %v3766_v25  ;;  %v3780_v5 = vadd.f32 %v8534_v33, %v9424_v7  ;;  %v3782_v38 = vadd.f32 %v8539_v34, %v9426_v22 }
 0x2df   : > { %5327 = vst [vmem:[%s9415_s18] sm:$0xff] %v5291_v27  ;;  %v5294_v8 = vmax.f32 %v6443_v44, 0.0  ;;  %v5305_v53 = vmax.f32 %v5261_v29, 0.0  ;;  %v5264_v51 = vadd.f32 %v6419_v42, %v9397_v32  ;;  %v3776_v32 = vadd.f32 %v8519_v35, %v9426_v22 }
 0x2e0   : > { %5328 = vst [vmem:[%s9415_s18 + $0x8] sm:$0xff] %v5292_v13  ;;  %v5295_v50 = vmax.f32 %v6445_v40, 0.0  ;;  %v3784_v56 = vadd.f32 %v8544_v4, %v9424_v7 }
 0x2e1   : > { %5330 = vst [vmem:[%s9415_s18 + $0x18] sm:$0xff] %v5294_v8  ;;  %5341 = vst [vmem:[%s9415_s18 + $0x70] sm:$0xff] %v5305_v53  ;;  %v5308_v26 = vmax.f32 %v5264_v51, 0.0  ;;  %v6420_v23 = vpop.f32.mrb[228].mxu1 }
 0x2e2   : > { %5331 = vst [vmem:[%s9415_s18 + $0x20] sm:$0xff] %v5295_v50  ;;  %v4513_v59 = vpop.f32.mrb[4].mxu0  ;;  %v6421_v43 = vpop.f32.mrb[229].mxu1 }
 0x2e3   : > { %v6447_v36 = vadd.f32 %v4513_v59, %v3770_v6  ;;  %v4515_v60 = vpop.f32.mrb[5].mxu0  ;;  %5344 = vst [vmem:[%s9415_s18 + $0x88] sm:$0xff] %v5308_v26  ;;  %v6422_v1 = vadd.f32 %v6421_v43, %v6420_v23  ;;  %v6423_v11 = vpop.f32.mrb[230].mxu1 }
 0x2e4   : > { %v6449_v24 = vadd.f32 %v4515_v60, %v3772_v41  ;;  %v4517_v14 = vpop.f32.mrb[6].mxu0  ;;  %v6424_v28 = vpop.f32.mrb[231].mxu1  ;;  %v3792_v60 = vadd.f32 %v8569_v47, %v9426_v22 }
 0x2e5   : > { %v5297_v57 = vmax.f32 %v6447_v36, 0.0  ;;  %v6451_v54 = vadd.f32 %v4517_v14, %v3774_v39  ;;  %v4519_v31 = vpop.f32.mrb[7].mxu0  ;;  %v5269_v21 = vadd.f32 %v6422_v1, %v9399_v20  ;;  %v6425_v19 = vadd.f32 %v6424_v28, %v6423_v11 }
 0x2e6   : > { %v5298_v48 = vmax.f32 %v6449_v24, 0.0  ;;  %v6453_v30 = vadd.f32 %v4519_v31, %v3776_v32  ;;  %v3790_v36 = vadd.f32 %v8564_v16, %v9424_v7  ;;  %v3794_v24 = vadd.f32 %v8574_v45, %v9424_v7 }
 0x2e7   : > { %5333 = vst [vmem:[%s9415_s18 + $0x30] sm:$0xff] %v5297_v57  ;;  %v5300_v35 = vmax.f32 %v6451_v54, 0.0  ;;  %v5311_v25 = vmax.f32 %v5269_v21, 0.0  ;;  %v5272_v18 = vadd.f32 %v6425_v19, %v9401_v52  ;;  %v3786_v52 = vadd.f32 %v8549_v9, %v9426_v22 }
 0x2e8   : > { %5334 = vst [vmem:[%s9415_s18 + $0x38] sm:$0xff] %v5298_v48  ;;  %v5301_v58 = vmax.f32 %v6453_v30, 0.0 }
 0x2e9   : > { %5336 = vst [vmem:[%s9415_s18 + $0x48] sm:$0xff] %v5300_v35  ;;  %5347 = vst [vmem:[%s9415_s18 + $0xa0] sm:$0xff] %v5311_v25  ;;  %v5314_v20 = vmax.f32 %v5272_v18, 0.0  ;;  %v6426_v44 = vpop.f32.mrb[232].mxu1 }
 0x2ea   : > { %5337 = vst [vmem:[%s9415_s18 + $0x50] sm:$0xff] %v5301_v58  ;;  %v4523_v27 = vpop.f32.mrb[8].mxu0  ;;  %v6427_v29 = vpop.f32.mrb[233].mxu1 }
 0x2eb   : > { %v6455_v3 = vadd.f32 %v4523_v27, %v3780_v5  ;;  %v4525_v13 = vpop.f32.mrb[9].mxu0  ;;  %5350 = vst [vmem:[%s9415_s18 + $0xb8] sm:$0xff] %v5314_v20  ;;  %v6428_v40 = vadd.f32 %v6427_v29, %v6426_v44  ;;  %v6429_v42 = vpop.f32.mrb[234].mxu1  ;;  %v3800_v5 = vadd.f32 %v8598_v0, %v9424_v7  ;;  %v3804_v27 = vadd.f32 %v8608_v37, %v9424_v7 }
 0x2ec   : > { %v6457_v33 = vadd.f32 %v4525_v13, %v3782_v38  ;;  %v4527_v34 = vpop.f32.mrb[10].mxu0  ;;  %v6430_v4 = vpop.f32.mrb[235].mxu1  ;;  %v3802_v38 = vadd.f32 %v8603_v2, %v9426_v22  ;;  %v3810_v37 = vadd.f32 %v8629_v49, %v9424_v7 }
 0x2ed   : > { %v5303_v8 = vmax.f32 %v6455_v3, 0.0  ;;  %v6459_v53 = vadd.f32 %v4527_v34, %v3784_v56  ;;  %v4529_v50 = vpop.f32.mrb[11].mxu0  ;;  %v5277_v6 = vadd.f32 %v6428_v40, %v9403_v10  ;;  %v6431_v26 = vadd.f32 %v6430_v4, %v6429_v42 }
 0x2ee   : > { %v5304_v51 = vmax.f32 %v6457_v33, 0.0  ;;  %v6461_v41 = vadd.f32 %v4529_v50, %v3786_v52  ;;  %v3816_v4 = vadd.f32 %v8647_v17, %v9426_v22 }
 0x2ef   : > { %5339 = vst [vmem:[%s9415_s18 + $0x60] sm:$0xff] %v5303_v8  ;;  %v5306_v9 = vmax.f32 %v6459_v53, 0.0  ;;  %v5317_v59 = vmax.f32 %v5277_v6, 0.0  ;;  %v5280_v39 = vadd.f32 %v6431_v26, %v9405_v15  ;;  %v3796_v15 = vadd.f32 %v8576_v46, %v9426_v22 }
 0x2f0   : > { %5340 = vst [vmem:[%s9415_s18 + $0x68] sm:$0xff] %v5304_v51  ;;  %v5307_v23 = vmax.f32 %v6461_v41, 0.0  ;;  %v3814_v8 = vadd.f32 %v8642_v12, %v9424_v7 }
 0x2f1   : > { %5342 = vst [vmem:[%s9415_s18 + $0x78] sm:$0xff] %v5306_v9  ;;  %5353 = vst [vmem:[%s9415_s18 + $0xd0] sm:$0xff] %v5317_v59  ;;  %v5320_v10 = vmax.f32 %v5280_v39, 0.0  ;;  %v6432_v32 = vpop.f32.mrb[236].mxu1 }
 0x2f2   : > { %5343 = vst [vmem:[%s9415_s18 + $0x80] sm:$0xff] %v5307_v23  ;;  %v4533_v43 = vpop.f32.mrb[12].mxu0  ;;  %v6433_v11 = vpop.f32.mrb[237].mxu1 }
 0x2f3   : > { %v6463_v1 = vadd.f32 %v4533_v43, %v3790_v36  ;;  %v4535_v14 = vpop.f32.mrb[13].mxu0  ;;  %5356 = vst [vmem:[%s9415_s18 + $0xe8] sm:$0xff] %v5320_v10  ;;  %v6434_v57 = vadd.f32 %v6433_v11, %v6432_v32  ;;  %v6435_v54 = vpop.f32.mrb[238].mxu1 }
 0x2f4   : > { %v6465_v16 = vadd.f32 %v4535_v14, %v3792_v60  ;;  %v4537_v47 = vpop.f32.mrb[14].mxu0  ;;  %v6436_v45 = vpop.f32.mrb[239].mxu1 }
 0x2f5   : > { %v5309_v31 = vmax.f32 %v6463_v1, 0.0  ;;  %v6467_v28 = vadd.f32 %v4537_v47, %v3794_v24  ;;  %v4539_v48 = vpop.f32.mrb[15].mxu0  ;;  %v5285_v30 = vadd.f32 %v6434_v57, %v9407_v61  ;;  %v6437_v35 = vadd.f32 %v6436_v45, %v6435_v54 }
 0x2f6   : > { %v5310_v21 = vmax.f32 %v6465_v16, 0.0  ;;  %v6469_v19 = vadd.f32 %v4539_v48, %v3796_v15 }
 0x2f7   : > { %5345 = vst [vmem:[%s9415_s18 + $0x90] sm:$0xff] %v5309_v31  ;;  %v5312_v46 = vmax.f32 %v6467_v28, 0.0  ;;  %v5323_v25 = vmax.f32 %v5285_v30, 0.0  ;;  %v5288_v18 = vadd.f32 %v6437_v35, %v9409_v62  ;;  %v3806_v62 = vadd.f32 %v8610_v63, %v9426_v22 }
 0x2f8   : > { %5346 = vst [vmem:[%s9415_s18 + $0x98] sm:$0xff] %v5310_v21  ;;  %v5313_v58 = vmax.f32 %v6469_v19, 0.0  ;;  %v3812_v63 = vadd.f32 %v8637_v55, %v9426_v22 }
 0x2f9   : > { %5348 = vst [vmem:[%s9415_s18 + $0xa8] sm:$0xff] %v5312_v46  ;;  %5359 = vst [vmem:[%s9415_s18 + $0x100] sm:$0xff] %v5323_v25  ;;  %v5326_v61 = vmax.f32 %v5288_v18, 0.0 }
 0x2fa   : > { %5349 = vst [vmem:[%s9415_s18 + $0xb0] sm:$0xff] %v5313_v58  ;;  %v4543_v20 = vpop.f32.mrb[16].mxu0 }
 0x2fb   : > { %v6471_v44 = vadd.f32 %v4543_v20, %v3800_v5  ;;  %v4545_v56 = vpop.f32.mrb[17].mxu0  ;;  %5362 = vst [vmem:[%s9415_s18 + $0x118] sm:$0xff] %v5326_v61 }
 0x2fc   : > { %v6473_v0 = vadd.f32 %v4545_v56, %v3802_v38  ;;  %v4547_v3 = vpop.f32.mrb[18].mxu0 }
 0x2fd   : > { %v5315_v2 = vmax.f32 %v6471_v44, 0.0  ;;  %v6475_v13 = vadd.f32 %v4547_v3, %v3804_v27  ;;  %v4549_v29 = vpop.f32.mrb[19].mxu0 }
 0x2fe   : > { %v5316_v52 = vmax.f32 %v6473_v0, 0.0  ;;  %v6477_v33 = vadd.f32 %v4549_v29, %v3806_v62 }
 0x2ff   : > { %5351 = vst [vmem:[%s9415_s18 + $0xc0] sm:$0xff] %v5315_v2  ;;  %v5318_v40 = vmax.f32 %v6475_v13, 0.0 }
 0x300   : > { %5352 = vst [vmem:[%s9415_s18 + $0xc8] sm:$0xff] %v5316_v52  ;;  %v5319_v34 = vmax.f32 %v6477_v33, 0.0 }
 0x301   : > { %5354 = vst [vmem:[%s9415_s18 + $0xd8] sm:$0xff] %v5318_v40 }
 0x302   : > { %5355 = vst [vmem:[%s9415_s18 + $0xe0] sm:$0xff] %v5319_v34  ;;  %v4553_v42 = vpop.f32.mrb[20].mxu0 }
 0x303   : > { %v6479_v53 = vadd.f32 %v4553_v42, %v3810_v37  ;;  %v4555_v50 = vpop.f32.mrb[21].mxu0 }
 0x304   : > { %v6481_v51 = vadd.f32 %v4555_v50, %v3812_v63  ;;  %v4557_v49 = vpop.f32.mrb[22].mxu0 }
 0x305   : > { %v5321_v6 = vmax.f32 %v6479_v53, 0.0  ;;  %v6483_v41 = vadd.f32 %v4557_v49, %v3814_v8  ;;  %v4559_v26 = vpop.f32.mrb[23].mxu0 }
 0x306   : > { %v5322_v9 = vmax.f32 %v6481_v51, 0.0  ;;  %v6485_v55 = vadd.f32 %v4559_v26, %v3816_v4 }
 0x307   : > { %5357 = vst [vmem:[%s9415_s18 + $0xf0] sm:$0xff] %v5321_v6  ;;  %v5324_v59 = vmax.f32 %v6483_v41, 0.0 }
 0x308   : > { %5358 = vst [vmem:[%s9415_s18 + $0xf8] sm:$0xff] %v5322_v9  ;;  %v5325_v23 = vmax.f32 %v6485_v55, 0.0 }
 0x309   : > { %5360 = vst [vmem:[%s9415_s18 + $0x108] sm:$0xff] %v5324_v59 }
 0x30a   : > { %5361 = vst [vmem:[%s9415_s18 + $0x110] sm:$0xff] %v5325_v23 }
 0x30b PF: > { %s13_s12 = sadd.s32 1, %s7409_s12  }
 0x30c   : > { %p10_p4 = scmp.ge.s32.totalorder %s13_s12, 4  }
 0x30e   :  { %12 = sbr.rel (!%p10_p4) target bundleno = 1 (0x1), region = 62 }

// kernel: mixed_c_forward.9
= control target key start
LH: loop header
LB: loop body
LE: loop exit
PB: predicated region body
PF: predicated region fallthrough
CT: control target
= control target key end

     0   :  { %s6085_s12 = smov 0   ;;  %s7701_s0 = inlined_call_operand.vmem [shape: bf16[32,2592], index: 0, kind: input, shape index: {}]   ;;  %s7702_s1 = inlined_call_operand.vmem [shape: bf16[2592,384], index: 1, kind: input, shape index: {}]   ;;  %s7703_s2 = inlined_call_operand.vmem [shape: f32[1,384], index: 2, kind: input, shape index: {}]   ;;  %s7704_s3 = inlined_call_operand.vmem [shape: f32[32,384], index: 3, kind: output, shape index: {}]  }
   0x1 LB: > { %s4562_s13 = sadd.s32 4294967295, %s6060_s12   ;;  %p4566_p0 = scmp.ge.s32.totalorder %s6060_s12, 1  ;;  %s6060_s12 = sphi %s6085_s12, %s13_s12  }
   0x2   : > { %p139_p1 = scmp.lt.s32.totalorder %s6060_s12, 3 }
   0x4   : > { %p140_p2 = pnand %p4566_p0, %p139_p1 }
   0x5   : > { %v5370_v0 = vld [vmem:[%s7702_s1 + $0x4] ss:$12 sps:$4 sm:$0xff] (!%p140_p2)   ;;  %v5374_v2 = vld [vmem:[%s7702_s1] ss:$12 sps:$4 sm:$0xff] (!%p140_p2)   ;;  %v5376_v4 = vld [vmem:[%s7702_s1 + $0x1c] ss:$12 sps:$4 sm:$0xff] (!%p140_p2)  }
   0x6   : > { %143 = sbr.rel (%p140_p2) target bundleno = 741 (0x2e5), region = 32  ;;  %v5372_v1 = vld [vmem:[%s7702_s1 + $0x304] ss:$12 sps:$4 sm:$0xff] (!%p140_p2)   ;;  %3568 = vmatprep.subr.bf16.mxu1 (!%p140_p2), %v5370_v0  ;;  %v5375_v3 = vld [vmem:[%s7702_s1 + $0x300] ss:$12 sps:$4 sm:$0xff] (!%p140_p2)   ;;  %s4567_s24 = sshll.u32 (!%p140_p2), %s4562_s13, 1 }
   0x7   : > { %3654 = vmatprep.subr.bf16.mxu0 (!%p140_p2), %v5372_v1  ;;  %3569 = vmatpush1.bf16.msra.mxu1 (!%p140_p2), %v5374_v2  ;;  %v5378_v5 = vld [vmem:[%s7702_s1 + $0x31c] ss:$12 sps:$4 sm:$0xff] (!%p140_p2)   ;;  %v5380_v6 = vld [vmem:[%s7702_s1 + $0x18] ss:$12 sps:$4 sm:$0xff] (!%p140_p2)   ;;  %v5382_v8 = vld [vmem:[%s7702_s1 + $0x34] ss:$12 sps:$4 sm:$0xff] (!%p140_p2)  }
   0x8   : > { %3655 = vmatpush1.bf16.msra.mxu0 (!%p140_p2), %v5375_v3  ;;  %3570 = vmatprep.subr.bf16.mxu1 (!%p140_p2), %v5376_v4  ;;  %v5381_v7 = vld [vmem:[%s7702_s1 + $0x318] ss:$12 sps:$4 sm:$0xff] (!%p140_p2)   ;;  %v5384_v9 = vld [vmem:[%s7702_s1 + $0x334] ss:$12 sps:$4 sm:$0xff] (!%p140_p2)   ;;  %v5386_v10 = vld [vmem:[%s7702_s1 + $0x30] ss:$12 sps:$4 sm:$0xff] (!%p140_p2)  }
   0x9   : > { %3656 = vmatprep.subr.bf16.mxu0 (!%p140_p2), %v5378_v5  ;;  %v5387_v11 = vld [vmem:[%s7702_s1 + $0x330] ss:$12 sps:$4 sm:$0xff] (!%p140_p2)   ;;  %v5388_v12 = vld [vmem:[%s7702_s1 + $0x4c] ss:$12 sps:$4 sm:$0xff] (!%p140_p2)   ;;  %v5392_v14 = vld [vmem:[%s7702_s1 + $0x48] ss:$12 sps:$4 sm:$0xff] (!%p140_p2)  }
   0xa   : > { %v5390_v13 = vld [vmem:[%s7702_s1 + $0x34c] ss:$12 sps:$4 sm:$0xff] (!%p140_p2)   ;;  %v5393_v15 = vld [vmem:[%s7702_s1 + $0x348] ss:$12 sps:$4 sm:$0xff] (!%p140_p2)   ;;  %v5394_v16 = vld [vmem:[%s7702_s1 + $0x64] ss:$12 sps:$4 sm:$0xff] (!%p140_p2)  }
   0xb   : > { %3571 = vmatpush1.bf16.msra.mxu1 (!%p140_p2), %v5380_v6  ;;  %v5396_v17 = vld [vmem:[%s7702_s1 + $0x364] ss:$12 sps:$4 sm:$0xff] (!%p140_p2)   ;;  %v5398_v18 = vld [vmem:[%s7702_s1 + $0x60] ss:$12 sps:$4 sm:$0xff] (!%p140_p2)   ;;  %v5400_v20 = vld [vmem:[%s7702_s1 + $0x7c] ss:$12 sps:$4 sm:$0xff] (!%p140_p2)  }
   0xc   : > { %3657 = vmatpush1.bf16.msra.mxu0 (!%p140_p2), %v5381_v7  ;;  %3572 = vmatprep.subr.bf16.mxu1 (!%p140_p2), %v5382_v8  ;;  %v5399_v19 = vld [vmem:[%s7702_s1 + $0x360] ss:$12 sps:$4 sm:$0xff] (!%p140_p2)   ;;  %v5402_v21 = vld [vmem:[%s7702_s1 + $0x37c] ss:$12 sps:$4 sm:$0xff] (!%p140_p2)   ;;  %v5404_v22 = vld [vmem:[%s7702_s1 + $0x78] ss:$12 sps:$4 sm:$0xff] (!%p140_p2)  }
   0xd   : > { %3658 = vmatprep.subr.bf16.mxu0 %v5384_v9  ;;  %v5405_v23 = vld [vmem:[%s7702_s1 + $0x378] ss:$12 sps:$4 sm:$0xff]   ;;  %v5406_v24 = vld [vmem:[%s7702_s1 + $0x94] ss:$12 sps:$4 sm:$0xff]   ;;  %v5410_v26 = vld [vmem:[%s7702_s1 + $0x90] ss:$12 sps:$4 sm:$0xff]  }
   0xe   : > { %v5408_v25 = vld [vmem:[%s7702_s1 + $0x394] ss:$12 sps:$4 sm:$0xff]   ;;  %v5411_v27 = vld [vmem:[%s7702_s1 + $0x390] ss:$12 sps:$4 sm:$0xff]   ;;  %v5412_v28 = vld [vmem:[%s7702_s1 + $0xac] ss:$12 sps:$4 sm:$0xff]  }
   0xf   : > { %3573 = vmatpush1.bf16.msra.mxu1 %v5386_v10  ;;  %v5414_v29 = vld [vmem:[%s7702_s1 + $0x3ac] ss:$12 sps:$4 sm:$0xff]   ;;  %v5416_v30 = vld [vmem:[%s7702_s1 + $0xa8] ss:$12 sps:$4 sm:$0xff]   ;;  %v5418_v32 = vld [vmem:[%s7702_s1 + $0xc4] ss:$12 sps:$4 sm:$0xff]  }
  0x10   : > { %3659 = vmatpush1.bf16.msra.mxu0 %v5387_v11  ;;  %3574 = vmatprep.subr.bf16.mxu1 %v5388_v12  ;;  %v5417_v31 = vld [vmem:[%s7702_s1 + $0x3a8] ss:$12 sps:$4 sm:$0xff]   ;;  %p166_p3 = scmp.lt.s32.totalorder %s4567_s24, 3  ;;  %v5420_v33 = vld [vmem:[%s7702_s1 + $0x3c4] ss:$12 sps:$4 sm:$0xff]   ;;  %vm3564_vm0 = vcmask 261120  }
  0x11   : > { %3660 = vmatprep.subr.bf16.mxu0 %v5390_v13  ;;  %v5422_v34 = vld [vmem:[%s7702_s1 + $0xc0] ss:$12 sps:$4 sm:$0xff]   ;;  %v5424_v36 = vld [vmem:[%s7702_s1 + $0xdc] ss:$12 sps:$4 sm:$0xff]   ;;  %v5428_v38 = vld [vmem:[%s7702_s1 + $0xd8] ss:$12 sps:$4 sm:$0xff]  }
  0x12   : > { %v5423_v35 = vld [vmem:[%s7702_s1 + $0x3c0] ss:$12 sps:$4 sm:$0xff]   ;;  %s7706_s24 = smov (!%p166_p3, %s4567_s24), 3  ;;  %v5426_v37 = vld [vmem:[%s7702_s1 + $0x3dc] ss:$12 sps:$4 sm:$0xff]   ;;  %vm6064_vm1 = vmmov 0  }
  0x13   : > { %3575 = vmatpush1.bf16.msra.mxu1 %v5392_v14  ;;  %v5429_v39 = vld [vmem:[%s7702_s1 + $0x3d8] ss:$12 sps:$4 sm:$0xff]   ;;  %v5430_v40 = vld [vmem:[%s7702_s1 + $0xf4] ss:$12 sps:$4 sm:$0xff]   ;;  %s5357_s21 = smul.u32 84, %s7706_s24 }
  0x14   : > { %3661 = vmatpush1.bf16.msra.mxu0 %v5393_v15  ;;  %3576 = vmatprep.subr.bf16.mxu1 %v5394_v16  ;;  %v5432_v41 = vld [vmem:[%s7702_s1 + $0x3f4] ss:$12 sps:$4 sm:$0xff]   ;;  %v5434_v42 = vld [vmem:[%s7702_s1 + $0xf0] ss:$12 sps:$4 sm:$0xff]   ;;  %v5436_v44 = vld [vmem:[%s7702_s1 + $0x10c] ss:$12 sps:$4 sm:$0xff]  }
  0x15   : > { %3662 = vmatprep.subr.bf16.mxu0 %v5396_v17  ;;  %v5435_v43 = vld [vmem:[%s7702_s1 + $0x3f0] ss:$12 sps:$4 sm:$0xff]   ;;  %s6236_s13 = scalar_lea.vmem %s7701_s0, %s5357_s21  ;;  %v5438_v45 = vld [vmem:[%s7702_s1 + $0x40c] ss:$12 sps:$4 sm:$0xff]   ;;  %v5440_v46 = vld [vmem:[%s7702_s1 + $0x108] ss:$12 sps:$4 sm:$0xff]  }
  0x16   : > { %v5441_v47 = vld [vmem:[%s7702_s1 + $0x408] ss:$12 sps:$4 sm:$0xff]   ;;  %v6248_v48 = vld [vmem:[%s6236_s13 + $0x4] ss:$84 sps:$4 sm:$0xff]   ;;  %v5446_v52 = vld [vmem:[%s7702_s1 + $0x120] ss:$12 sps:$4 sm:$0xff]  }
  0x17   : > { %3577 = vmatpush1.bf16.msra.mxu1 %v5398_v18  ;;  %v5442_v49 = vld [vmem:[%s7702_s1 + $0x124] ss:$12 sps:$4 sm:$0xff]   ;;  %3600 = vmatprep.mubr.bf16.mxu1 %v6248_v48  ;;  %v5474_v51 = vld [vmem:[%s6236_s13 + $0x14] ss:$84 sps:$4 sm:$0xff]   ;;  %v5447_v53 = vld [vmem:[%s7702_s1 + $0x420] ss:$12 sps:$4 sm:$0xff]  }
  0x18   : > { %3663 = vmatpush1.bf16.msra.mxu0 %v5399_v19  ;;  %3578 = vmatprep.subr.bf16.mxu1 %v5400_v20  ;;  %v5444_v50 = vld [vmem:[%s7702_s1 + $0x424] ss:$12 sps:$4 sm:$0xff]   ;;  %v5448_v54 = vld [vmem:[%s7702_s1 + $0x13c] ss:$12 sps:$4 sm:$0xff]   ;;  %v5454_v58 = vld [vmem:[%s7702_s1 + $0x154] ss:$12 sps:$4 sm:$0xff]  }
  0x19   : > { %3664 = vmatprep.subr.bf16.mxu0 %v5402_v21  ;;  %v5450_v55 = vld [vmem:[%s7702_s1 + $0x43c] ss:$12 sps:$4 sm:$0xff]   ;;  %3686 = vmatprep.mubr.bf16.mxu0 %v5474_v51  ;;  %v5452_v56 = vld [vmem:[%s7702_s1 + $0x138] ss:$12 sps:$4 sm:$0xff]   ;;  %v5456_v59 = vld [vmem:[%s7702_s1 + $0x454] ss:$12 sps:$4 sm:$0xff]  }
  0x1a   : > { %v5453_v57 = vld [vmem:[%s7702_s1 + $0x438] ss:$12 sps:$4 sm:$0xff]   ;;  %v5458_v60 = vld [vmem:[%s7702_s1 + $0x150] ss:$12 sps:$4 sm:$0xff]   ;;  %v5464_v0 = vld [vmem:[%s7702_s1 + $0x168] ss:$12 sps:$4 sm:$0xff]  }
  0x1b   : > { %3579 = vmatpush1.bf16.msra.mxu1 %v5404_v22  ;;  %v5459_v61 = vld [vmem:[%s7702_s1 + $0x450] ss:$12 sps:$4 sm:$0xff]   ;;  %v5460_v62 = vld [vmem:[%s7702_s1 + $0x16c] ss:$12 sps:$4 sm:$0xff]   ;;  %v5465_v1 = vld [vmem:[%s7702_s1 + $0x468] ss:$12 sps:$4 sm:$0xff]  }
  0x1c   : > { %3665 = vmatpush1.bf16.msra.mxu0 %v5405_v23  ;;  %3580 = vmatprep.subr.bf16.mxu1 %v5406_v24  ;;  %v5462_v63 = vld [vmem:[%s7702_s1 + $0x46c] ss:$12 sps:$4 sm:$0xff]   ;;  %v5471_v2 = vld [vmem:[%s7702_s1 + $0x184] ss:$12 sps:$4 sm:$0xff]   ;;  %v6307_v4 = vld [vmem:[%s6236_s13] ss:$84 sps:$4 sm:$0xff]  }
  0x1d   : > { %3666 = vmatprep.subr.bf16.mxu0 %v5408_v25  ;;  %v5477_v3 = vld [vmem:[%s7702_s1 + $0x484] ss:$12 sps:$4 sm:$0xff]   ;;  %v5469_v5 = vld [vmem:[%s7702_s1 + $0x180] ss:$12 sps:$4 sm:$0xff]   ;;  %v5480_v8 = vld [vmem:[%s7702_s1 + $0x19c] ss:$12 sps:$4 sm:$0xff]  }
  0x1e   : > { %v5472_v6 = vld [vmem:[%s6236_s13 + $0x10] ss:$84 sps:$4 sm:$0xff]   ;;  %v5475_v7 = vld [vmem:[%s7702_s1 + $0x480] ss:$12 sps:$4 sm:$0xff]   ;;  %v5483_v9 = vld [vmem:[%s7702_s1 + $0x49c] ss:$12 sps:$4 sm:$0xff]  }
  0x1f   : > { %3581 = vmatpush1.bf16.msra.mxu1 %v5410_v26  ;;  %v5478_v10 = vld [vmem:[%s7702_s1 + $0x198] ss:$12 sps:$4 sm:$0xff]   ;;  %v5486_v12 = vld [vmem:[%s7702_s1 + $0x1b4] ss:$12 sps:$4 sm:$0xff]   ;;  %v5484_v14 = vld [vmem:[%s7702_s1 + $0x1b0] ss:$12 sps:$4 sm:$0xff]  }
  0x20   : > { %3667 = vmatpush1.bf16.msra.mxu0 %v5411_v27  ;;  %3582 = vmatprep.subr.bf16.mxu1 %v5412_v28  ;;  %v5481_v11 = vld [vmem:[%s7702_s1 + $0x498] ss:$12 sps:$4 sm:$0xff]   ;;  %v5489_v13 = vld [vmem:[%s7702_s1 + $0x4b4] ss:$12 sps:$4 sm:$0xff]   ;;  %v5487_v15 = vld [vmem:[%s7702_s1 + $0x4b0] ss:$12 sps:$4 sm:$0xff]  }
  0x21   : > { %3668 = vmatprep.subr.bf16.mxu0 %v5414_v29  ;;  %v5492_v16 = vld [vmem:[%s7702_s1 + $0x1cc] ss:$12 sps:$4 sm:$0xff]   ;;  %v5490_v18 = vld [vmem:[%s7702_s1 + $0x1c8] ss:$12 sps:$4 sm:$0xff]   ;;  %v5498_v20 = vld [vmem:[%s7702_s1 + $0x1e4] ss:$12 sps:$4 sm:$0xff]  }
  0x22   : > { %v5495_v17 = vld [vmem:[%s7702_s1 + $0x4cc] ss:$12 sps:$4 sm:$0xff]   ;;  %v5493_v19 = vld [vmem:[%s7702_s1 + $0x4c8] ss:$12 sps:$4 sm:$0xff]   ;;  %v5501_v21 = vld [vmem:[%s7702_s1 + $0x4e4] ss:$12 sps:$4 sm:$0xff]  }
  0x23   : > { %3583 = vmatpush1.bf16.msra.mxu1 %v5416_v30  ;;  %v5496_v22 = vld [vmem:[%s7702_s1 + $0x1e0] ss:$12 sps:$4 sm:$0xff]   ;;  %v5504_v24 = vld [vmem:[%s7702_s1 + $0x1fc] ss:$12 sps:$4 sm:$0xff]   ;;  %v5502_v26 = vld [vmem:[%s7702_s1 + $0x1f8] ss:$12 sps:$4 sm:$0xff]  }
  0x24   : > { %3669 = vmatpush1.bf16.msra.mxu0 %v5417_v31  ;;  %3584 = vmatprep.subr.bf16.mxu1 %v5418_v32  ;;  %v5499_v23 = vld [vmem:[%s7702_s1 + $0x4e0] ss:$12 sps:$4 sm:$0xff]   ;;  %v5507_v25 = vld [vmem:[%s7702_s1 + $0x4fc] ss:$12 sps:$4 sm:$0xff]   ;;  %v5505_v27 = vld [vmem:[%s7702_s1 + $0x4f8] ss:$12 sps:$4 sm:$0xff]  }
  0x25   : > { %3670 = vmatprep.subr.bf16.mxu0 %v5420_v33  ;;  %v5510_v28 = vld [vmem:[%s7702_s1 + $0x214] ss:$12 sps:$4 sm:$0xff]   ;;  %v5508_v30 = vld [vmem:[%s7702_s1 + $0x210] ss:$12 sps:$4 sm:$0xff]   ;;  %v5516_v32 = vld [vmem:[%s7702_s1 + $0x22c] ss:$12 sps:$4 sm:$0xff]  }
  0x26   : > { %v5513_v29 = vld [vmem:[%s7702_s1 + $0x514] ss:$12 sps:$4 sm:$0xff]   ;;  %v5511_v31 = vld [vmem:[%s7702_s1 + $0x510] ss:$12 sps:$4 sm:$0xff]   ;;  %v5519_v33 = vld [vmem:[%s7702_s1 + $0x52c] ss:$12 sps:$4 sm:$0xff]  }
  0x27   : > { %3585 = vmatpush1.bf16.msra.mxu1 %v5422_v34  ;;  %v6396_v34 = vld [vmem:[%s6236_s13 + $0xc] ss:$84 sps:$4 sm:$0xff]   ;;  %s5358_s27 = smul.u32 24, %s7706_s24 }
  0x28   : > { %3671 = vmatpush1.bf16.msra.mxu0 %v5423_v35  ;;  %3586 = vmatprep.subr.bf16.mxu1 %v5424_v36  ;;  %v5573_v35 = vld [vmem:[%s6236_s13 + $0x1c] ss:$84 sps:$4 sm:$0xff]   ;;  %v5514_v36 = vld [vmem:[%s7702_s1 + $0x228] ss:$12 sps:$4 sm:$0xff]   ;;  %v5540_v51 = vld [vmem:[%s7702_s1 + $0x28c] ss:$12 sps:$4 sm:$0xff]  }
  0x29   : > { %3672 = vmatprep.subr.bf16.mxu0 %v5426_v37  ;;  %v5517_v37 = vld [vmem:[%s7702_s1 + $0x528] ss:$12 sps:$4 sm:$0xff]   ;;  %s177_s30 = scalar_lea.vmem %s7704_s3, %s5358_s27 }
  0x2b   : > { %3587 = vmatpush1.bf16.msra.mxu1 %v5428_v38  ;;  %v5522_v38 = vld [vmem:[%s7702_s1 + $0x244] ss:$12 sps:$4 sm:$0xff]  }
  0x2c   : > { %3673 = vmatpush1.bf16.msra.mxu0 %v5429_v39  ;;  %3588 = vmatprep.subr.bf16.mxu1 %v5430_v40  ;;  %v5525_v39 = vld [vmem:[%s7702_s1 + $0x544] ss:$12 sps:$4 sm:$0xff]   ;;  %v5520_v40 = vld [vmem:[%s7702_s1 + $0x240] ss:$12 sps:$4 sm:$0xff]  }
  0x2d   : > { %3674 = vmatprep.subr.bf16.mxu0 %v5432_v41  ;;  %v5523_v41 = vld [vmem:[%s7702_s1 + $0x540] ss:$12 sps:$4 sm:$0xff]  }
  0x2f   : > { %3589 = vmatpush1.bf16.msra.mxu1 %v5434_v42  ;;  %v5528_v42 = vld [vmem:[%s7702_s1 + $0x25c] ss:$12 sps:$4 sm:$0xff]  }
  0x30   : > { %3675 = vmatpush1.bf16.msra.mxu0 %v5435_v43  ;;  %3590 = vmatprep.subr.bf16.mxu1 %v5436_v44  ;;  %v5531_v43 = vld [vmem:[%s7702_s1 + $0x55c] ss:$12 sps:$4 sm:$0xff]   ;;  %v5526_v44 = vld [vmem:[%s7702_s1 + $0x258] ss:$12 sps:$4 sm:$0xff]  }
  0x31   : > { %3676 = vmatprep.subr.bf16.mxu0 %v5438_v45  ;;  %v5529_v45 = vld [vmem:[%s7702_s1 + $0x558] ss:$12 sps:$4 sm:$0xff]  }
  0x33   : > { %3591 = vmatpush1.bf16.msra.mxu1 %v5440_v46  ;;  %v5534_v46 = vld [vmem:[%s7702_s1 + $0x274] ss:$12 sps:$4 sm:$0xff]  }
  0x34   : > { %3677 = vmatpush1.bf16.msra.mxu0 %v5441_v47  ;;  %3592 = vmatprep.subr.bf16.mxu1 %v5442_v49  ;;  %v5537_v47 = vld [vmem:[%s7702_s1 + $0x574] ss:$12 sps:$4 sm:$0xff]   ;;  %v5532_v49 = vld [vmem:[%s7702_s1 + $0x270] ss:$12 sps:$4 sm:$0xff]  }
  0x35   : > { %3678 = vmatprep.subr.bf16.mxu0 %v5444_v50  ;;  %v5535_v50 = vld [vmem:[%s7702_s1 + $0x570] ss:$12 sps:$4 sm:$0xff]  }
  0x37   : > { %3593 = vmatpush1.bf16.msra.mxu1 %v5446_v52  ;;  %v5543_v52 = vld [vmem:[%s7702_s1 + $0x58c] ss:$12 sps:$4 sm:$0xff]  }
  0x38   : > { %3679 = vmatpush1.bf16.msra.mxu0 %v5447_v53  ;;  %3594 = vmatprep.subr.bf16.mxu1 %v5448_v54  ;;  %v5538_v53 = vld [vmem:[%s7702_s1 + $0x288] ss:$12 sps:$4 sm:$0xff]  }
  0x39   : > { %3680 = vmatprep.subr.bf16.mxu0 %v5450_v55  ;;  %v5541_v54 = vld [vmem:[%s7702_s1 + $0x588] ss:$12 sps:$4 sm:$0xff]   ;;  %v5546_v55 = vld [vmem:[%s7702_s1 + $0x2a4] ss:$12 sps:$4 sm:$0xff]  }
  0x3b   : > { %3595 = vmatpush1.bf16.msra.mxu1 %v5452_v56  ;;  %v5549_v56 = vld [vmem:[%s7702_s1 + $0x5a4] ss:$12 sps:$4 sm:$0xff]  }
  0x3c   : > { %3681 = vmatpush1.bf16.msra.mxu0 %v5453_v57  ;;  %3596 = vmatprep.subr.bf16.mxu1 %v5454_v58  ;;  %v5544_v57 = vld [vmem:[%s7702_s1 + $0x2a0] ss:$12 sps:$4 sm:$0xff]  }
  0x3d   : > { %3682 = vmatprep.subr.bf16.mxu0 %v5456_v59  ;;  %v5547_v58 = vld [vmem:[%s7702_s1 + $0x5a0] ss:$12 sps:$4 sm:$0xff]   ;;  %v5552_v59 = vld [vmem:[%s7702_s1 + $0x2bc] ss:$12 sps:$4 sm:$0xff]  }
  0x3f   : > { %3597 = vmatpush1.bf16.msra.mxu1 %v5458_v60  ;;  %v5555_v60 = vld [vmem:[%s7702_s1 + $0x5bc] ss:$12 sps:$4 sm:$0xff]  }
  0x40   : > { %3683 = vmatpush1.bf16.msra.mxu0 %v5459_v61  ;;  %3598 = vmatprep.subr.bf16.mxu1 %v5460_v62  ;;  %v5550_v61 = vld [vmem:[%s7702_s1 + $0x2b8] ss:$12 sps:$4 sm:$0xff]  }
  0x41   : > { %3684 = vmatprep.subr.bf16.mxu0 %v5462_v63  ;;  %v5553_v62 = vld [vmem:[%s7702_s1 + $0x5b8] ss:$12 sps:$4 sm:$0xff]   ;;  %v5558_v63 = vld [vmem:[%s7702_s1 + $0x2d4] ss:$12 sps:$4 sm:$0xff]  }
  0x43   : > { %3599 = vmatpush1.bf16.msra.mxu1 %v5464_v0  ;;  %v5561_v0 = vld [vmem:[%s7702_s1 + $0x5d4] ss:$12 sps:$4 sm:$0xff]  }
  0x44   : > { %3685 = vmatpush1.bf16.msra.mxu0 %v5465_v1  ;;  %3611 = vmatprep.subr.bf16.mxu1 %v5471_v2  ;;  %v5556_v1 = vld [vmem:[%s7702_s1 + $0x2d0] ss:$12 sps:$4 sm:$0xff]  }
  0x45   : > { %3697 = vmatprep.subr.bf16.mxu0 %v5477_v3  ;;  %v5559_v2 = vld [vmem:[%s7702_s1 + $0x5d0] ss:$12 sps:$4 sm:$0xff]   ;;  %v5564_v3 = vld [vmem:[%s7702_s1 + $0x2ec] ss:$12 sps:$4 sm:$0xff]  }
  0x46   : > { %3601 = vmatmul.mubr.bf16.vlgmr.msra.gmra.mrb[0].mxu1 %v6307_v4 }
  0x47   : > { %3687 = vmatmul.mubr.bf16.vlgmr.msra.gmra.mrb[0].mxu0 %v5472_v6  ;;  %3612 = vmatpush1.bf16.msra.mxu1 %v5469_v5  ;;  %v5567_v5 = vld [vmem:[%s7702_s1 + $0x5ec] ss:$12 sps:$4 sm:$0xff]   ;;  %v5562_v6 = vld [vmem:[%s7702_s1 + $0x2e8] ss:$12 sps:$4 sm:$0xff]  }
  0x48   : > { %3698 = vmatpush1.bf16.msra.mxu0 %v5475_v7  ;;  %3613 = vmatprep.subr.bf16.mxu1 %v5480_v8  ;;  %v5565_v7 = vld [vmem:[%s7702_s1 + $0x5e8] ss:$12 sps:$4 sm:$0xff]   ;;  %v5576_v8 = vld [vmem:[%s7702_s1 + $0x604] ss:$12 sps:$4 sm:$0xff]  }
  0x49   : > { %3699 = vmatprep.subr.bf16.mxu0 %v5483_v9  ;;  %3643 = vmatprep.mubr.bf16.mxu1 %v6396_v34  ;;  %v6506_v9 = vld [vmem:[%s6236_s13 + $0x8] ss:$84 sps:$4 sm:$0xff]  }
  0x4a   : > { %3729 = vmatprep.mubr.bf16.mxu0 %v5573_v35  ;;  %v5605_v35 = vld [vmem:[%s7702_s1 + $0x110] ss:$12 sps:$4 sm:$0xff]  }
  0x4b   : > { %3614 = vmatpush1.bf16.msra.mxu1 %v5478_v10  ;;  %v5571_v10 = vld [vmem:[%s6236_s13 + $0x18] ss:$84 sps:$4 sm:$0xff]  }
  0x4c   : > { %3700 = vmatpush1.bf16.msra.mxu0 %v5481_v11  ;;  %3615 = vmatprep.subr.bf16.mxu1 %v5486_v12  ;;  %v5579_v11 = vld [vmem:[%s7702_s1 + $0xf04] ss:$12 sps:$4 sm:$0xff]   ;;  %v5574_v12 = vld [vmem:[%s7702_s1 + $0x600] ss:$12 sps:$4 sm:$0xff]  }
  0x4d   : > { %3701 = vmatprep.subr.bf16.mxu0 %v5489_v13  ;;  %v5577_v13 = vld [vmem:[%s7702_s1 + $0xf00] ss:$12 sps:$4 sm:$0xff]  }
  0x4f   : > { %3616 = vmatpush1.bf16.msra.mxu1 %v5484_v14  ;;  %v5582_v14 = vld [vmem:[%s7702_s1 + $0x61c] ss:$12 sps:$4 sm:$0xff]  }
  0x50   : > { %3702 = vmatpush1.bf16.msra.mxu0 %v5487_v15  ;;  %3617 = vmatprep.subr.bf16.mxu1 %v5492_v16  ;;  %v5585_v15 = vld [vmem:[%s7702_s1 + $0xf1c] ss:$12 sps:$4 sm:$0xff]   ;;  %v5580_v16 = vld [vmem:[%s7702_s1 + $0x618] ss:$12 sps:$4 sm:$0xff]  }
  0x51   : > { %3703 = vmatprep.subr.bf16.mxu0 %v5495_v17  ;;  %v5583_v17 = vld [vmem:[%s7702_s1 + $0xf18] ss:$12 sps:$4 sm:$0xff]  }
  0x53   : > { %3618 = vmatpush1.bf16.msra.mxu1 %v5490_v18  ;;  %v5588_v18 = vld [vmem:[%s7702_s1 + $0x634] ss:$12 sps:$4 sm:$0xff]  }
  0x54   : > { %3704 = vmatpush1.bf16.msra.mxu0 %v5493_v19  ;;  %3619 = vmatprep.subr.bf16.mxu1 %v5498_v20  ;;  %v5589_v19 = vld [vmem:[%s7702_s1 + $0xc8] ss:$12 sps:$4 sm:$0xff]   ;;  %v5586_v20 = vld [vmem:[%s7702_s1 + $0x630] ss:$12 sps:$4 sm:$0xff]  }
  0x55   : > { %3705 = vmatprep.subr.bf16.mxu0 %v5501_v21  ;;  %v6062_v21 = vmov 0  }
  0x57   : > { %3620 = vmatpush1.bf16.msra.mxu1 %v5496_v22  ;;  %v5590_v22 = vld [vmem:[%s6236_s13 + $0x50] ss:$84 sps:$4 sm:$0xff]  }
  0x58   : > { %3706 = vmatpush1.bf16.msra.mxu0 %v5499_v23  ;;  %3621 = vmatprep.subr.bf16.mxu1 %v5504_v24  ;;  %v5591_v23 = vld [vmem:[%s7702_s1 + $0x8] ss:$12 sps:$4 sm:$0xff]   ;;  %v5594_v24 = vld [vmem:[%s7702_s1 + $0x64c] ss:$12 sps:$4 sm:$0xff]  }
  0x59   : > { %3707 = vmatprep.subr.bf16.mxu0 %v5507_v25  ;;  %v5595_v25 = vld [vmem:[%s7702_s1 + $0xe0] ss:$12 sps:$4 sm:$0xff]  }
  0x5b   : > { %3622 = vmatpush1.bf16.msra.mxu1 %v5502_v26  ;;  %v5592_v26 = vld [vmem:[%s7702_s1 + $0x648] ss:$12 sps:$4 sm:$0xff]  }
  0x5c   : > { %3708 = vmatpush1.bf16.msra.mxu0 %v5505_v27  ;;  %3623 = vmatprep.subr.bf16.mxu1 %v5510_v28  ;;  %v5596_v27 = vld [vmem:[%s7702_s1 + $0x20] ss:$12 sps:$4 sm:$0xff]   ;;  %v5599_v28 = vld [vmem:[%s7702_s1 + $0x664] ss:$12 sps:$4 sm:$0xff]  }
  0x5d   : > { %3709 = vmatprep.subr.bf16.mxu0 %v5513_v29  ;;  %v5600_v29 = vld [vmem:[%s7702_s1 + $0xf8] ss:$12 sps:$4 sm:$0xff]  }
  0x5f   : > { %3624 = vmatpush1.bf16.msra.mxu1 %v5508_v30  ;;  %v5597_v30 = vld [vmem:[%s7702_s1 + $0x660] ss:$12 sps:$4 sm:$0xff]  }
  0x60   : > { %3710 = vmatpush1.bf16.msra.mxu0 %v5511_v31  ;;  %3625 = vmatprep.subr.bf16.mxu1 %v5516_v32  ;;  %v5601_v31 = vld [vmem:[%s7702_s1 + $0x38] ss:$12 sps:$4 sm:$0xff]   ;;  %v5604_v32 = vld [vmem:[%s7702_s1 + $0x67c] ss:$12 sps:$4 sm:$0xff]  }
  0x61   : > { %3711 = vmatprep.subr.bf16.mxu0 %v5519_v33  ;;  %v6574_v33 = vld [vmem:[%s6236_s13 + $0x24] ss:$84 sps:$4 sm:$0xff]  }
  0x63   : > { %3626 = vmatpush1.bf16.msra.mxu1 %v5514_v36  ;;  %v5606_v36 = vld [vmem:[%s7702_s1 + $0x50] ss:$12 sps:$4 sm:$0xff]  }
  0x64   : > { %3712 = vmatpush1.bf16.msra.mxu0 %v5517_v37  ;;  %3627 = vmatprep.subr.bf16.mxu1 %v5522_v38  ;;  %v5609_v37 = vld [vmem:[%s7702_s1 + $0x694] ss:$12 sps:$4 sm:$0xff]  }
  0x65   : > { %3713 = vmatprep.subr.bf16.mxu0 %v5525_v39  ;;  %v5610_v38 = vld [vmem:[%s7702_s1 + $0x128] ss:$12 sps:$4 sm:$0xff]   ;;  %v5607_v39 = vld [vmem:[%s7702_s1 + $0x690] ss:$12 sps:$4 sm:$0xff]  }
  0x67   : > { %3628 = vmatpush1.bf16.msra.mxu1 %v5520_v40  ;;  %v5611_v40 = vld [vmem:[%s7702_s1 + $0x68] ss:$12 sps:$4 sm:$0xff]  }
  0x68   : > { %3714 = vmatpush1.bf16.msra.mxu0 %v5523_v41  ;;  %3629 = vmatprep.subr.bf16.mxu1 %v5528_v42  ;;  %v5614_v41 = vld [vmem:[%s7702_s1 + $0x6ac] ss:$12 sps:$4 sm:$0xff]  }
  0x69   : > { %3715 = vmatprep.subr.bf16.mxu0 %v5531_v43  ;;  %v5615_v42 = vld [vmem:[%s7702_s1 + $0x140] ss:$12 sps:$4 sm:$0xff]   ;;  %v5612_v43 = vld [vmem:[%s7702_s1 + $0x6a8] ss:$12 sps:$4 sm:$0xff]  }
  0x6b   : > { %3630 = vmatpush1.bf16.msra.mxu1 %v5526_v44  ;;  %v5616_v44 = vld [vmem:[%s7702_s1 + $0x80] ss:$12 sps:$4 sm:$0xff]  }
  0x6c   : > { %3716 = vmatpush1.bf16.msra.mxu0 %v5529_v45  ;;  %3631 = vmatprep.subr.bf16.mxu1 %v5534_v46  ;;  %v5619_v45 = vld [vmem:[%s7702_s1 + $0x6c4] ss:$12 sps:$4 sm:$0xff]  }
  0x6d   : > { %3717 = vmatprep.subr.bf16.mxu0 %v5537_v47  ;;  %v5620_v46 = vld [vmem:[%s7702_s1 + $0x158] ss:$12 sps:$4 sm:$0xff]   ;;  %v5617_v47 = vld [vmem:[%s7702_s1 + $0x6c0] ss:$12 sps:$4 sm:$0xff]  }
  0x6f   : > { %3632 = vmatpush1.bf16.msra.mxu1 %v5532_v49  ;;  %v5621_v49 = vld [vmem:[%s7702_s1 + $0x98] ss:$12 sps:$4 sm:$0xff]  }
  0x70   : > { %3718 = vmatpush1.bf16.msra.mxu0 %v5535_v50  ;;  %3633 = vmatprep.subr.bf16.mxu1 %v5540_v51  ;;  %v5624_v50 = vld [vmem:[%s7702_s1 + $0x6dc] ss:$12 sps:$4 sm:$0xff]  }
  0x71   : > { %3719 = vmatprep.subr.bf16.mxu0 %v5543_v52  ;;  %v5625_v51 = vld [vmem:[%s7702_s1 + $0x170] ss:$12 sps:$4 sm:$0xff]   ;;  %v5622_v52 = vld [vmem:[%s7702_s1 + $0x6d8] ss:$12 sps:$4 sm:$0xff]  }
  0x73   : > { %3634 = vmatpush1.bf16.msra.mxu1 %v5538_v53  ;;  %v5626_v53 = vld [vmem:[%s7702_s1 + $0xb0] ss:$12 sps:$4 sm:$0xff]  }
  0x74   : > { %3720 = vmatpush1.bf16.msra.mxu0 %v5541_v54  ;;  %3635 = vmatprep.subr.bf16.mxu1 %v5546_v55  ;;  %v5629_v54 = vld [vmem:[%s7702_s1 + $0x6f4] ss:$12 sps:$4 sm:$0xff]  }
  0x75   : > { %3721 = vmatprep.subr.bf16.mxu0 %v5549_v56  ;;  %v5630_v55 = vld [vmem:[%s7702_s1 + $0x248] ss:$12 sps:$4 sm:$0xff]   ;;  %v5627_v56 = vld [vmem:[%s7702_s1 + $0x6f0] ss:$12 sps:$4 sm:$0xff]  }
  0x77   : > { %3636 = vmatpush1.bf16.msra.mxu1 %v5544_v57  ;;  %v5631_v57 = vld [vmem:[%s7702_s1 + $0x188] ss:$12 sps:$4 sm:$0xff]  }
  0x78   : > { %3722 = vmatpush1.bf16.msra.mxu0 %v5547_v58  ;;  %3637 = vmatprep.subr.bf16.mxu1 %v5552_v59  ;;  %v5634_v58 = vld [vmem:[%s7702_s1 + $0x70c] ss:$12 sps:$4 sm:$0xff]  }
  0x79   : > { %3723 = vmatprep.subr.bf16.mxu0 %v5555_v60  ;;  %v5635_v59 = vld [vmem:[%s7702_s1 + $0x260] ss:$12 sps:$4 sm:$0xff]   ;;  %v5632_v60 = vld [vmem:[%s7702_s1 + $0x708] ss:$12 sps:$4 sm:$0xff]  }
  0x7b   : > { %3638 = vmatpush1.bf16.msra.mxu1 %v5550_v61  ;;  %v5636_v61 = vld [vmem:[%s7702_s1 + $0x1a0] ss:$12 sps:$4 sm:$0xff]  }
  0x7c   : > { %3724 = vmatpush1.bf16.msra.mxu0 %v5553_v62  ;;  %3639 = vmatprep.subr.bf16.mxu1 %v5558_v63  ;;  %v5639_v62 = vld [vmem:[%s7702_s1 + $0x724] ss:$12 sps:$4 sm:$0xff]   ;;  %v5637_v63 = vld [vmem:[%s7702_s1 + $0x720] ss:$12 sps:$4 sm:$0xff]  }
  0x7d   : > { %3725 = vmatprep.subr.bf16.mxu0 %v5561_v0  ;;  %v5641_v0 = vld [vmem:[%s7702_s1 + $0x1b8] ss:$12 sps:$4 sm:$0xff]  }
  0x7f   : > { %3640 = vmatpush1.bf16.msra.mxu1 %v5556_v1  ;;  %v5644_v1 = vld [vmem:[%s7702_s1 + $0x73c] ss:$12 sps:$4 sm:$0xff]  }
  0x80   : > { %3726 = vmatpush1.bf16.msra.mxu0 %v5559_v2  ;;  %3641 = vmatprep.subr.bf16.mxu1 %v5564_v3  ;;  %v5645_v2 = vld [vmem:[%s7702_s1 + $0x290] ss:$12 sps:$4 sm:$0xff]  }
  0x81   : > { %3727 = vmatprep.subr.bf16.mxu0 %v5567_v5  ;;  %v5646_v3 = vld [vmem:[%s7702_s1 + $0x1d0] ss:$12 sps:$4 sm:$0xff]   ;;  %v5649_v5 = vld [vmem:[%s7702_s1 + $0x754] ss:$12 sps:$4 sm:$0xff]  }
  0x83   : > { %3642 = vmatpush1.bf16.msra.mxu1 %v5562_v6  ;;  %v5650_v6 = vld [vmem:[%s7702_s1 + $0x2a8] ss:$12 sps:$4 sm:$0xff]  }
  0x84   : > { %3728 = vmatpush1.bf16.msra.mxu0 %v5565_v7  ;;  %3998 = vmatprep.subr.bf16.mxu1 %v5579_v11  ;;  %v5647_v7 = vld [vmem:[%s7702_s1 + $0x750] ss:$12 sps:$4 sm:$0xff]   ;;  %v5655_v11 = vld [vmem:[%s7702_s1 + $0x2c0] ss:$12 sps:$4 sm:$0xff]  }
  0x85   : > { %3740 = vmatprep.subr.bf16.mxu0 %v5576_v8  ;;  %v5651_v8 = vld [vmem:[%s7702_s1 + $0x1e8] ss:$12 sps:$4 sm:$0xff]  }
  0x86   : > { %3644 = vmatmul.mubr.bf16.vlgmr.msra.gmra.mrb[0].mxu1 %v6506_v9 }
  0x87   : > { %3730 = vmatmul.mubr.bf16.vlgmr.msra.gmra.mrb[0].mxu0 %v5571_v10  ;;  %3999 = vmatpush1.bf16.msra.mxu1 %v5577_v13  ;;  %v5654_v10 = vld [vmem:[%s7702_s1 + $0x76c] ss:$12 sps:$4 sm:$0xff]  }
  0x88   : > { %3741 = vmatpush1.bf16.msra.mxu0 %v5574_v12  ;;  %4000 = vmatprep.subr.bf16.mxu1 %v5585_v15  ;;  %v5652_v12 = vld [vmem:[%s7702_s1 + $0x768] ss:$12 sps:$4 sm:$0xff]   ;;  %v5656_v13 = vld [vmem:[%s7702_s1 + $0x200] ss:$12 sps:$4 sm:$0xff]   ;;  %v5663_v15 = vld [vmem:[%s7702_s1 + $0x2d8] ss:$12 sps:$4 sm:$0xff]  }
  0x89   : > { %3742 = vmatprep.subr.bf16.mxu0 %v5582_v14  ;;  %4030 = vmatprep.mubr.bf16.mxu1 %v6062_v21  ;;  %v5662_v14 = vld [vmem:[%s7702_s1 + $0x784] ss:$12 sps:$4 sm:$0xff]  }
  0x8a   : > { %3772 = vmatprep.mubr.bf16.mxu0 %v6574_v33  ;;  %v5665_v21 = vld [vmem:[%s7702_s1 + $0x798] ss:$12 sps:$4 sm:$0xff]  }
  0x8b   : > { %4001 = vmatpush1.bf16.msra.mxu1 %v5583_v17  ;;  %v5660_v17 = vld [vmem:[%s7702_s1 + $0x780] ss:$12 sps:$4 sm:$0xff]  }
  0x8c   : > { %3743 = vmatpush1.bf16.msra.mxu0 %v5580_v16  ;;  %5082 = vmatprep.subr.bf16.mxu1 %v5589_v19  ;;  %v6715_v16 = vld [vmem:[%s6236_s13 + $0x20] ss:$84 sps:$4 sm:$0xff]   ;;  %v5667_v19 = vld [vmem:[%s7702_s1 + $0x79c] ss:$12 sps:$4 sm:$0xff]  }
  0x8d   : > { %3744 = vmatprep.subr.bf16.mxu0 %v5588_v18  ;;  %v5664_v18 = vld [vmem:[%s7702_s1 + $0x218] ss:$12 sps:$4 sm:$0xff]  }
  0x8e   : > { %5078 = vmatmul.mubr.msk.bf16.vlgmr.msra.gmra.mrb[4].mxu1 %vm3564_vm0, %v5590_v22  ;;  %v5669_v22 = vld [vmem:[%s7702_s1 + $0x230] ss:$12 sps:$4 sm:$0xff]  }
  0x8f   : > { %5083 = vmatpush3.bf16.msra.mxu1 %v5591_v23  ;;  %4073 = vmatprep.mubr.bf16.mxu1 %v6248_v48  ;;  %v5602_v48 = vld [vmem:[%s7702_s1 + $0x678] ss:$12 sps:$4 sm:$0xff]   ;;  %v5672_v23 = vld [vmem:[%s7702_s1 + $0x7b4] ss:$12 sps:$4 sm:$0xff]  }
  0x90   : > { %3745 = vmatpush1.bf16.msra.mxu0 %v5586_v20  ;;  %5084 = vmatprep.subr.bf16.mxu1 %v5595_v25  ;;  %v5668_v20 = vld [vmem:[%s7702_s1 + $0x2f0] ss:$12 sps:$4 sm:$0xff]  }
  0x91   : > { %3746 = vmatprep.subr.bf16.mxu0 %v5594_v24  ;;  %v5673_v24 = vld [vmem:[%s7702_s1 + $0x3c8] ss:$12 sps:$4 sm:$0xff]   ;;  %v5670_v25 = vld [vmem:[%s7702_s1 + $0x7b0] ss:$12 sps:$4 sm:$0xff]  }
  0x93   : > { %5085 = vmatpush3.bf16.msra.mxu1 %v5596_v27  ;;  %v5674_v27 = vld [vmem:[%s7702_s1 + $0x308] ss:$12 sps:$4 sm:$0xff]  }
  0x94   : > { %3747 = vmatpush1.bf16.msra.mxu0 %v5592_v26  ;;  %5086 = vmatprep.subr.bf16.mxu1 %v5600_v29  ;;  %v6746_v26 = vld [vmem:[%s6236_s13 + $0x2c] ss:$84 sps:$4 sm:$0xff]  }
  0x95   : > { %3748 = vmatprep.subr.bf16.mxu0 %v5599_v28  ;;  %v5677_v28 = vld [vmem:[%s7702_s1 + $0x7cc] ss:$12 sps:$4 sm:$0xff]  }
  0x96   : > { %v5678_v29 = vld [vmem:[%s7702_s1 + $0x3e0] ss:$12 sps:$4 sm:$0xff]  }
  0x97   : > { %5087 = vmatpush3.bf16.msra.mxu1 %v5601_v31  ;;  %v5679_v31 = vld [vmem:[%s7702_s1 + $0x320] ss:$12 sps:$4 sm:$0xff]  }
  0x98   : > { %3749 = vmatpush1.bf16.msra.mxu0 %v5597_v30  ;;  %5088 = vmatprep.subr.bf16.mxu1 %v5605_v35  ;;  %v5675_v30 = vld [vmem:[%s7702_s1 + $0x7c8] ss:$12 sps:$4 sm:$0xff]   ;;  %v5683_v35 = vld [vmem:[%s7702_s1 + $0x3f8] ss:$12 sps:$4 sm:$0xff]  }
  0x99   : > { %3750 = vmatprep.subr.bf16.mxu0 %v5604_v32  ;;  %v5682_v32 = vld [vmem:[%s7702_s1 + $0x7e4] ss:$12 sps:$4 sm:$0xff]  }
  0x9b   : > { %5089 = vmatpush3.bf16.msra.mxu1 %v5606_v36  ;;  %v5684_v36 = vld [vmem:[%s7702_s1 + $0x338] ss:$12 sps:$4 sm:$0xff]  }
  0x9c   : > { %3751 = vmatpush1.bf16.msra.mxu0 %v5602_v48  ;;  %5090 = vmatprep.subr.bf16.mxu1 %v5610_v38  ;;  %v6049_v48 = vld [vmem:[%s6236_s13 + $0x14] ss:$84 sps:$4 sm:$0xff]   ;;  %v5688_v38 = vld [vmem:[%s7702_s1 + $0x410] ss:$12 sps:$4 sm:$0xff]  }
  0x9d   : > { %3752 = vmatprep.subr.bf16.mxu0 %v5609_v37  ;;  %v5687_v37 = vld [vmem:[%s7702_s1 + $0x7fc] ss:$12 sps:$4 sm:$0xff]  }
  0x9f   : > { %5091 = vmatpush3.bf16.msra.mxu1 %v5611_v40  ;;  %v5689_v40 = vld [vmem:[%s7702_s1 + $0x350] ss:$12 sps:$4 sm:$0xff]  }
  0xa0   : > { %3753 = vmatpush1.bf16.msra.mxu0 %v5607_v39  ;;  %5092 = vmatprep.subr.bf16.mxu1 %v5615_v42  ;;  %v5685_v39 = vld [vmem:[%s7702_s1 + $0x7f8] ss:$12 sps:$4 sm:$0xff]   ;;  %v5693_v42 = vld [vmem:[%s7702_s1 + $0x428] ss:$12 sps:$4 sm:$0xff]  }
  0xa1   : > { %3754 = vmatprep.subr.bf16.mxu0 %v5614_v41  ;;  %v5692_v41 = vld [vmem:[%s7702_s1 + $0x814] ss:$12 sps:$4 sm:$0xff]  }
  0xa3   : > { %5093 = vmatpush3.bf16.msra.mxu1 %v5616_v44  ;;  %v5694_v44 = vld [vmem:[%s7702_s1 + $0x368] ss:$12 sps:$4 sm:$0xff]  }
  0xa4   : > { %3755 = vmatpush1.bf16.msra.mxu0 %v5612_v43  ;;  %5094 = vmatprep.subr.bf16.mxu1 %v5620_v46  ;;  %v5690_v43 = vld [vmem:[%s7702_s1 + $0x810] ss:$12 sps:$4 sm:$0xff]   ;;  %v5698_v46 = vld [vmem:[%s7702_s1 + $0x440] ss:$12 sps:$4 sm:$0xff]  }
  0xa5   : > { %3756 = vmatprep.subr.bf16.mxu0 %v5619_v45  ;;  %v5697_v45 = vld [vmem:[%s7702_s1 + $0x82c] ss:$12 sps:$4 sm:$0xff]  }
  0xa7   : > { %5095 = vmatpush3.bf16.msra.mxu1 %v5621_v49  ;;  %v5699_v49 = vld [vmem:[%s7702_s1 + $0x380] ss:$12 sps:$4 sm:$0xff]  }
  0xa8   : > { %3757 = vmatpush1.bf16.msra.mxu0 %v5617_v47  ;;  %5096 = vmatprep.subr.bf16.mxu1 %v5625_v51  ;;  %v5695_v47 = vld [vmem:[%s7702_s1 + $0x828] ss:$12 sps:$4 sm:$0xff]   ;;  %v5703_v51 = vld [vmem:[%s7702_s1 + $0x458] ss:$12 sps:$4 sm:$0xff]  }
  0xa9   : > { %3758 = vmatprep.subr.bf16.mxu0 %v5624_v50  ;;  %v5702_v50 = vld [vmem:[%s7702_s1 + $0x844] ss:$12 sps:$4 sm:$0xff]  }
  0xab   : > { %5097 = vmatpush3.bf16.msra.mxu1 %v5626_v53  ;;  %v5704_v53 = vld [vmem:[%s7702_s1 + $0x398] ss:$12 sps:$4 sm:$0xff]  }
  0xac   : > { %3759 = vmatpush1.bf16.msra.mxu0 %v5622_v52  ;;  %5104 = vmatprep.subr.bf16.mxu1 %v5630_v55  ;;  %v5700_v52 = vld [vmem:[%s7702_s1 + $0x840] ss:$12 sps:$4 sm:$0xff]   ;;  %v5708_v55 = vld [vmem:[%s7702_s1 + $0x470] ss:$12 sps:$4 sm:$0xff]  }
  0xad   : > { %3760 = vmatprep.subr.bf16.mxu0 %v5629_v54  ;;  %v5707_v54 = vld [vmem:[%s7702_s1 + $0x85c] ss:$12 sps:$4 sm:$0xff]  }
  0xae   : > { %4074 = vmatmul.mubr.bf16.vlgmr.msra.gmra.mrb[8].mxu1 %v6307_v4  ;;  %v5640_v4 = vld [vmem:[%s7702_s1 + $0x278] ss:$12 sps:$4 sm:$0xff]  }
  0xaf   : > { %5105 = vmatpush3.bf16.msra.mxu1 %v5631_v57  ;;  %4114 = vmatprep.mubr.bf16.mxu1 %v6396_v34  ;;  %v5642_v34 = vld [vmem:[%s7702_s1 + $0x738] ss:$12 sps:$4 sm:$0xff]   ;;  %v5709_v57 = vld [vmem:[%s7702_s1 + $0x3b0] ss:$12 sps:$4 sm:$0xff]  }
  0xb0   : > { %3761 = vmatpush1.bf16.msra.mxu0 %v5627_v56  ;;  %5106 = vmatprep.subr.bf16.mxu1 %v5635_v59  ;;  %v5705_v56 = vld [vmem:[%s7702_s1 + $0x858] ss:$12 sps:$4 sm:$0xff]   ;;  %v5713_v59 = vld [vmem:[%s7702_s1 + $0x548] ss:$12 sps:$4 sm:$0xff]  }
  0xb1   : > { %3762 = vmatprep.subr.bf16.mxu0 %v5634_v58  ;;  %v5712_v58 = vld [vmem:[%s7702_s1 + $0x874] ss:$12 sps:$4 sm:$0xff]  }
  0xb3   : > { %5107 = vmatpush3.bf16.msra.mxu1 %v5636_v61  ;;  %v5714_v61 = vld [vmem:[%s7702_s1 + $0x488] ss:$12 sps:$4 sm:$0xff]  }
  0xb4   : > { %3763 = vmatpush1.bf16.msra.mxu0 %v5632_v60  ;;  %5108 = vmatprep.subr.bf16.mxu1 %v5640_v4  ;;  %v5710_v60 = vld [vmem:[%s7702_s1 + $0x870] ss:$12 sps:$4 sm:$0xff]   ;;  %v5718_v4 = vld [vmem:[%s7702_s1 + $0x560] ss:$12 sps:$4 sm:$0xff]  }
  0xb5   : > { %3764 = vmatprep.subr.bf16.mxu0 %v5639_v62  ;;  %v5717_v62 = vld [vmem:[%s7702_s1 + $0x88c] ss:$12 sps:$4 sm:$0xff]  }
  0xb7   : > { %5109 = vmatpush3.bf16.msra.mxu1 %v5641_v0  ;;  %v5715_v0 = vld [vmem:[%s7702_s1 + $0x888] ss:$12 sps:$4 sm:$0xff]  }
  0xb8   : > { %3765 = vmatpush1.bf16.msra.mxu0 %v5637_v63  ;;  %5110 = vmatprep.subr.bf16.mxu1 %v5645_v2  ;;  %v6050_v63 = vld [vmem:[%s6236_s13 + $0x10] ss:$84 sps:$4 sm:$0xff]  }
  0xb9   : > { %3766 = vmatprep.subr.bf16.mxu0 %v5644_v1  ;;  %v5719_v1 = vld [vmem:[%s7702_s1 + $0x4a0] ss:$12 sps:$4 sm:$0xff]   ;;  %v5722_v2 = vld [vmem:[%s7702_s1 + $0x8a4] ss:$12 sps:$4 sm:$0xff]  }
  0xbb   : > { %5111 = vmatpush3.bf16.msra.mxu1 %v5646_v3  ;;  %v6051_v3 = vld [vmem:[%s6236_s13 + $0x1c] ss:$84 sps:$4 sm:$0xff]  }
  0xbc   : > { %3767 = vmatpush1.bf16.msra.mxu0 %v5642_v34  ;;  %5112 = vmatprep.subr.bf16.mxu1 %v5650_v6  ;;  %v5723_v34 = vld [vmem:[%s7702_s1 + $0x578] ss:$12 sps:$4 sm:$0xff]  }
  0xbd   : > { %3768 = vmatprep.subr.bf16.mxu0 %v5649_v5  ;;  %v5720_v5 = vld [vmem:[%s7702_s1 + $0x8a0] ss:$12 sps:$4 sm:$0xff]   ;;  %v5724_v6 = vld [vmem:[%s7702_s1 + $0x4b8] ss:$12 sps:$4 sm:$0xff]  }
  0xbf   : > { %5113 = vmatpush3.bf16.msra.mxu1 %v5651_v8  ;;  %v5728_v8 = vld [vmem:[%s7702_s1 + $0x590] ss:$12 sps:$4 sm:$0xff]  }
  0xc0   : > { %3769 = vmatpush1.bf16.msra.mxu0 %v5647_v7  ;;  %5114 = vmatprep.subr.bf16.mxu1 %v5655_v11  ;;  %v5727_v7 = vld [vmem:[%s7702_s1 + $0x8bc] ss:$12 sps:$4 sm:$0xff]  }
  0xc1   : > { %3770 = vmatprep.subr.bf16.mxu0 %v5654_v10  ;;  %v5725_v10 = vld [vmem:[%s7702_s1 + $0x8b8] ss:$12 sps:$4 sm:$0xff]   ;;  %v5729_v11 = vld [vmem:[%s7702_s1 + $0x4d0] ss:$12 sps:$4 sm:$0xff]  }
  0xc3   : > { %5115 = vmatpush3.bf16.msra.mxu1 %v5656_v13  ;;  %v5733_v13 = vld [vmem:[%s7702_s1 + $0x5a8] ss:$12 sps:$4 sm:$0xff]  }
  0xc4   : > { %3771 = vmatpush1.bf16.msra.mxu0 %v5652_v12  ;;  %5116 = vmatprep.subr.bf16.mxu1 %v5663_v15  ;;  %v5732_v12 = vld [vmem:[%s7702_s1 + $0x8d4] ss:$12 sps:$4 sm:$0xff]  }
  0xc5   : > { %3783 = vmatprep.subr.bf16.mxu0 %v5662_v14  ;;  %v5730_v14 = vld [vmem:[%s7702_s1 + $0x8d0] ss:$12 sps:$4 sm:$0xff]   ;;  %v5734_v15 = vld [vmem:[%s7702_s1 + $0x4e8] ss:$12 sps:$4 sm:$0xff]  }
  0xc7   : > { %3773 = vmatmul.mubr.bf16.vlgmr.msra.gmra.mrb[0].mxu0 %v6715_v16  ;;  %5117 = vmatpush3.bf16.msra.mxu1 %v5664_v18  ;;  %v5738_v18 = vld [vmem:[%s7702_s1 + $0x5c0] ss:$12 sps:$4 sm:$0xff]  }
  0xc8   : > { %3784 = vmatpush1.bf16.msra.mxu0 %v5660_v17  ;;  %5118 = vmatprep.subr.bf16.mxu1 %v5668_v20  ;;  %v5737_v17 = vld [vmem:[%s7702_s1 + $0x8ec] ss:$12 sps:$4 sm:$0xff]  }
  0xc9   : > { %3785 = vmatprep.subr.bf16.mxu0 %v5667_v19  ;;  %3815 = vmatprep.mubr.bf16.mxu0 %v6746_v26  ;;  %v5735_v19 = vld [vmem:[%s7702_s1 + $0x8e8] ss:$12 sps:$4 sm:$0xff]   ;;  %v5739_v20 = vld [vmem:[%s7702_s1 + $0x500] ss:$12 sps:$4 sm:$0xff]  }
  0xcb   : > { %5119 = vmatpush3.bf16.msra.mxu1 %v5669_v22  ;;  %v5746_v22 = vld [vmem:[%s7702_s1 + $0x5d8] ss:$12 sps:$4 sm:$0xff]  }
  0xcc   : > { %3786 = vmatpush1.bf16.msra.mxu0 %v5665_v21  ;;  %5126 = vmatprep.subr.bf16.mxu1 %v5673_v24  ;;  %v5745_v21 = vld [vmem:[%s7702_s1 + $0x904] ss:$12 sps:$4 sm:$0xff]   ;;  %v5743_v24 = vld [vmem:[%s7702_s1 + $0x900] ss:$12 sps:$4 sm:$0xff]  }
  0xcd   : > { %3787 = vmatprep.subr.bf16.mxu0 %v5672_v23  ;;  %v6919_v23 = vld [vmem:[%s6236_s13 + $0x28] ss:$84 sps:$4 sm:$0xff]  }
  0xce   : > { %4115 = vmatmul.mubr.bf16.vlgmr.msra.gmra.mrb[12].mxu1 %v6506_v9  ;;  %v5680_v9 = vld [vmem:[%s7702_s1 + $0x7e0] ss:$12 sps:$4 sm:$0xff]  }
  0xcf   : > { %5127 = vmatpush3.bf16.msra.mxu1 %v5674_v27  ;;  %4155 = vmatprep.mubr.bf16.mxu1 %v6049_v48  ;;  %v5750_v27 = vld [vmem:[%s7702_s1 + $0x91c] ss:$12 sps:$4 sm:$0xff]  }
  0xd0   : > { %3788 = vmatpush1.bf16.msra.mxu0 %v5670_v25  ;;  %5128 = vmatprep.subr.bf16.mxu1 %v5678_v29  ;;  %v5747_v25 = vld [vmem:[%s7702_s1 + $0x518] ss:$12 sps:$4 sm:$0xff]   ;;  %v5753_v48 = vld [vmem:[%s7702_s1 + $0x930] ss:$12 sps:$4 sm:$0xff]  }
  0xd1   : > { %3789 = vmatprep.subr.bf16.mxu0 %v5677_v28  ;;  %v5751_v28 = vld [vmem:[%s7702_s1 + $0x5f0] ss:$12 sps:$4 sm:$0xff]   ;;  %v5748_v29 = vld [vmem:[%s7702_s1 + $0x918] ss:$12 sps:$4 sm:$0xff]  }
  0xd3   : > { %5129 = vmatpush3.bf16.msra.mxu1 %v5679_v31  ;;  %v5752_v31 = vld [vmem:[%s7702_s1 + $0x530] ss:$12 sps:$4 sm:$0xff]  }
  0xd4   : > { %3790 = vmatpush1.bf16.msra.mxu0 %v5675_v30  ;;  %5130 = vmatprep.subr.bf16.mxu1 %v5683_v35  ;;  %v6937_v30 = vld [vmem:[%s6236_s13 + $0x34] ss:$84 sps:$4 sm:$0xff]  }
  0xd5   : > { %3791 = vmatprep.subr.bf16.mxu0 %v5682_v32  ;;  %v5755_v32 = vld [vmem:[%s7702_s1 + $0x934] ss:$12 sps:$4 sm:$0xff]  }
  0xd6   : > { %v5756_v35 = vld [vmem:[%s7702_s1 + $0x6c8] ss:$12 sps:$4 sm:$0xff]  }
  0xd7   : > { %5131 = vmatpush3.bf16.msra.mxu1 %v5684_v36  ;;  %v5760_v36 = vld [vmem:[%s7702_s1 + $0x94c] ss:$12 sps:$4 sm:$0xff]  }
  0xd8   : > { %3792 = vmatpush1.bf16.msra.mxu0 %v5680_v9  ;;  %5132 = vmatprep.subr.bf16.mxu1 %v5688_v38  ;;  %v5757_v9 = vld [vmem:[%s7702_s1 + $0x608] ss:$12 sps:$4 sm:$0xff]   ;;  %v6052_v38 = vld [vmem:[%s6236_s13 + $0x18] ss:$84 sps:$4 sm:$0xff]  }
  0xd9   : > { %3793 = vmatprep.subr.bf16.mxu0 %v5687_v37  ;;  %v5761_v37 = vld [vmem:[%s7702_s1 + $0x6e0] ss:$12 sps:$4 sm:$0xff]  }
  0xdb   : > { %5133 = vmatpush3.bf16.msra.mxu1 %v5689_v40  ;;  %v5762_v40 = vld [vmem:[%s7702_s1 + $0x620] ss:$12 sps:$4 sm:$0xff]  }
  0xdc   : > { %3794 = vmatpush1.bf16.msra.mxu0 %v5685_v39  ;;  %5134 = vmatprep.subr.bf16.mxu1 %v5693_v42  ;;  %v5758_v39 = vld [vmem:[%s7702_s1 + $0x948] ss:$12 sps:$4 sm:$0xff]   ;;  %v5766_v42 = vld [vmem:[%s7702_s1 + $0x6f8] ss:$12 sps:$4 sm:$0xff]  }
  0xdd   : > { %3795 = vmatprep.subr.bf16.mxu0 %v5692_v41  ;;  %v5765_v41 = vld [vmem:[%s7702_s1 + $0x964] ss:$12 sps:$4 sm:$0xff]  }
  0xdf   : > { %5135 = vmatpush3.bf16.msra.mxu1 %v5694_v44  ;;  %v5767_v44 = vld [vmem:[%s7702_s1 + $0x638] ss:$12 sps:$4 sm:$0xff]  }
  0xe0   : > { %3796 = vmatpush1.bf16.msra.mxu0 %v5690_v43  ;;  %5136 = vmatprep.subr.bf16.mxu1 %v5698_v46  ;;  %v5763_v43 = vld [vmem:[%s7702_s1 + $0x960] ss:$12 sps:$4 sm:$0xff]   ;;  %v5768_v46 = vld [vmem:[%s7702_s1 + $0x978] ss:$12 sps:$4 sm:$0xff]  }
  0xe1   : > { %3797 = vmatprep.subr.bf16.mxu0 %v5697_v45  ;;  %v5770_v45 = vld [vmem:[%s7702_s1 + $0x97c] ss:$12 sps:$4 sm:$0xff]  }
  0xe3   : > { %5137 = vmatpush3.bf16.msra.mxu1 %v5699_v49  ;;  %v5775_v49 = vld [vmem:[%s7702_s1 + $0x994] ss:$12 sps:$4 sm:$0xff]  }
  0xe4   : > { %3798 = vmatpush1.bf16.msra.mxu0 %v5695_v47  ;;  %5138 = vmatprep.subr.bf16.mxu1 %v5703_v51  ;;  %v5772_v47 = vld [vmem:[%s7702_s1 + $0x650] ss:$12 sps:$4 sm:$0xff]  }
  0xe5   : > { %3799 = vmatprep.subr.bf16.mxu0 %v5702_v50  ;;  %v5776_v50 = vld [vmem:[%s7702_s1 + $0x728] ss:$12 sps:$4 sm:$0xff]   ;;  %v5773_v51 = vld [vmem:[%s7702_s1 + $0x990] ss:$12 sps:$4 sm:$0xff]  }
  0xe7   : > { %5139 = vmatpush3.bf16.msra.mxu1 %v5704_v53  ;;  %v5780_v53 = vld [vmem:[%s7702_s1 + $0x9ac] ss:$12 sps:$4 sm:$0xff]  }
  0xe8   : > { %3800 = vmatpush1.bf16.msra.mxu0 %v5700_v52  ;;  %5140 = vmatprep.subr.bf16.mxu1 %v5708_v55  ;;  %v5777_v52 = vld [vmem:[%s7702_s1 + $0x668] ss:$12 sps:$4 sm:$0xff]  }
  0xe9   : > { %3801 = vmatprep.subr.bf16.mxu0 %v5707_v54  ;;  %v5781_v54 = vld [vmem:[%s7702_s1 + $0x740] ss:$12 sps:$4 sm:$0xff]   ;;  %v5778_v55 = vld [vmem:[%s7702_s1 + $0x9a8] ss:$12 sps:$4 sm:$0xff]  }
  0xeb   : > { %5141 = vmatpush3.bf16.msra.mxu1 %v5709_v57  ;;  %v5785_v57 = vld [vmem:[%s7702_s1 + $0x9c4] ss:$12 sps:$4 sm:$0xff]  }
  0xec   : > { %3802 = vmatpush1.bf16.msra.mxu0 %v5705_v56  ;;  %5148 = vmatprep.subr.bf16.mxu1 %v5713_v59  ;;  %v5782_v56 = vld [vmem:[%s7702_s1 + $0x680] ss:$12 sps:$4 sm:$0xff]  }
  0xed   : > { %3803 = vmatprep.subr.bf16.mxu0 %v5712_v58  ;;  %v5786_v58 = vld [vmem:[%s7702_s1 + $0x758] ss:$12 sps:$4 sm:$0xff]   ;;  %v5783_v59 = vld [vmem:[%s7702_s1 + $0x9c0] ss:$12 sps:$4 sm:$0xff]  }
  0xee   : > { %4156 = vmatmul.mubr.bf16.vlgmr.msra.gmra.mrb[16].mxu1 %v6050_v63  ;;  %v5792_v63 = vld [vmem:[%s7702_s1 + $0x6b0] ss:$12 sps:$4 sm:$0xff]  }
  0xef   : > { %5149 = vmatpush3.bf16.msra.mxu1 %v5714_v61  ;;  %4196 = vmatprep.mubr.bf16.mxu1 %v6051_v3  ;;  %v5790_v61 = vld [vmem:[%s7702_s1 + $0x9dc] ss:$12 sps:$4 sm:$0xff]   ;;  %v5800_v3 = vld [vmem:[%s7702_s1 + $0xa0c] ss:$12 sps:$4 sm:$0xff]  }
  0xf0   : > { %3804 = vmatpush1.bf16.msra.mxu0 %v5710_v60  ;;  %5150 = vmatprep.subr.bf16.mxu1 %v5718_v4  ;;  %v5787_v60 = vld [vmem:[%s7702_s1 + $0x698] ss:$12 sps:$4 sm:$0xff]  }
  0xf1   : > { %3805 = vmatprep.subr.bf16.mxu0 %v5717_v62  ;;  %v5791_v62 = vld [vmem:[%s7702_s1 + $0x770] ss:$12 sps:$4 sm:$0xff]   ;;  %v5788_v4 = vld [vmem:[%s7702_s1 + $0x9d8] ss:$12 sps:$4 sm:$0xff]  }
  0xf3   : > { %5151 = vmatpush3.bf16.msra.mxu1 %v5719_v1  ;;  %v5796_v1 = vld [vmem:[%s7702_s1 + $0x848] ss:$12 sps:$4 sm:$0xff]  }
  0xf4   : > { %3806 = vmatpush1.bf16.msra.mxu0 %v5715_v0  ;;  %5152 = vmatprep.subr.bf16.mxu1 %v5723_v34  ;;  %v5795_v0 = vld [vmem:[%s7702_s1 + $0x9f4] ss:$12 sps:$4 sm:$0xff]  }
  0xf5   : > { %3807 = vmatprep.subr.bf16.mxu0 %v5722_v2  ;;  %v5793_v2 = vld [vmem:[%s7702_s1 + $0x9f0] ss:$12 sps:$4 sm:$0xff]   ;;  %v5797_v34 = vld [vmem:[%s7702_s1 + $0x788] ss:$12 sps:$4 sm:$0xff]  }
  0xf7   : > { %5153 = vmatpush3.bf16.msra.mxu1 %v5724_v6  ;;  %v5798_v6 = vld [vmem:[%s7702_s1 + $0xa08] ss:$12 sps:$4 sm:$0xff]  }
  0xf8   : > { %3808 = vmatpush1.bf16.msra.mxu0 %v5720_v5  ;;  %5154 = vmatprep.subr.bf16.mxu1 %v5728_v8  ;;  %v5801_v5 = vld [vmem:[%s7702_s1 + $0x860] ss:$12 sps:$4 sm:$0xff]   ;;  %v5805_v8 = vld [vmem:[%s7702_s1 + $0xa24] ss:$12 sps:$4 sm:$0xff]  }
  0xf9   : > { %3809 = vmatprep.subr.bf16.mxu0 %v5727_v7  ;;  %v5802_v7 = vld [vmem:[%s7702_s1 + $0x7a0] ss:$12 sps:$4 sm:$0xff]  }
  0xfb   : > { %5155 = vmatpush3.bf16.msra.mxu1 %v5729_v11  ;;  %v5807_v11 = vld [vmem:[%s7702_s1 + $0x7b8] ss:$12 sps:$4 sm:$0xff]  }
  0xfc   : > { %3810 = vmatpush1.bf16.msra.mxu0 %v5725_v10  ;;  %5156 = vmatprep.subr.bf16.mxu1 %v5733_v13  ;;  %v5806_v10 = vld [vmem:[%s7702_s1 + $0x878] ss:$12 sps:$4 sm:$0xff]  }
  0xfd   : > { %3811 = vmatprep.subr.bf16.mxu0 %v5732_v12  ;;  %v5810_v12 = vld [vmem:[%s7702_s1 + $0xa3c] ss:$12 sps:$4 sm:$0xff]   ;;  %v5808_v13 = vld [vmem:[%s7702_s1 + $0xa38] ss:$12 sps:$4 sm:$0xff]  }
  0xff   : > { %5157 = vmatpush3.bf16.msra.mxu1 %v5734_v15  ;;  %v5815_v15 = vld [vmem:[%s7702_s1 + $0xa54] ss:$12 sps:$4 sm:$0xff]  }
 0x100   : > { %3812 = vmatpush1.bf16.msra.mxu0 %v5730_v14  ;;  %5158 = vmatprep.subr.bf16.mxu1 %v5738_v18  ;;  %v5812_v14 = vld [vmem:[%s7702_s1 + $0x7d0] ss:$12 sps:$4 sm:$0xff]  }
 0x101   : > { %3813 = vmatprep.subr.bf16.mxu0 %v5737_v17  ;;  %v5816_v17 = vld [vmem:[%s7702_s1 + $0x8a8] ss:$12 sps:$4 sm:$0xff]   ;;  %v5813_v18 = vld [vmem:[%s7702_s1 + $0xa50] ss:$12 sps:$4 sm:$0xff]  }
 0x103   : > { %5159 = vmatpush3.bf16.msra.mxu1 %v5739_v20  ;;  %v5820_v20 = vld [vmem:[%s7702_s1 + $0xa6c] ss:$12 sps:$4 sm:$0xff]  }
 0x104   : > { %3814 = vmatpush1.bf16.msra.mxu0 %v5735_v19  ;;  %5160 = vmatprep.subr.bf16.mxu1 %v5746_v22  ;;  %v5817_v19 = vld [vmem:[%s7702_s1 + $0x7e8] ss:$12 sps:$4 sm:$0xff]  }
 0x105   : > { %3826 = vmatprep.subr.bf16.mxu0 %v5745_v21  ;;  %v5821_v21 = vld [vmem:[%s7702_s1 + $0x8c0] ss:$12 sps:$4 sm:$0xff]   ;;  %v5818_v22 = vld [vmem:[%s7702_s1 + $0xa68] ss:$12 sps:$4 sm:$0xff]  }
 0x107   : > { %3816 = vmatmul.mubr.bf16.vlgmr.msra.gmra.mrb[0].mxu0 %v6919_v23  ;;  %5161 = vmatpush3.bf16.msra.mxu1 %v5747_v25  ;;  %v5828_v25 = vld [vmem:[%s7702_s1 + $0xa84] ss:$12 sps:$4 sm:$0xff]  }
 0x108   : > { %3827 = vmatpush1.bf16.msra.mxu0 %v5743_v24  ;;  %5162 = vmatprep.subr.bf16.mxu1 %v5751_v28  ;;  %v5822_v24 = vld [vmem:[%s7702_s1 + $0x800] ss:$12 sps:$4 sm:$0xff]   ;;  %v7123_v28 = vld [vmem:[%s6236_s13 + $0x30] ss:$84 sps:$4 sm:$0xff]  }
 0x109   : > { %3828 = vmatprep.subr.bf16.mxu0 %v5750_v27  ;;  %3858 = vmatprep.mubr.bf16.mxu0 %v6937_v30  ;;  %v5829_v27 = vld [vmem:[%s7702_s1 + $0x8d8] ss:$12 sps:$4 sm:$0xff]  }
 0x10b   : > { %5163 = vmatpush3.bf16.msra.mxu1 %v5752_v31  ;;  %v5830_v31 = vld [vmem:[%s7702_s1 + $0x818] ss:$12 sps:$4 sm:$0xff]  }
 0x10c   : > { %3829 = vmatpush1.bf16.msra.mxu0 %v5748_v29  ;;  %5170 = vmatprep.subr.bf16.mxu1 %v5756_v35  ;;  %v5826_v29 = vld [vmem:[%s7702_s1 + $0xa80] ss:$12 sps:$4 sm:$0xff]   ;;  %v5834_v35 = vld [vmem:[%s7702_s1 + $0x8f0] ss:$12 sps:$4 sm:$0xff]  }
 0x10d   : > { %3830 = vmatprep.subr.bf16.mxu0 %v5755_v32  ;;  %v5833_v32 = vld [vmem:[%s7702_s1 + $0xa9c] ss:$12 sps:$4 sm:$0xff]  }
 0x10e   : > { %4197 = vmatmul.mubr.bf16.vlgmr.msra.gmra.mrb[20].mxu1 %v6052_v38  ;;  %v5839_v38 = vld [vmem:[%s7702_s1 + $0x9c8] ss:$12 sps:$4 sm:$0xff]  }
 0x10f   : > { %5171 = vmatpush3.bf16.msra.mxu1 %v5757_v9  ;;  %4237 = vmatprep.mubr.bf16.mxu1 %v6574_v33  ;;  %v5771_v33 = vld [vmem:[%s7702_s1 + $0x710] ss:$12 sps:$4 sm:$0xff]   ;;  %v5831_v9 = vld [vmem:[%s7702_s1 + $0xa98] ss:$12 sps:$4 sm:$0xff]  }
 0x110   : > { %3831 = vmatpush1.bf16.msra.mxu0 %v5753_v48  ;;  %5172 = vmatprep.subr.bf16.mxu1 %v5761_v37  ;;  %v7138_v48 = vld [vmem:[%s6236_s13 + $0x3c] ss:$84 sps:$4 sm:$0xff]   ;;  %v5838_v37 = vld [vmem:[%s7702_s1 + $0xab4] ss:$12 sps:$4 sm:$0xff]  }
 0x111   : > { %3832 = vmatprep.subr.bf16.mxu0 %v5760_v36  ;;  %v5835_v36 = vld [vmem:[%s7702_s1 + $0x830] ss:$12 sps:$4 sm:$0xff]  }
 0x113   : > { %5173 = vmatpush3.bf16.msra.mxu1 %v5762_v40  ;;  %v5836_v40 = vld [vmem:[%s7702_s1 + $0xab0] ss:$12 sps:$4 sm:$0xff]  }
 0x114   : > { %3833 = vmatpush1.bf16.msra.mxu0 %v5758_v39  ;;  %5174 = vmatprep.subr.bf16.mxu1 %v5766_v42  ;;  %v852_v39 = vlaneseq  ;;  %v5843_v42 = vld [vmem:[%s7702_s1 + $0xacc] ss:$12 sps:$4 sm:$0xff]  }
 0x115   : > { %3834 = vmatprep.subr.bf16.mxu0 %v5765_v41  ;;  %v5840_v41 = vld [vmem:[%s7702_s1 + $0x908] ss:$12 sps:$4 sm:$0xff]  }
 0x117   : > { %5175 = vmatpush3.bf16.msra.mxu1 %v5767_v44  ;;  %v7166_v44 = vshrl.u32 %v852_v39, 7  ;;  %v5895_v39 = vld [vmem:[%s7702_s1 + $0xad0] ss:$12 sps:$4 sm:$0xff]  }
 0x118   : > { %3835 = vmatpush1.bf16.msra.mxu0 %v5763_v43  ;;  %5176 = vmatprep.subr.bf16.mxu1 %v5771_v33  ;;  %v5844_v43 = vld [vmem:[%s7702_s1 + $0x9e0] ss:$12 sps:$4 sm:$0xff]  }
 0x119   : > { %3836 = vmatprep.subr.bf16.mxu0 %v5770_v45  ;;  %v5841_v45 = vld [vmem:[%s7702_s1 + $0xac8] ss:$12 sps:$4 sm:$0xff]   ;;  %v5845_v33 = vld [vmem:[%s7702_s1 + $0x920] ss:$12 sps:$4 sm:$0xff]  }
 0x11b   : > { %5177 = vmatpush3.bf16.msra.mxu1 %v5772_v47  ;;  %v854_v47 = vsub.s32 0, %v7166_v44 }
 0x11c   : > { %3837 = vmatpush1.bf16.msra.mxu0 %v5768_v46  ;;  %5178 = vmatprep.subr.bf16.mxu1 %v5776_v50  ;;  %v5848_v46 = vld [vmem:[%s7702_s1 + $0xae4] ss:$12 sps:$4 sm:$0xff]  }
 0x11d   : > { %3838 = vmatprep.subr.bf16.mxu0 %v5775_v49  ;;  %v5846_v49 = vld [vmem:[%s7702_s1 + $0xae0] ss:$12 sps:$4 sm:$0xff]   ;;  %v5850_v50 = vld [vmem:[%s7702_s1 + $0x938] ss:$12 sps:$4 sm:$0xff]  }
 0x11f   : > { %5179 = vmatpush3.bf16.msra.mxu1 %v5777_v52  ;;  %v858_v52 = vsub.s32 1, %v7166_v44 }
 0x120   : > { %3839 = vmatpush1.bf16.msra.mxu0 %v5773_v51  ;;  %5180 = vmatprep.subr.bf16.mxu1 %v5781_v54  ;;  %v7192_v51 = vld [vmem:[%s7703_s2] sm:$0x7]  ;;  %v5854_v54 = vld [vmem:[%s7702_s1 + $0xa10] ss:$12 sps:$4 sm:$0xff]  }
 0x121   : > { %3840 = vmatprep.subr.bf16.mxu0 %v5780_v53  ;;  %v5853_v53 = vld [vmem:[%s7702_s1 + $0xafc] ss:$12 sps:$4 sm:$0xff]  }
 0x123   : > { %5181 = vmatpush3.bf16.msra.mxu1 %v5782_v56  ;;  %v859_v56 = vrot.slane %v7192_v51, %v858_v52  ;;  %v5906_v52 = vld [vmem:[%s6236_s13 + $0x38] ss:$84 sps:$4 sm:$0xff]  }
 0x124   : > { %3841 = vmatpush1.bf16.msra.mxu0 %v5778_v55  ;;  %5182 = vmatprep.subr.bf16.mxu1 %v5786_v58  ;;  %v5851_v55 = vld [vmem:[%s7702_s1 + $0xaf8] ss:$12 sps:$4 sm:$0xff]   ;;  %v5858_v58 = vld [vmem:[%s7702_s1 + $0xb14] ss:$12 sps:$4 sm:$0xff]  }
 0x125   : > { %3842 = vmatprep.subr.bf16.mxu0 %v5785_v57  ;;  %v5855_v57 = vld [vmem:[%s7702_s1 + $0x950] ss:$12 sps:$4 sm:$0xff]  }
 0x127   : > { %5183 = vmatpush3.bf16.msra.mxu1 %v5787_v60 }
 0x128   : > { %3843 = vmatpush1.bf16.msra.mxu0 %v5783_v59  ;;  %5184 = vmatprep.subr.bf16.mxu1 %v5791_v62  ;;  %v5859_v59 = vld [vmem:[%s7702_s1 + $0xa28] ss:$12 sps:$4 sm:$0xff]  }
 0x129   : > { %3844 = vmatprep.subr.bf16.mxu0 %v5790_v61 }
 0x12b   : > { %5185 = vmatpush3.bf16.msra.mxu1 %v5792_v63  ;;  %v5860_v63 = vld [vmem:[%s7702_s1 + $0x968] ss:$12 sps:$4 sm:$0xff]  }
 0x12c   : > { %3845 = vmatpush1.bf16.msra.mxu0 %v5788_v4  ;;  %5192 = vmatprep.subr.bf16.mxu1 %v5796_v1  ;;  %v5856_v4 = vld [vmem:[%s7702_s1 + $0xb10] ss:$12 sps:$4 sm:$0xff]  }
 0x12d   : > { %3846 = vmatprep.subr.bf16.mxu0 %v5795_v0 }
 0x12e   : > { %4238 = vmatmul.mubr.bf16.vlgmr.msra.gmra.mrb[24].mxu1 %v6715_v16  ;;  %v5803_v16 = vld [vmem:[%s7702_s1 + $0xa20] ss:$12 sps:$4 sm:$0xff]  }
 0x12f   : > { %5193 = vmatpush3.bf16.msra.mxu1 %v5797_v34  ;;  %4278 = vmatprep.mubr.bf16.mxu1 %v6746_v26  ;;  %v5811_v26 = vld [vmem:[%s7702_s1 + $0x890] ss:$12 sps:$4 sm:$0xff]  }
 0x130   : > { %3847 = vmatpush1.bf16.msra.mxu0 %v5793_v2  ;;  %5194 = vmatprep.subr.bf16.mxu1 %v5801_v5  ;;  %v5863_v2 = vld [vmem:[%s7702_s1 + $0xb2c] ss:$12 sps:$4 sm:$0xff]  }
 0x131   : > { %3848 = vmatprep.subr.bf16.mxu0 %v5800_v3  ;;  %v5864_v5 = vld [vmem:[%s7702_s1 + $0xa40] ss:$12 sps:$4 sm:$0xff]  }
 0x133   : > { %5195 = vmatpush3.bf16.msra.mxu1 %v5802_v7  ;;  %v5861_v7 = vld [vmem:[%s7702_s1 + $0xb28] ss:$12 sps:$4 sm:$0xff]  }
 0x134   : > { %3849 = vmatpush1.bf16.msra.mxu0 %v5798_v6  ;;  %5196 = vmatprep.subr.bf16.mxu1 %v5806_v10  ;;  %v5868_v10 = vld [vmem:[%s7702_s1 + $0xb44] ss:$12 sps:$4 sm:$0xff]  }
 0x135   : > { %3850 = vmatprep.subr.bf16.mxu0 %v5805_v8  ;;  %v5865_v8 = vld [vmem:[%s7702_s1 + $0x980] ss:$12 sps:$4 sm:$0xff]  }
 0x137   : > { %5197 = vmatpush3.bf16.msra.mxu1 %v5807_v11  ;;  %v5866_v11 = vld [vmem:[%s7702_s1 + $0xb40] ss:$12 sps:$4 sm:$0xff]  }
 0x138   : > { %3851 = vmatpush1.bf16.msra.mxu0 %v5803_v16  ;;  %5198 = vmatprep.subr.bf16.mxu1 %v5811_v26  ;;  %v5869_v16 = vld [vmem:[%s7702_s1 + $0xa58] ss:$12 sps:$4 sm:$0xff]  }
 0x139   : > { %3852 = vmatprep.subr.bf16.mxu0 %v5810_v12  ;;  %v5870_v26 = vld [vmem:[%s7702_s1 + $0x998] ss:$12 sps:$4 sm:$0xff]  }
 0x13b   : > { %5199 = vmatpush3.bf16.msra.mxu1 %v5812_v14 }
 0x13c   : > { %3853 = vmatpush1.bf16.msra.mxu0 %v5808_v13  ;;  %5200 = vmatprep.subr.bf16.mxu1 %v5816_v17  ;;  %v5873_v13 = vld [vmem:[%s7702_s1 + $0xb5c] ss:$12 sps:$4 sm:$0xff]  }
 0x13d   : > { %3854 = vmatprep.subr.bf16.mxu0 %v5815_v15  ;;  %v5874_v17 = vld [vmem:[%s7702_s1 + $0xa70] ss:$12 sps:$4 sm:$0xff]  }
 0x13f   : > { %5201 = vmatpush3.bf16.msra.mxu1 %v5817_v19  ;;  %v5871_v19 = vld [vmem:[%s7702_s1 + $0xb58] ss:$12 sps:$4 sm:$0xff]  }
 0x140   : > { %3855 = vmatpush1.bf16.msra.mxu0 %v5813_v18  ;;  %5202 = vmatprep.subr.bf16.mxu1 %v5821_v21  ;;  %v5878_v21 = vld [vmem:[%s7702_s1 + $0xb74] ss:$12 sps:$4 sm:$0xff]  }
 0x141   : > { %3856 = vmatprep.subr.bf16.mxu0 %v5820_v20  ;;  %v5875_v20 = vld [vmem:[%s7702_s1 + $0x9b0] ss:$12 sps:$4 sm:$0xff]  }
 0x143   : > { %5203 = vmatpush3.bf16.msra.mxu1 %v5822_v24  ;;  %v5876_v24 = vld [vmem:[%s7702_s1 + $0xb70] ss:$12 sps:$4 sm:$0xff]  }
 0x144   : > { %3857 = vmatpush1.bf16.msra.mxu0 %v5818_v22  ;;  %5204 = vmatprep.subr.bf16.mxu1 %v5829_v27  ;;  %v5879_v22 = vld [vmem:[%s7702_s1 + $0xb48] ss:$12 sps:$4 sm:$0xff]   ;;  %v5883_v27 = vld [vmem:[%s7702_s1 + $0xb8c] ss:$12 sps:$4 sm:$0xff]  }
 0x145   : > { %3869 = vmatprep.subr.bf16.mxu0 %v5828_v25  ;;  %v5880_v25 = vld [vmem:[%s7702_s1 + $0xa88] ss:$12 sps:$4 sm:$0xff]  }
 0x147   : > { %3859 = vmatmul.mubr.bf16.vlgmr.msra.gmra.mrb[0].mxu0 %v7123_v28  ;;  %5205 = vmatpush3.bf16.msra.mxu1 %v5830_v31  ;;  %v5881_v31 = vld [vmem:[%s7702_s1 + $0xb88] ss:$12 sps:$4 sm:$0xff]  }
 0x148   : > { %3870 = vmatpush1.bf16.msra.mxu0 %v5826_v29  ;;  %5206 = vmatprep.subr.bf16.mxu1 %v5834_v35  ;;  %v5884_v29 = vld [vmem:[%s7702_s1 + $0xb60] ss:$12 sps:$4 sm:$0xff]   ;;  %v5888_v35 = vld [vmem:[%s7702_s1 + $0xba4] ss:$12 sps:$4 sm:$0xff]  }
 0x149   : > { %3871 = vmatprep.subr.bf16.mxu0 %v5833_v32  ;;  %3901 = vmatprep.mubr.bf16.mxu0 %v7138_v48  ;;  %v5885_v32 = vld [vmem:[%s7702_s1 + $0xaa0] ss:$12 sps:$4 sm:$0xff]  }
 0x14b   : > { %5207 = vmatpush3.bf16.msra.mxu1 %v5835_v36  ;;  %v5890_v36 = vld [vmem:[%s7702_s1 + $0xab8] ss:$12 sps:$4 sm:$0xff]  }
 0x14c   : > { %3872 = vmatpush1.bf16.msra.mxu0 %v5831_v9  ;;  %5214 = vmatprep.subr.bf16.mxu1 %v5839_v38  ;;  %v5889_v9 = vld [vmem:[%s7702_s1 + $0xb78] ss:$12 sps:$4 sm:$0xff]  }
 0x14d   : > { %3873 = vmatprep.subr.bf16.mxu0 %v5838_v37  ;;  %v5893_v37 = vld [vmem:[%s7702_s1 + $0xbbc] ss:$12 sps:$4 sm:$0xff]   ;;  %v5891_v38 = vld [vmem:[%s7702_s1 + $0xbb8] ss:$12 sps:$4 sm:$0xff]  }
 0x14e   : > { %4279 = vmatmul.mubr.bf16.vlgmr.msra.gmra.mrb[28].mxu1 %v6919_v23  ;;  %v5849_v23 = vld [vmem:[%s7702_s1 + $0x9f8] ss:$12 sps:$4 sm:$0xff]  }
 0x14f   : > { %5215 = vmatpush3.bf16.msra.mxu1 %v5840_v41  ;;  %4319 = vmatprep.mubr.bf16.mxu1 %v6937_v30  ;;  %v855_v30 = vrot.slane %v7192_v51, %v854_v47  ;;  %v5899_v41 = vld [vmem:[%s7702_s1 + $0xba8] ss:$12 sps:$4 sm:$0xff]   ;;  %v5911_v47 = vld [vmem:[%s7702_s1 + $0xc04] ss:$12 sps:$4 sm:$0xff]  }
 0x150   : > { %3874 = vmatpush1.bf16.msra.mxu0 %v5836_v40  ;;  %5216 = vmatprep.subr.bf16.mxu1 %v5844_v43  ;;  %v5898_v40 = vld [vmem:[%s7702_s1 + $0xbd4] ss:$12 sps:$4 sm:$0xff]  }
 0x151   : > { %3875 = vmatprep.subr.bf16.mxu0 %v5843_v42  ;;  %v5896_v42 = vld [vmem:[%s7702_s1 + $0xbd0] ss:$12 sps:$4 sm:$0xff]   ;;  %v5900_v43 = vld [vmem:[%s7702_s1 + $0xae8] ss:$12 sps:$4 sm:$0xff]  }
 0x153   : > { %5217 = vmatpush3.bf16.msra.mxu1 %v5845_v33  ;;  %v5904_v33 = vld [vmem:[%s7702_s1 + $0xbc0] ss:$12 sps:$4 sm:$0xff]  }
 0x154   : > { %3876 = vmatpush1.bf16.msra.mxu0 %v5841_v45  ;;  %5218 = vmatprep.subr.bf16.mxu1 %v5849_v23  ;;  %v5903_v45 = vld [vmem:[%s7702_s1 + $0xbec] ss:$12 sps:$4 sm:$0xff]  }
 0x155   : > { %3877 = vmatprep.subr.bf16.mxu0 %v5848_v46  ;;  %v5901_v46 = vld [vmem:[%s7702_s1 + $0xbe8] ss:$12 sps:$4 sm:$0xff]   ;;  %v5905_v23 = vld [vmem:[%s7702_s1 + $0xb00] ss:$12 sps:$4 sm:$0xff]  }
 0x157   : > { %5219 = vmatpush3.bf16.msra.mxu1 %v5850_v50 }
 0x158   : > { %3878 = vmatpush1.bf16.msra.mxu0 %v5846_v49  ;;  %5220 = vmatprep.subr.bf16.mxu1 %v5854_v54  ;;  %v5912_v49 = vld [vmem:[%s7702_s1 + $0xbd8] ss:$12 sps:$4 sm:$0xff]   ;;  %v5909_v54 = vld [vmem:[%s7702_s1 + $0xc00] ss:$12 sps:$4 sm:$0xff]  }
 0x159   : > { %3879 = vmatprep.subr.bf16.mxu0 %v5853_v53  ;;  %v3645_v60 = vpop.f32.mrb[0].mxu1 }
 0x15a   : > { %v7215_v61 = vadd.f32 %v3645_v60, %v855_v30  ;;  %v3647_v62 = vpop.f32.mrb[1].mxu1 }
 0x15b   : > { %v7223_v0 = vadd.f32 %v3647_v62, %v859_v56  ;;  %v3649_v1 = vpop.f32.mrb[2].mxu1  ;;  %5221 = vmatpush3.bf16.msra.mxu1 %v5855_v57  ;;  %v5916_v57 = vld [vmem:[%s7702_s1 + $0xc1c] ss:$12 sps:$4 sm:$0xff]   ;;  %v5914_v62 = vld [vmem:[%s7702_s1 + $0xc18] ss:$12 sps:$4 sm:$0xff]  }
 0x15c   : > { %3880 = vmatpush1.bf16.msra.mxu0 %v5851_v55  ;;  %v7228_v34 = vadd.f32 %v3649_v1, %v855_v30  ;;  %v3651_v3 = vpop.f32.mrb[3].mxu1  ;;  %5222 = vmatprep.subr.bf16.mxu1 %v5859_v59  ;;  %v5913_v30 = vld [vmem:[%s7702_s1 + $0xb18] ss:$12 sps:$4 sm:$0xff]   ;;  %v5921_v1 = vld [vmem:[%s7702_s1 + $0xc34] ss:$12 sps:$4 sm:$0xff]  }
 0x15d   : > { %3881 = vmatprep.subr.bf16.mxu0 %v5858_v58  ;;  %v7233_v6 = vadd.f32 %v3651_v3, %v859_v56  ;;  %v5917_v58 = vld [vmem:[%s7702_s1 + $0xbf0] ss:$12 sps:$4 sm:$0xff]  }
 0x15e   : > { %v5919_v3 = vld [vmem:[%s7702_s1 + $0xc30] ss:$12 sps:$4 sm:$0xff]  }
 0x15f   : > { %5223 = vmatpush3.bf16.msra.mxu1 %v5860_v63  ;;  %v5961_v63 = vld [vmem:[%s6236_s13 + $0x44] ss:$84 sps:$4 sm:$0xff]  }
 0x160   : > { %3882 = vmatpush1.bf16.msra.mxu0 %v5856_v4  ;;  %5224 = vmatprep.subr.bf16.mxu1 %v5864_v5  ;;  %v5918_v4 = vld [vmem:[%s7702_s1 + $0xb30] ss:$12 sps:$4 sm:$0xff]   ;;  %v5923_v5 = vld [vmem:[%s7702_s1 + $0xc08] ss:$12 sps:$4 sm:$0xff]  }
 0x161   : > { %3883 = vmatprep.subr.bf16.mxu0 %v5863_v2  ;;  %v7250_v12 = vpop.f32.mrb[4].mxu1  ;;  %v5922_v2 = vld [vmem:[%s7702_s1 + $0xcc8] ss:$12 sps:$4 sm:$0xff]  }
 0x162   : > { %v7258_v14 = vpop.f32.mrb[5].mxu1 }
 0x163   : > { %5225 = vmatpush3.bf16.msra.mxu1 %v5865_v8  ;;  %v7260_v15 = vpop.f32.mrb[6].mxu1  ;;  %v5927_v8 = vld [vmem:[%s7702_s1 + $0xce0] ss:$12 sps:$4 sm:$0xff]  }
 0x164   : > { %3884 = vmatpush1.bf16.msra.mxu0 %v5861_v7  ;;  %5226 = vmatprep.subr.bf16.mxu1 %v5869_v16  ;;  %v7265_v18 = vpop.f32.mrb[7].mxu1  ;;  %v5926_v7 = vld [vmem:[%s7702_s1 + $0xc4c] ss:$12 sps:$4 sm:$0xff]  }
 0x165   : > { %3885 = vmatprep.subr.bf16.mxu0 %v5868_v10  ;;  %v5924_v10 = vld [vmem:[%s7702_s1 + $0xc48] ss:$12 sps:$4 sm:$0xff]   ;;  %v5928_v16 = vld [vmem:[%s7702_s1 + $0xc20] ss:$12 sps:$4 sm:$0xff]  }
 0x167   : > { %5227 = vmatpush3.bf16.msra.mxu1 %v5870_v26  ;;  %v5932_v26 = vld [vmem:[%s7702_s1 + $0xcf8] ss:$12 sps:$4 sm:$0xff]  }
 0x168   : > { %3886 = vmatpush1.bf16.msra.mxu0 %v5866_v11  ;;  %5228 = vmatprep.subr.bf16.mxu1 %v5874_v17  ;;  %v5931_v11 = vld [vmem:[%s7702_s1 + $0xc64] ss:$12 sps:$4 sm:$0xff]  }
 0x169   : > { %3887 = vmatprep.subr.bf16.mxu0 %v5873_v13  ;;  %v5929_v13 = vld [vmem:[%s7702_s1 + $0xc60] ss:$12 sps:$4 sm:$0xff]   ;;  %v5933_v17 = vld [vmem:[%s7702_s1 + $0xc38] ss:$12 sps:$4 sm:$0xff]  }
 0x16b   : > { %5229 = vmatpush3.bf16.msra.mxu1 %v5875_v20  ;;  %v5937_v20 = vld [vmem:[%s7702_s1 + $0xd10] ss:$12 sps:$4 sm:$0xff]  }
 0x16c   : > { %3888 = vmatpush1.bf16.msra.mxu0 %v5871_v19  ;;  %5236 = vmatprep.subr.bf16.mxu1 %v5879_v22  ;;  %v5936_v19 = vld [vmem:[%s7702_s1 + $0xc7c] ss:$12 sps:$4 sm:$0xff]  }
 0x16d   : > { %3889 = vmatprep.subr.bf16.mxu0 %v5878_v21  ;;  %v5934_v21 = vld [vmem:[%s7702_s1 + $0xc78] ss:$12 sps:$4 sm:$0xff]   ;;  %v5938_v22 = vld [vmem:[%s7702_s1 + $0xc50] ss:$12 sps:$4 sm:$0xff]  }
 0x16e   : > { %4320 = vmatmul.mubr.bf16.vlgmr.msra.gmra.mrb[32].mxu1 %v7123_v28  ;;  %v5886_v28 = vld [vmem:[%s7702_s1 + $0xba0] ss:$12 sps:$4 sm:$0xff]  }
 0x16f   : > { %5237 = vmatpush3.bf16.msra.mxu1 %v5880_v25  ;;  %4360 = vmatprep.mubr.bf16.mxu1 %v7138_v48  ;;  %v5894_v48 = vld [vmem:[%s7702_s1 + $0xb90] ss:$12 sps:$4 sm:$0xff]   ;;  %v5942_v25 = vld [vmem:[%s7702_s1 + $0xd28] ss:$12 sps:$4 sm:$0xff]  }
 0x170   : > { %3890 = vmatpush1.bf16.msra.mxu0 %v5876_v24  ;;  %5238 = vmatprep.subr.bf16.mxu1 %v5884_v29  ;;  %v5941_v24 = vld [vmem:[%s7702_s1 + $0xc94] ss:$12 sps:$4 sm:$0xff]   ;;  %v5939_v29 = vld [vmem:[%s7702_s1 + $0xc90] ss:$12 sps:$4 sm:$0xff]  }
 0x171   : > { %3891 = vmatprep.subr.bf16.mxu0 %v5883_v27  ;;  %v862_v27 = vsub.s32 2, %v7166_v44  ;;  %v5947_v44 = vld [vmem:[%s7702_s1 + $0xd40] ss:$12 sps:$4 sm:$0xff]  }
 0x173   : > { %5239 = vmatpush3.bf16.msra.mxu1 %v5885_v32  ;;  %v5946_v32 = vld [vmem:[%s7702_s1 + $0xcac] ss:$12 sps:$4 sm:$0xff]  }
 0x174   : > { %3892 = vmatpush1.bf16.msra.mxu0 %v5881_v31  ;;  %5240 = vmatprep.subr.bf16.mxu1 %v5889_v9  ;;  %v5943_v31 = vld [vmem:[%s7702_s1 + $0xc68] ss:$12 sps:$4 sm:$0xff]  }
 0x175   : > { %3893 = vmatprep.subr.bf16.mxu0 %v5888_v35  ;;  %v863_v35 = vrot.slane %v7192_v51, %v862_v27  ;;  %v5944_v9 = vld [vmem:[%s7702_s1 + $0xca8] ss:$12 sps:$4 sm:$0xff]   ;;  %v5952_v51 = vld [vmem:[%s7702_s1 + $0xd58] ss:$12 sps:$4 sm:$0xff]  }
 0x177   : > { %5241 = vmatpush3.bf16.msra.mxu1 %v5890_v36  ;;  %v5951_v36 = vld [vmem:[%s7702_s1 + $0xcc4] ss:$12 sps:$4 sm:$0xff]  }
 0x178   : > { %3894 = vmatpush1.bf16.msra.mxu0 %v5886_v28  ;;  %5242 = vmatprep.subr.bf16.mxu1 %v5894_v48  ;;  %v5948_v28 = vld [vmem:[%s7702_s1 + $0xc80] ss:$12 sps:$4 sm:$0xff]  }
 0x179   : > { %3895 = vmatprep.subr.bf16.mxu0 %v5893_v37 }
 0x17b   : > { %5243 = vmatpush3.bf16.msra.mxu1 %v5895_v39  ;;  %v5949_v39 = vld [vmem:[%s7702_s1 + $0xcc0] ss:$12 sps:$4 sm:$0xff]  }
 0x17c   : > { %3896 = vmatpush1.bf16.msra.mxu0 %v5891_v38  ;;  %5244 = vmatprep.subr.bf16.mxu1 %v5899_v41 }
 0x17d   : > { %3897 = vmatprep.subr.bf16.mxu0 %v5898_v40  ;;  %v5953_v40 = vld [vmem:[%s7702_s1 + $0xc98] ss:$12 sps:$4 sm:$0xff]  }
 0x17f   : > { %5245 = vmatpush3.bf16.msra.mxu1 %v5900_v43 }
 0x180   : > { %3898 = vmatpush1.bf16.msra.mxu0 %v5896_v42  ;;  %5246 = vmatprep.subr.bf16.mxu1 %v5904_v33  ;;  %v5957_v33 = vld [vmem:[%s7702_s1 + $0xd70] ss:$12 sps:$4 sm:$0xff]  }
 0x181   : > { %3899 = vmatprep.subr.bf16.mxu0 %v5903_v45  ;;  %v5098_v50 = vpop.f32.mrb[8].mxu1  ;;  %v5956_v45 = vld [vmem:[%s7702_s1 + $0xcdc] ss:$12 sps:$4 sm:$0xff]  }
 0x182   : > { %v5099_v53 = vpop.f32.mrb[9].mxu1 }
 0x183   : > { %5247 = vmatpush3.bf16.msra.mxu1 %v5905_v23  ;;  %v7360_v55 = vadd.f32 %v5099_v53, %v5098_v50  ;;  %v5101_v56 = vpop.f32.mrb[10].mxu1  ;;  %v5958_v50 = vld [vmem:[%s7702_s1 + $0xcb0] ss:$12 sps:$4 sm:$0xff]   ;;  %v5964_v53 = vld [vmem:[%s7702_s1 + $0xcf4] ss:$12 sps:$4 sm:$0xff]  }
 0x184   : > { %3900 = vmatpush1.bf16.msra.mxu0 %v5901_v46  ;;  %5248 = vmatprep.subr.bf16.mxu1 %v5912_v49  ;;  %v5102_v59 = vpop.f32.mrb[11].mxu1  ;;  %v5954_v49 = vld [vmem:[%s7702_s1 + $0xcd8] ss:$12 sps:$4 sm:$0xff]  }
 0x185   : > { %3912 = vmatprep.subr.bf16.mxu0 %v5911_v47  ;;  %v7368_v60 = vadd.f32 %v5102_v59, %v5101_v56  ;;  %v4076_v37 = vadd.f32 %v7360_v55, %v863_v35  ;;  %v5962_v55 = vld [vmem:[%s7702_s1 + $0xcf0] ss:$12 sps:$4 sm:$0xff]   ;;  %v5966_v56 = vld [vmem:[%s7702_s1 + $0xd88] ss:$12 sps:$4 sm:$0xff]   ;;  %v7503_v59 = vld [vmem:[%s6236_s13 + $0x4c] ss:$84 sps:$4 sm:$0xff]  }
 0x187   : > { %3902 = vmatmul.mubr.bf16.vlgmr.msra.gmra.mrb[0].mxu0 %v5906_v52  ;;  %5249 = vmatpush3.bf16.msra.mxu1 %v5913_v30  ;;  %v4079_v41 = vadd.f32 %v7368_v60, %v863_v35  ;;  %v7488_v30 = vld [vmem:[%s6236_s13 + $0x40] ss:$84 sps:$4 sm:$0xff]   ;;  %v5999_v35 = vld [vmem:[%s7702_s1 + $0xd9c] ss:$12 sps:$4 sm:$0xff]  }
 0x188   : > { %3913 = vmatpush1.bf16.msra.mxu0 %v5909_v54  ;;  %5250 = vmatprep.subr.bf16.mxu1 %v5917_v58  ;;  %v5965_v54 = vld [vmem:[%s7702_s1 + $0xe48] ss:$12 sps:$4 sm:$0xff]   ;;  %v5970_v58 = vld [vmem:[%s7702_s1 + $0xe60] ss:$12 sps:$4 sm:$0xff]  }
 0x189   : > { %3914 = vmatprep.subr.bf16.mxu0 %v5916_v57  ;;  %3944 = vmatprep.mubr.bf16.mxu0 %v5961_v63  ;;  %v5969_v57 = vld [vmem:[%s7702_s1 + $0xd0c] ss:$12 sps:$4 sm:$0xff]   ;;  %v5967_v60 = vld [vmem:[%s7702_s1 + $0xd08] ss:$12 sps:$4 sm:$0xff]  }
 0x18b   : > { %5251 = vmatpush3.bf16.msra.mxu1 %v5918_v4  ;;  %v5974_v4 = vld [vmem:[%s7702_s1 + $0xd24] ss:$12 sps:$4 sm:$0xff]  }
 0x18c   : > { %3915 = vmatpush1.bf16.msra.mxu0 %v5914_v62  ;;  %5258 = vmatprep.subr.bf16.mxu1 %v5922_v2  ;;  %v5971_v62 = vld [vmem:[%s7702_s1 + $0xda0] ss:$12 sps:$4 sm:$0xff]   ;;  %v5976_v2 = vld [vmem:[%s7702_s1 + $0xdb8] ss:$12 sps:$4 sm:$0xff]  }
 0x18d   : > { %3916 = vmatprep.subr.bf16.mxu0 %v5921_v1  ;;  %v5972_v1 = vld [vmem:[%s7702_s1 + $0xd20] ss:$12 sps:$4 sm:$0xff]  }
 0x18e   : > { %4361 = vmatmul.mubr.bf16.vlgmr.msra.gmra.mrb[36].mxu1 %v5906_v52 }
 0x18f   : > { %5259 = vmatpush3.bf16.msra.mxu1 %v5923_v5  ;;  %4401 = vmatprep.mubr.bf16.mxu1 %v5961_v63  ;;  %v5975_v63 = vld [vmem:[%s7702_s1 + $0xe78] ss:$12 sps:$4 sm:$0xff]   ;;  %v5980_v5 = vld [vmem:[%s7702_s1 + $0xe90] ss:$12 sps:$4 sm:$0xff]  }
 0x190   : > { %3917 = vmatpush1.bf16.msra.mxu0 %v5919_v3  ;;  %5260 = vmatprep.subr.bf16.mxu1 %v5927_v8  ;;  %v5979_v3 = vld [vmem:[%s7702_s1 + $0xd3c] ss:$12 sps:$4 sm:$0xff]  }
 0x191   : > { %3918 = vmatprep.subr.bf16.mxu0 %v5926_v7  ;;  %v5977_v7 = vld [vmem:[%s7702_s1 + $0xd38] ss:$12 sps:$4 sm:$0xff]   ;;  %v5981_v8 = vld [vmem:[%s7702_s1 + $0xdd0] ss:$12 sps:$4 sm:$0xff]  }
 0x193   : > { %5261 = vmatpush3.bf16.msra.mxu1 %v5928_v16  ;;  %v5985_v16 = vld [vmem:[%s7702_s1 + $0xea8] ss:$12 sps:$4 sm:$0xff]  }
 0x194   : > { %3919 = vmatpush1.bf16.msra.mxu0 %v5924_v10  ;;  %5262 = vmatprep.subr.bf16.mxu1 %v5932_v26  ;;  %v5984_v10 = vld [vmem:[%s7702_s1 + $0xd54] ss:$12 sps:$4 sm:$0xff]  }
 0x195   : > { %3920 = vmatprep.subr.bf16.mxu0 %v5931_v11  ;;  %v5982_v11 = vld [vmem:[%s7702_s1 + $0xd50] ss:$12 sps:$4 sm:$0xff]   ;;  %v5986_v26 = vld [vmem:[%s7702_s1 + $0xde8] ss:$12 sps:$4 sm:$0xff]  }
 0x197   : > { %5263 = vmatpush3.bf16.msra.mxu1 %v5933_v17  ;;  %v5990_v17 = vld [vmem:[%s7702_s1 + $0xec0] ss:$12 sps:$4 sm:$0xff]  }
 0x198   : > { %3921 = vmatpush1.bf16.msra.mxu0 %v5929_v13  ;;  %5264 = vmatprep.subr.bf16.mxu1 %v5937_v20  ;;  %v5989_v13 = vld [vmem:[%s7702_s1 + $0xd6c] ss:$12 sps:$4 sm:$0xff]  }
 0x199   : > { %3922 = vmatprep.subr.bf16.mxu0 %v5936_v19  ;;  %v5987_v19 = vld [vmem:[%s7702_s1 + $0xd68] ss:$12 sps:$4 sm:$0xff]   ;;  %v5991_v20 = vld [vmem:[%s7702_s1 + $0xe00] ss:$12 sps:$4 sm:$0xff]  }
 0x19b   : > { %5265 = vmatpush3.bf16.msra.mxu1 %v5938_v22  ;;  %v5995_v22 = vld [vmem:[%s7702_s1 + $0xed8] ss:$12 sps:$4 sm:$0xff]  }
 0x19c   : > { %3923 = vmatpush1.bf16.msra.mxu0 %v5934_v21  ;;  %5266 = vmatprep.subr.bf16.mxu1 %v5942_v25  ;;  %v5994_v21 = vld [vmem:[%s7702_s1 + $0xd84] ss:$12 sps:$4 sm:$0xff]  }
 0x19d   : > { %3924 = vmatprep.subr.bf16.mxu0 %v5941_v24 }
 0x19f   : > { %5267 = vmatpush3.bf16.msra.mxu1 %v5943_v31  ;;  %v5992_v31 = vld [vmem:[%s7702_s1 + $0xd80] ss:$12 sps:$4 sm:$0xff]  }
 0x1a0   : > { %3925 = vmatpush1.bf16.msra.mxu0 %v5939_v29  ;;  %5268 = vmatprep.subr.bf16.mxu1 %v5947_v44 }
 0x1a1   : > { %3926 = vmatprep.subr.bf16.mxu0 %v5946_v32  ;;  %v5120_v48 = vpop.f32.mrb[12].mxu1  ;;  %v5996_v32 = vld [vmem:[%s7702_s1 + $0xe18] ss:$12 sps:$4 sm:$0xff]  }
 0x1a2   : > { %v5121_v38 = vpop.f32.mrb[13].mxu1 }
 0x1a3   : > { %5269 = vmatpush3.bf16.msra.mxu1 %v5948_v28  ;;  %v5122_v42 = vadd.f32 %v5121_v38, %v5120_v48  ;;  %v5123_v43 = vpop.f32.mrb[14].mxu1  ;;  %v6001_v48 = vld [vmem:[%s7702_s1 + $0xe30] ss:$12 sps:$4 sm:$0xff]   ;;  %v6007_v38 = vld [vmem:[%s7702_s1 + $0xdb4] ss:$12 sps:$4 sm:$0xff]  }
 0x1a4   : > { %3927 = vmatpush1.bf16.msra.mxu0 %v5944_v9  ;;  %5270 = vmatprep.subr.bf16.mxu1 %v5952_v51  ;;  %v5124_v46 = vpop.f32.mrb[15].mxu1  ;;  %v6000_v9 = vld [vmem:[%s7702_s1 + $0xef0] ss:$12 sps:$4 sm:$0xff]  }
 0x1a5   : > { %3928 = vmatprep.subr.bf16.mxu0 %v5951_v36  ;;  %v7471_v23 = vadd.f32 %v5122_v42, %v4076_v37  ;;  %v5125_v47 = vadd.f32 %v5124_v46, %v5123_v43  ;;  %v5997_v37 = vld [vmem:[%s7702_s1 + $0xd98] ss:$12 sps:$4 sm:$0xff]   ;;  %v6063_v42 = vmov 0.0  }
 0x1a6   : > { %v6011_v43 = vld [vmem:[%s7702_s1 + $0xdcc] ss:$12 sps:$4 sm:$0xff]   ;;  %v6015_v46 = vld [vmem:[%s7702_s1 + $0xde4] ss:$12 sps:$4 sm:$0xff]  }
 0x1a7   : > { %5271 = vmatpush3.bf16.msra.mxu1 %v5953_v40  ;;  %v7479_v52 = vadd.f32 %v5125_v47, %v4079_v41  ;;  %v6005_v40 = vld [vmem:[%s7702_s1 + $0xdb0] ss:$12 sps:$4 sm:$0xff]   ;;  %v6008_v41 = vld [vmem:[%s7702_s1 + $0xf08] ss:$12 sps:$4 sm:$0xff]  }
 0x1a8   : > { %3929 = vmatpush1.bf16.msra.mxu0 %v5949_v39  ;;  %5272 = vmatprep.subr.bf16.mxu1 %v5957_v33  ;;  %v7593_v39 = vld [vmem:[%s6236_s13 + $0x48] ss:$84 sps:$4 sm:$0xff]   ;;  %v6012_v33 = vld [vmem:[%s7702_s1 + $0xf20] ss:$12 sps:$4 sm:$0xff]  }
 0x1a9   : > { %3930 = vmatprep.subr.bf16.mxu0 %v5956_v45  ;;  %v6009_v45 = vld [vmem:[%s7702_s1 + $0xdc8] ss:$12 sps:$4 sm:$0xff]  }
 0x1aa   : > { %v6018_v47 = vld [vmem:[%s7702_s1 + $0xdfc] ss:$12 sps:$4 sm:$0xff]  }
 0x1ab   : > { %5273 = vmatpush3.bf16.msra.mxu1 %v5958_v50  ;;  %v6016_v50 = vld [vmem:[%s7702_s1 + $0xdf8] ss:$12 sps:$4 sm:$0xff]  }
 0x1ac   : > { %3931 = vmatpush1.bf16.msra.mxu0 %v5954_v49  ;;  %5280 = vmatprep.subr.bf16.mxu1 %v5965_v54  ;;  %v6053_v49 = vld [vmem:[%s6236_s13 + $0x50] ss:$84 sps:$4 sm:$0xff]   ;;  %v6024_v54 = vld [vmem:[%s7702_s1 + $0xe2c] ss:$12 sps:$4 sm:$0xff]  }
 0x1ad   : > { %3932 = vmatprep.subr.bf16.mxu0 %v5964_v53  ;;  %v6019_v53 = vld [vmem:[%s7702_s1 + $0xe10] ss:$12 sps:$4 sm:$0xff]  }
 0x1ae   : > { %4402 = vmatmul.mubr.bf16.vlgmr.msra.gmra.mrb[40].mxu1 %v7488_v30 }
 0x1af   : > { %5281 = vmatpush3.bf16.msra.mxu1 %v5966_v56  ;;  %4442 = vmatprep.mubr.bf16.mxu1 %v7503_v59 }
 0x1b0   : > { %3933 = vmatpush1.bf16.msra.mxu0 %v5962_v55  ;;  %5282 = vmatprep.subr.bf16.mxu1 %v5970_v58  ;;  %v6027_v55 = vld [vmem:[%s7702_s1 + $0xe44] ss:$12 sps:$4 sm:$0xff]  }
 0x1b1   : > { %3934 = vmatprep.subr.bf16.mxu0 %v5969_v57 }
 0x1b3   : > { %5283 = vmatpush3.bf16.msra.mxu1 %v5971_v62 }
 0x1b4   : > { %3935 = vmatpush1.bf16.msra.mxu0 %v5967_v60  ;;  %5284 = vmatprep.subr.bf16.mxu1 %v5975_v63  ;;  %v6025_v60 = vld [vmem:[%s7702_s1 + $0xe40] ss:$12 sps:$4 sm:$0xff]  }
 0x1b5   : > { %3936 = vmatprep.subr.bf16.mxu0 %v5974_v4  ;;  %v6030_v4 = vld [vmem:[%s7702_s1 + $0xe5c] ss:$12 sps:$4 sm:$0xff]  }
 0x1b7   : > { %5285 = vmatpush3.bf16.msra.mxu1 %v5976_v2 }
 0x1b8   : > { %3937 = vmatpush1.bf16.msra.mxu0 %v5972_v1  ;;  %5286 = vmatprep.subr.bf16.mxu1 %v5980_v5  ;;  %v6033_v5 = vld [vmem:[%s7702_s1 + $0xe74] ss:$12 sps:$4 sm:$0xff]  }
 0x1b9   : > { %3938 = vmatprep.subr.bf16.mxu0 %v5979_v3  ;;  %v6028_v3 = vld [vmem:[%s7702_s1 + $0xe58] ss:$12 sps:$4 sm:$0xff]  }
 0x1bb   : > { %5287 = vmatpush3.bf16.msra.mxu1 %v5981_v8  ;;  %v6036_v8 = vld [vmem:[%s7702_s1 + $0xe8c] ss:$12 sps:$4 sm:$0xff]  }
 0x1bc   : > { %3939 = vmatpush1.bf16.msra.mxu0 %v5977_v7  ;;  %5288 = vmatprep.subr.bf16.mxu1 %v5985_v16  ;;  %v6031_v7 = vld [vmem:[%s7702_s1 + $0xe70] ss:$12 sps:$4 sm:$0xff]  }
 0x1bd   : > { %3940 = vmatprep.subr.bf16.mxu0 %v5984_v10  ;;  %v6034_v10 = vld [vmem:[%s7702_s1 + $0xe88] ss:$12 sps:$4 sm:$0xff]   ;;  %v6039_v16 = vld [vmem:[%s7702_s1 + $0xea4] ss:$12 sps:$4 sm:$0xff]  }
 0x1bf   : > { %5289 = vmatpush3.bf16.msra.mxu1 %v5986_v26  ;;  %v6042_v26 = vld [vmem:[%s7702_s1 + $0xebc] ss:$12 sps:$4 sm:$0xff]  }
 0x1c0   : > { %3941 = vmatpush1.bf16.msra.mxu0 %v5982_v11  ;;  %5290 = vmatprep.subr.bf16.mxu1 %v5990_v17  ;;  %v6037_v11 = vld [vmem:[%s7702_s1 + $0xea0] ss:$12 sps:$4 sm:$0xff]  }
 0x1c1   : > { %3942 = vmatprep.subr.bf16.mxu0 %v5989_v13  ;;  %v5142_v24 = vpop.f32.mrb[16].mxu1  ;;  %v6040_v13 = vld [vmem:[%s7702_s1 + $0xeb8] ss:$12 sps:$4 sm:$0xff]   ;;  %v6045_v17 = vld [vmem:[%s7702_s1 + $0xed4] ss:$12 sps:$4 sm:$0xff]  }
 0x1c2   : > { %v5143_v25 = vpop.f32.mrb[17].mxu1 }
 0x1c3   : > { %v5144_v27 = vadd.f32 %v5143_v25, %v5142_v24  ;;  %v5145_v29 = vpop.f32.mrb[18].mxu1  ;;  %5291 = vmatpush3.bf16.msra.mxu1 %v5991_v20  ;;  %v6048_v20 = vld [vmem:[%s7702_s1 + $0xeec] ss:$12 sps:$4 sm:$0xff]  }
 0x1c4   : > { %3943 = vmatpush1.bf16.msra.mxu0 %v5987_v19  ;;  %v5146_v44 = vpop.f32.mrb[19].mxu1  ;;  %5292 = vmatprep.subr.bf16.mxu1 %v5995_v22  ;;  %v6043_v19 = vld [vmem:[%s7702_s1 + $0xed0] ss:$12 sps:$4 sm:$0xff]  }
 0x1c5   : > { %3955 = vmatprep.subr.bf16.mxu0 %v5994_v21  ;;  %v4158_v28 = vadd.f32 %v5144_v27, %v7471_v23  ;;  %v5147_v36 = vadd.f32 %v5146_v44, %v5145_v29  ;;  %v6013_v23 = vld [vmem:[%s7702_s1 + $0xde0] ss:$12 sps:$4 sm:$0xff]   ;;  %v6046_v21 = vld [vmem:[%s7702_s1 + $0xee8] ss:$12 sps:$4 sm:$0xff]  }
 0x1c7   : > { %3945 = vmatmul.mubr.bf16.vlgmr.msra.gmra.mrb[0].mxu0 %v7488_v30  ;;  %v4161_v51 = vadd.f32 %v5147_v36, %v7479_v52  ;;  %5293 = vmatpush3.bf16.msra.mxu1 %v5996_v32  ;;  %v6021_v52 = vld [vmem:[%s7702_s1 + $0xe14] ss:$12 sps:$4 sm:$0xff]  }
 0x1c8   : > { %3956 = vmatpush1.bf16.msra.mxu0 %v5992_v31  ;;  %5294 = vmatprep.subr.bf16.mxu1 %v6000_v9  ;;  %v6022_v30 = vld [vmem:[%s7702_s1 + $0xe28] ss:$12 sps:$4 sm:$0xff]  }
 0x1c9   : > { %3957 = vmatprep.subr.bf16.mxu0 %v5999_v35  ;;  %3987 = vmatprep.mubr.bf16.mxu0 %v7503_v59 }
 0x1cb   : > { %5295 = vmatpush3.bf16.msra.mxu1 %v6001_v48 }
 0x1cc   : > { %3958 = vmatpush1.bf16.msra.mxu0 %v5997_v37  ;;  %5305 = vmatprep.subr.bf16.mxu1 %v6063_v42 }
 0x1cd   : > { %3959 = vmatprep.subr.bf16.mxu0 %v6007_v38 }
 0x1ce   : > { %4443 = vmatmul.mubr.bf16.vlgmr.msra.gmra.mrb[44].mxu1 %v7593_v39 }
 0x1cf   : > { %5306 = vmatpush3.bf16.msra.mxu1 %v6008_v41  ;;  %5309 = vmatprep.mubr.msk.bf16.mxu1 %vm6064_vm1, %v6063_v42 }
 0x1d0   : > { %3960 = vmatpush1.bf16.msra.mxu0 %v6005_v40  ;;  %5307 = vmatprep.subr.bf16.mxu1 %v6063_v42 }
 0x1d1   : > { %3961 = vmatprep.subr.bf16.mxu0 %v6011_v43 }
 0x1d3   : > { %5308 = vmatpush3.bf16.msra.mxu1 %v6012_v33 }
 0x1d4   : > { %3962 = vmatpush1.bf16.msra.mxu0 %v6009_v45 }
 0x1d5   : > { %3963 = vmatprep.subr.bf16.mxu0 %v6015_v46 }
 0x1d6   : > { %5310 = vmatmul.mubr.msk.bf16.vlgmr.msra.gmra.mrb[48].mxu1 %vm3564_vm0, %v6053_v49 }
 0x1d8   : > { %3964 = vmatpush1.bf16.msra.mxu0 %v6013_v23 }
 0x1d9   : > { %3965 = vmatprep.subr.bf16.mxu0 %v6018_v47 }
 0x1dc   : > { %3966 = vmatpush1.bf16.msra.mxu0 %v6016_v50 }
 0x1dd   : > { %3967 = vmatprep.subr.bf16.mxu0 %v6021_v52 }
 0x1e0   : > { %3968 = vmatpush1.bf16.msra.mxu0 %v6019_v53 }
 0x1e1   : > { %3969 = vmatprep.subr.bf16.mxu0 %v6024_v54  ;;  %v5164_v56 = vpop.f32.mrb[20].mxu1 }
 0x1e2   : > { %v5165_v57 = vpop.f32.mrb[21].mxu1 }
 0x1e3   : > { %v5166_v58 = vadd.f32 %v5165_v57, %v5164_v56  ;;  %v5167_v59 = vpop.f32.mrb[22].mxu1 }
 0x1e4   : > { %3970 = vmatpush1.bf16.msra.mxu0 %v6022_v30  ;;  %v5168_v62 = vpop.f32.mrb[23].mxu1 }
 0x1e5   : > { %3971 = vmatprep.subr.bf16.mxu0 %v6027_v55  ;;  %v4199_v63 = vadd.f32 %v5166_v58, %v4158_v28  ;;  %v5169_v1 = vadd.f32 %v5168_v62, %v5167_v59 }
 0x1e7   : > { %v4202_v2 = vadd.f32 %v5169_v1, %v4161_v51 }
 0x1e8   : > { %3972 = vmatpush1.bf16.msra.mxu0 %v6025_v60 }
 0x1e9   : > { %3973 = vmatprep.subr.bf16.mxu0 %v6030_v4 }
 0x1ec   : > { %3974 = vmatpush1.bf16.msra.mxu0 %v6028_v3 }
 0x1ed   : > { %3975 = vmatprep.subr.bf16.mxu0 %v6033_v5 }
 0x1f0   : > { %3976 = vmatpush1.bf16.msra.mxu0 %v6031_v7 }
 0x1f1   : > { %3977 = vmatprep.subr.bf16.mxu0 %v6036_v8 }
 0x1f4   : > { %3978 = vmatpush1.bf16.msra.mxu0 %v6034_v10 }
 0x1f5   : > { %3979 = vmatprep.subr.bf16.mxu0 %v6039_v16 }
 0x1f8   : > { %3980 = vmatpush1.bf16.msra.mxu0 %v6037_v11 }
 0x1f9   : > { %3981 = vmatprep.subr.bf16.mxu0 %v6042_v26 }
 0x1fc   : > { %3982 = vmatpush1.bf16.msra.mxu0 %v6040_v13 }
 0x1fd   : > { %3983 = vmatprep.subr.bf16.mxu0 %v6045_v17 }
 0x200   : > { %3984 = vmatpush1.bf16.msra.mxu0 %v6043_v19 }
 0x201   : > { %3985 = vmatprep.subr.bf16.mxu0 %v6048_v20  ;;  %v5186_v22 = vpop.f32.mrb[24].mxu1 }
 0x202   : > { %v5187_v24 = vpop.f32.mrb[25].mxu1 }
 0x203   : > { %v5188_v25 = vadd.f32 %v5187_v24, %v5186_v22  ;;  %v5189_v27 = vpop.f32.mrb[26].mxu1 }
 0x204   : > { %3986 = vmatpush1.bf16.msra.mxu0 %v6046_v21  ;;  %v5190_v29 = vpop.f32.mrb[27].mxu1 }
 0x205   : > { %v4240_v31 = vadd.f32 %v5188_v25, %v4199_v63  ;;  %v5191_v32 = vadd.f32 %v5190_v29, %v5189_v27 }
 0x207   : > { %3988 = vmatmul.mubr.bf16.vlgmr.msra.gmra.mrb[0].mxu0 %v7593_v39  ;;  %v4243_v44 = vadd.f32 %v5191_v32, %v4202_v2 }
 0x221   : > { %v5208_v35 = vpop.f32.mrb[28].mxu1 }
 0x222   : > { %v5209_v9 = vpop.f32.mrb[29].mxu1 }
 0x223   : > { %v5210_v28 = vadd.f32 %v5209_v9, %v5208_v35  ;;  %v5211_v36 = vpop.f32.mrb[30].mxu1 }
 0x224   : > { %v5212_v51 = vpop.f32.mrb[31].mxu1 }
 0x225   : > { %v4281_v37 = vadd.f32 %v5210_v28, %v4240_v31  ;;  %v5213_v48 = vadd.f32 %v5212_v51, %v5211_v36 }
 0x227   : > { %v4284_v38 = vadd.f32 %v5213_v48, %v4243_v44 }
 0x241   : > { %v5230_v40 = vpop.f32.mrb[32].mxu1 }
 0x242   : > { %v5231_v41 = vpop.f32.mrb[33].mxu1 }
 0x243   : > { %v5232_v42 = vadd.f32 %v5231_v41, %v5230_v40  ;;  %v5233_v43 = vpop.f32.mrb[34].mxu1 }
 0x244   : > { %v5234_v45 = vpop.f32.mrb[35].mxu1 }
 0x245   : > { %v4322_v33 = vadd.f32 %v5232_v42, %v4281_v37  ;;  %v5235_v46 = vadd.f32 %v5234_v45, %v5233_v43 }
 0x247   : > { %v4325_v23 = vadd.f32 %v5235_v46, %v4284_v38 }
 0x261   : > { %v5252_v47 = vpop.f32.mrb[36].mxu1 }
 0x262   : > { %v5253_v49 = vpop.f32.mrb[37].mxu1 }
 0x263   : > { %v5254_v39 = vadd.f32 %v5253_v49, %v5252_v47  ;;  %v5255_v50 = vpop.f32.mrb[38].mxu1 }
 0x264   : > { %v5256_v52 = vpop.f32.mrb[39].mxu1 }
 0x265   : > { %v4363_v53 = vadd.f32 %v5254_v39, %v4322_v33  ;;  %v5257_v54 = vadd.f32 %v5256_v52, %v5255_v50 }
 0x267   : > { %v4366_v30 = vadd.f32 %v5257_v54, %v4325_v23 }
 0x281   : > { %v5274_v55 = vpop.f32.mrb[40].mxu1 }
 0x282   : > { %v5275_v56 = vpop.f32.mrb[41].mxu1 }
 0x283   : > { %v5276_v57 = vadd.f32 %v5275_v56, %v5274_v55  ;;  %v5277_v58 = vpop.f32.mrb[42].mxu1 }
 0x284   : > { %v5278_v59 = vpop.f32.mrb[43].mxu1 }
 0x285   : > { %v4404_v60 = vadd.f32 %v5276_v57, %v4363_v53  ;;  %v5279_v62 = vadd.f32 %v5278_v59, %v5277_v58 }
 0x287   : > { %v4407_v4 = vadd.f32 %v5279_v62, %v4366_v30 }
 0x2a1   : > { %v5296_v63 = vpop.f32.mrb[44].mxu1 }
 0x2a2   : > { %v5297_v1 = vpop.f32.mrb[45].mxu1 }
 0x2a3   : > { %v5298_v2 = vadd.f32 %v5297_v1, %v5296_v63  ;;  %v5299_v3 = vpop.f32.mrb[46].mxu1 }
 0x2a4   : > { %v5300_v5 = vpop.f32.mrb[47].mxu1 }
 0x2a5   : > { %v5301_v7 = vadd.f32 %v5300_v5, %v5299_v3  ;;  %v4445_v8 = vadd.f32 %v5298_v2, %v4404_v60 }
 0x2a7   : > { %v4448_v10 = vadd.f32 %v5301_v7, %v4407_v4 }
 0x2a9   : > { %v4485_v16 = vpop.f32.mrb[48].mxu1 }
 0x2aa   : > { %v4486_v11 = vadd.f32 %v4485_v16, %v4445_v8  ;;  %v5311_v26 = vpop.f32.mrb[49].mxu1 }
 0x2ab   : > { %v4488_v13 = vpop.f32.mrb[50].mxu1 }
 0x2ac   : > { %v4494_v17 = vmax.f32 %v4486_v11, 0.0  ;;  %v4489_v19 = vadd.f32 %v4488_v13, %v4448_v10  ;;  %v5312_v20 = vpop.f32.mrb[51].mxu1 }
 0x2ae   : > { %4500 = vst [vmem:[%s177_s30 + $0x10] sm:$0xff] %v4494_v17  ;;  %v4497_v21 = vmax.f32 %v4489_v19, 0.0 }
 0x2b0   : > { %4503 = vst [vmem:[%s177_s30 + $0x28] sm:$0xff] %v4497_v21 }
 0x2da   : > { %v3989_v22 = vpop.f32.mrb[0].mxu0 }
 0x2db   : > { %v5314_v24 = vadd.f32 %v7215_v61, %v3989_v22  ;;  %v3991_v25 = vpop.f32.mrb[1].mxu0 }
 0x2dc   : > { %v5317_v27 = vadd.f32 %v7223_v0, %v3991_v25  ;;  %v3993_v29 = vpop.f32.mrb[2].mxu0 }
 0x2dd   : > { %v5315_v31 = vadd.f32 %v5314_v24, %v7250_v12  ;;  %v5320_v32 = vadd.f32 %v7228_v34, %v3993_v29  ;;  %v3995_v44 = vpop.f32.mrb[3].mxu0 }
 0x2de   : > { %v5318_v35 = vadd.f32 %v5317_v27, %v7258_v14  ;;  %v5323_v9 = vadd.f32 %v7233_v6, %v3995_v44 }
 0x2df   : > { %v4492_v28 = vmax.f32 %v5315_v31, 0.0  ;;  %v5321_v36 = vadd.f32 %v5320_v32, %v7260_v15 }
 0x2e0   : > { %v4493_v51 = vmax.f32 %v5318_v35, 0.0  ;;  %v5324_v37 = vadd.f32 %v5323_v9, %v7265_v18 }
 0x2e1   : > { %4498 = vst [vmem:[%s177_s30] sm:$0xff] %v4492_v28  ;;  %v4495_v61 = vmax.f32 %v5321_v36, 0.0 }
 0x2e2   : > { %4499 = vst [vmem:[%s177_s30 + $0x8] sm:$0xff] %v4493_v51  ;;  %v4496_v0 = vmax.f32 %v5324_v37, 0.0 }
 0x2e3   : > { %4501 = vst [vmem:[%s177_s30 + $0x18] sm:$0xff] %v4495_v61 }
 0x2e4   : > { %4502 = vst [vmem:[%s177_s30 + $0x20] sm:$0xff] %v4496_v0 }
 0x2e5 PF: > { %s13_s12 = sadd.s32 1, %s6060_s12  }
 0x2e6   : > { %p10_p4 = scmp.ge.s32.totalorder %s13_s12, 4  }
 0x2e8   :  { %12 = sbr.rel (!%p10_p4) target bundleno = 1 (0x1), region = 62 }

</bundles_post_ra>
